<compile_context>
chip_gen: v6e
topology: v6e:2x2x1
jax: 0.10.0
libtpu: 0.0.40
codegen_flags: <defaults>
</compile_context>

<pallas_src>
import functools

import jax
import jax.numpy as jnp
from jax import lax
from jax.experimental import pallas as pl
from jax.experimental.pallas import tpu as pltpu


# ----------------------- per-generation tuning knobs -----------------------

def _device_kind():
    try:
        return jax.devices()[0].device_kind.lower()
    except Exception:  # pragma: no cover - no backend available
        return ""


_KIND = _device_kind()
_IS_V7 = "v7" in _KIND
# bf16 elementwise path exists on v6e/v7x VPU; v5e (and older) have none.
_HAS_BF16_VPU = _IS_V7 or ("v6" in _KIND)
if _IS_V7:
    _VMEM_LIMIT = 48 * 1024 * 1024        # 64 MiB/TC on v7x -> leave headroom
elif ("v5" in _KIND) or ("v6" in _KIND):
    _VMEM_LIMIT = 100 * 1024 * 1024       # 128 MiB physical VMEM on v5e/v6e
else:
    _VMEM_LIMIT = 64 * 1024 * 1024
_DW_DTYPE = jnp.bfloat16 if _HAS_BF16_VPU else jnp.float32

_GELU_APPROX = True  # tanh GELU runs on the (idle) EUP; set False for exact erf


def _gelu(x):
    if _GELU_APPROX:
        # tanh approximation -> EUP slot instead of an erf VALU polynomial
        return 0.5 * x * (1.0 + jnp.tanh(0.7978845608028654
                                         * (x + 0.044715 * (x * x * x))))
    return 0.5 * x * (1.0 + lax.erf(x * 0.7071067811865476))


def _pick_tile(size, target, align):
    """Largest tile <= target that is a multiple of `align` and divides `size`,
    falling back to the full dimension (legal per the (8,128) rule)."""
    if size <= target:
        return size
    t = (target // align) * align
    while t >= align:
        if size % t == 0:
            return t
        t -= align
    return size


# ----------------------------- Pallas kernels ------------------------------

def _matmul_affine_kernel(x_ref, w_ref, b_ref, sc_ref, sh_ref, o_ref, acc_ref):
    """Tiled matmul + bias + GELU + BN affine.  Grid = (M, N, K) tiles; the K
    axis is the reduction (last, "arbitrary"); acc_ref is a resident f32
    accumulator."""
    k = pl.program_id(2)

    @pl.when(k == 0)
    def _():
        acc_ref[...] = jnp.zeros_like(acc_ref)

    acc_ref[...] += jnp.dot(x_ref[...], w_ref[...],
                            preferred_element_type=jnp.float32)

    @pl.when(k == pl.num_programs(2) - 1)
    def _():
        y = _gelu(acc_ref[...] + b_ref[...])
        o_ref[...] = (y * sc_ref[...] + sh_ref[...]).astype(o_ref.dtype)


def _block_kernel(K, H, W, pad, ws, pool,
                  x_ref, dww_ref, dwb_ref, sc1_ref, sh1_ref,
                  pww_ref, pwb_ref, sc2_ref, sh2_ref,
                  o_ref, xpad_ref, acc_ref):
    """One fused ConvMixer block:
         dw KxK conv + GELU + BN1 + residual  ->  1x1 conv + GELU + BN2
         (+ optional fused global average pool on the last block).
    Grid = (batch, channel_tiles); the channel axis is the pw contraction
    axis, accumulated in acc_ref (f32).  Default is one channel tile (nc=1)
    so the full pointwise weight stays VMEM-resident."""
    c = pl.program_id(1)
    dc = x_ref.shape[-1]
    dt = xpad_ref.dtype                       # depthwise compute dtype
    wcols = W + ws + pad

    # Zero ONLY the halo (pad rows + pad cols either side of the data).  The
    # interior is fully overwritten below, so the full-slab re-zero of the
    # previous version is gone.  Done unconditionally (not pl.when(first
    # step)) so it stays correct if the batch axis is split across megacore
    # TensorCores (each core owns its own scratch).
    if pad > 0:
        xpad_ref[0:pad, :, :] = jnp.zeros((pad, wcols, dc), dt)
        xpad_ref[pad + H:2 * pad + H, :, :] = jnp.zeros((pad, wcols, dc), dt)
        xpad_ref[pad:pad + H, ws - pad:ws, :] = jnp.zeros((H, pad, dc), dt)
        xpad_ref[pad:pad + H, ws + W:ws + W + pad, :] = jnp.zeros((H, pad, dc), dt)

    x = x_ref[0]                                              # (H, W, dc) bf16
    xpad_ref[pad:pad + H, ws:ws + W, :] = x.astype(dt)        # aligned store

    # Depthwise KxK 'same' conv:
    #   * one column-shifted slab read per kw (K shifted reads, not K^2)
    #   * kh taps are free dim-0 slices of that slab
    #   * tap multiplies in `dt` (packed bf16 on v6e/v7x), per-kw partial
    #     summed in `dt`, accumulated across kw in f32
    #   * single fused expression: no zeros-init / no per-tap VMEM round trip
    dw = None
    for kw in range(K):
        col = xpad_ref[:, ws - pad + kw: ws - pad + kw + W, :]  # (H+2p, W, dc)
        part = None
        for kh in range(K):
            t = col[kh:kh + H] * dww_ref[kh * K + kw, :]
            part = t if part is None else part + t
        part = part.astype(jnp.float32)
        dw = part if dw is None else dw + part

    # GELU + BN1 + residual (residual = this block's own input slab)
    y = _gelu(dw + dwb_ref[...]) * sc1_ref[...] + sh1_ref[...] \
        + x.astype(jnp.float32)

    # 1x1 pointwise conv: MXU matmul, accumulated over channel tiles.
    # (H,W,dc)->(H*W,dc) is layout-preserving when W % 8 == 0 (typical
    # ConvMixer feature maps are 16/32 wide).
    yb = y.reshape(H * W, dc).astype(jnp.bfloat16)

    @pl.when(c == 0)
    def _():
        acc_ref[...] = jnp.zeros_like(acc_ref)

    acc_ref[...] += jnp.dot(yb, pww_ref[...], preferred_element_type=jnp.float32)

    @pl.when(c == pl.num_programs(1) - 1)
    def _():
        z = _gelu(acc_ref[...] + pwb_ref[...]) * sc2_ref[...] + sh2_ref[...]
        if pool:
            # fused global average pool: emit (1,1,D) per image and skip the
            # final feature-map HBM writeback entirely.
            o_ref[...] = (jnp.mean(z, axis=0, keepdims=True)
                          .reshape(o_ref.shape).astype(o_ref.dtype))
        else:
            o_ref[...] = z.reshape(o_ref.shape).astype(o_ref.dtype)


def _head_kernel(x_ref, w_ref, b_ref, o_ref):
    # pooled features (B, D) -> linear head (lane-padded N)
    o_ref[...] = (jnp.dot(x_ref[...], w_ref[...],
                          preferred_element_type=jnp.float32) + b_ref[...])


# --------------------------- pallas_call wrappers ---------------------------

def _matmul_affine(x, w, b, sc, sh, *, out_dtype):
    M, K = x.shape
    N = w.shape[1]
    # Large tiles: the stem has a single shallow reduction step, so the cost
    # is dominated by per-grid-step overhead -> cut the step count.
    tm = _pick_tile(M, 1024, 8)
    tn = _pick_tile(N, 512, 128)
    tk = _pick_tile(K, 512, 128)
    grid = (M // tm, N // tn, K // tk)
    return pl.pallas_call(
        _matmul_affine_kernel,
        out_shape=jax.ShapeDtypeStruct((M, N), out_dtype),
        grid=grid,
        in_specs=[
            pl.BlockSpec((tm, tk), lambda i, j, k: (i, k)),
            pl.BlockSpec((tk, tn), lambda i, j, k: (k, j)),
            pl.BlockSpec((1, tn), lambda i, j, k: (0, j)),
            pl.BlockSpec((1, tn), lambda i, j, k: (0, j)),
            pl.BlockSpec((1, tn), lambda i, j, k: (0, j)),
        ],
        out_specs=pl.BlockSpec((tm, tn), lambda i, j, k: (i, j)),
        scratch_shapes=[pltpu.VMEM((tm, tn), jnp.float32)],
        compiler_params=pltpu.CompilerParams(
            dimension_semantics=("parallel", "parallel", "arbitrary"),
            vmem_limit_bytes=_VMEM_LIMIT),
    )(x.astype(jnp.bfloat16), w.astype(jnp.bfloat16), b, sc, sh)


def _fused_block(feat, dw_w, dw_b, sc1, sh1, pw_w, pw_b, sc2, sh2, *, K,
                 channel_tile=None, pool=False, dw_dtype=None):
    B, H, W, D = feat.shape
    assert K % 2 == 1, "padding='same' depthwise conv assumes odd kernel size"
    dw_dtype = _DW_DTYPE if dw_dtype is None else dw_dtype

    # Default: nc=1 -> the pointwise weight index_map is constant, so the
    # full (D, D) bf16 weight stays VMEM-resident across the batch grid.
    # channel_tile is kept only as a VMEM-pressure fallback (e.g. v7x, dim
    # 1536 with big feature maps).
    dc = D if channel_tile is None else channel_tile
    assert D % dc == 0 and (dc == D or dc % 128 == 0)
    nc = D // dc

    pad = (K - 1) // 2
    # 8/16-aligned left margin so the interior slab store is an aligned vst
    # (bf16 packs 2 rows/sublane -> align to 16 for the bf16 tap path).
    align = 8 if dw_dtype == jnp.float32 else 16
    ws = (((pad + align - 1) // align) * align) if pad > 0 else 0

    kern = functools.partial(_block_kernel, K, H, W, pad, ws, pool)

    if pool:
        out_shape = jax.ShapeDtypeStruct((B, 1, D), jnp.float32)
        out_spec = pl.BlockSpec((1, 1, D), lambda b, c: (b, 0, 0))
    else:
        out_shape = jax.ShapeDtypeStruct((B, H, W, D), feat.dtype)
        out_spec = pl.BlockSpec((1, H, W, D), lambda b, c: (b, 0, 0, 0))

    return pl.pallas_call(
        kern,
        out_shape=out_shape,
        grid=(B, nc),
        in_specs=[
            pl.BlockSpec((1, H, W, dc), lambda b, c: (b, 0, 0, c)),   # x
            pl.BlockSpec((K * K, dc), lambda b, c: (0, c)),           # dw weights
            pl.BlockSpec((1, dc), lambda b, c: (0, c)),               # dw bias
            pl.BlockSpec((1, dc), lambda b, c: (0, c)),               # bn1 scale
            pl.BlockSpec((1, dc), lambda b, c: (0, c)),               # bn1 shift
            pl.BlockSpec((dc, D), lambda b, c: (c, 0)),               # pw weights
            pl.BlockSpec((1, D), lambda b, c: (0, 0)),                # pw bias
            pl.BlockSpec((1, D), lambda b, c: (0, 0)),                # bn2 scale
            pl.BlockSpec((1, D), lambda b, c: (0, 0)),                # bn2 shift
        ],
        out_specs=out_spec,
        scratch_shapes=[
            pltpu.VMEM((H + 2 * pad, W + ws + pad, dc), dw_dtype),  # padded slab
            pltpu.VMEM((H * W, D), jnp.float32),                    # pw accumulator
        ],
        compiler_params=pltpu.CompilerParams(
            dimension_semantics=("parallel", "arbitrary"),
            vmem_limit_bytes=_VMEM_LIMIT),
    )(feat, dw_w.astype(dw_dtype), dw_b, sc1, sh1,
      pw_w.astype(jnp.bfloat16), pw_b, sc2, sh2)


def _head(x, w, b):
    B, D = x.shape
    N = w.shape[1]
    return pl.pallas_call(
        _head_kernel,
        out_shape=jax.ShapeDtypeStruct((B, N), jnp.float32),
        grid=(1,),
        in_specs=[
            pl.BlockSpec((B, D), lambda i: (0, 0)),
            pl.BlockSpec((D, N), lambda i: (0, 0)),
            pl.BlockSpec((1, N), lambda i: (0, 0)),
        ],
        out_specs=pl.BlockSpec((B, N), lambda i: (0, 0)),
        compiler_params=pltpu.CompilerParams(
            dimension_semantics=("arbitrary",),
            vmem_limit_bytes=_VMEM_LIMIT),
    )(x, w, b)


# ------------------------------- parameters --------------------------------

def _bn_affine(gamma, beta, mean, var, eps=1e-5):
    scale = gamma / jnp.sqrt(var + eps)
    shift = beta - mean * scale
    return scale[None, :], shift[None, :]


def init_params(key, *, dim, depth, kernel_size, patch_size, in_chans, num_classes):
    state = {"key": key}

    def nxt():
        state["key"], sub = jax.random.split(state["key"])
        return sub

    def bn():
        return dict(
            gamma=1.0 + 0.1 * jax.random.normal(nxt(), (dim,), jnp.float32),
            beta=0.1 * jax.random.normal(nxt(), (dim,), jnp.float32),
            mean=0.1 * jax.random.normal(nxt(), (dim,), jnp.float32),
            var=0.5 + jax.random.uniform(nxt(), (dim,), jnp.float32),
        )

    params = dict(
        stem_w=0.1 * jax.random.normal(nxt(), (dim, in_chans, patch_size, patch_size), jnp.float32),
        stem_b=0.1 * jax.random.normal(nxt(), (dim,), jnp.float32),
        stem_bn=bn(),
        blocks=[],
        head_w=0.1 * jax.random.normal(nxt(), (num_classes, dim), jnp.float32),
        head_b=0.1 * jax.random.normal(nxt(), (num_classes,), jnp.float32),
    )
    for _ in range(depth):
        params["blocks"].append(dict(
            dw_w=0.1 * jax.random.normal(nxt(), (dim, 1, kernel_size, kernel_size), jnp.float32),
            dw_b=0.1 * jax.random.normal(nxt(), (dim,), jnp.float32),
            bn1=bn(),
            pw_w=0.1 * jax.random.normal(nxt(), (dim, dim, 1, 1), jnp.float32),
            pw_b=0.1 * jax.random.normal(nxt(), (dim,), jnp.float32),
            bn2=bn(),
        ))
    return params


# ------------------------------ forward pass --------------------------------

def convmixer_forward(x, params, *, dim, depth, kernel_size, patch_size,
                      num_classes, channel_tile=None):
    # x: NCHW (PyTorch convention)
    B, C, H, W = x.shape
    p = patch_size
    Hp, Wp = H // p, W // p

    # --- stem: Conv2d(C, dim, p, stride=p) == matmul over flattened patches ---
    patches = (x.reshape(B, C, Hp, p, Wp, p)
                .transpose(0, 2, 4, 1, 3, 5)
                .reshape(B * Hp * Wp, C * p * p))
    stem_w = params["stem_w"].reshape(dim, C * p * p).T
    sc, sh = _bn_affine(**params["stem_bn"])
    feat = _matmul_affine(patches, stem_w, params["stem_b"][None, :], sc, sh,
                          out_dtype=jnp.bfloat16)
    feat = feat.reshape(B, Hp, Wp, dim)  # NHWC, bf16 between layers

    # --- ConvMixer blocks; global average pool fused into the last block ---
    pooled = None
    nblk = len(params["blocks"])
    for bi, blk in enumerate(params["blocks"]):
        dw_w = blk["dw_w"].reshape(dim, kernel_size * kernel_size).T  # [K*K, dim]
        sc1, sh1 = _bn_affine(**blk["bn1"])
        sc2, sh2 = _bn_affine(**blk["bn2"])
        pw_w = blk["pw_w"].reshape(dim, dim).T                        # [in, out]
        last = (bi == nblk - 1)
        out = _fused_block(feat, dw_w, blk["dw_b"][None, :], sc1, sh1,
                           pw_w, blk["pw_b"][None, :], sc2, sh2,
                           K=kernel_size, channel_tile=channel_tile, pool=last)
        if last:
            pooled = out[:, 0, :]          # (B, dim) f32, already averaged
        else:
            feat = out

    if pooled is None:
        # depth == 0 degenerate case: pool the stem output in plain JAX.
        pooled = feat.reshape(B, Hp * Wp, dim).astype(jnp.float32).mean(axis=1)

    # --- Linear head (num_classes lane-padded to a multiple of 128) ---
    ncls_pad = ((num_classes + 127) // 128) * 128
    head_w = jnp.pad(params["head_w"].T, ((0, 0), (0, ncls_pad - num_classes)))
    head_b = jnp.pad(params["head_b"], (0, ncls_pad - num_classes))[None, :]
    out = _head(pooled, head_w, head_b)
    return out[:, :num_classes]


if __name__ == "__main__":
    B, C, H, W = 2, 3, 16, 16
    dim, depth, ksize, psize, ncls = 256, 2, 3, 2, 16

    key = jax.random.PRNGKey(0)
    kx, kp = jax.random.split(key)
    x = jax.random.normal(kx, (B, C, H, W), jnp.float32)
    params = init_params(kp, dim=dim, depth=depth, kernel_size=ksize,
                         patch_size=psize, in_chans=C, num_classes=ncls)

    fwd = jax.jit(functools.partial(
        convmixer_forward, dim=dim, depth=depth, kernel_size=ksize,
        patch_size=psize, num_classes=ncls))
    out = fwd(x, params)
    jax.block_until_ready(out)
    assert out.shape == (B, ncls) and out.dtype == jnp.float32
    print("KERNEL_OK")
</pallas_src>

<mosaic_0001>
module attributes {stable_mosaic.version = 11 : i64} {
  func.func @_matmul_affine_kernel(%arg0: i32, %arg1: i32, %arg2: i32, %arg3: memref<128x12xbf16, #tpu.memory_space<vmem>>, %arg4: memref<12x256xbf16, #tpu.memory_space<vmem>>, %arg5: memref<1x256xf32, #tpu.memory_space<vmem>>, %arg6: memref<1x256xf32, #tpu.memory_space<vmem>>, %arg7: memref<1x256xf32, #tpu.memory_space<vmem>>, %arg8: memref<128x256xbf16, #tpu.memory_space<vmem>>, %arg9: memref<128x256xf32, #tpu.memory_space<vmem>>) attributes {dimension_semantics = [#tpu.dimension_semantics<parallel>, #tpu.dimension_semantics<parallel>, #tpu.dimension_semantics<arbitrary>], iteration_bounds = array<i64: 1, 1, 1>, scalar_prefetch = 0 : i64, scratch_operands = 1 : i64, tpu.core_type = #tpu.core_type<tc>, window_params = [{transform_indices = @transform_0, window_bounds = array<i64: 128, 12>}, {transform_indices = @transform_1, window_bounds = array<i64: 12, 256>}, {transform_indices = @transform_2, window_bounds = array<i64: 1, 256>}, {transform_indices = @transform_3, window_bounds = array<i64: 1, 256>}, {transform_indices = @transform_4, window_bounds = array<i64: 1, 256>}, {transform_indices = @transform_5, window_bounds = array<i64: 128, 256>}]} {
    %c0_i32 = arith.constant 0 : i32
    %0 = arith.cmpi eq, %arg2, %c0_i32 : i32
    %1 = arith.extui %0 : i1 to i32
    %c0_i32_0 = arith.constant 0 : i32
    %2 = arith.cmpi ne, %1, %c0_i32_0 : i32
    scf.if %2 {
      %cst_10 = arith.constant 0.000000e+00 : f32
      %12 = vector.broadcast %cst_10 : f32 to vector<128x256xf32>
      %c0_11 = arith.constant 0 : index
      %c0_12 = arith.constant 0 : index
      %13 = vector.load %arg9[%c0_11, %c0_12] : memref<128x256xf32, #tpu.memory_space<vmem>>, vector<128x256xf32>
      tpu.vector_store %arg9[%c0_11, %c0_12], %12 {strides = array<i32>} : memref<128x256xf32, #tpu.memory_space<vmem>>, vector<128x256xf32>,
    } else {
    }
    %c0 = arith.constant 0 : index
    %c0_1 = arith.constant 0 : index
    %3 = vector.load %arg9[%c0, %c0_1] : memref<128x256xf32, #tpu.memory_space<vmem>>, vector<128x256xf32>
    %c0_2 = arith.constant 0 : index
    %c0_3 = arith.constant 0 : index
    %4 = vector.load %arg3[%c0_2, %c0_3] : memref<128x12xbf16, #tpu.memory_space<vmem>>, vector<128x12xbf16>
    %c0_4 = arith.constant 0 : index
    %c0_5 = arith.constant 0 : index
    %5 = vector.load %arg4[%c0_4, %c0_5] : memref<12x256xbf16, #tpu.memory_space<vmem>>, vector<12x256xbf16>
    %cst = arith.constant dense<0.000000e+00> : vector<128x256xf32>
    %6 = tpu.matmul %4, %5, %cst {dimension_numbers = #tpu.dot_dimension_numbers<[1], [0], [0], [1], [0, 0, 1, 1], [], []>} : vector<128x12xbf16>, vector<12x256xbf16>, vector<128x256xf32> -> vector<128x256xf32>
    %7 = arith.addf %3, %6 : vector<128x256xf32>
    %c0_6 = arith.constant 0 : index
    %c0_7 = arith.constant 0 : index
    %8 = vector.load %arg9[%c0_6, %c0_7] : memref<128x256xf32, #tpu.memory_space<vmem>>, vector<128x256xf32>
    tpu.vector_store %arg9[%c0_6, %c0_7], %7 {strides = array<i32>} : memref<128x256xf32, #tpu.memory_space<vmem>>, vector<128x256xf32>,
    %c0_i32_8 = arith.constant 0 : i32
    %9 = arith.cmpi eq, %arg2, %c0_i32_8 : i32
    %10 = arith.extui %9 : i1 to i32
    %c0_i32_9 = arith.constant 0 : i32
    %11 = arith.cmpi ne, %10, %c0_i32_9 : i32
    scf.if %11 {
      %c0_10 = arith.constant 0 : index
      %c0_11 = arith.constant 0 : index
      %12 = vector.load %arg9[%c0_10, %c0_11] : memref<128x256xf32, #tpu.memory_space<vmem>>, vector<128x256xf32>
      %c0_12 = arith.constant 0 : index
      %c0_13 = arith.constant 0 : index
      %13 = vector.load %arg5[%c0_12, %c0_13] : memref<1x256xf32, #tpu.memory_space<vmem>>, vector<1x256xf32>
      %14 = vector.broadcast %13 : vector<1x256xf32> to vector<128x256xf32>
      %15 = arith.addf %12, %14 : vector<128x256xf32>
      %cst_14 = arith.constant 5.000000e-01 : f32
      %16 = vector.broadcast %cst_14 : f32 to vector<128x256xf32>
      %17 = arith.mulf %16, %15 : vector<128x256xf32>
      %18 = arith.mulf %15, %15 : vector<128x256xf32>
      %19 = arith.mulf %18, %15 : vector<128x256xf32>
      %cst_15 = arith.constant 4.471500e-02 : f32
      %20 = vector.broadcast %cst_15 : f32 to vector<128x256xf32>
      %21 = arith.mulf %20, %19 : vector<128x256xf32>
      %22 = arith.addf %15, %21 : vector<128x256xf32>
      %cst_16 = arith.constant 0.797884583 : f32
      %23 = vector.broadcast %cst_16 : f32 to vector<128x256xf32>
      %24 = arith.mulf %23, %22 : vector<128x256xf32>
      %25 = math.tanh %24 : vector<128x256xf32>
      %cst_17 = arith.constant 1.000000e+00 : f32
      %26 = vector.broadcast %cst_17 : f32 to vector<128x256xf32>
      %27 = arith.addf %26, %25 : vector<128x256xf32>
      %28 = arith.mulf %17, %27 : vector<128x256xf32>
      %c0_18 = arith.constant 0 : index
      %c0_19 = arith.constant 0 : index
      %29 = vector.load %arg6[%c0_18, %c0_19] : memref<1x256xf32, #tpu.memory_space<vmem>>, vector<1x256xf32>
      %30 = vector.broadcast %29 : vector<1x256xf32> to vector<128x256xf32>
      %31 = arith.mulf %28, %30 : vector<128x256xf32>
      %c0_20 = arith.constant 0 : index
      %c0_21 = arith.constant 0 : index
      %32 = vector.load %arg7[%c0_20, %c0_21] : memref<1x256xf32, #tpu.memory_space<vmem>>, vector<1x256xf32>
      %33 = vector.broadcast %32 : vector<1x256xf32> to vector<128x256xf32>
      %34 = arith.addf %31, %33 : vector<128x256xf32>
      %35 = arith.truncf %34 : vector<128x256xf32> to vector<128x256xbf16>
      %c0_22 = arith.constant 0 : index
      %c0_23 = arith.constant 0 : index
      %36 = vector.load %arg8[%c0_22, %c0_23] : memref<128x256xbf16, #tpu.memory_space<vmem>>, vector<128x256xbf16>
      tpu.vector_store %arg8[%c0_22, %c0_23], %35 {strides = array<i32>} : memref<128x256xbf16, #tpu.memory_space<vmem>>, vector<128x256xbf16>,
    } else {
    }
    return
  }
  func.func @transform_0(%arg0: i32, %arg1: i32, %arg2: i32) -> (i32, i32) {
    %c0_i32 = arith.constant 0 : i32
    return %arg0, %arg2 : i32, i32
  }
  func.func @transform_1(%arg0: i32, %arg1: i32, %arg2: i32) -> (i32, i32) {
    %c0_i32 = arith.constant 0 : i32
    return %arg2, %arg1 : i32, i32
  }
  func.func @transform_2(%arg0: i32, %arg1: i32, %arg2: i32) -> (i32, i32) {
    %c0_i32 = arith.constant 0 : i32
    %c0_i32_0 = arith.constant 0 : i32
    return %c0_i32, %arg1 : i32, i32
  }
  func.func @transform_3(%arg0: i32, %arg1: i32, %arg2: i32) -> (i32, i32) {
    %c0_i32 = arith.constant 0 : i32
    %c0_i32_0 = arith.constant 0 : i32
    return %c0_i32, %arg1 : i32, i32
  }
  func.func @transform_4(%arg0: i32, %arg1: i32, %arg2: i32) -> (i32, i32) {
    %c0_i32 = arith.constant 0 : i32
    %c0_i32_0 = arith.constant 0 : i32
    return %c0_i32, %arg1 : i32, i32
  }
  func.func @transform_5(%arg0: i32, %arg1: i32, %arg2: i32) -> (i32, i32) {
    %c0_i32 = arith.constant 0 : i32
    return %arg0, %arg1 : i32, i32
  }
}

module attributes {stable_mosaic.version = 11 : i64} {
  func.func @_block_kernel(%arg0: i32, %arg1: i32, %arg2: memref<1x8x8x256xbf16, #tpu.memory_space<vmem>>, %arg3: memref<9x256xf32, #tpu.memory_space<vmem>>, %arg4: memref<1x256xf32, #tpu.memory_space<vmem>>, %arg5: memref<1x256xf32, #tpu.memory_space<vmem>>, %arg6: memref<1x256xf32, #tpu.memory_space<vmem>>, %arg7: memref<256x256xbf16, #tpu.memory_space<vmem>>, %arg8: memref<1x256xf32, #tpu.memory_space<vmem>>, %arg9: memref<1x256xf32, #tpu.memory_space<vmem>>, %arg10: memref<1x256xf32, #tpu.memory_space<vmem>>, %arg11: memref<1x1x256xf32, #tpu.memory_space<vmem>>, %arg12: memref<10x17x256xf32, #tpu.memory_space<vmem>>, %arg13: memref<64x256xf32, #tpu.memory_space<vmem>>) attributes {dimension_semantics = [#tpu.dimension_semantics<parallel>, #tpu.dimension_semantics<arbitrary>], iteration_bounds = array<i64: 2, 1>, scalar_prefetch = 0 : i64, scratch_operands = 2 : i64, tpu.core_type = #tpu.core_type<tc>, window_params = [{transform_indices = @transform_0, window_bounds = array<i64: 1, 8, 8, 256>}, {transform_indices = @transform_1, window_bounds = array<i64: 9, 256>}, {transform_indices = @transform_2, window_bounds = array<i64: 1, 256>}, {transform_indices = @transform_3, window_bounds = array<i64: 1, 256>}, {transform_indices = @transform_4, window_bounds = array<i64: 1, 256>}, {transform_indices = @transform_5, window_bounds = array<i64: 256, 256>}, {pipeline_mode = #tpu.pipeline_mode<synchronous>, transform_indices = @transform_6, window_bounds = array<i64: 1, 256>}, {pipeline_mode = #tpu.pipeline_mode<synchronous>, transform_indices = @transform_7, window_bounds = array<i64: 1, 256>}, {pipeline_mode = #tpu.pipeline_mode<synchronous>, transform_indices = @transform_8, window_bounds = array<i64: 1, 256>}, {transform_indices = @transform_9, window_bounds = array<i64: 1, 1, 256>}]} {
    %cst = arith.constant 0.000000e+00 : f32
    %0 = vector.broadcast %cst : f32 to vector<1x17x256xf32>
    %c0 = arith.constant 0 : index
    %c0_0 = arith.constant 0 : index
    %c0_1 = arith.constant 0 : index
    %1 = vector.load %arg12[%c0, %c0_0, %c0_1] : memref<10x17x256xf32, #tpu.memory_space<vmem>>, vector<1x17x256xf32>
    tpu.vector_store %arg12[%c0, %c0_0, %c0_1], %0 {strides = array<i32>} : memref<10x17x256xf32, #tpu.memory_space<vmem>>, vector<1x17x256xf32>,
    %cst_2 = arith.constant 0.000000e+00 : f32
    %2 = vector.broadcast %cst_2 : f32 to vector<1x17x256xf32>
    %c9 = arith.constant 9 : index
    %c0_3 = arith.constant 0 : index
    %c0_4 = arith.constant 0 : index
    %3 = vector.load %arg12[%c9, %c0_3, %c0_4] : memref<10x17x256xf32, #tpu.memory_space<vmem>>, vector<1x17x256xf32>
    tpu.vector_store %arg12[%c9, %c0_3, %c0_4], %2 {strides = array<i32>} : memref<10x17x256xf32, #tpu.memory_space<vmem>>, vector<1x17x256xf32>,
    %cst_5 = arith.constant 0.000000e+00 : f32
    %4 = vector.broadcast %cst_5 : f32 to vector<8x1x256xf32>
    %c1 = arith.constant 1 : index
    %c7 = arith.constant 7 : index
    %c0_6 = arith.constant 0 : index
    %5 = vector.load %arg12[%c1, %c7, %c0_6] : memref<10x17x256xf32, #tpu.memory_space<vmem>>, vector<8x1x256xf32>
    tpu.vector_store %arg12[%c1, %c7, %c0_6], %4 {strides = array<i32>} : memref<10x17x256xf32, #tpu.memory_space<vmem>>, vector<8x1x256xf32>,
    %cst_7 = arith.constant 0.000000e+00 : f32
    %6 = vector.broadcast %cst_7 : f32 to vector<8x1x256xf32>
    %c1_8 = arith.constant 1 : index
    %c16 = arith.constant 16 : index
    %c0_9 = arith.constant 0 : index
    %7 = vector.load %arg12[%c1_8, %c16, %c0_9] : memref<10x17x256xf32, #tpu.memory_space<vmem>>, vector<8x1x256xf32>
    tpu.vector_store %arg12[%c1_8, %c16, %c0_9], %6 {strides = array<i32>} : memref<10x17x256xf32, #tpu.memory_space<vmem>>, vector<8x1x256xf32>,
    %c0_10 = arith.constant 0 : index
    %c0_11 = arith.constant 0 : index
    %c0_12 = arith.constant 0 : index
    %c0_13 = arith.constant 0 : index
    %8 = vector.load %arg2[%c0_10, %c0_11, %c0_12, %c0_13] : memref<1x8x8x256xbf16, #tpu.memory_space<vmem>>, vector<1x8x8x256xbf16>
    %9 = vector.shape_cast %8 : vector<1x8x8x256xbf16> to vector<8x8x256xbf16>
    %10 = arith.extf %9 : vector<8x8x256xbf16> to vector<8x8x256xf32>
    %c1_14 = arith.constant 1 : index
    %c8 = arith.constant 8 : index
    %c0_15 = arith.constant 0 : index
    %11 = vector.load %arg12[%c1_14, %c8, %c0_15] : memref<10x17x256xf32, #tpu.memory_space<vmem>>, vector<8x8x256xf32>
    tpu.vector_store %arg12[%c1_14, %c8, %c0_15], %10 {strides = array<i32>} : memref<10x17x256xf32, #tpu.memory_space<vmem>>, vector<8x8x256xf32>,
    %c0_16 = arith.constant 0 : index
    %c7_17 = arith.constant 7 : index
    %c0_18 = arith.constant 0 : index
    %12 = vector.load %arg12[%c0_16, %c7_17, %c0_18] : memref<10x17x256xf32, #tpu.memory_space<vmem>>, vector<10x8x256xf32>
    %13 = vector.extract_strided_slice %12 {offsets = [0, 0, 0], sizes = [8, 8, 256], strides = [1, 1, 1]} : vector<10x8x256xf32> to vector<8x8x256xf32>
    %c0_19 = arith.constant 0 : index
    %c0_20 = arith.constant 0 : index
    %14 = vector.load %arg3[%c0_19, %c0_20] : memref<9x256xf32, #tpu.memory_space<vmem>>, vector<1x256xf32>
    %15 = vector.shape_cast %14 : vector<1x256xf32> to vector<256xf32>
    %16 = vector.shape_cast %15 : vector<256xf32> to vector<1x1x256xf32>
    %17 = vector.broadcast %16 : vector<1x1x256xf32> to vector<8x8x256xf32>
    %18 = arith.mulf %13, %17 : vector<8x8x256xf32>
    %19 = vector.extract_strided_slice %12 {offsets = [1, 0, 0], sizes = [8, 8, 256], strides = [1, 1, 1]} : vector<10x8x256xf32> to vector<8x8x256xf32>
    %c3 = arith.constant 3 : index
    %c0_21 = arith.constant 0 : index
    %20 = vector.load %arg3[%c3, %c0_21] : memref<9x256xf32, #tpu.memory_space<vmem>>, vector<1x256xf32>
    %21 = vector.shape_cast %20 : vector<1x256xf32> to vector<256xf32>
    %22 = vector.shape_cast %21 : vector<256xf32> to vector<1x1x256xf32>
    %23 = vector.broadcast %22 : vector<1x1x256xf32> to vector<8x8x256xf32>
    %24 = arith.mulf %19, %23 : vector<8x8x256xf32>
    %25 = arith.addf %18, %24 : vector<8x8x256xf32>
    %26 = vector.extract_strided_slice %12 {offsets = [2, 0, 0], sizes = [8, 8, 256], strides = [1, 1, 1]} : vector<10x8x256xf32> to vector<8x8x256xf32>
    %c6 = arith.constant 6 : index
    %c0_22 = arith.constant 0 : index
    %27 = vector.load %arg3[%c6, %c0_22] : memref<9x256xf32, #tpu.memory_space<vmem>>, vector<1x256xf32>
    %28 = vector.shape_cast %27 : vector<1x256xf32> to vector<256xf32>
    %29 = vector.shape_cast %28 : vector<256xf32> to vector<1x1x256xf32>
    %30 = vector.broadcast %29 : vector<1x1x256xf32> to vector<8x8x256xf32>
    %31 = arith.mulf %26, %30 : vector<8x8x256xf32>
    %32 = arith.addf %25, %31 : vector<8x8x256xf32>
    %c0_23 = arith.constant 0 : index
    %c8_24 = arith.constant 8 : index
    %c0_25 = arith.constant 0 : index
    %33 = vector.load %arg12[%c0_23, %c8_24, %c0_25] : memref<10x17x256xf32, #tpu.memory_space<vmem>>, vector<10x8x256xf32>
    %34 = vector.extract_strided_slice %33 {offsets = [0, 0, 0], sizes = [8, 8, 256], strides = [1, 1, 1]} : vector<10x8x256xf32> to vector<8x8x256xf32>
    %c1_26 = arith.constant 1 : index
    %c0_27 = arith.constant 0 : index
    %35 = vector.load %arg3[%c1_26, %c0_27] : memref<9x256xf32, #tpu.memory_space<vmem>>, vector<1x256xf32>
    %36 = vector.shape_cast %35 : vector<1x256xf32> to vector<256xf32>
    %37 = vector.shape_cast %36 : vector<256xf32> to vector<1x1x256xf32>
    %38 = vector.broadcast %37 : vector<1x1x256xf32> to vector<8x8x256xf32>
    %39 = arith.mulf %34, %38 : vector<8x8x256xf32>
    %40 = vector.extract_strided_slice %33 {offsets = [1, 0, 0], sizes = [8, 8, 256], strides = [1, 1, 1]} : vector<10x8x256xf32> to vector<8x8x256xf32>
    %c4 = arith.constant 4 : index
    %c0_28 = arith.constant 0 : index
    %41 = vector.load %arg3[%c4, %c0_28] : memref<9x256xf32, #tpu.memory_space<vmem>>, vector<1x256xf32>
    %42 = vector.shape_cast %41 : vector<1x256xf32> to vector<256xf32>
    %43 = vector.shape_cast %42 : vector<256xf32> to vector<1x1x256xf32>
    %44 = vector.broadcast %43 : vector<1x1x256xf32> to vector<8x8x256xf32>
    %45 = arith.mulf %40, %44 : vector<8x8x256xf32>
    %46 = arith.addf %39, %45 : vector<8x8x256xf32>
    %47 = vector.extract_strided_slice %33 {offsets = [2, 0, 0], sizes = [8, 8, 256], strides = [1, 1, 1]} : vector<10x8x256xf32> to vector<8x8x256xf32>
    %c7_29 = arith.constant 7 : index
    %c0_30 = arith.constant 0 : index
    %48 = vector.load %arg3[%c7_29, %c0_30] : memref<9x256xf32, #tpu.memory_space<vmem>>, vector<1x256xf32>
    %49 = vector.shape_cast %48 : vector<1x256xf32> to vector<256xf32>
    %50 = vector.shape_cast %49 : vector<256xf32> to vector<1x1x256xf32>
    %51 = vector.broadcast %50 : vector<1x1x256xf32> to vector<8x8x256xf32>
    %52 = arith.mulf %47, %51 : vector<8x8x256xf32>
    %53 = arith.addf %46, %52 : vector<8x8x256xf32>
    %54 = arith.addf %32, %53 : vector<8x8x256xf32>
    %c0_31 = arith.constant 0 : index
    %c9_32 = arith.constant 9 : index
    %c0_33 = arith.constant 0 : index
    %55 = vector.load %arg12[%c0_31, %c9_32, %c0_33] : memref<10x17x256xf32, #tpu.memory_space<vmem>>, vector<10x8x256xf32>
    %56 = vector.extract_strided_slice %55 {offsets = [0, 0, 0], sizes = [8, 8, 256], strides = [1, 1, 1]} : vector<10x8x256xf32> to vector<8x8x256xf32>
    %c2 = arith.constant 2 : index
    %c0_34 = arith.constant 0 : index
    %57 = vector.load %arg3[%c2, %c0_34] : memref<9x256xf32, #tpu.memory_space<vmem>>, vector<1x256xf32>
    %58 = vector.shape_cast %57 : vector<1x256xf32> to vector<256xf32>
    %59 = vector.shape_cast %58 : vector<256xf32> to vector<1x1x256xf32>
    %60 = vector.broadcast %59 : vector<1x1x256xf32> to vector<8x8x256xf32>
    %61 = arith.mulf %56, %60 : vector<8x8x256xf32>
    %62 = vector.extract_strided_slice %55 {offsets = [1, 0, 0], sizes = [8, 8, 256], strides = [1, 1, 1]} : vector<10x8x256xf32> to vector<8x8x256xf32>
    %c5 = arith.constant 5 : index
    %c0_35 = arith.constant 0 : index
    %63 = vector.load %arg3[%c5, %c0_35] : memref<9x256xf32, #tpu.memory_space<vmem>>, vector<1x256xf32>
    %64 = vector.shape_cast %63 : vector<1x256xf32> to vector<256xf32>
    %65 = vector.shape_cast %64 : vector<256xf32> to vector<1x1x256xf32>
    %66 = vector.broadcast %65 : vector<1x1x256xf32> to vector<8x8x256xf32>
    %67 = arith.mulf %62, %66 : vector<8x8x256xf32>
    %68 = arith.addf %61, %67 : vector<8x8x256xf32>
    %69 = vector.extract_strided_slice %55 {offsets = [2, 0, 0], sizes = [8, 8, 256], strides = [1, 1, 1]} : vector<10x8x256xf32> to vector<8x8x256xf32>
    %c8_36 = arith.constant 8 : index
    %c0_37 = arith.constant 0 : index
    %70 = vector.load %arg3[%c8_36, %c0_37] : memref<9x256xf32, #tpu.memory_space<vmem>>, vector<1x256xf32>
    %71 = vector.shape_cast %70 : vector<1x256xf32> to vector<256xf32>
    %72 = vector.shape_cast %71 : vector<256xf32> to vector<1x1x256xf32>
    %73 = vector.broadcast %72 : vector<1x1x256xf32> to vector<8x8x256xf32>
    %74 = arith.mulf %69, %73 : vector<8x8x256xf32>
    %75 = arith.addf %68, %74 : vector<8x8x256xf32>
    %76 = arith.addf %54, %75 : vector<8x8x256xf32>
    %c0_38 = arith.constant 0 : index
    %c0_39 = arith.constant 0 : index
    %77 = vector.load %arg4[%c0_38, %c0_39] : memref<1x256xf32, #tpu.memory_space<vmem>>, vector<1x256xf32>
    %78 = vector.shape_cast %77 : vector<1x256xf32> to vector<1x1x256xf32>
    %79 = vector.broadcast %78 : vector<1x1x256xf32> to vector<8x8x256xf32>
    %80 = arith.addf %76, %79 : vector<8x8x256xf32>
    %cst_40 = arith.constant 5.000000e-01 : f32
    %81 = vector.broadcast %cst_40 : f32 to vector<8x8x256xf32>
    %82 = arith.mulf %81, %80 : vector<8x8x256xf32>
    %83 = arith.mulf %80, %80 : vector<8x8x256xf32>
    %84 = arith.mulf %83, %80 : vector<8x8x256xf32>
    %cst_41 = arith.constant 4.471500e-02 : f32
    %85 = vector.broadcast %cst_41 : f32 to vector<8x8x256xf32>
    %86 = arith.mulf %85, %84 : vector<8x8x256xf32>
    %87 = arith.addf %80, %86 : vector<8x8x256xf32>
    %cst_42 = arith.constant 0.797884583 : f32
    %88 = vector.broadcast %cst_42 : f32 to vector<8x8x256xf32>
    %89 = arith.mulf %88, %87 : vector<8x8x256xf32>
    %90 = math.tanh %89 : vector<8x8x256xf32>
    %cst_43 = arith.constant 1.000000e+00 : f32
    %91 = vector.broadcast %cst_43 : f32 to vector<8x8x256xf32>
    %92 = arith.addf %91, %90 : vector<8x8x256xf32>
    %93 = arith.mulf %82, %92 : vector<8x8x256xf32>
    %c0_44 = arith.constant 0 : index
    %c0_45 = arith.constant 0 : index
    %94 = vector.load %arg5[%c0_44, %c0_45] : memref<1x256xf32, #tpu.memory_space<vmem>>, vector<1x256xf32>
    %95 = vector.shape_cast %94 : vector<1x256xf32> to vector<1x1x256xf32>
    %96 = vector.broadcast %95 : vector<1x1x256xf32> to vector<8x8x256xf32>
    %97 = arith.mulf %93, %96 : vector<8x8x256xf32>
    %c0_46 = arith.constant 0 : index
    %c0_47 = arith.constant 0 : index
    %98 = vector.load %arg6[%c0_46, %c0_47] : memref<1x256xf32, #tpu.memory_space<vmem>>, vector<1x256xf32>
    %99 = vector.shape_cast %98 : vector<1x256xf32> to vector<1x1x256xf32>
    %100 = vector.broadcast %99 : vector<1x1x256xf32> to vector<8x8x256xf32>
    %101 = arith.addf %97, %100 : vector<8x8x256xf32>
    %102 = arith.extf %9 : vector<8x8x256xbf16> to vector<8x8x256xf32>
    %103 = arith.addf %101, %102 : vector<8x8x256xf32>
    %104 = vector.shape_cast %103 : vector<8x8x256xf32> to vector<64x256xf32>
    %105 = arith.truncf %104 : vector<64x256xf32> to vector<64x256xbf16>
    %c0_i32 = arith.constant 0 : i32
    %106 = arith.cmpi eq, %arg1, %c0_i32 : i32
    %107 = arith.extui %106 : i1 to i32
    %c0_i32_48 = arith.constant 0 : i32
    %108 = arith.cmpi ne, %107, %c0_i32_48 : i32
    scf.if %108 {
      %cst_58 = arith.constant 0.000000e+00 : f32
      %117 = vector.broadcast %cst_58 : f32 to vector<64x256xf32>
      %c0_59 = arith.constant 0 : index
      %c0_60 = arith.constant 0 : index
      %118 = vector.load %arg13[%c0_59, %c0_60] : memref<64x256xf32, #tpu.memory_space<vmem>>, vector<64x256xf32>
      tpu.vector_store %arg13[%c0_59, %c0_60], %117 {strides = array<i32>} : memref<64x256xf32, #tpu.memory_space<vmem>>, vector<64x256xf32>,
    } else {
    }
    %c0_49 = arith.constant 0 : index
    %c0_50 = arith.constant 0 : index
    %109 = vector.load %arg13[%c0_49, %c0_50] : memref<64x256xf32, #tpu.memory_space<vmem>>, vector<64x256xf32>
    %c0_51 = arith.constant 0 : index
    %c0_52 = arith.constant 0 : index
    %110 = vector.load %arg7[%c0_51, %c0_52] : memref<256x256xbf16, #tpu.memory_space<vmem>>, vector<256x256xbf16>
    %cst_53 = arith.constant dense<0.000000e+00> : vector<64x256xf32>
    %111 = tpu.matmul %105, %110, %cst_53 {dimension_numbers = #tpu.dot_dimension_numbers<[1], [0], [0], [1], [0, 0, 1, 1], [], []>} : vector<64x256xbf16>, vector<256x256xbf16>, vector<64x256xf32> -> vector<64x256xf32>
    %112 = arith.addf %109, %111 : vector<64x256xf32>
    %c0_54 = arith.constant 0 : index
    %c0_55 = arith.constant 0 : index
    %113 = vector.load %arg13[%c0_54, %c0_55] : memref<64x256xf32, #tpu.memory_space<vmem>>, vector<64x256xf32>
    tpu.vector_store %arg13[%c0_54, %c0_55], %112 {strides = array<i32>} : memref<64x256xf32, #tpu.memory_space<vmem>>, vector<64x256xf32>,
    %c0_i32_56 = arith.constant 0 : i32
    %114 = arith.cmpi eq, %arg1, %c0_i32_56 : i32
    %115 = arith.extui %114 : i1 to i32
    %c0_i32_57 = arith.constant 0 : i32
    %116 = arith.cmpi ne, %115, %c0_i32_57 : i32
    scf.if %116 {
      %c0_58 = arith.constant 0 : index
      %c0_59 = arith.constant 0 : index
      %117 = vector.load %arg13[%c0_58, %c0_59] : memref<64x256xf32, #tpu.memory_space<vmem>>, vector<64x256xf32>
      %c0_60 = arith.constant 0 : index
      %c0_61 = arith.constant 0 : index
      %118 = vector.load %arg8[%c0_60, %c0_61] : memref<1x256xf32, #tpu.memory_space<vmem>>, vector<1x256xf32>
      %119 = vector.broadcast %118 : vector<1x256xf32> to vector<64x256xf32>
      %120 = arith.addf %117, %119 : vector<64x256xf32>
      %cst_62 = arith.constant 5.000000e-01 : f32
      %121 = vector.broadcast %cst_62 : f32 to vector<64x256xf32>
      %122 = arith.mulf %121, %120 : vector<64x256xf32>
      %123 = arith.mulf %120, %120 : vector<64x256xf32>
      %124 = arith.mulf %123, %120 : vector<64x256xf32>
      %cst_63 = arith.constant 4.471500e-02 : f32
      %125 = vector.broadcast %cst_63 : f32 to vector<64x256xf32>
      %126 = arith.mulf %125, %124 : vector<64x256xf32>
      %127 = arith.addf %120, %126 : vector<64x256xf32>
      %cst_64 = arith.constant 0.797884583 : f32
      %128 = vector.broadcast %cst_64 : f32 to vector<64x256xf32>
      %129 = arith.mulf %128, %127 : vector<64x256xf32>
      %130 = math.tanh %129 : vector<64x256xf32>
      %cst_65 = arith.constant 1.000000e+00 : f32
      %131 = vector.broadcast %cst_65 : f32 to vector<64x256xf32>
      %132 = arith.addf %131, %130 : vector<64x256xf32>
      %133 = arith.mulf %122, %132 : vector<64x256xf32>
      %c0_66 = arith.constant 0 : index
      %c0_67 = arith.constant 0 : index
      %134 = vector.load %arg9[%c0_66, %c0_67] : memref<1x256xf32, #tpu.memory_space<vmem>>, vector<1x256xf32>
      %135 = vector.broadcast %134 : vector<1x256xf32> to vector<64x256xf32>
      %136 = arith.mulf %133, %135 : vector<64x256xf32>
      %c0_68 = arith.constant 0 : index
      %c0_69 = arith.constant 0 : index
      %137 = vector.load %arg10[%c0_68, %c0_69] : memref<1x256xf32, #tpu.memory_space<vmem>>, vector<1x256xf32>
      %138 = vector.broadcast %137 : vector<1x256xf32> to vector<64x256xf32>
      %139 = arith.addf %136, %138 : vector<64x256xf32>
      %cst_70 = arith.constant dense<0.000000e+00> : vector<256xf32>
      %140 = vector.multi_reduction <add>, %139, %cst_70 [0] : vector<64x256xf32> to vector<256xf32>
      %141 = vector.shape_cast %140 : vector<256xf32> to vector<1x256xf32>
      %cst_71 = arith.constant 6.400000e+01 : f32
      %142 = vector.broadcast %cst_71 : f32 to vector<1x256xf32>
      %143 = arith.divf %141, %142 : vector<1x256xf32>
      %144 = vector.shape_cast %143 : vector<1x256xf32> to vector<1x1x256xf32>
      %c0_72 = arith.constant 0 : index
      %c0_73 = arith.constant 0 : index
      %c0_74 = arith.constant 0 : index
      %145 = vector.load %arg11[%c0_72, %c0_73, %c0_74] : memref<1x1x256xf32, #tpu.memory_space<vmem>>, vector<1x1x256xf32>
      tpu.vector_store %arg11[%c0_72, %c0_73, %c0_74], %144 {strides = array<i32>} : memref<1x1x256xf32, #tpu.memory_space<vmem>>, vector<1x1x256xf32>,
    } else {
    }
    return
  }
  func.func @transform_0(%arg0: i32, %arg1: i32) -> (i32, i32, i32, i32) {
    %c0_i32 = arith.constant 0 : i32
    %c0_i32_0 = arith.constant 0 : i32
    %c0_i32_1 = arith.constant 0 : i32
    return %arg0, %c0_i32, %c0_i32_0, %arg1 : i32, i32, i32, i32
  }
  func.func @transform_1(%arg0: i32, %arg1: i32) -> (i32, i32) {
    %c0_i32 = arith.constant 0 : i32
    %c0_i32_0 = arith.constant 0 : i32
    return %c0_i32, %arg1 : i32, i32
  }
  func.func @transform_2(%arg0: i32, %arg1: i32) -> (i32, i32) {
    %c0_i32 = arith.constant 0 : i32
    %c0_i32_0 = arith.constant 0 : i32
    return %c0_i32, %arg1 : i32, i32
  }
  func.func @transform_3(%arg0: i32, %arg1: i32) -> (i32, i32) {
    %c0_i32 = arith.constant 0 : i32
    %c0_i32_0 = arith.constant 0 : i32
    return %c0_i32, %arg1 : i32, i32
  }
  func.func @transform_4(%arg0: i32, %arg1: i32) -> (i32, i32) {
    %c0_i32 = arith.constant 0 : i32
    %c0_i32_0 = arith.constant 0 : i32
    return %c0_i32, %arg1 : i32, i32
  }
  func.func @transform_5(%arg0: i32, %arg1: i32) -> (i32, i32) {
    %c0_i32 = arith.constant 0 : i32
    %c0_i32_0 = arith.constant 0 : i32
    return %arg1, %c0_i32 : i32, i32
  }
  func.func @transform_6(%arg0: i32, %arg1: i32) -> (i32, i32) {
    %c0_i32 = arith.constant 0 : i32
    %c0_i32_0 = arith.constant 0 : i32
    %c0_i32_1 = arith.constant 0 : i32
    return %c0_i32, %c0_i32_0 : i32, i32
  }
  func.func @transform_7(%arg0: i32, %arg1: i32) -> (i32, i32) {
    %c0_i32 = arith.constant 0 : i32
    %c0_i32_0 = arith.constant 0 : i32
    %c0_i32_1 = arith.constant 0 : i32
    return %c0_i32, %c0_i32_0 : i32, i32
  }
  func.func @transform_8(%arg0: i32, %arg1: i32) -> (i32, i32) {
    %c0_i32 = arith.constant 0 : i32
    %c0_i32_0 = arith.constant 0 : i32
    %c0_i32_1 = arith.constant 0 : i32
    return %c0_i32, %c0_i32_0 : i32, i32
  }
  func.func @transform_9(%arg0: i32, %arg1: i32) -> (i32, i32, i32) {
    %c0_i32 = arith.constant 0 : i32
    %c0_i32_0 = arith.constant 0 : i32
    %c0_i32_1 = arith.constant 0 : i32
    return %arg0, %c0_i32, %c0_i32_0 : i32, i32, i32
  }
}

module attributes {stable_mosaic.version = 11 : i64} {
  func.func @_block_kernel(%arg0: i32, %arg1: i32, %arg2: memref<1x8x8x256xbf16, #tpu.memory_space<vmem>>, %arg3: memref<9x256xf32, #tpu.memory_space<vmem>>, %arg4: memref<1x256xf32, #tpu.memory_space<vmem>>, %arg5: memref<1x256xf32, #tpu.memory_space<vmem>>, %arg6: memref<1x256xf32, #tpu.memory_space<vmem>>, %arg7: memref<256x256xbf16, #tpu.memory_space<vmem>>, %arg8: memref<1x256xf32, #tpu.memory_space<vmem>>, %arg9: memref<1x256xf32, #tpu.memory_space<vmem>>, %arg10: memref<1x256xf32, #tpu.memory_space<vmem>>, %arg11: memref<1x8x8x256xbf16, #tpu.memory_space<vmem>>, %arg12: memref<10x17x256xf32, #tpu.memory_space<vmem>>, %arg13: memref<64x256xf32, #tpu.memory_space<vmem>>) attributes {dimension_semantics = [#tpu.dimension_semantics<parallel>, #tpu.dimension_semantics<arbitrary>], iteration_bounds = array<i64: 2, 1>, scalar_prefetch = 0 : i64, scratch_operands = 2 : i64, tpu.core_type = #tpu.core_type<tc>, window_params = [{transform_indices = @transform_0, window_bounds = array<i64: 1, 8, 8, 256>}, {transform_indices = @transform_1, window_bounds = array<i64: 9, 256>}, {transform_indices = @transform_2, window_bounds = array<i64: 1, 256>}, {transform_indices = @transform_3, window_bounds = array<i64: 1, 256>}, {transform_indices = @transform_4, window_bounds = array<i64: 1, 256>}, {transform_indices = @transform_5, window_bounds = array<i64: 256, 256>}, {pipeline_mode = #tpu.pipeline_mode<synchronous>, transform_indices = @transform_6, window_bounds = array<i64: 1, 256>}, {pipeline_mode = #tpu.pipeline_mode<synchronous>, transform_indices = @transform_7, window_bounds = array<i64: 1, 256>}, {pipeline_mode = #tpu.pipeline_mode<synchronous>, transform_indices = @transform_8, window_bounds = array<i64: 1, 256>}, {transform_indices = @transform_9, window_bounds = array<i64: 1, 8, 8, 256>}]} {
    %cst = arith.constant 0.000000e+00 : f32
    %0 = vector.broadcast %cst : f32 to vector<1x17x256xf32>
    %c0 = arith.constant 0 : index
    %c0_0 = arith.constant 0 : index
    %c0_1 = arith.constant 0 : index
    %1 = vector.load %arg12[%c0, %c0_0, %c0_1] : memref<10x17x256xf32, #tpu.memory_space<vmem>>, vector<1x17x256xf32>
    tpu.vector_store %arg12[%c0, %c0_0, %c0_1], %0 {strides = array<i32>} : memref<10x17x256xf32, #tpu.memory_space<vmem>>, vector<1x17x256xf32>,
    %cst_2 = arith.constant 0.000000e+00 : f32
    %2 = vector.broadcast %cst_2 : f32 to vector<1x17x256xf32>
    %c9 = arith.constant 9 : index
    %c0_3 = arith.constant 0 : index
    %c0_4 = arith.constant 0 : index
    %3 = vector.load %arg12[%c9, %c0_3, %c0_4] : memref<10x17x256xf32, #tpu.memory_space<vmem>>, vector<1x17x256xf32>
    tpu.vector_store %arg12[%c9, %c0_3, %c0_4], %2 {strides = array<i32>} : memref<10x17x256xf32, #tpu.memory_space<vmem>>, vector<1x17x256xf32>,
    %cst_5 = arith.constant 0.000000e+00 : f32
    %4 = vector.broadcast %cst_5 : f32 to vector<8x1x256xf32>
    %c1 = arith.constant 1 : index
    %c7 = arith.constant 7 : index
    %c0_6 = arith.constant 0 : index
    %5 = vector.load %arg12[%c1, %c7, %c0_6] : memref<10x17x256xf32, #tpu.memory_space<vmem>>, vector<8x1x256xf32>
    tpu.vector_store %arg12[%c1, %c7, %c0_6], %4 {strides = array<i32>} : memref<10x17x256xf32, #tpu.memory_space<vmem>>, vector<8x1x256xf32>,
    %cst_7 = arith.constant 0.000000e+00 : f32
    %6 = vector.broadcast %cst_7 : f32 to vector<8x1x256xf32>
    %c1_8 = arith.constant 1 : index
    %c16 = arith.constant 16 : index
    %c0_9 = arith.constant 0 : index
    %7 = vector.load %arg12[%c1_8, %c16, %c0_9] : memref<10x17x256xf32, #tpu.memory_space<vmem>>, vector<8x1x256xf32>
    tpu.vector_store %arg12[%c1_8, %c16, %c0_9], %6 {strides = array<i32>} : memref<10x17x256xf32, #tpu.memory_space<vmem>>, vector<8x1x256xf32>,
    %c0_10 = arith.constant 0 : index
    %c0_11 = arith.constant 0 : index
    %c0_12 = arith.constant 0 : index
    %c0_13 = arith.constant 0 : index
    %8 = vector.load %arg2[%c0_10, %c0_11, %c0_12, %c0_13] : memref<1x8x8x256xbf16, #tpu.memory_space<vmem>>, vector<1x8x8x256xbf16>
    %9 = vector.shape_cast %8 : vector<1x8x8x256xbf16> to vector<8x8x256xbf16>
    %10 = arith.extf %9 : vector<8x8x256xbf16> to vector<8x8x256xf32>
    %c1_14 = arith.constant 1 : index
    %c8 = arith.constant 8 : index
    %c0_15 = arith.constant 0 : index
    %11 = vector.load %arg12[%c1_14, %c8, %c0_15] : memref<10x17x256xf32, #tpu.memory_space<vmem>>, vector<8x8x256xf32>
    tpu.vector_store %arg12[%c1_14, %c8, %c0_15], %10 {strides = array<i32>} : memref<10x17x256xf32, #tpu.memory_space<vmem>>, vector<8x8x256xf32>,
    %c0_16 = arith.constant 0 : index
    %c7_17 = arith.constant 7 : index
    %c0_18 = arith.constant 0 : index
    %12 = vector.load %arg12[%c0_16, %c7_17, %c0_18] : memref<10x17x256xf32, #tpu.memory_space<vmem>>, vector<10x8x256xf32>
    %13 = vector.extract_strided_slice %12 {offsets = [0, 0, 0], sizes = [8, 8, 256], strides = [1, 1, 1]} : vector<10x8x256xf32> to vector<8x8x256xf32>
    %c0_19 = arith.constant 0 : index
    %c0_20 = arith.constant 0 : index
    %14 = vector.load %arg3[%c0_19, %c0_20] : memref<9x256xf32, #tpu.memory_space<vmem>>, vector<1x256xf32>
    %15 = vector.shape_cast %14 : vector<1x256xf32> to vector<256xf32>
    %16 = vector.shape_cast %15 : vector<256xf32> to vector<1x1x256xf32>
    %17 = vector.broadcast %16 : vector<1x1x256xf32> to vector<8x8x256xf32>
    %18 = arith.mulf %13, %17 : vector<8x8x256xf32>
    %19 = vector.extract_strided_slice %12 {offsets = [1, 0, 0], sizes = [8, 8, 256], strides = [1, 1, 1]} : vector<10x8x256xf32> to vector<8x8x256xf32>
    %c3 = arith.constant 3 : index
    %c0_21 = arith.constant 0 : index
    %20 = vector.load %arg3[%c3, %c0_21] : memref<9x256xf32, #tpu.memory_space<vmem>>, vector<1x256xf32>
    %21 = vector.shape_cast %20 : vector<1x256xf32> to vector<256xf32>
    %22 = vector.shape_cast %21 : vector<256xf32> to vector<1x1x256xf32>
    %23 = vector.broadcast %22 : vector<1x1x256xf32> to vector<8x8x256xf32>
    %24 = arith.mulf %19, %23 : vector<8x8x256xf32>
    %25 = arith.addf %18, %24 : vector<8x8x256xf32>
    %26 = vector.extract_strided_slice %12 {offsets = [2, 0, 0], sizes = [8, 8, 256], strides = [1, 1, 1]} : vector<10x8x256xf32> to vector<8x8x256xf32>
    %c6 = arith.constant 6 : index
    %c0_22 = arith.constant 0 : index
    %27 = vector.load %arg3[%c6, %c0_22] : memref<9x256xf32, #tpu.memory_space<vmem>>, vector<1x256xf32>
    %28 = vector.shape_cast %27 : vector<1x256xf32> to vector<256xf32>
    %29 = vector.shape_cast %28 : vector<256xf32> to vector<1x1x256xf32>
    %30 = vector.broadcast %29 : vector<1x1x256xf32> to vector<8x8x256xf32>
    %31 = arith.mulf %26, %30 : vector<8x8x256xf32>
    %32 = arith.addf %25, %31 : vector<8x8x256xf32>
    %c0_23 = arith.constant 0 : index
    %c8_24 = arith.constant 8 : index
    %c0_25 = arith.constant 0 : index
    %33 = vector.load %arg12[%c0_23, %c8_24, %c0_25] : memref<10x17x256xf32, #tpu.memory_space<vmem>>, vector<10x8x256xf32>
    %34 = vector.extract_strided_slice %33 {offsets = [0, 0, 0], sizes = [8, 8, 256], strides = [1, 1, 1]} : vector<10x8x256xf32> to vector<8x8x256xf32>
    %c1_26 = arith.constant 1 : index
    %c0_27 = arith.constant 0 : index
    %35 = vector.load %arg3[%c1_26, %c0_27] : memref<9x256xf32, #tpu.memory_space<vmem>>, vector<1x256xf32>
    %36 = vector.shape_cast %35 : vector<1x256xf32> to vector<256xf32>
    %37 = vector.shape_cast %36 : vector<256xf32> to vector<1x1x256xf32>
    %38 = vector.broadcast %37 : vector<1x1x256xf32> to vector<8x8x256xf32>
    %39 = arith.mulf %34, %38 : vector<8x8x256xf32>
    %40 = vector.extract_strided_slice %33 {offsets = [1, 0, 0], sizes = [8, 8, 256], strides = [1, 1, 1]} : vector<10x8x256xf32> to vector<8x8x256xf32>
    %c4 = arith.constant 4 : index
    %c0_28 = arith.constant 0 : index
    %41 = vector.load %arg3[%c4, %c0_28] : memref<9x256xf32, #tpu.memory_space<vmem>>, vector<1x256xf32>
    %42 = vector.shape_cast %41 : vector<1x256xf32> to vector<256xf32>
    %43 = vector.shape_cast %42 : vector<256xf32> to vector<1x1x256xf32>
    %44 = vector.broadcast %43 : vector<1x1x256xf32> to vector<8x8x256xf32>
    %45 = arith.mulf %40, %44 : vector<8x8x256xf32>
    %46 = arith.addf %39, %45 : vector<8x8x256xf32>
    %47 = vector.extract_strided_slice %33 {offsets = [2, 0, 0], sizes = [8, 8, 256], strides = [1, 1, 1]} : vector<10x8x256xf32> to vector<8x8x256xf32>
    %c7_29 = arith.constant 7 : index
    %c0_30 = arith.constant 0 : index
    %48 = vector.load %arg3[%c7_29, %c0_30] : memref<9x256xf32, #tpu.memory_space<vmem>>, vector<1x256xf32>
    %49 = vector.shape_cast %48 : vector<1x256xf32> to vector<256xf32>
    %50 = vector.shape_cast %49 : vector<256xf32> to vector<1x1x256xf32>
    %51 = vector.broadcast %50 : vector<1x1x256xf32> to vector<8x8x256xf32>
    %52 = arith.mulf %47, %51 : vector<8x8x256xf32>
    %53 = arith.addf %46, %52 : vector<8x8x256xf32>
    %54 = arith.addf %32, %53 : vector<8x8x256xf32>
    %c0_31 = arith.constant 0 : index
    %c9_32 = arith.constant 9 : index
    %c0_33 = arith.constant 0 : index
    %55 = vector.load %arg12[%c0_31, %c9_32, %c0_33] : memref<10x17x256xf32, #tpu.memory_space<vmem>>, vector<10x8x256xf32>
    %56 = vector.extract_strided_slice %55 {offsets = [0, 0, 0], sizes = [8, 8, 256], strides = [1, 1, 1]} : vector<10x8x256xf32> to vector<8x8x256xf32>
    %c2 = arith.constant 2 : index
    %c0_34 = arith.constant 0 : index
    %57 = vector.load %arg3[%c2, %c0_34] : memref<9x256xf32, #tpu.memory_space<vmem>>, vector<1x256xf32>
    %58 = vector.shape_cast %57 : vector<1x256xf32> to vector<256xf32>
    %59 = vector.shape_cast %58 : vector<256xf32> to vector<1x1x256xf32>
    %60 = vector.broadcast %59 : vector<1x1x256xf32> to vector<8x8x256xf32>
    %61 = arith.mulf %56, %60 : vector<8x8x256xf32>
    %62 = vector.extract_strided_slice %55 {offsets = [1, 0, 0], sizes = [8, 8, 256], strides = [1, 1, 1]} : vector<10x8x256xf32> to vector<8x8x256xf32>
    %c5 = arith.constant 5 : index
    %c0_35 = arith.constant 0 : index
    %63 = vector.load %arg3[%c5, %c0_35] : memref<9x256xf32, #tpu.memory_space<vmem>>, vector<1x256xf32>
    %64 = vector.shape_cast %63 : vector<1x256xf32> to vector<256xf32>
    %65 = vector.shape_cast %64 : vector<256xf32> to vector<1x1x256xf32>
    %66 = vector.broadcast %65 : vector<1x1x256xf32> to vector<8x8x256xf32>
    %67 = arith.mulf %62, %66 : vector<8x8x256xf32>
    %68 = arith.addf %61, %67 : vector<8x8x256xf32>
    %69 = vector.extract_strided_slice %55 {offsets = [2, 0, 0], sizes = [8, 8, 256], strides = [1, 1, 1]} : vector<10x8x256xf32> to vector<8x8x256xf32>
    %c8_36 = arith.constant 8 : index
    %c0_37 = arith.constant 0 : index
    %70 = vector.load %arg3[%c8_36, %c0_37] : memref<9x256xf32, #tpu.memory_space<vmem>>, vector<1x256xf32>
    %71 = vector.shape_cast %70 : vector<1x256xf32> to vector<256xf32>
    %72 = vector.shape_cast %71 : vector<256xf32> to vector<1x1x256xf32>
    %73 = vector.broadcast %72 : vector<1x1x256xf32> to vector<8x8x256xf32>
    %74 = arith.mulf %69, %73 : vector<8x8x256xf32>
    %75 = arith.addf %68, %74 : vector<8x8x256xf32>
    %76 = arith.addf %54, %75 : vector<8x8x256xf32>
    %c0_38 = arith.constant 0 : index
    %c0_39 = arith.constant 0 : index
    %77 = vector.load %arg4[%c0_38, %c0_39] : memref<1x256xf32, #tpu.memory_space<vmem>>, vector<1x256xf32>
    %78 = vector.shape_cast %77 : vector<1x256xf32> to vector<1x1x256xf32>
    %79 = vector.broadcast %78 : vector<1x1x256xf32> to vector<8x8x256xf32>
    %80 = arith.addf %76, %79 : vector<8x8x256xf32>
    %cst_40 = arith.constant 5.000000e-01 : f32
    %81 = vector.broadcast %cst_40 : f32 to vector<8x8x256xf32>
    %82 = arith.mulf %81, %80 : vector<8x8x256xf32>
    %83 = arith.mulf %80, %80 : vector<8x8x256xf32>
    %84 = arith.mulf %83, %80 : vector<8x8x256xf32>
    %cst_41 = arith.constant 4.471500e-02 : f32
    %85 = vector.broadcast %cst_41 : f32 to vector<8x8x256xf32>
    %86 = arith.mulf %85, %84 : vector<8x8x256xf32>
    %87 = arith.addf %80, %86 : vector<8x8x256xf32>
    %cst_42 = arith.constant 0.797884583 : f32
    %88 = vector.broadcast %cst_42 : f32 to vector<8x8x256xf32>
    %89 = arith.mulf %88, %87 : vector<8x8x256xf32>
    %90 = math.tanh %89 : vector<8x8x256xf32>
    %cst_43 = arith.constant 1.000000e+00 : f32
    %91 = vector.broadcast %cst_43 : f32 to vector<8x8x256xf32>
    %92 = arith.addf %91, %90 : vector<8x8x256xf32>
    %93 = arith.mulf %82, %92 : vector<8x8x256xf32>
    %c0_44 = arith.constant 0 : index
    %c0_45 = arith.constant 0 : index
    %94 = vector.load %arg5[%c0_44, %c0_45] : memref<1x256xf32, #tpu.memory_space<vmem>>, vector<1x256xf32>
    %95 = vector.shape_cast %94 : vector<1x256xf32> to vector<1x1x256xf32>
    %96 = vector.broadcast %95 : vector<1x1x256xf32> to vector<8x8x256xf32>
    %97 = arith.mulf %93, %96 : vector<8x8x256xf32>
    %c0_46 = arith.constant 0 : index
    %c0_47 = arith.constant 0 : index
    %98 = vector.load %arg6[%c0_46, %c0_47] : memref<1x256xf32, #tpu.memory_space<vmem>>, vector<1x256xf32>
    %99 = vector.shape_cast %98 : vector<1x256xf32> to vector<1x1x256xf32>
    %100 = vector.broadcast %99 : vector<1x1x256xf32> to vector<8x8x256xf32>
    %101 = arith.addf %97, %100 : vector<8x8x256xf32>
    %102 = arith.extf %9 : vector<8x8x256xbf16> to vector<8x8x256xf32>
    %103 = arith.addf %101, %102 : vector<8x8x256xf32>
    %104 = vector.shape_cast %103 : vector<8x8x256xf32> to vector<64x256xf32>
    %105 = arith.truncf %104 : vector<64x256xf32> to vector<64x256xbf16>
    %c0_i32 = arith.constant 0 : i32
    %106 = arith.cmpi eq, %arg1, %c0_i32 : i32
    %107 = arith.extui %106 : i1 to i32
    %c0_i32_48 = arith.constant 0 : i32
    %108 = arith.cmpi ne, %107, %c0_i32_48 : i32
    scf.if %108 {
      %cst_58 = arith.constant 0.000000e+00 : f32
      %117 = vector.broadcast %cst_58 : f32 to vector<64x256xf32>
      %c0_59 = arith.constant 0 : index
      %c0_60 = arith.constant 0 : index
      %118 = vector.load %arg13[%c0_59, %c0_60] : memref<64x256xf32, #tpu.memory_space<vmem>>, vector<64x256xf32>
      tpu.vector_store %arg13[%c0_59, %c0_60], %117 {strides = array<i32>} : memref<64x256xf32, #tpu.memory_space<vmem>>, vector<64x256xf32>,
    } else {
    }
    %c0_49 = arith.constant 0 : index
    %c0_50 = arith.constant 0 : index
    %109 = vector.load %arg13[%c0_49, %c0_50] : memref<64x256xf32, #tpu.memory_space<vmem>>, vector<64x256xf32>
    %c0_51 = arith.constant 0 : index
    %c0_52 = arith.constant 0 : index
    %110 = vector.load %arg7[%c0_51, %c0_52] : memref<256x256xbf16, #tpu.memory_space<vmem>>, vector<256x256xbf16>
    %cst_53 = arith.constant dense<0.000000e+00> : vector<64x256xf32>
    %111 = tpu.matmul %105, %110, %cst_53 {dimension_numbers = #tpu.dot_dimension_numbers<[1], [0], [0], [1], [0, 0, 1, 1], [], []>} : vector<64x256xbf16>, vector<256x256xbf16>, vector<64x256xf32> -> vector<64x256xf32>
    %112 = arith.addf %109, %111 : vector<64x256xf32>
    %c0_54 = arith.constant 0 : index
    %c0_55 = arith.constant 0 : index
    %113 = vector.load %arg13[%c0_54, %c0_55] : memref<64x256xf32, #tpu.memory_space<vmem>>, vector<64x256xf32>
    tpu.vector_store %arg13[%c0_54, %c0_55], %112 {strides = array<i32>} : memref<64x256xf32, #tpu.memory_space<vmem>>, vector<64x256xf32>,
    %c0_i32_56 = arith.constant 0 : i32
    %114 = arith.cmpi eq, %arg1, %c0_i32_56 : i32
    %115 = arith.extui %114 : i1 to i32
    %c0_i32_57 = arith.constant 0 : i32
    %116 = arith.cmpi ne, %115, %c0_i32_57 : i32
    scf.if %116 {
      %c0_58 = arith.constant 0 : index
      %c0_59 = arith.constant 0 : index
      %117 = vector.load %arg13[%c0_58, %c0_59] : memref<64x256xf32, #tpu.memory_space<vmem>>, vector<64x256xf32>
      %c0_60 = arith.constant 0 : index
      %c0_61 = arith.constant 0 : index
      %118 = vector.load %arg8[%c0_60, %c0_61] : memref<1x256xf32, #tpu.memory_space<vmem>>, vector<1x256xf32>
      %119 = vector.broadcast %118 : vector<1x256xf32> to vector<64x256xf32>
      %120 = arith.addf %117, %119 : vector<64x256xf32>
      %cst_62 = arith.constant 5.000000e-01 : f32
      %121 = vector.broadcast %cst_62 : f32 to vector<64x256xf32>
      %122 = arith.mulf %121, %120 : vector<64x256xf32>
      %123 = arith.mulf %120, %120 : vector<64x256xf32>
      %124 = arith.mulf %123, %120 : vector<64x256xf32>
      %cst_63 = arith.constant 4.471500e-02 : f32
      %125 = vector.broadcast %cst_63 : f32 to vector<64x256xf32>
      %126 = arith.mulf %125, %124 : vector<64x256xf32>
      %127 = arith.addf %120, %126 : vector<64x256xf32>
      %cst_64 = arith.constant 0.797884583 : f32
      %128 = vector.broadcast %cst_64 : f32 to vector<64x256xf32>
      %129 = arith.mulf %128, %127 : vector<64x256xf32>
      %130 = math.tanh %129 : vector<64x256xf32>
      %cst_65 = arith.constant 1.000000e+00 : f32
      %131 = vector.broadcast %cst_65 : f32 to vector<64x256xf32>
      %132 = arith.addf %131, %130 : vector<64x256xf32>
      %133 = arith.mulf %122, %132 : vector<64x256xf32>
      %c0_66 = arith.constant 0 : index
      %c0_67 = arith.constant 0 : index
      %134 = vector.load %arg9[%c0_66, %c0_67] : memref<1x256xf32, #tpu.memory_space<vmem>>, vector<1x256xf32>
      %135 = vector.broadcast %134 : vector<1x256xf32> to vector<64x256xf32>
      %136 = arith.mulf %133, %135 : vector<64x256xf32>
      %c0_68 = arith.constant 0 : index
      %c0_69 = arith.constant 0 : index
      %137 = vector.load %arg10[%c0_68, %c0_69] : memref<1x256xf32, #tpu.memory_space<vmem>>, vector<1x256xf32>
      %138 = vector.broadcast %137 : vector<1x256xf32> to vector<64x256xf32>
      %139 = arith.addf %136, %138 : vector<64x256xf32>
      %140 = vector.shape_cast %139 : vector<64x256xf32> to vector<1x8x8x256xf32>
      %141 = arith.truncf %140 : vector<1x8x8x256xf32> to vector<1x8x8x256xbf16>
      %c0_70 = arith.constant 0 : index
      %c0_71 = arith.constant 0 : index
      %c0_72 = arith.constant 0 : index
      %c0_73 = arith.constant 0 : index
      %142 = vector.load %arg11[%c0_70, %c0_71, %c0_72, %c0_73] : memref<1x8x8x256xbf16, #tpu.memory_space<vmem>>, vector<1x8x8x256xbf16>
      tpu.vector_store %arg11[%c0_70, %c0_71, %c0_72, %c0_73], %141 {strides = array<i32>} : memref<1x8x8x256xbf16, #tpu.memory_space<vmem>>, vector<1x8x8x256xbf16>,
    } else {
    }
    return
  }
  func.func @transform_0(%arg0: i32, %arg1: i32) -> (i32, i32, i32, i32) {
    %c0_i32 = arith.constant 0 : i32
    %c0_i32_0 = arith.constant 0 : i32
    %c0_i32_1 = arith.constant 0 : i32
    return %arg0, %c0_i32, %c0_i32_0, %arg1 : i32, i32, i32, i32
  }
  func.func @transform_1(%arg0: i32, %arg1: i32) -> (i32, i32) {
    %c0_i32 = arith.constant 0 : i32
    %c0_i32_0 = arith.constant 0 : i32
    return %c0_i32, %arg1 : i32, i32
  }
  func.func @transform_2(%arg0: i32, %arg1: i32) -> (i32, i32) {
    %c0_i32 = arith.constant 0 : i32
    %c0_i32_0 = arith.constant 0 : i32
    return %c0_i32, %arg1 : i32, i32
  }
  func.func @transform_3(%arg0: i32, %arg1: i32) -> (i32, i32) {
    %c0_i32 = arith.constant 0 : i32
    %c0_i32_0 = arith.constant 0 : i32
    return %c0_i32, %arg1 : i32, i32
  }
  func.func @transform_4(%arg0: i32, %arg1: i32) -> (i32, i32) {
    %c0_i32 = arith.constant 0 : i32
    %c0_i32_0 = arith.constant 0 : i32
    return %c0_i32, %arg1 : i32, i32
  }
  func.func @transform_5(%arg0: i32, %arg1: i32) -> (i32, i32) {
    %c0_i32 = arith.constant 0 : i32
    %c0_i32_0 = arith.constant 0 : i32
    return %arg1, %c0_i32 : i32, i32
  }
  func.func @transform_6(%arg0: i32, %arg1: i32) -> (i32, i32) {
    %c0_i32 = arith.constant 0 : i32
    %c0_i32_0 = arith.constant 0 : i32
    %c0_i32_1 = arith.constant 0 : i32
    return %c0_i32, %c0_i32_0 : i32, i32
  }
  func.func @transform_7(%arg0: i32, %arg1: i32) -> (i32, i32) {
    %c0_i32 = arith.constant 0 : i32
    %c0_i32_0 = arith.constant 0 : i32
    %c0_i32_1 = arith.constant 0 : i32
    return %c0_i32, %c0_i32_0 : i32, i32
  }
  func.func @transform_8(%arg0: i32, %arg1: i32) -> (i32, i32) {
    %c0_i32 = arith.constant 0 : i32
    %c0_i32_0 = arith.constant 0 : i32
    %c0_i32_1 = arith.constant 0 : i32
    return %c0_i32, %c0_i32_0 : i32, i32
  }
  func.func @transform_9(%arg0: i32, %arg1: i32) -> (i32, i32, i32, i32) {
    %c0_i32 = arith.constant 0 : i32
    %c0_i32_0 = arith.constant 0 : i32
    %c0_i32_1 = arith.constant 0 : i32
    %c0_i32_2 = arith.constant 0 : i32
    return %arg0, %c0_i32, %c0_i32_0, %c0_i32_1 : i32, i32, i32, i32
  }
}

module attributes {stable_mosaic.version = 11 : i64} {
  func.func @_head_kernel(%arg0: i32, %arg1: memref<2x256xf32, #tpu.memory_space<vmem>>, %arg2: memref<256x128xf32, #tpu.memory_space<vmem>>, %arg3: memref<1x128xf32, #tpu.memory_space<vmem>>, %arg4: memref<2x128xf32, #tpu.memory_space<vmem>>) attributes {dimension_semantics = [#tpu.dimension_semantics<arbitrary>], iteration_bounds = array<i64: 1>, scalar_prefetch = 0 : i64, scratch_operands = 0 : i64, tpu.core_type = #tpu.core_type<tc>, window_params = [{pipeline_mode = #tpu.pipeline_mode<synchronous>, transform_indices = @transform_0, window_bounds = array<i64: 2, 256>}, {pipeline_mode = #tpu.pipeline_mode<synchronous>, transform_indices = @transform_1, window_bounds = array<i64: 256, 128>}, {pipeline_mode = #tpu.pipeline_mode<synchronous>, transform_indices = @transform_2, window_bounds = array<i64: 1, 128>}, {pipeline_mode = #tpu.pipeline_mode<synchronous>, transform_indices = @transform_3, window_bounds = array<i64: 2, 128>}]} {
    %c0 = arith.constant 0 : index
    %c0_0 = arith.constant 0 : index
    %0 = vector.load %arg1[%c0, %c0_0] : memref<2x256xf32, #tpu.memory_space<vmem>>, vector<2x256xf32>
    %c0_1 = arith.constant 0 : index
    %c0_2 = arith.constant 0 : index
    %1 = vector.load %arg2[%c0_1, %c0_2] : memref<256x128xf32, #tpu.memory_space<vmem>>, vector<256x128xf32>
    %cst = arith.constant dense<0.000000e+00> : vector<2x128xf32>
    %2 = tpu.matmul %0, %1, %cst {dimension_numbers = #tpu.dot_dimension_numbers<[1], [0], [0], [1], [0, 0, 1, 1], [], []>} : vector<2x256xf32>, vector<256x128xf32>, vector<2x128xf32> -> vector<2x128xf32>
    %c0_3 = arith.constant 0 : index
    %c0_4 = arith.constant 0 : index
    %3 = vector.load %arg3[%c0_3, %c0_4] : memref<1x128xf32, #tpu.memory_space<vmem>>, vector<1x128xf32>
    %4 = vector.broadcast %3 : vector<1x128xf32> to vector<2x128xf32>
    %5 = arith.addf %2, %4 : vector<2x128xf32>
    %c0_5 = arith.constant 0 : index
    %c0_6 = arith.constant 0 : index
    %6 = vector.load %arg4[%c0_5, %c0_6] : memref<2x128xf32, #tpu.memory_space<vmem>>, vector<2x128xf32>
    tpu.vector_store %arg4[%c0_5, %c0_6], %5 {strides = array<i32>} : memref<2x128xf32, #tpu.memory_space<vmem>>, vector<2x128xf32>,
    return
  }
  func.func @transform_0(%arg0: i32) -> (i32, i32) {
    %c0_i32 = arith.constant 0 : i32
    %c0_i32_0 = arith.constant 0 : i32
    %c0_i32_1 = arith.constant 0 : i32
    return %c0_i32, %c0_i32_0 : i32, i32
  }
  func.func @transform_1(%arg0: i32) -> (i32, i32) {
    %c0_i32 = arith.constant 0 : i32
    %c0_i32_0 = arith.constant 0 : i32
    %c0_i32_1 = arith.constant 0 : i32
    return %c0_i32, %c0_i32_0 : i32, i32
  }
  func.func @transform_2(%arg0: i32) -> (i32, i32) {
    %c0_i32 = arith.constant 0 : i32
    %c0_i32_0 = arith.constant 0 : i32
    %c0_i32_1 = arith.constant 0 : i32
    return %c0_i32, %c0_i32_0 : i32, i32
  }
  func.func @transform_3(%arg0: i32) -> (i32, i32) {
    %c0_i32 = arith.constant 0 : i32
    %c0_i32_0 = arith.constant 0 : i32
    %c0_i32_1 = arith.constant 0 : i32
    return %c0_i32, %c0_i32_0 : i32, i32
  }
}

</mosaic_0001>

<bundles_post_ra>
// kernel: convmixer_forward.7
= control target key start
LH: loop header
LB: loop body
LE: loop exit
PB: predicated region body
PF: predicated region fallthrough
CT: control target
= control target key end

     0   :  { %s337_s0 = inlined_call_operand.vmem [shape: f32[2,256], index: 0, kind: input, shape index: {}]   ;;  %s338_s1 = inlined_call_operand.vmem [shape: f32[256,128], index: 1, kind: input, shape index: {}]   ;;  %s339_s2 = inlined_call_operand.vmem [shape: f32[1,128], index: 2, kind: input, shape index: {}]   ;;  %s340_s3 = inlined_call_operand.hbm [shape: f32[2,128], index: 3, kind: output, shape index: {}]  }
   0x1   :  { %v47_v0 = vld [vmem:[%s338_s1 + $0xf8] sm:$0xff]  ;;  %v46_v2 = vld [vmem:[%s338_s1 + $0xf0] sm:$0xff]  ;;  %v45_v4 = vld [vmem:[%s338_s1 + $0xe8] sm:$0xff] }
   0x2   :  { %v31_v1 = vld [vmem:[%s338_s1 + $0x78] sm:$0xff]  ;;  %153 = vmatprep.subr.mxu0 %v47_v0  ;;  %v30_v3 = vld [vmem:[%s338_s1 + $0x70] sm:$0xff]  ;;  %v29_v5 = vld [vmem:[%s338_s1 + $0x68] sm:$0xff] }
   0x3   :  { %154 = vmatpush3.msra.mxu0 %v31_v1  ;;  %v44_v6 = vld [vmem:[%s338_s1 + $0xe0] sm:$0xff]  ;;  %v43_v8 = vld [vmem:[%s338_s1 + $0xd8] sm:$0xff]  ;;  %v42_v10 = vld [vmem:[%s338_s1 + $0xd0] sm:$0xff] }
   0x4   :  { %155 = vmatprep.subr.mxu0 %v46_v2  ;;  %v28_v7 = vld [vmem:[%s338_s1 + $0x60] sm:$0xff]  ;;  %v27_v9 = vld [vmem:[%s338_s1 + $0x58] sm:$0xff]  ;;  %v26_v11 = vld [vmem:[%s338_s1 + $0x50] sm:$0xff] }
   0x5   :  { %156 = vmatpush3.msra.mxu0 %v30_v3  ;;  %v41_v12 = vld [vmem:[%s338_s1 + $0xc8] sm:$0xff]  ;;  %v152_v13 = vld.sshfl [vmem:[%s337_s0] sm:$0x33 pattern:$0x76325410] }
   0x6   :  { %157 = vmatprep.subr.mxu0 %v45_v4  ;;  %v25_v14 = vld [vmem:[%s338_s1 + $0x48] sm:$0xff]  ;;  %v63_v15 = vcombine.high %v152_v13, %v152_v13 }
   0x7   :  { %158 = vmatpush3.msra.mxu0 %v29_v5 }
   0x8   :  { %159 = vmatprep.subr.mxu0 %v44_v6 }
   0x9   :  { %160 = vmatpush3.msra.mxu0 %v28_v7 }
   0xa   :  { %161 = vmatprep.subr.mxu0 %v43_v8 }
   0xb   :  { %162 = vmatpush3.msra.mxu0 %v27_v9 }
   0xc   :  { %163 = vmatprep.subr.mxu0 %v42_v10 }
   0xd   :  { %8 = vsyncpa [#allocation3], 0  ;;  %164 = vmatpush3.msra.mxu0 %v26_v11  ;;  %v40_v16 = vld [vmem:[%s338_s1 + $0xc0] sm:$0xff]  ;;  %130 = vmatprep.mubr.f32.mxu0 %v63_v15  ;;  %v39_v18 = vld [vmem:[%s338_s1 + $0xb8] sm:$0xff]  ;;  %s211_s24 = smov [#allocation2]  }
   0xe   :  { %165 = vmatprep.subr.mxu0 %v41_v12  ;;  %v24_v17 = vld [vmem:[%s338_s1 + $0x40] sm:$0xff]  ;;  %v23_v19 = vld [vmem:[%s338_s1 + $0x38] sm:$0xff]  ;;  %v38_v20 = vld [vmem:[%s338_s1 + $0xb0] sm:$0xff]  ;;  %s143_s25 = sshll.u32 %s211_s24, 4  ;;  %s144_s25 = int_to_ptr.vmem [resolvable:$true] %s143_s25 }
   0xf   :  { %166 = vmatpush3.msra.mxu0 %v25_v14  ;;  %v22_v21 = vld [vmem:[%s338_s1 + $0x30] sm:$0xff]  ;;  %v37_v22 = vld [vmem:[%s338_s1 + $0xa8] sm:$0xff]  ;;  %v36_v24 = vld [vmem:[%s338_s1 + $0xa0] sm:$0xff]  ;;  %s189_s26 = scalar_lea.vmem %s144_s25, 32  ;;  %p194_p1 = scmp.lt.s32.totalorder %s144_s25, %s144_s25 }
  0x10   :  { %167 = vmatprep.subr.mxu0 %v40_v16  ;;  %v21_v23 = vld [vmem:[%s338_s1 + $0x28] sm:$0xff]  ;;  %v20_v25 = vld [vmem:[%s338_s1 + $0x20] sm:$0xff]  ;;  %v35_v26 = vld [vmem:[%s338_s1 + $0x98] sm:$0xff]  ;;  %p190_p0 = scmp.ne.s32.totalorder %s144_s25, %s189_s26  ;;  %p195_p2 = scmp.lt.s32.totalorder %s189_s26, %s189_s26 }
  0x11   :  { %168 = vmatpush3.msra.mxu0 %v24_v17  ;;  %v19_v27 = vld [vmem:[%s338_s1 + $0x18] sm:$0xff]  ;;  %v34_v28 = vld [vmem:[%s338_s1 + $0x90] sm:$0xff]  ;;  %v33_v30 = vld [vmem:[%s338_s1 + $0x88] sm:$0xff] }
  0x12   :  { %169 = vmatprep.subr.mxu0 %v39_v18  ;;  %v18_v29 = vld [vmem:[%s338_s1 + $0x10] sm:$0xff]  ;;  %v17_v31 = vld [vmem:[%s338_s1 + $0x8] sm:$0xff]  ;;  %v32_v32 = vld [vmem:[%s338_s1 + $0x80] sm:$0xff]  ;;  %p196_p3 = por %p195_p2, %p194_p1 }
  0x13   :  { %170 = vmatpush3.msra.mxu0 %v23_v19  ;;  %v16_v33 = vld [vmem:[%s338_s1] sm:$0xff] }
  0x14   :  { %171 = vmatprep.subr.mxu0 %v38_v20  ;;  %v151_v36 = vld [vmem:[%s339_s2] ss:$0 sm:$0xff]  ;;  %p197_p4 = pnand %p196_p3, %p190_p0 }
  0x15   :  { %172 = vmatpush3.msra.mxu0 %v22_v21 }
  0x16   :  { %173 = vmatprep.subr.mxu0 %v37_v22 }
  0x17   :  { %174 = vmatpush3.msra.mxu0 %v21_v23 }
  0x18   :  { %175 = vmatprep.subr.mxu0 %v36_v24 }
  0x19   :  { %176 = vmatpush3.msra.mxu0 %v20_v25 }
  0x1a   :  { %177 = vmatprep.subr.mxu0 %v35_v26 }
  0x1b   :  { %178 = vmatpush3.msra.mxu0 %v19_v27 }
  0x1c   :  { %179 = vmatprep.subr.mxu0 %v34_v28 }
  0x1d   :  { %180 = vmatpush3.msra.mxu0 %v18_v29 }
  0x1e   :  { %181 = vmatprep.subr.mxu0 %v33_v30 }
  0x1f   :  { %182 = vmatpush3.msra.mxu0 %v17_v31 }
  0x20   :  { %183 = vmatprep.subr.mxu0 %v32_v32 }
  0x21   :  { %184 = vmatpush3.msra.mxu0 %v16_v33 }
  0x22   :  { %131 = vmatmul.mubr.f32.vlgmr.msra.gmra.mxu0 %v152_v13 }
  0xe2   :  { %v185_v34 = vpop.f32.mrf.mxu0 }
  0xe4   :  { %v186_v35 = vpop.f32.mrf.mxu0 }
  0xe5   :  { %v187_v37 = vadd.f32 %v186_v35, %v185_v34 }
  0xe7   :  { %v133_v38 = vadd.f32 %v187_v37, %v151_v36 }
  0xe9   :  { %136 = vst [vmem:[#allocation2] sm:$0x3] %v133_v38 }
  0xea   :  { %200 = shalt.err (!%p197_p4)
}
  0xeb   :  { %146 = dma.vmem_to_hbm [thread:$0]  %s144_s25, 32, %s340_s3, [#allocation3]  }
  0xec   :  { %209 = dma.done.wait [#allocation3], 32  }
  0xed   :  { %210 = vsyncadd [#allocation3], 4294967264 }
  0xee   :  { %150 = vsyncpa [#allocation3], 1 }

// kernel: convmixer_forward.4
= control target key start
LH: loop header
LB: loop body
LE: loop exit
PB: predicated region body
PF: predicated region fallthrough
CT: control target
= control target key end

     0   :  { %vm180_vm0 = vcmask 1045504   ;;  %v1064_v1 = vmov 0   ;;  %vm155_vm1 = vcmask 97280   ;;  %v401_v12 = vlaneseq  ;;  %s1530_s1 = inlined_call_operand.vmem [shape: bf16[12,256], index: 1, kind: input, shape index: {}]   ;;  %s1531_s0 = inlined_call_operand.vmem [shape: bf16[128,12], index: 0, kind: input, shape index: {}]   ;;  %s1532_s2 = inlined_call_operand.vmem [shape: f32[1,256], index: 2, kind: input, shape index: {}]   ;;  %s1533_s3 = inlined_call_operand.vmem [shape: f32[1,256], index: 3, kind: input, shape index: {}]   ;;  %s1534_s4 = inlined_call_operand.vmem [shape: f32[1,256], index: 4, kind: input, shape index: {}]   ;;  %s1535_s5 = inlined_call_operand.vmem [shape: bf16[128,256], index: 5, kind: output, shape index: {}]  }
   0x1   :  { %v989_v0 = vld [vmem:[%s1530_s1 + $0x4] ss:$8 sps:$4 sm:$0x3f]   ;;  %219 = vmatprep.mubr.bf16.mxu0 %v1064_v1  ;;  %259 = vmatprep.mubr.bf16.mxu1 %v1064_v1  ;;  %v991_v2 = vld [vmem:[%s1530_s1] ss:$8 sps:$4 sm:$0x3f]  }
   0x2   :  { %v992_v3 = vld [vmem:[%s1531_s0] sm:$0xff]   ;;  %945 = vmatprep.subr.msk.bf16.mxu0 %vm180_vm0, %v989_v0  ;;  %986 = vmatprep.subr.msk.bf16.mxu1 %vm180_vm0, %v989_v0  ;;  %v182_v4 = vsel %vm180_vm0, %v991_v2, 0  ;;  %v994_v6 = vld [vmem:[%s1531_s0 + $0x8] sm:$0xff]   ;;  %v996_v8 = vld [vmem:[%s1531_s0 + $0x10] sm:$0xff]   ;;  %v402_v13 = vshrl.u32 %v401_v12, 7 }
   0x3   :  { %v993_v5 = vld [vmem:[%s1531_s0 + $0x20] sm:$0xff]   ;;  %202 = vmatpush1.bf16.msra.mxu0 %v182_v4  ;;  %987 = vmatpush1.bf16.msra.mxu1 %v182_v4  ;;  %v995_v7 = vld [vmem:[%s1531_s0 + $0x28] sm:$0xff]   ;;  %v997_v9 = vld [vmem:[%s1531_s0 + $0x30] sm:$0xff]  }
   0x4   :  { %v998_v10 = vld [vmem:[%s1531_s0 + $0x18] sm:$0xff]   ;;  %v403_v14 = vsub.s32 0, %v402_v13  ;;  %v399_v15 = vld [vmem:[%s1532_s2] sm:$0x3]  ;;  %v1136_v16 = vsub.s32 1, %v402_v13 }
   0x5   :  { %v999_v11 = vld [vmem:[%s1531_s0 + $0x38] sm:$0xff]   ;;  %v731_v32 = vld [vmem:[%s1533_s3] sm:$0x3] }
   0x6   :  { %946 = vmatmul.mubr.msk.bf16.vlgmr.msra.gmra.mxu0 %vm155_vm1, %v992_v3  ;;  %950 = vmatmul.mubr.msk.bf16.vlgmr.msra.gmra.mxu1 %vm155_vm1, %v993_v5  ;;  %v1138_v17 = vrot.slane %v399_v15, %v403_v14  ;;  %v1141_v20 = vrot.slane %v399_v15, %v1136_v16  ;;  %v1176_v43 = vrot.slane %v731_v32, %v403_v14  ;;  %v775_v48 = vld [vmem:[%s1534_s4] sm:$0x3] }
   0x7   :  { %229 = vmatprep.mubr.bf16.mxu0 %v1064_v1  ;;  %269 = vmatprep.mubr.bf16.mxu1 %v1064_v1  ;;  %v1197_v62 = vrot.slane %v775_v48, %v403_v14  ;;  %v1202_v2 = vrot.slane %v731_v32, %v1136_v16 }
   0xe   :  { %947 = vmatmul.mubr.msk.bf16.gmra.mxu0 %vm155_vm1, %v994_v6  ;;  %951 = vmatmul.mubr.msk.bf16.gmra.mxu1 %vm155_vm1, %v995_v7 }
   0xf   :  { %239 = vmatprep.mubr.bf16.mxu0 %v1064_v1  ;;  %279 = vmatprep.mubr.bf16.mxu1 %v1064_v1 }
  0x16   :  { %948 = vmatmul.mubr.msk.bf16.gmra.mxu0 %vm155_vm1, %v996_v8  ;;  %952 = vmatmul.mubr.msk.bf16.gmra.mxu1 %vm155_vm1, %v997_v9 }
  0x17   :  { %249 = vmatprep.mubr.bf16.mxu0 %v1064_v1  ;;  %289 = vmatprep.mubr.bf16.mxu1 %v1064_v1 }
  0x1e   :  { %949 = vmatmul.mubr.msk.bf16.gmra.mxu0 %vm155_vm1, %v998_v10  ;;  %953 = vmatmul.mubr.msk.bf16.gmra.mxu1 %vm155_vm1, %v999_v11 }
  0xc6   :  { %v221_v18 = vpop.f32.mrf.mxu0  ;;  %v261_v19 = vpop.f32.mrf.mxu1 }
  0xc7   :  { %v1144_v21 = vadd.f32 %v1138_v17, %v221_v18  ;;  %v1147_v22 = vadd.f32 %v1138_v17, %v261_v19  ;;  %v1219_v19 = vrot.slane %v775_v48, %v1136_v16 }
  0xc8   :  { %v223_v23 = vpop.f32.mrf.mxu0  ;;  %v263_v24 = vpop.f32.mrf.mxu1 }
  0xc9   :  { %v475_v25 = vmul.f32 %v1144_v21, %v1144_v21  ;;  %v491_v26 = vmul.f32 %v1147_v22, %v1147_v22  ;;  %v1154_v27 = vadd.f32 %v1141_v20, %v223_v23  ;;  %v1157_v28 = vadd.f32 %v1141_v20, %v263_v24 }
  0xca   :  { %v225_v29 = vpop.f32.mrf.mxu0  ;;  %v265_v30 = vpop.f32.mrf.mxu1  ;;  %v459_v32 = vmul.f32 0.5, %v1147_v22 }
  0xcb   :  { %v507_v31 = vmul.f32 %v475_v25, %v1144_v21  ;;  %v523_v33 = vmul.f32 %v491_v26, %v1147_v22  ;;  %v1165_v34 = vadd.f32 %v1138_v17, %v225_v29  ;;  %v1168_v35 = vadd.f32 %v1138_v17, %v265_v30 }
  0xcc   :  { %v476_v36 = vmul.f32 %v1154_v27, %v1154_v27  ;;  %v492_v37 = vmul.f32 %v1157_v28, %v1157_v28  ;;  %v227_v38 = vpop.f32.mrf.mxu0  ;;  %v267_v39 = vpop.f32.mrf.mxu1  ;;  %v443_v25 = vmul.f32 0.5, %v1144_v21 }
  0xcd   :  { %v539_v40 = vmul.f32 0.044715, %v507_v31  ;;  %v555_v41 = vmul.f32 0.044715, %v523_v33  ;;  %v477_v42 = vmul.f32 %v1165_v34, %v1165_v34  ;;  %v493_v46 = vmul.f32 %v1168_v35, %v1168_v35 }
  0xce   :  { %v508_v44 = vmul.f32 %v476_v36, %v1154_v27  ;;  %v524_v45 = vmul.f32 %v492_v37, %v1157_v28  ;;  %v1189_v51 = vadd.f32 %v1141_v20, %v227_v38  ;;  %v231_v52 = vpop.f32.mrf.mxu0  ;;  %v1193_v56 = vadd.f32 %v1141_v20, %v267_v39  ;;  %v271_v57 = vpop.f32.mrf.mxu1 }
  0xcf   :  { %v571_v47 = vadd.f32 %v539_v40, %v1144_v21  ;;  %v587_v49 = vadd.f32 %v555_v41, %v1147_v22  ;;  %v509_v50 = vmul.f32 %v477_v42, %v1165_v34  ;;  %v525_v55 = vmul.f32 %v493_v46, %v1168_v35 }
  0xd0   :  { %v540_v53 = vmul.f32 0.044715, %v508_v44  ;;  %v556_v54 = vmul.f32 0.044715, %v524_v45  ;;  %v478_v61 = vmul.f32 %v1189_v51, %v1189_v51  ;;  %v233_v5 = vpop.f32.mrf.mxu0  ;;  %v273_v9 = vpop.f32.mrf.mxu1  ;;  %v494_v12 = vmul.f32 %v1193_v56, %v1193_v56 }
  0xd1   :  { %v603_v58 = vmul.f32 0.7978846, %v571_v47  ;;  %v619_v59 = vmul.f32 0.7978846, %v587_v49  ;;  %v541_v60 = vmul.f32 0.044715, %v509_v50  ;;  %v1210_v13 = vadd.f32 %v1138_v17, %v231_v52 }
  0xd2   :  { %v572_v63 = vadd.f32 %v540_v53, %v1154_v27  ;;  %v588_v0 = vadd.f32 %v556_v54, %v1157_v28  ;;  %v557_v1 = vmul.f32 0.044715, %v525_v55  ;;  %v510_v4 = vmul.f32 %v478_v61, %v1189_v51  ;;  %v235_v30 = vpop.f32.mrf.mxu0  ;;  %v275_v31 = vpop.f32.mrf.mxu1 }
  0xd3   :  { %1000 = vtanh.f32 %v603_v58  ;;  %v573_v3 = vadd.f32 %v541_v60, %v1165_v34  ;;  %v1213_v15 = vadd.f32 %v1138_v17, %v271_v57  ;;  %v1216_v18 = vadd.f32 %v1141_v20, %v233_v5 }
  0xd4   :  { %1002 = vtanh.f32 %v619_v59  ;;  %v604_v6 = vmul.f32 0.7978846, %v572_v63  ;;  %v620_v7 = vmul.f32 0.7978846, %v588_v0  ;;  %v589_v8 = vadd.f32 %v557_v1, %v1168_v35 }
  0xd5   :  { %v605_v10 = vmul.f32 0.7978846, %v573_v3  ;;  %v542_v11 = vmul.f32 0.044715, %v510_v4  ;;  %v526_v24 = vmul.f32 %v494_v12, %v1193_v56  ;;  %v479_v26 = vmul.f32 %v1210_v13, %v1210_v13 }
  0xd6   :  { %1004 = vtanh.f32 %v604_v6  ;;  %v621_v14 = vmul.f32 0.7978846, %v589_v8  ;;  %v495_v29 = vmul.f32 %v1213_v15, %v1213_v15  ;;  %v480_v21 = vmul.f32 %v1216_v18, %v1216_v18 }
  0xd7   :  { %1006 = vtanh.f32 %v620_v7  ;;  %v574_v23 = vadd.f32 %v542_v11, %v1189_v51  ;;  %v558_v33 = vmul.f32 0.044715, %v526_v24  ;;  %v511_v36 = vmul.f32 %v479_v26, %v1210_v13  ;;  %v237_v7 = vpop.f32.mrf.mxu0 }
  0xd8   :  { %1008 = vtanh.f32 %v605_v10  ;;  %v527_v37 = vmul.f32 %v495_v29, %v1213_v15  ;;  %v1234_v38 = vadd.f32 %v1141_v20, %v273_v9  ;;  %v1238_v40 = vadd.f32 %v1138_v17, %v235_v30 }
  0xd9   :  { %1010 = vtanh.f32 %v621_v14  ;;  %v606_v16 = vmul.f32 0.7978846, %v574_v23  ;;  %v590_v39 = vadd.f32 %v558_v33, %v1193_v56  ;;  %v1241_v22 = vadd.f32 %v1138_v17, %v275_v31 }
  0xda   :  { %v444_v41 = vmul.f32 0.5, %v1154_v27  ;;  %v543_v42 = vmul.f32 0.044715, %v511_v36  ;;  %v559_v44 = vmul.f32 0.044715, %v527_v37  ;;  %v512_v45 = vmul.f32 %v480_v21, %v1216_v18 }
  0xdb   :  { %1012 = vtanh.f32 %v606_v16  ;;  %v460_v46 = vmul.f32 0.5, %v1157_v28  ;;  %v622_v47 = vmul.f32 0.7978846, %v590_v39  ;;  %v496_v48 = vmul.f32 %v1234_v38, %v1234_v38  ;;  %v277_v39 = vpop.f32.mrf.mxu1 }
  0xdc   :  { %v481_v49 = vmul.f32 %v1238_v40, %v1238_v40  ;;  %v445_v50 = vmul.f32 0.5, %v1165_v34  ;;  %v575_v52 = vadd.f32 %v543_v42, %v1210_v13  ;;  %v591_v53 = vadd.f32 %v559_v44, %v1213_v15 }
  0xdd   :  { %v544_v27 = vmul.f32 0.044715, %v512_v45  ;;  %1014 = vtanh.f32 %v622_v47  ;;  %v528_v54 = vmul.f32 %v496_v48, %v1234_v38  ;;  %v497_v28 = vmul.f32 %v1241_v22, %v1241_v22 }
  0xde   :  { %v513_v55 = vmul.f32 %v481_v49, %v1238_v40  ;;  %v461_v58 = vmul.f32 0.5, %v1168_v35  ;;  %v607_v59 = vmul.f32 0.7978846, %v575_v52  ;;  %v623_v60 = vmul.f32 0.7978846, %v591_v53 }
  0xdf   :  { %v576_v34 = vadd.f32 %v544_v27, %v1216_v18  ;;  %v560_v0 = vmul.f32 0.044715, %v528_v54  ;;  %v529_v3 = vmul.f32 %v497_v28, %v1241_v22  ;;  %v446_v5 = vmul.f32 0.5, %v1189_v51 }
  0xe0   :  { %v1001_v57 = vpop.eup %1000  ;;  %v545_v1 = vmul.f32 0.044715, %v513_v55  ;;  %1016 = vtanh.f32 %v607_v59  ;;  %v1264_v51 = vadd.f32 %v1141_v20, %v237_v7  ;;  %v462_v47 = vmul.f32 0.5, %v1193_v56 }
  0xe1   :  { %v1003_v61 = vpop.eup %1002  ;;  %v667_v63 = vadd.f32 1.0, %v1001_v57  ;;  %v608_v6 = vmul.f32 0.7978846, %v576_v34  ;;  %1018 = vtanh.f32 %v623_v60  ;;  %v592_v35 = vadd.f32 %v560_v0, %v1234_v38  ;;  %v241_v57 = vpop.f32.mrf.mxu0 }
  0xe2   :  { %v683_v4 = vadd.f32 1.0, %v1003_v61  ;;  %v577_v10 = vadd.f32 %v545_v1, %v1238_v40  ;;  %v561_v23 = vmul.f32 0.044715, %v529_v3  ;;  %v1277_v54 = vadd.f32 %v1141_v20, %v277_v39 }
  0xe3   :  { %v1005_v8 = vpop.eup %1004  ;;  %v699_v9 = vmul.f32 %v667_v63, %v443_v25  ;;  %1020 = vtanh.f32 %v608_v6  ;;  %v624_v29 = vmul.f32 0.7978846, %v592_v35  ;;  %v447_v34 = vmul.f32 0.5, %v1210_v13  ;;  %v243_v39 = vpop.f32.mrf.mxu0 }
  0xe4   :  { %v1007_v11 = vpop.eup %1006  ;;  %v715_v12 = vmul.f32 %v683_v4, %v459_v32  ;;  %v668_v14 = vadd.f32 1.0, %v1005_v8  ;;  %v609_v30 = vmul.f32 0.7978846, %v577_v10  ;;  %v593_v36 = vadd.f32 %v561_v23, %v1241_v22  ;;  %v281_v23 = vpop.f32.mrf.mxu1 }
  0xe5   :  { %v1009_v24 = vpop.eup %1008  ;;  %v684_v26 = vadd.f32 1.0, %v1007_v11  ;;  %v743_v25 = vmul.f32 %v1176_v43, %v699_v9  ;;  %1022 = vtanh.f32 %v624_v29  ;;  %v463_v3 = vmul.f32 0.5, %v1213_v15 }
  0xe6   :  { %v1011_v31 = vpop.eup %1010  ;;  %v700_v16 = vmul.f32 %v668_v14, %v444_v41  ;;  %v669_v33 = vadd.f32 1.0, %v1009_v24  ;;  %v759_v37 = vmul.f32 %v1176_v43, %v715_v12  ;;  %1024 = vtanh.f32 %v609_v30 }
  0xe7   :  { %v716_v32 = vmul.f32 %v684_v26, %v460_v46  ;;  %v685_v21 = vadd.f32 1.0, %v1011_v31  ;;  %v625_v52 = vmul.f32 0.7978846, %v593_v36  ;;  %v787_v53 = vadd.f32 %v1197_v62, %v743_v25 }
  0xe8   :  { %v1013_v42 = vpop.eup %1012  ;;  %v744_v44 = vmul.f32 %v1202_v2, %v700_v16  ;;  %v701_v45 = vmul.f32 %v669_v33, %v445_v50  ;;  %v482_v46 = vmul.f32 %v1264_v51, %v1264_v51  ;;  %v803_v50 = vadd.f32 %v1197_v62, %v759_v37 }
  0xe9   :  { %v760_v48 = vmul.f32 %v1202_v2, %v716_v32  ;;  %v717_v49 = vmul.f32 %v685_v21, %v461_v58  ;;  %v670_v41 = vadd.f32 1.0, %v1013_v42  ;;  %1026 = vtanh.f32 %v625_v52 }
  0xea   :  { %v788_v27 = vadd.f32 %v1219_v19, %v744_v44  ;;  %v745_v55 = vmul.f32 %v1176_v43, %v701_v45  ;;  %v1015_v58 = vpop.eup %1014  ;;  %v514_v61 = vmul.f32 %v482_v46, %v1264_v51  ;;  %v1293_v6 = vadd.f32 %v1138_v17, %v241_v57 }
  0xeb   :  { %v804_v56 = vadd.f32 %v1219_v19, %v760_v48  ;;  %v702_v28 = vmul.f32 %v670_v41, %v446_v5  ;;  %v761_v60 = vmul.f32 %v1176_v43, %v717_v49  ;;  %v686_v1 = vadd.f32 1.0, %v1015_v58 }
  0xec   :  { %v970_v59 = vpack.c.bf16 %v788_v27, %v787_v53  ;;  %v546_v4 = vmul.f32 0.044715, %v514_v61  ;;  %v498_v5 = vmul.f32 %v1277_v54, %v1277_v54  ;;  %v789_v7 = vadd.f32 %v1197_v62, %v745_v55  ;;  %v283_v27 = vpop.f32.mrf.mxu1  ;;  %v245_v61 = vpop.f32.mrf.mxu0 }
  0xed   :  { %v978_v63 = vpack.c.bf16 %v804_v56, %v803_v50  ;;  %v746_v0 = vmul.f32 %v1202_v2, %v702_v28  ;;  %v1017_v13 = vpop.eup %1016  ;;  %v718_v9 = vmul.f32 %v686_v1, %v462_v47  ;;  %v448_v35 = vmul.f32 0.5, %v1216_v18 }
  0xee   :  { %915 = vst [vmem:[%s1535_s5] sm:$0xff] %v970_v59  ;;  %v1019_v15 = vpop.eup %1018  ;;  %v805_v10 = vadd.f32 %v1197_v62, %v761_v60  ;;  %v671_v11 = vadd.f32 1.0, %v1017_v13  ;;  %v578_v12 = vadd.f32 %v546_v4, %v1264_v51  ;;  %v530_v14 = vmul.f32 %v498_v5, %v1277_v54 }
  0xef   :  { %923 = vst [vmem:[%s1535_s5 + $0x40] sm:$0xff] %v978_v63  ;;  %v790_v8 = vadd.f32 %v1219_v19, %v746_v0  ;;  %v762_v29 = vmul.f32 %v1202_v2, %v718_v9  ;;  %v687_v30 = vadd.f32 1.0, %v1019_v15  ;;  %v483_v31 = vmul.f32 %v1293_v6, %v1293_v6  ;;  %v285_v9 = vpop.f32.mrf.mxu1 }
  0xf0   :  { %v1021_v24 = vpop.eup %1020  ;;  %v703_v25 = vmul.f32 %v671_v11, %v447_v34  ;;  %v610_v18 = vmul.f32 0.7978846, %v578_v12  ;;  %v562_v33 = vmul.f32 0.044715, %v530_v14  ;;  %v1313_v21 = vadd.f32 %v1138_v17, %v281_v23  ;;  %v247_v14 = vpop.f32.mrf.mxu0 }
  0xf1   :  { %v971_v26 = vpack.c.bf16 %v790_v8, %v789_v7  ;;  %v672_v16 = vadd.f32 1.0, %v1021_v24  ;;  %v806_v36 = vadd.f32 %v1219_v19, %v762_v29  ;;  %v719_v37 = vmul.f32 %v687_v30, %v463_v3 }
  0xf2   :  { %v515_v32 = vmul.f32 %v483_v31, %v1293_v6  ;;  %v1023_v42 = vpop.eup %1022  ;;  %v747_v44 = vmul.f32 %v1176_v43, %v703_v25  ;;  %1028 = vtanh.f32 %v610_v18  ;;  %v594_v47 = vadd.f32 %v562_v33, %v1277_v54 }
  0xf3   :  { %916 = vst [vmem:[%s1535_s5 + $0x8] sm:$0xff] %v971_v26  ;;  %v704_v45 = vmul.f32 %v672_v16, %v448_v35  ;;  %v1025_v48 = vpop.eup %1024  ;;  %v979_v49 = vpack.c.bf16 %v806_v36, %v805_v10  ;;  %v464_v41 = vmul.f32 0.5, %v1234_v38  ;;  %v688_v52 = vadd.f32 1.0, %v1023_v42  ;;  %v287_v16 = vpop.f32.mrf.mxu1 }
  0xf4   :  { %v547_v53 = vmul.f32 0.044715, %v515_v32  ;;  %v763_v46 = vmul.f32 %v1176_v43, %v719_v37  ;;  %v626_v56 = vmul.f32 0.7978846, %v594_v47  ;;  %v1321_v55 = vadd.f32 %v1141_v20, %v243_v39 }
  0xf5   :  { %v748_v50 = vmul.f32 %v1202_v2, %v704_v45  ;;  %924 = vst [vmem:[%s1535_s5 + $0x48] sm:$0xff] %v979_v49  ;;  %v720_v28 = vmul.f32 %v688_v52, %v464_v41  ;;  %v673_v57 = vadd.f32 1.0, %v1025_v48  ;;  %v499_v38 = vmul.f32 %v1313_v21, %v1313_v21 }
  0xf6   :  { %v579_v58 = vadd.f32 %v547_v53, %v1293_v6  ;;  %v791_v59 = vadd.f32 %v1197_v62, %v747_v44  ;;  %1030 = vtanh.f32 %v626_v56  ;;  %v1332_v34 = vadd.f32 %v1141_v20, %v283_v27  ;;  %v1027_v4 = vpop.eup %1026  ;;  %v251_v44 = vpop.f32.mrf.mxu0 }
  0xf7   :  { %v792_v60 = vadd.f32 %v1219_v19, %v748_v50  ;;  %v764_v63 = vmul.f32 %v1202_v2, %v720_v28  ;;  %v449_v0 = vmul.f32 0.5, %v1238_v40  ;;  %v531_v3 = vmul.f32 %v499_v38, %v1313_v21 }
  0xf8   :  { %v611_v1 = vmul.f32 0.7978846, %v579_v58  ;;  %v807_v5 = vadd.f32 %v1197_v62, %v763_v46  ;;  %v465_v7 = vmul.f32 0.5, %v1241_v22  ;;  %v484_v8 = vmul.f32 %v1321_v55, %v1321_v55 }
  0xf9   :  { %v972_v13 = vpack.c.bf16 %v792_v60, %v791_v59  ;;  %v808_v35 = vadd.f32 %v1219_v19, %v764_v63  ;;  %v705_v15 = vmul.f32 %v673_v57, %v449_v0  ;;  %v563_v10 = vmul.f32 0.044715, %v531_v3  ;;  %v291_v0 = vpop.f32.mrf.mxu1 }
  0xfa   :  { %1032 = vtanh.f32 %v611_v1  ;;  %v450_v40 = vmul.f32 0.5, %v1264_v51  ;;  %v516_v11 = vmul.f32 %v484_v8, %v1321_v55  ;;  %v500_v22 = vmul.f32 %v1332_v34, %v1332_v34 }
  0xfb   :  { %917 = vst [vmem:[%s1535_s5 + $0x10] sm:$0xff] %v972_v13  ;;  %v1350_v12 = vadd.f32 %v1138_v17, %v245_v61  ;;  %v980_v23 = vpack.c.bf16 %v808_v35, %v807_v5  ;;  %v689_v24 = vadd.f32 1.0, %v1027_v4  ;;  %v595_v26 = vadd.f32 %v563_v10, %v1313_v21 }
  0xfc   :  { %v1354_v29 = vadd.f32 %v1138_v17, %v285_v9  ;;  %v466_v30 = vmul.f32 0.5, %v1277_v54  ;;  %v548_v31 = vmul.f32 0.044715, %v516_v11  ;;  %v532_v51 = vmul.f32 %v500_v22, %v1332_v34 }
  0xfd   :  { %v485_v25 = vmul.f32 %v1350_v12, %v1350_v12  ;;  %925 = vst [vmem:[%s1535_s5 + $0x50] sm:$0xff] %v980_v23  ;;  %v749_v18 = vmul.f32 %v1176_v43, %v705_v15  ;;  %v1365_v33 = vmul.f32 0.5, %v1293_v6  ;;  %v627_v36 = vmul.f32 0.7978846, %v595_v26  ;;  %v293_v23 = vpop.f32.mrf.mxu1 }
  0xfe   :  { %v501_v54 = vmul.f32 %v1354_v29, %v1354_v29  ;;  %v580_v37 = vadd.f32 %v548_v31, %v1321_v55  ;;  %v564_v32 = vmul.f32 0.044715, %v532_v51  ;;  %v1372_v42 = vadd.f32 %v1141_v20, %v247_v14  ;;  %v253_v14 = vpop.f32.mrf.mxu0 }
  0xff   :  { %v517_v39 = vmul.f32 %v485_v25, %v1350_v12  ;;  %v1029_v45 = vpop.eup %1028  ;;  %v721_v47 = vmul.f32 %v689_v24, %v465_v7  ;;  %1034 = vtanh.f32 %v627_v36  ;;  %v1376_v6 = vadd.f32 %v1141_v20, %v287_v16 }
 0x100   :  { %v533_v48 = vmul.f32 %v501_v54, %v1354_v29  ;;  %v674_v49 = vadd.f32 1.0, %v1029_v45  ;;  %v612_v41 = vmul.f32 0.7978846, %v580_v37  ;;  %v596_v52 = vadd.f32 %v564_v32, %v1332_v34 }
 0x101   :  { %v549_v53 = vmul.f32 0.044715, %v517_v39  ;;  %v793_v27 = vadd.f32 %v1197_v62, %v749_v18  ;;  %v486_v50 = vmul.f32 %v1372_v42, %v1372_v42  ;;  %v1383_v56 = vadd.f32 %v1138_v17, %v251_v44 }
 0x102   :  { %v565_v46 = vmul.f32 0.044715, %v533_v48  ;;  %v706_v28 = vmul.f32 %v674_v49, %v450_v40  ;;  %1036 = vtanh.f32 %v612_v41  ;;  %v628_v57 = vmul.f32 0.7978846, %v596_v52  ;;  %v255_v52 = vpop.f32.mrf.mxu0 }
 0x103   :  { %v581_v58 = vadd.f32 %v549_v53, %v1350_v12  ;;  %v1031_v38 = vpop.eup %1030  ;;  %v765_v59 = vmul.f32 %v1176_v43, %v721_v47  ;;  %v518_v61 = vmul.f32 %v486_v50, %v1372_v42  ;;  %v502_v63 = vmul.f32 %v1376_v6, %v1376_v6 }
 0x104   :  { %v597_v60 = vadd.f32 %v565_v46, %v1354_v29  ;;  %v750_v1 = vmul.f32 %v1202_v2, %v706_v28  ;;  %v690_v3 = vadd.f32 1.0, %v1031_v38  ;;  %1038 = vtanh.f32 %v628_v57  ;;  %v295_v57 = vpop.f32.mrf.mxu1 }
 0x105   :  { %v613_v4 = vmul.f32 0.7978846, %v581_v58  ;;  %v550_v13 = vmul.f32 0.044715, %v518_v61  ;;  %v534_v7 = vmul.f32 %v502_v63, %v1376_v6  ;;  %v487_v8 = vmul.f32 %v1383_v56, %v1383_v56 }
 0x106   :  { %v629_v5 = vmul.f32 0.7978846, %v597_v60  ;;  %v794_v35 = vadd.f32 %v1219_v19, %v750_v1  ;;  %v722_v15 = vmul.f32 %v690_v3, %v466_v30  ;;  %v1397_v10 = vadd.f32 %v1138_v17, %v291_v0 }
 0x107   :  { %v1033_v9 = vpop.eup %1032  ;;  %1040 = vtanh.f32 %v613_v4  ;;  %v582_v11 = vadd.f32 %v550_v13, %v1372_v42  ;;  %v566_v22 = vmul.f32 0.044715, %v534_v7  ;;  %v467_v31 = vmul.f32 0.5, %v1313_v21 }
 0x108   :  { %v675_v40 = vadd.f32 1.0, %v1033_v9  ;;  %1042 = vtanh.f32 %v629_v5  ;;  %v973_v24 = vpack.c.bf16 %v794_v35, %v793_v27  ;;  %v766_v26 = vmul.f32 %v1202_v2, %v722_v15 }
 0x109   :  { %v519_v51 = vmul.f32 %v487_v8, %v1383_v56  ;;  %v809_v30 = vadd.f32 %v1197_v62, %v765_v59  ;;  %v614_v25 = vmul.f32 0.7978846, %v582_v11  ;;  %v598_v16 = vadd.f32 %v566_v22, %v1376_v6 }
 0x10a   :  { %v503_v18 = vmul.f32 %v1397_v10, %v1397_v10  ;;  %918 = vst [vmem:[%s1535_s5 + $0x18] sm:$0xff] %v973_v24  ;;  %v810_v36 = vadd.f32 %v1219_v19, %v766_v26  ;;  %v1412_v37 = vadd.f32 %v1141_v20, %v253_v14  ;;  %v1415_v21 = vadd.f32 %v1141_v20, %v293_v23 }
 0x10b   :  { %v551_v54 = vmul.f32 0.044715, %v519_v51  ;;  %v707_v32 = vmul.f32 %v675_v40, %v1365_v33  ;;  %1044 = vtanh.f32 %v614_v25  ;;  %v630_v39 = vmul.f32 0.7978846, %v598_v16  ;;  %v257_v25 = vpop.f32.mrf.mxu0 }
 0x10c   :  { %v535_v44 = vmul.f32 %v503_v18, %v1397_v10  ;;  %v1035_v45 = vpop.eup %1034  ;;  %v981_v47 = vpack.c.bf16 %v810_v36, %v809_v30  ;;  %v452_v48 = vmul.f32 0.5, %v1321_v55  ;;  %v488_v41 = vmul.f32 %v1412_v37, %v1412_v37 }
 0x10d   :  { %v583_v49 = vadd.f32 %v551_v54, %v1383_v56  ;;  %v691_v53 = vadd.f32 1.0, %v1035_v45  ;;  %v468_v27 = vmul.f32 0.5, %v1332_v34  ;;  %1046 = vtanh.f32 %v630_v39 }
 0x10e   :  { %v567_v46 = vmul.f32 0.044715, %v535_v44  ;;  %926 = vst [vmem:[%s1535_s5 + $0x58] sm:$0xff] %v981_v47  ;;  %v453_v33 = vmul.f32 0.5, %v1350_v12  ;;  %v520_v55 = vmul.f32 %v488_v41, %v1412_v37  ;;  %v504_v28 = vmul.f32 %v1415_v21, %v1415_v21 }
 0x10f   :  { %v615_v50 = vmul.f32 0.7978846, %v583_v49  ;;  %v1037_v58 = vpop.eup %1036  ;;  %v751_v38 = vmul.f32 %v1176_v43, %v707_v32  ;;  %v723_v59 = vmul.f32 %v691_v53, %v467_v31  ;;  %v1434_v60 = vadd.f32 %v1138_v17, %v255_v52  ;;  %v297_v53 = vpop.f32.mrf.mxu1 }
 0x110   :  { %v599_v34 = vadd.f32 %v567_v46, %v1397_v10  ;;  %v676_v61 = vadd.f32 1.0, %v1037_v58  ;;  %v552_v63 = vmul.f32 0.044715, %v520_v55  ;;  %v536_v12 = vmul.f32 %v504_v28, %v1415_v21 }
 0x111   :  { %1048 = vtanh.f32 %v615_v50  ;;  %v1039_v0 = vpop.eup %1038  ;;  %v767_v1 = vmul.f32 %v1176_v43, %v723_v59  ;;  %v489_v4 = vmul.f32 %v1434_v60, %v1434_v60  ;;  %v1441_v5 = vadd.f32 %v1138_v17, %v295_v57 }
 0x112   :  { %v631_v3 = vmul.f32 0.7978846, %v599_v34  ;;  %v708_v13 = vmul.f32 %v676_v61, %v452_v48  ;;  %v692_v7 = vadd.f32 1.0, %v1039_v0  ;;  %v584_v8 = vadd.f32 %v552_v63, %v1412_v37 }
 0x113   :  { %v568_v9 = vmul.f32 0.044715, %v536_v12  ;;  %v795_v15 = vadd.f32 %v1197_v62, %v751_v38  ;;  %v469_v40 = vmul.f32 0.5, %v1354_v29  ;;  %v521_v11 = vmul.f32 %v489_v4, %v1434_v60 }
 0x114   :  { %v1041_v35 = vpop.eup %1040  ;;  %1050 = vtanh.f32 %v631_v3  ;;  %v752_v14 = vmul.f32 %v1202_v2, %v708_v13  ;;  %v724_v23 = vmul.f32 %v692_v7, %v468_v27  ;;  %v616_v17 = vmul.f32 0.7978846, %v584_v8 }
 0x115   :  { %v1043_v22 = vpop.eup %1042  ;;  %v677_v24 = vadd.f32 1.0, %v1041_v35  ;;  %v600_v31 = vadd.f32 %v568_v9, %v1415_v21  ;;  %v553_v51 = vmul.f32 0.044715, %v521_v11  ;;  %v505_v30 = vmul.f32 %v1441_v5, %v1441_v5 }
 0x116   :  { %v693_v26 = vadd.f32 1.0, %v1043_v22  ;;  %v811_v16 = vadd.f32 %v1197_v62, %v767_v1  ;;  %v796_v29 = vadd.f32 %v1219_v19, %v752_v14  ;;  %v768_v18 = vmul.f32 %v1202_v2, %v724_v23 }
 0x117   :  { %1052 = vtanh.f32 %v616_v17  ;;  %v709_v36 = vmul.f32 %v677_v24, %v453_v33  ;;  %v632_v54 = vmul.f32 0.7978846, %v600_v31  ;;  %v585_v32 = vadd.f32 %v553_v51, %v1434_v60 }
 0x118   :  { %v537_v39 = vmul.f32 %v505_v30, %v1441_v5  ;;  %v1045_v44 = vpop.eup %1044  ;;  %v974_v45 = vpack.c.bf16 %v796_v29, %v795_v15  ;;  %v812_v47 = vadd.f32 %v1219_v19, %v768_v18  ;;  %v725_v48 = vmul.f32 %v693_v26, %v469_v40 }
 0x119   :  { %v1458_v49 = vadd.f32 %v1141_v20, %v257_v25  ;;  %v454_v41 = vmul.f32 0.5, %v1372_v42  ;;  %v678_v52 = vadd.f32 1.0, %v1045_v44  ;;  %1054 = vtanh.f32 %v632_v54 }
 0x11a   :  { %v1047_v27 = vpop.eup %1046  ;;  %919 = vst [vmem:[%s1535_s5 + $0x20] sm:$0xff] %v974_v45  ;;  %v982_v46 = vpack.c.bf16 %v812_v47, %v811_v16  ;;  %v617_v33 = vmul.f32 0.7978846, %v585_v32  ;;  %v569_v50 = vmul.f32 0.044715, %v537_v39  ;;  %v753_v55 = vmul.f32 %v1176_v43, %v709_v36 }
 0x11b   :  { %v710_v28 = vmul.f32 %v678_v52, %v454_v41  ;;  %v470_v57 = vmul.f32 0.5, %v1376_v6  ;;  %v694_v58 = vadd.f32 1.0, %v1047_v27  ;;  %v769_v42 = vmul.f32 %v1176_v43, %v725_v48 }
 0x11c   :  { %927 = vst [vmem:[%s1535_s5 + $0x60] sm:$0xff] %v982_v46  ;;  %v601_v38 = vadd.f32 %v569_v50, %v1441_v5  ;;  %v490_v59 = vmul.f32 %v1458_v49, %v1458_v49  ;;  %v1474_v34 = vadd.f32 %v1141_v20, %v297_v53  ;;  %1056 = vtanh.f32 %v617_v33 }
 0x11d   :  { %v754_v63 = vmul.f32 %v1202_v2, %v710_v28  ;;  %v726_v12 = vmul.f32 %v694_v58, %v470_v57  ;;  %v797_v3 = vadd.f32 %v1197_v62, %v753_v55  ;;  %v813_v8 = vadd.f32 %v1197_v62, %v769_v42 }
 0x11e   :  { %v1049_v61 = vpop.eup %1048  ;;  %v633_v0 = vmul.f32 0.7978846, %v601_v38  ;;  %v522_v1 = vmul.f32 %v490_v59, %v1458_v49  ;;  %v506_v7 = vmul.f32 %v1474_v34, %v1474_v34  ;;  %v455_v9 = vmul.f32 0.5, %v1383_v56 }
 0x11f   :  { %v679_v6 = vadd.f32 1.0, %v1049_v61  ;;  %v798_v4 = vadd.f32 %v1219_v19, %v754_v63  ;;  %v770_v13 = vmul.f32 %v1202_v2, %v726_v12  ;;  %v471_v26 = vmul.f32 0.5, %v1397_v10 }
 0x120   :  { %1058 = vtanh.f32 %v633_v0  ;;  %v554_v35 = vmul.f32 0.044715, %v522_v1  ;;  %v538_v22 = vmul.f32 %v506_v7, %v1474_v34  ;;  %v456_v31 = vmul.f32 0.5, %v1412_v37 }
 0x121   :  { %v1051_v20 = vpop.eup %1050  ;;  %v975_v15 = vpack.c.bf16 %v798_v4, %v797_v3  ;;  %v814_v40 = vadd.f32 %v1219_v19, %v770_v13  ;;  %v711_v14 = vmul.f32 %v679_v6, %v455_v9  ;;  %v472_v54 = vmul.f32 0.5, %v1415_v21 }
 0x122   :  { %v695_v11 = vadd.f32 1.0, %v1051_v20  ;;  %v586_v23 = vadd.f32 %v554_v35, %v1458_v49  ;;  %v570_v56 = vmul.f32 0.044715, %v538_v22  ;;  %v457_v50 = vmul.f32 0.5, %v1434_v60 }
 0x123   :  { %920 = vst [vmem:[%s1535_s5 + $0x28] sm:$0xff] %v975_v15  ;;  %v983_v17 = vpack.c.bf16 %v814_v40, %v813_v8  ;;  %v755_v18 = vmul.f32 %v1176_v43, %v711_v14  ;;  %v473_v58 = vmul.f32 0.5, %v1441_v5  ;;  %v458_v42 = vmul.f32 0.5, %v1458_v49 }
 0x124   :  { %v1053_v24 = vpop.eup %1052  ;;  %v618_v30 = vmul.f32 0.7978846, %v586_v23  ;;  %v727_v25 = vmul.f32 %v695_v11, %v471_v26  ;;  %v602_v16 = vadd.f32 %v570_v56, %v1474_v34  ;;  %v474_v6 = vmul.f32 0.5, %v1474_v34 }
 0x125   :  { %v680_v51 = vadd.f32 1.0, %v1053_v24  ;;  %928 = vst [vmem:[%s1535_s5 + $0x68] sm:$0xff] %v983_v17  ;;  %v799_v45 = vadd.f32 %v1197_v62, %v755_v18 }
 0x126   :  { %v1055_v29 = vpop.eup %1054  ;;  %1060 = vtanh.f32 %v618_v30  ;;  %v634_v32 = vmul.f32 0.7978846, %v602_v16  ;;  %v771_v39 = vmul.f32 %v1176_v43, %v727_v25 }
 0x127   :  { %v712_v36 = vmul.f32 %v680_v51, %v456_v31  ;;  %v696_v10 = vadd.f32 1.0, %v1055_v29 }
 0x128   :  { %1062 = vtanh.f32 %v634_v32  ;;  %v815_v27 = vadd.f32 %v1197_v62, %v771_v39 }
 0x129   :  { %v756_v37 = vmul.f32 %v1202_v2, %v712_v36  ;;  %v728_v44 = vmul.f32 %v696_v10, %v472_v54  ;;  %v1057_v48 = vpop.eup %1056 }
 0x12a   :  { %v681_v46 = vadd.f32 1.0, %v1057_v48 }
 0x12b   :  { %v800_v47 = vadd.f32 %v1219_v19, %v756_v37  ;;  %v772_v41 = vmul.f32 %v1202_v2, %v728_v44 }
 0x12c   :  { %v713_v28 = vmul.f32 %v681_v46, %v457_v50 }
 0x12d   :  { %v976_v52 = vpack.c.bf16 %v800_v47, %v799_v45  ;;  %v1059_v53 = vpop.eup %1058  ;;  %v816_v21 = vadd.f32 %v1219_v19, %v772_v41 }
 0x12e   :  { %v697_v55 = vadd.f32 1.0, %v1059_v53  ;;  %v757_v63 = vmul.f32 %v1176_v43, %v713_v28 }
 0x12f   :  { %921 = vst [vmem:[%s1535_s5 + $0x30] sm:$0xff] %v976_v52  ;;  %v984_v33 = vpack.c.bf16 %v816_v21, %v815_v27 }
 0x130   :  { %v729_v59 = vmul.f32 %v697_v55, %v473_v58  ;;  %v801_v4 = vadd.f32 %v1197_v62, %v757_v63 }
 0x131   :  { %929 = vst [vmem:[%s1535_s5 + $0x70] sm:$0xff] %v984_v33 }
 0x132   :  { %v773_v1 = vmul.f32 %v1176_v43, %v729_v59 }
 0x133   :  { %v1061_v57 = vpop.eup %1060 }
 0x134   :  { %v682_v38 = vadd.f32 1.0, %v1061_v57  ;;  %v817_v7 = vadd.f32 %v1197_v62, %v773_v1 }
 0x135   :  { %v1063_v61 = vpop.eup %1062 }
 0x136   :  { %v714_v12 = vmul.f32 %v682_v38, %v458_v42  ;;  %v698_v60 = vadd.f32 1.0, %v1063_v61 }
 0x138   :  { %v758_v0 = vmul.f32 %v1202_v2, %v714_v12  ;;  %v730_v3 = vmul.f32 %v698_v60, %v474_v6 }
 0x13a   :  { %v802_v5 = vadd.f32 %v1219_v19, %v758_v0  ;;  %v774_v49 = vmul.f32 %v1202_v2, %v730_v3 }
 0x13c   :  { %v977_v13 = vpack.c.bf16 %v802_v5, %v801_v4  ;;  %v818_v20 = vadd.f32 %v1219_v19, %v774_v49 }
 0x13e   :  { %922 = vst [vmem:[%s1535_s5 + $0x38] sm:$0xff] %v977_v13  ;;  %v985_v34 = vpack.c.bf16 %v818_v20, %v817_v7 }
 0x140   :  { %930 = vst [vmem:[%s1535_s5 + $0x78] sm:$0xff] %v985_v34 }

// kernel: convmixer_forward.6
= control target key start
LH: loop header
LB: loop body
LE: loop exit
PB: predicated region body
PF: predicated region fallthrough
CT: control target
= control target key end

     0   :  { %s3158_s30 = smov 0   ;;  %s3160_s10 = smov 0   ;;  %s4628_s0 = inlined_call_operand.vmem [shape: bf16[2,8,8,256], index: 0, kind: input, shape index: {}]   ;;  %s4629_s1 = inlined_call_operand.vmem [shape: f32[9,256], index: 1, kind: input, shape index: {}]   ;;  %s4630_s2 = inlined_call_operand.vmem [shape: f32[1,256], index: 2, kind: input, shape index: {}]   ;;  %s4631_s3 = inlined_call_operand.vmem [shape: f32[1,256], index: 3, kind: input, shape index: {}]   ;;  %s4632_s4 = inlined_call_operand.vmem [shape: f32[1,256], index: 4, kind: input, shape index: {}]   ;;  %s4633_s5 = inlined_call_operand.vmem [shape: bf16[256,256], index: 5, kind: input, shape index: {}]   ;;  %s4634_s6 = inlined_call_operand.vmem [shape: f32[1,256], index: 6, kind: input, shape index: {}]   ;;  %s4635_s7 = inlined_call_operand.vmem [shape: f32[1,256], index: 7, kind: input, shape index: {}]   ;;  %s4636_s8 = inlined_call_operand.vmem [shape: f32[1,256], index: 8, kind: input, shape index: {}]   ;;  %s4637_s9 = inlined_call_operand.vmem [shape: f32[2,1,256], index: 9, kind: output, shape index: {}]  }
   0x1   :  { %s3162_s11 = smov 0  }
   0x2 LB: > { %s31_s12 = sadd.s32 1, %s3100_s10  ;;  %p2802_p0 = scmp.ge.s32.totalorder %s3104_s11, 1  ;;  %s3104_s11 = sphi %s3162_s11, %s19_s11   ;;  %s3100_s10 = sphi %s3160_s10, %s4818_s10   ;;  %s3096_s30 = sphi %s3158_s30, %s4817_s30  }
   0x3   : > { %p33_p1 = scmp.ge.s32.totalorder %s31_s12, 2  ;;  %p359_p2 = scmp.lt.s32.totalorder %s3104_s11, 3 }
   0x5   : > { %s4820_s12 = smov (%p33_p1, %s31_s12), 0  ;;  %p360_p3 = pnand %p2802_p0, %p359_p2 }
   0x7   : > { %363 = sbr.rel (%p360_p3) target bundleno = 585 (0x249), region = 56 }
   0xc   : > { %v2907_v0 = vld [vmem:[%s4633_s5 + $0x74] ss:$8 sps:$4 sm:$0xff]   ;;  %v477_v1 = vlaneseq  ;;  %v2909_v2 = vld [vmem:[%s4633_s5 + $0x70] ss:$8 sps:$4 sm:$0xff]   ;;  %v3106_v3 = vmov 0.0   ;;  %v4679_v6 = vmov 0 }
   0xd   : > { %464 = vst [vmem:[#allocation2 + $0x8] sm:$0xff] %v3106_v3  ;;  %466 = vst [vmem:[#allocation2 + $0x18] sm:$0xff] %v3106_v3  ;;  %2243 = vmatprep.subr.bf16.mxu0 %v2907_v0  ;;  %2849 = vmatprep.subr.bf16.mxu1 %v2907_v0  ;;  %v2910_v4 = vld [vmem:[%s4633_s5 + $0x64] ss:$8 sps:$4 sm:$0xff]   ;;  %v2912_v5 = vld [vmem:[%s4633_s5 + $0x60] ss:$8 sps:$4 sm:$0xff]  }
   0xe   : > { %468 = vst [vmem:[#allocation2 + $0x28] sm:$0x1] %v3106_v3  ;;  %463 = vst [vmem:[#allocation2] sm:$0xff] %v3106_v3  ;;  %2244 = vmatpush1.bf16.msra.mxu0 %v2909_v2  ;;  %2865 = vmatpush1.bf16.msra.mxu1 %v2909_v2  ;;  %vm3190_vm0 = vcmp.lt.s32.totalorder %v477_v1, 256  ;;  %v2913_v7 = vld [vmem:[%s4633_s5 + $0x54] ss:$8 sps:$4 sm:$0xff]  }
   0xf   : > { %465 = vst [vmem:[#allocation2 + $0x10] sm:$0xff] %v3106_v3  ;;  %467 = vst [vmem:[#allocation2 + $0x20] sm:$0x1] %v3106_v3  ;;  %v4680_v6 = vsel %vm3190_vm0, 4294967295, %v4679_v6  ;;  %2245 = vmatprep.subr.bf16.mxu0 %v2910_v4  ;;  %2850 = vmatprep.subr.bf16.mxu1 %v2910_v4  ;;  %v2915_v8 = vld [vmem:[%s4633_s5 + $0x50] ss:$8 sps:$4 sm:$0xff]  }
  0x10   : > { %470 = vst [vmem:[#allocation2 + $0x1b0] sm:$0xff] %v3106_v3  ;;  %471 = vst [vmem:[#allocation2 + $0x1b8] sm:$0xff] %v3106_v3  ;;  %p422_p4 = scmp.lt.s32.totalorder %s3096_s30, 1  ;;  %v2916_v9 = vld [vmem:[%s4633_s5 + $0x44] ss:$8 sps:$4 sm:$0xff]   ;;  %v3252_v14 = vshrl.u32 %v477_v1, 7 }
  0x11   : > { %472 = vst [vmem:[#allocation2 + $0x1c0] sm:$0xff] %v3106_v3  ;;  %473 = vst [vmem:[#allocation2 + $0x1c8] sm:$0xff] %v3106_v3  ;;  %v2918_v10 = vld [vmem:[%s4633_s5 + $0x40] ss:$8 sps:$4 sm:$0xff]   ;;  %v2919_v11 = vld [vmem:[%s4633_s5 + $0x34] ss:$8 sps:$4 sm:$0xff]  }
  0x12   : > { %474 = vst [vmem:[#allocation2 + $0x1d0] sm:$0x1] %v3106_v3  ;;  %475 = vst [vmem:[#allocation2 + $0x1d8] sm:$0x1] %v3106_v3  ;;  %2246 = vmatpush1.bf16.msra.mxu0 %v2912_v5  ;;  %2866 = vmatpush1.bf16.msra.mxu1 %v2912_v5  ;;  %s4822_s30 = smov (!%p422_p4, %s3096_s30), 1  ;;  %v3268_v19 = vsub.s32 0, %v3252_v14 }
  0x13   : > { %4681 = vst [vmem:[#allocation4_spill] sm:$0xff] %v4680_v6  ;;  %482 = vst.msk [vmem:[#allocation2 + $0x37] ss:$8 sm:$0x3] %vm3190_vm0, %v3106_v3  ;;  %2247 = vmatprep.subr.bf16.mxu0 %v2913_v7  ;;  %2851 = vmatprep.subr.bf16.mxu1 %v2913_v7  ;;  %v2921_v12 = vld [vmem:[%s4633_s5 + $0x30] ss:$8 sps:$4 sm:$0xff]  }
  0x14   : > { %485 = vst.msk [vmem:[#allocation2 + $0x67] ss:$8 sm:$0x3] %vm3190_vm0, %v3106_v3  ;;  %488 = vst.msk [vmem:[#allocation2 + $0x97] ss:$8 sm:$0x3] %vm3190_vm0, %v3106_v3 }
  0x15   : > { %506 = vst.msk [vmem:[#allocation2 + $0x50] ss:$8 sm:$0x3] %vm3190_vm0, %v3106_v3  ;;  %509 = vst.msk [vmem:[#allocation2 + $0x80] ss:$8 sm:$0x3] %vm3190_vm0, %v3106_v3 }
  0x16   : > { %512 = vst.msk [vmem:[#allocation2 + $0xb0] ss:$8 sm:$0x3] %vm3190_vm0, %v3106_v3  ;;  %491 = vst.msk [vmem:[#allocation2 + $0xc7] ss:$8 sm:$0x3] %vm3190_vm0, %v3106_v3  ;;  %2248 = vmatpush1.bf16.msra.mxu0 %v2915_v8  ;;  %2867 = vmatpush1.bf16.msra.mxu1 %v2915_v8 }
  0x17   : > { %494 = vst.msk [vmem:[#allocation2 + $0xf7] ss:$8 sm:$0x3] %vm3190_vm0, %v3106_v3  ;;  %497 = vst.msk [vmem:[#allocation2 + $0x127] ss:$8 sm:$0x3] %vm3190_vm0, %v3106_v3  ;;  %2249 = vmatprep.subr.bf16.mxu0 %v2916_v9  ;;  %2852 = vmatprep.subr.bf16.mxu1 %v2916_v9 }
  0x18   : > { %500 = vst.msk [vmem:[#allocation2 + $0x157] ss:$8 sm:$0x3] %vm3190_vm0, %v3106_v3  ;;  %503 = vst.msk [vmem:[#allocation2 + $0x187] ss:$8 sm:$0x3] %vm3190_vm0, %v3106_v3 }
  0x19   : > { %515 = vst.msk [vmem:[#allocation2 + $0xe0] ss:$8 sm:$0x3] %vm3190_vm0, %v3106_v3  ;;  %518 = vst.msk [vmem:[#allocation2 + $0x110] ss:$8 sm:$0x3] %vm3190_vm0, %v3106_v3 }
  0x1a   : > { %521 = vst.msk [vmem:[#allocation2 + $0x140] ss:$8 sm:$0x3] %vm3190_vm0, %v3106_v3  ;;  %524 = vst.msk [vmem:[#allocation2 + $0x170] ss:$8 sm:$0x3] %vm3190_vm0, %v3106_v3  ;;  %2250 = vmatpush1.bf16.msra.mxu0 %v2918_v10  ;;  %2868 = vmatpush1.bf16.msra.mxu1 %v2918_v10 }
  0x1b   : > { %527 = vst.msk [vmem:[#allocation2 + $0x1a0] ss:$8 sm:$0x3] %vm3190_vm0, %v3106_v3  ;;  %s2848_s16 = sshll.u32 %s4822_s30, 6  ;;  %2251 = vmatprep.subr.bf16.mxu0 %v2919_v11  ;;  %2853 = vmatprep.subr.bf16.mxu1 %v2919_v11  ;;  %v2922_v13 = vld [vmem:[%s4633_s5 + $0x24] ss:$8 sps:$4 sm:$0xff]  }
  0x1c   : > { %4682 = vst [vmem:[#allocation5_spill] sm:$0xff] %v3252_v14  ;;  %s3257_s21 = scalar_lea.vmem %s4628_s0, %s2848_s16  ;;  %v2924_v15 = vld [vmem:[%s4633_s5 + $0x20] ss:$8 sps:$4 sm:$0xff]   ;;  %v2925_v16 = vld [vmem:[%s4633_s5 + $0x14] ss:$8 sps:$4 sm:$0xff]   ;;  %4683 = vst [vmem:[#allocation6_spill] sm:$0xff] %v3268_v19 }
  0x1d   : > { %v529_v17 = vld [vmem:[%s3257_s21] sm:$0xff]  ;;  %v530_v18 = vld [vmem:[%s3257_s21 + $0x8] sm:$0xff]  ;;  %v3271_v20 = vsub.s32 1, %v3252_v14  ;;  %v3274_v21 = vld [vmem:[%s3257_s21 + $0x10] sm:$0xff]  ;;  %vm1297_vm1 = vcmask 1045504   ;;  %vm1942_vm2 = vcmask 1040384  }
  0x1e   : > { %2252 = vmatpush1.bf16.msra.mxu0 %v2921_v12  ;;  %2869 = vmatpush1.bf16.msra.mxu1 %v2921_v12  ;;  %v3277_v22 = vld [vmem:[%s3257_s21 + $0x18] sm:$0xff]  ;;  %v535_v23 = vld [vmem:[%s3257_s21 + $0x30] sm:$0xff]  ;;  %v3280_v24 = vunpack.c.l.bf16 %v529_v17  ;;  %v3282_v25 = vunpack.c.h.bf16 %v529_v17  ;;  %v3284_v26 = vunpack.c.l.bf16 %v530_v18  ;;  %v3286_v27 = vunpack.c.h.bf16 %v530_v18  ;;  %v2928_v29 = vld [vmem:[%s4633_s5 + $0x4] ss:$8 sps:$4 sm:$0xff]   ;;  %s2805_s29 = sshll.u32 %s4822_s30, 1 }
  0x1f   : > { %2253 = vmatprep.subr.bf16.mxu0 %v2922_v13  ;;  %2854 = vmatprep.subr.bf16.mxu1 %v2922_v13  ;;  %4684 = vst [vmem:[#allocation7_spill] sm:$0xff] %v3271_v20  ;;  %v2927_v28 = vld [vmem:[%s4633_s5 + $0x10] ss:$8 sps:$4 sm:$0xff]   ;;  %v4638_v30 = vunpack.c.l.bf16 %v3274_v21  ;;  %v3296_v31 = vunpack.c.h.bf16 %v3274_v21  ;;  %v543_v32 = vunpack.c.l.bf16 %v3277_v22  ;;  %v4639_v33 = vunpack.c.h.bf16 %v3277_v22  ;;  %v570_v36 = vld [vmem:[#allocation2 + $0x8] sm:$0x80]  ;;  %v3362_v60 = vld [vmem:[%s3257_s21 + $0x20] sm:$0xff]  ;;  %s462_s15 = scalar_lea.vmem %s4637_s9, %s2805_s29 }
  0x20   : > { %v549_v34 = vunpack.c.l.bf16 %v535_v23  ;;  %v3300_v35 = vunpack.c.h.bf16 %v535_v23  ;;  %553 = vst [vmem:[#allocation2 + $0x40] sm:$0xff] %v3280_v24  ;;  %554 = vst [vmem:[#allocation2 + $0x48] sm:$0xff] %v3282_v25  ;;  %v574_v37 = vld [vmem:[#allocation2 + $0x38] sm:$0x80]  ;;  %v578_v38 = vld [vmem:[#allocation2 + $0x68] sm:$0x80]  ;;  %v4640_v9 = vunpack.c.l.bf16 %v3362_v60 }
  0x21   : > { %555 = vst [vmem:[#allocation2 + $0x70] sm:$0xff] %v3284_v26  ;;  %556 = vst [vmem:[#allocation2 + $0x78] sm:$0xff] %v3286_v27  ;;  %v609_v39 = vld [vmem:[%s4629_s1] ss:$8 sm:$0x3] }
  0x22   : > { %2254 = vmatpush1.bf16.msra.mxu0 %v2924_v15  ;;  %2870 = vmatpush1.bf16.msra.mxu1 %v2924_v15  ;;  %557 = vst [vmem:[#allocation2 + $0xa0] sm:$0xff] %v4638_v30  ;;  %558 = vst [vmem:[#allocation2 + $0xa8] sm:$0xff] %v3296_v31  ;;  %v2806_v40 = vld [vmem:[%s4629_s1 + $0x3] ss:$8 sm:$0x3]  ;;  %v3319_v41 = vrot.slane %v609_v39, %v3268_v19  ;;  %v3322_v42 = vrot.slane %v609_v39, %v3271_v20 }
  0x23   : > { %2255 = vmatprep.subr.bf16.mxu0 %v2925_v16  ;;  %2855 = vmatprep.subr.bf16.mxu1 %v2925_v16  ;;  %559 = vst [vmem:[#allocation2 + $0xd0] sm:$0xff] %v543_v32  ;;  %560 = vst [vmem:[#allocation2 + $0xd8] sm:$0xff] %v4639_v33  ;;  %v3325_v43 = vrot.slane %v2806_v40, %v3271_v20  ;;  %v2807_v44 = vld [vmem:[%s4629_s1 + $0x6] ss:$8 sm:$0x3]  ;;  %v3337_v49 = vrot.slane %v2806_v40, %v3268_v19  ;;  %v3389_v16 = vunpack.c.h.bf16 %v3362_v60 }
  0x24   : > { %565 = vst [vmem:[#allocation2 + $0x160] sm:$0xff] %v549_v34  ;;  %566 = vst [vmem:[#allocation2 + $0x168] sm:$0xff] %v3300_v35  ;;  %v2808_v45 = vld [vmem:[%s4629_s1 + $0x1] ss:$8 sm:$0x3]  ;;  %v3340_v50 = vrot.slane %v2807_v44, %v3268_v19  ;;  %v3343_v51 = vrot.slane %v2807_v44, %v3271_v20  ;;  %v622_v53 = vmul.f32 %v3322_v42, %v570_v36 }
  0x25   : > { %4685 = vst [vmem:[#allocation8_spill] sm:$0xff] %v3325_v43  ;;  %v2930_v46 = vld [vmem:[%s4633_s5] ss:$8 sps:$4 sm:$0xff]   ;;  %v572_v47 = vld [vmem:[#allocation2 + $0x18] sm:$0x7f]  ;;  %v626_v54 = vmul.f32 %v3322_v42, %v574_v37  ;;  %v3351_v55 = vrot.slane %v2808_v45, %v3268_v19  ;;  %v3354_v56 = vmul.f32 %v3322_v42, %v578_v38  ;;  %v667_v58 = vmul.f32 %v3325_v43, %v574_v37 }
  0x26   : > { %2256 = vmatpush1.bf16.msra.mxu0 %v2927_v28  ;;  %2871 = vmatpush1.bf16.msra.mxu1 %v2927_v28  ;;  %v582_v48 = vld [vmem:[#allocation2 + $0x98] sm:$0x80]  ;;  %v671_v59 = vmul.f32 %v3325_v43, %v578_v38  ;;  %v624_v61 = vmul.f32 %v3322_v42, %v572_v47  ;;  %v744_v63 = vmul.f32 %v3343_v51, %v578_v38  ;;  %v2809_v1 = vld [vmem:[%s4629_s1 + $0x4] ss:$8 sm:$0x3] }
  0x27   : > { %2257 = vmatprep.subr.bf16.mxu0 %v2928_v29  ;;  %2856 = vmatprep.subr.bf16.mxu1 %v2928_v29  ;;  %v2931_v52 = vld [vmem:[%s4633_s5 + $0xf4] ss:$8 sps:$4 sm:$0xff]   ;;  %4686 = vst [vmem:[#allocation9_spill] sm:$0xff] %v3354_v56  ;;  %v3357_v57 = vmul.f32 %v3322_v42, %v582_v48  ;;  %v3366_v62 = vmul.f32 %v3325_v43, %v582_v48  ;;  %v2933_v2 = vld [vmem:[%s4633_s5 + $0xf0] ss:$8 sps:$4 sm:$0xff]   ;;  %561 = vst [vmem:[#allocation2 + $0x100] sm:$0xff] %v4640_v9 }
  0x28   : > { %v748_v0 = vmul.f32 %v3343_v51, %v582_v48  ;;  %v576_v3 = vld [vmem:[#allocation2 + $0x48] sm:$0x7f]  ;;  %v580_v4 = vld [vmem:[#allocation2 + $0x78] sm:$0x7f]  ;;  %v699_v5 = vadd.f32 %v667_v58, %v622_v53  ;;  %v703_v7 = vadd.f32 %v671_v59, %v626_v54  ;;  %v3377_v8 = vrot.slane %v2808_v45, %v3271_v20  ;;  %562 = vst [vmem:[#allocation2 + $0x108] sm:$0xff] %v3389_v16 }
  0x29   : > { %4687 = vst [vmem:[#allocation10_spill] sm:$0xff] %v3357_v57  ;;  %4688 = vst [vmem:[#allocation11_spill] sm:$0xff] %v3366_v62  ;;  %v2934_v10 = vld [vmem:[%s4633_s5 + $0xe4] ss:$8 sps:$4 sm:$0xff]   ;;  %v628_v12 = vmul.f32 %v3322_v42, %v576_v3  ;;  %v3385_v13 = vmul.f32 %v3322_v42, %v580_v4  ;;  %v669_v15 = vmul.f32 %v3325_v43, %v576_v3  ;;  %v2936_v29 = vld [vmem:[%s4633_s5 + $0xe0] ss:$8 sps:$4 sm:$0xff]  }
  0x2a   : > { %2258 = vmatpush1.bf16.msra.mxu0 %v2930_v46  ;;  %2872 = vmatpush1.bf16.msra.mxu1 %v2930_v46  ;;  %v584_v11 = vld [vmem:[#allocation2 + $0xa8] sm:$0x7f]  ;;  %v673_v18 = vmul.f32 %v3325_v43, %v580_v4  ;;  %v746_v23 = vmul.f32 %v3343_v51, %v580_v4  ;;  %v3397_v28 = vrot.slane %v2809_v1, %v3268_v19  ;;  %v2810_v38 = vld [vmem:[%s4629_s1 + $0x7] ss:$8 sm:$0x3]  ;;  %v841_v44 = vmul.f32 0.0, %v3377_v8 }
  0x2b   : > { %2259 = vmatprep.subr.bf16.mxu0 %v2931_v52  ;;  %2857 = vmatprep.subr.bf16.mxu1 %v2931_v52  ;;  %4689 = vst [vmem:[#allocation12_spill] sm:$0xff] %v3385_v13  ;;  %v3392_v17 = vmul.f32 %v3322_v42, %v584_v11  ;;  %v3405_v32 = vmul.f32 %v3325_v43, %v584_v11  ;;  %v2811_v45 = vld [vmem:[%s4629_s1 + $0x2] ss:$8 sm:$0x3]  ;;  %v2937_v47 = vld [vmem:[%s4633_s5 + $0xd4] ss:$8 sps:$4 sm:$0xff]  }
  0x2c   : > { %v701_v34 = vadd.f32 %v669_v15, %v624_v61  ;;  %v750_v36 = vmul.f32 %v3343_v51, %v584_v11  ;;  %v3408_v37 = vadd.f32 %v744_v63, %v699_v5  ;;  %v705_v39 = vadd.f32 %v673_v18, %v628_v12  ;;  %v2812_v46 = vld [vmem:[%s4629_s1 + $0x5] ss:$8 sm:$0x3]  ;;  %v1029_v3 = vld [vmem:[#allocation2 + $0x28] sm:$0x1] }
  0x2d   : > { %4690 = vst [vmem:[#allocation13_spill] sm:$0xff] %v3392_v17  ;;  %4691 = vst [vmem:[#allocation14_spill] sm:$0xff] %v3405_v32  ;;  %v3414_v40 = vadd.f32 %v748_v0, %v703_v7  ;;  %v843_v52 = vmul.f32 %v3377_v8, %v3282_v25  ;;  %v3432_v53 = vmul.f32 %v3377_v8, %v3286_v27  ;;  %v534_v54 = vld [vmem:[%s3257_s21 + $0x28] sm:$0xff]  ;;  %v1027_v0 = vld [vmem:[#allocation2 + $0x18] sm:$0xfe] }
  0x2e   : > { %2260 = vmatpush2.bf16.msra.mxu0 %v2933_v2  ;;  %2873 = vmatpush2.bf16.msra.mxu1 %v2933_v2  ;;  %v3426_v48 = vadd.f32 %v746_v23, %v701_v34  ;;  %v3435_v58 = vadd.f32 %v750_v36, %v705_v39  ;;  %v3439_v59 = vmul.f32 %v3377_v8, %v3296_v31  ;;  %v1031_v4 = vld [vmem:[#allocation2 + $0x48] sm:$0xfe]  ;;  %v1033_v15 = vld [vmem:[#allocation2 + $0x58] sm:$0x1]  ;;  %v3469_v23 = vunpack.c.l.bf16 %v534_v54  ;;  %v3481_v30 = vld [vmem:[#allocation2 + $0x78] sm:$0xfe] }
  0x2f   : > { %2261 = vmatprep.subr.bf16.mxu0 %v2934_v10  ;;  %2858 = vmatprep.subr.bf16.mxu1 %v2934_v10  ;;  %4692 = vst [vmem:[#allocation15_spill] sm:$0xff] %v3432_v53  ;;  %v3442_v61 = vrot.slane %v2809_v1, %v3271_v20  ;;  %v3445_v63 = vrot.slane %v2810_v38, %v3271_v20  ;;  %v2939_v1 = vld [vmem:[%s4633_s5 + $0xd0] ss:$8 sps:$4 sm:$0xff]   ;;  %v3479_v39 = vunpack.c.h.bf16 %v534_v54  ;;  %v3483_v33 = vld [vmem:[#allocation2 + $0x88] sm:$0x1] }
  0x30   : > { %4693 = vst [vmem:[#allocation16_spill] sm:$0xff] %v3439_v59  ;;  %v3448_v2 = vrot.slane %v2810_v38, %v3268_v19  ;;  %v3451_v5 = vrot.slane %v2811_v45, %v3268_v19  ;;  %v3454_v7 = vrot.slane %v2811_v45, %v3271_v20  ;;  %v3457_v10 = vrot.slane %v2812_v46, %v3268_v19  ;;  %v3490_v14 = vld [vmem:[#allocation2 + $0xb8] sm:$0x1]  ;;  %v3618_v13 = vld [vmem:[#allocation2 + $0x158] sm:$0x80] }
  0x31   : > { %v870_v11 = vmul.f32 %v3442_v61, %v3282_v25  ;;  %v872_v12 = vmul.f32 %v3442_v61, %v3286_v27  ;;  %v3467_v18 = vrot.slane %v2812_v46, %v3271_v20  ;;  %4694 = vst [vmem:[#allocation17_spill] sm:$0xff] %v3469_v23  ;;  %v915_v34 = vmul.f32 %v3445_v63, %v3286_v27  ;;  %v3621_v56 = vld [vmem:[#allocation2 + $0x168] sm:$0x7f] }
  0x32   : > { %2262 = vmatpush2.bf16.msra.mxu0 %v2936_v29  ;;  %2874 = vmatpush2.bf16.msra.mxu1 %v2936_v29  ;;  %v2940_v29 = vld [vmem:[%s4633_s5 + $0xc4] ss:$8 sps:$4 sm:$0xff]   ;;  %v917_v36 = vmul.f32 %v3445_v63, %v3296_v31  ;;  %v1080_v38 = vmul.f32 %v3454_v7, %v1027_v0  ;;  %v1082_v9 = vmul.f32 %v3454_v7, %v1029_v3  ;;  %v2942_v3 = vld [vmem:[%s4633_s5 + $0xc0] ss:$8 sps:$4 sm:$0xff]  }
  0x33   : > { %2263 = vmatprep.subr.bf16.mxu0 %v2937_v47  ;;  %2859 = vmatprep.subr.bf16.mxu1 %v2937_v47  ;;  %v886_v45 = vadd.f32 %v870_v11, %v841_v44  ;;  %v888_v46 = vadd.f32 %v872_v12, %v843_v52  ;;  %v3485_v47 = vld [vmem:[#allocation2 + $0xa8] sm:$0xfe]  ;;  %v1084_v6 = vmul.f32 %v3454_v7, %v1031_v4 }
  0x34   : > { %563 = vst [vmem:[#allocation2 + $0x130] sm:$0xff] %v3469_v23  ;;  %v1086_v0 = vmul.f32 %v3454_v7, %v1033_v15  ;;  %v3495_v44 = vmul.f32 %v3454_v7, %v3481_v30  ;;  %v3499_v52 = vmul.f32 %v3454_v7, %v3483_v33  ;;  %v3503_v54 = vmul.f32 %v3454_v7, %v3485_v47 }
  0x35   : > { %564 = vst [vmem:[#allocation2 + $0x138] sm:$0xff] %v3479_v39  ;;  %v931_v11 = vadd.f32 %v915_v34, %v886_v45  ;;  %v933_v12 = vadd.f32 %v917_v36, %v888_v46  ;;  %v1127_v59 = vmul.f32 %v3467_v18, %v1033_v15  ;;  %v1129_v34 = vmul.f32 %v3467_v18, %v3481_v30  ;;  %v2945_v45 = vld [vmem:[%s4633_s5 + $0xb0] ss:$8 sps:$4 sm:$0xff]  }
  0x36   : > { %4695 = vst [vmem:[#allocation18_spill] sm:$0xff] %v3495_v44  ;;  %4696 = vst [vmem:[#allocation19_spill] sm:$0xff] %v3499_v52  ;;  %2264 = vmatpush2.bf16.msra.mxu0 %v2939_v1  ;;  %2875 = vmatpush2.bf16.msra.mxu1 %v2939_v1  ;;  %v3511_v44 = vmul.f32 %v3454_v7, %v3490_v14  ;;  %v1125_v1 = vmul.f32 %v3467_v18, %v1031_v4 }
  0x37   : > { %4697 = vst [vmem:[#allocation20_spill] sm:$0xff] %v3503_v54  ;;  %2265 = vmatprep.subr.bf16.mxu0 %v2940_v29  ;;  %2860 = vmatprep.subr.bf16.mxu1 %v2940_v29  ;;  %v2943_v54 = vld [vmem:[%s4633_s5 + $0xb4] ss:$8 sps:$4 sm:$0xff]   ;;  %v3527_v29 = vmul.f32 %v3442_v61, %v3296_v31  ;;  %v963_v46 = vrot.slane %v931_v11, 1  ;;  %v965_v52 = vrot.slane %v933_v12, 1  ;;  %v1131_v4 = vmul.f32 %v3467_v18, %v3483_v33 }
  0x38   : > { %4698 = vst [vmem:[#allocation21_spill] sm:$0xff] %v3511_v44  ;;  %v3533_v15 = vmul.f32 %v3467_v18, %v3485_v47  ;;  %v3537_v36 = vmul.f32 %v3467_v18, %v3490_v14  ;;  %v1157_v44 = vadd.f32 %v1125_v1, %v1080_v38  ;;  %v1159_v53 = vadd.f32 %v1127_v59, %v1082_v9  ;;  %v2813_v31 = vld [vmem:[%s4629_s1 + $0x10] ss:$8 sm:$0x3]  ;;  %v1410_v11 = vld [vmem:[%s4630_s2] sm:$0x3] }
  0x39   : > { %4699 = vst [vmem:[#allocation22_spill] sm:$0xff] %v3527_v29  ;;  %v3546_v12 = vadd.f32 %v963_v46, %v3408_v37  ;;  %v1161_v38 = vadd.f32 %v1129_v34, %v1084_v6  ;;  %v1742_v9 = vld [vmem:[%s4631_s3] sm:$0x3]  ;;  %v2946_v37 = vld [vmem:[%s4633_s5 + $0xa4] ss:$8 sps:$4 sm:$0xff]   ;;  %v3563_v6 = vadd.f32 %v965_v52, %v3435_v58  ;;  %v3571_v1 = vrot.slane %v2813_v31, %v3271_v20 }
  0x3a   : > { %4700 = vst [vmem:[#allocation23_spill] sm:$0xff] %v3533_v15  ;;  %4701 = vst [vmem:[#allocation24_spill] sm:$0xff] %v3537_v36  ;;  %2266 = vmatpush2.bf16.msra.mxu0 %v2942_v3  ;;  %2876 = vmatpush2.bf16.msra.mxu1 %v2942_v3  ;;  %v3549_v15 = vadd.f32 %v963_v46, %v3426_v48  ;;  %v1786_v59 = vld [vmem:[%s4632_s4] sm:$0x3]  ;;  %v999_v48 = vadd.f32 %v965_v52, %v3414_v40  ;;  %v536_v46 = vld [vmem:[%s3257_s21 + $0x38] sm:$0xff] }
  0x3b   : > { %2267 = vmatprep.subr.bf16.mxu0 %v2943_v54  ;;  %2861 = vmatprep.subr.bf16.mxu1 %v2943_v54  ;;  %v1163_v3 = vadd.f32 %v1131_v4, %v1086_v0  ;;  %v3568_v36 = vrot.slane %v2813_v31, %v3268_v19  ;;  %4702 = vst [vmem:[#allocation25_spill] sm:$0xff] %v3571_v1  ;;  %v3579_v40 = vld [vmem:[#allocation2 + $0xc8] sm:$0x80]  ;;  %v3581_v58 = vld [vmem:[#allocation2 + $0xd8] sm:$0x7f]  ;;  %v552_v57 = vunpack.c.h.bf16 %v536_v46 }
  0x3c   : > { %v3574_v54 = vrot.slane %v1410_v11, %v3268_v19  ;;  %v3577_v29 = vrot.slane %v1410_v11, %v3271_v20  ;;  %4703 = vst [vmem:[#allocation26_spill] sm:$0xff] %v3579_v40  ;;  %4704 = vst [vmem:[#allocation27_spill] sm:$0xff] %v3581_v58  ;;  %v3584_v0 = vrot.slane %v1742_v9, %v3268_v19  ;;  %v590_v34 = vld [vmem:[#allocation2 + $0xf8] sm:$0x80]  ;;  %v2948_v11 = vld [vmem:[%s4633_s5 + $0xa0] ss:$8 sps:$4 sm:$0xff]  }
  0x3d   : > { %v3587_v52 = vrot.slane %v1742_v9, %v3271_v20  ;;  %v3590_v4 = vrot.slane %v1786_v59, %v3268_v19  ;;  %v3593_v31 = vrot.slane %v1786_v59, %v3271_v20  ;;  %v1202_v17 = vmul.f32 %v3571_v1, %v3481_v30  ;;  %v3609_v20 = vld [vmem:[#allocation2 + $0x128] sm:$0x80]  ;;  %v596_v32 = vld [vmem:[#allocation2 + $0x138] sm:$0x7f]  ;;  %568 = vst [vmem:[#allocation2 + $0x198] sm:$0xff] %v552_v57 }
  0x3e   : > { %4705 = vst [vmem:[#allocation28_spill] sm:$0xff] %v3584_v0  ;;  %2268 = vmatpush2.bf16.msra.mxu0 %v2945_v45  ;;  %2877 = vmatpush2.bf16.msra.mxu1 %v2945_v45  ;;  %v1204_v9 = vmul.f32 %v3571_v1, %v3483_v33  ;;  %v1206_v19 = vmul.f32 %v3571_v1, %v3485_v47  ;;  %v2949_v45 = vld [vmem:[%s4633_s5 + $0x94] ss:$8 sps:$4 sm:$0xff]   ;;  %v3616_v0 = vld [vmem:[#allocation2 + $0x108] sm:$0x7f] }
  0x3f   : > { %4706 = vst [vmem:[#allocation29_spill] sm:$0xff] %v3587_v52  ;;  %4707 = vst [vmem:[#allocation30_spill] sm:$0xff] %v3590_v4  ;;  %2269 = vmatprep.subr.bf16.mxu0 %v2946_v37  ;;  %2862 = vmatprep.subr.bf16.mxu1 %v2946_v37  ;;  %v1208_v59 = vmul.f32 %v3571_v1, %v3490_v14  ;;  %v638_v30 = vmul.f32 %v3322_v42, %v3579_v40  ;;  %v2951_v57 = vld [vmem:[%s4633_s5 + $0x90] ss:$8 sps:$4 sm:$0xff]  }
  0x40   : > { %4708 = vst [vmem:[#allocation31_spill] sm:$0xff] %v3593_v31  ;;  %v640_v33 = vmul.f32 %v3322_v42, %v3581_v58  ;;  %v1234_v46 = vadd.f32 %v1202_v17, %v1157_v44  ;;  %v1236_v4 = vadd.f32 %v1204_v9, %v1159_v53  ;;  %v1238_v37 = vadd.f32 %v1206_v19, %v1161_v38 }
  0x41   : > { %4709 = vst [vmem:[#allocation32_spill] sm:$0xff] %v3616_v0  ;;  %v642_v14 = vmul.f32 %v3322_v42, %v590_v34  ;;  %v1240_v62 = vadd.f32 %v1208_v59, %v1163_v3  ;;  %v3625_v40 = vmul.f32 %v3322_v42, %v3609_v20  ;;  %v3628_v47 = vmul.f32 %v3322_v42, %v596_v32  ;;  %v2952_v3 = vld [vmem:[%s4633_s5 + $0x84] ss:$8 sps:$4 sm:$0xff]  }
  0x42   : > { %v3632_v19 = vmul.f32 %v3322_v42, %v3618_v13  ;;  %2270 = vmatpush2.bf16.msra.mxu0 %v2948_v11  ;;  %2878 = vmatpush2.bf16.msra.mxu1 %v2948_v11  ;;  %v1299_v17 = vrot.slane %v1234_v46, 2  ;;  %v1302_v53 = vrot.slane %v1236_v4, 2  ;;  %v1305_v44 = vrot.slane %v1238_v37, 2 }
  0x43   : > { %4710 = vst [vmem:[#allocation33_spill] sm:$0xff] %v3625_v40  ;;  %4711 = vst [vmem:[#allocation34_spill] sm:$0xff] %v3628_v47  ;;  %v3639_v38 = vmul.f32 %v3322_v42, %v3621_v56  ;;  %2271 = vmatprep.subr.bf16.mxu0 %v2949_v45  ;;  %2863 = vmatprep.subr.bf16.mxu1 %v2949_v45  ;;  %v1308_v9 = vrot.slane %v1240_v62, 2  ;;  %v644_v11 = vmul.f32 %v3322_v42, %v3616_v0 }
  0x44   : > { %4712 = vst [vmem:[#allocation35_spill] sm:$0xff] %v3632_v19  ;;  %v683_v59 = vmul.f32 %v3325_v43, %v590_v34  ;;  %v685_v4 = vmul.f32 %v3325_v43, %v3616_v0  ;;  %v1303_v46 = vsel %vm1297_vm1, %v1299_v17, %v1302_v53  ;;  %v1379_v37 = vadd.f32 %v1299_v17, %v3546_v12  ;;  %v2954_v12 = vld [vmem:[%s4633_s5 + $0x80] ss:$8 sps:$4 sm:$0xff]  }
  0x45   : > { %4713 = vst [vmem:[#allocation36_spill] sm:$0xff] %v3639_v38  ;;  %v1383_v38 = vadd.f32 %v1305_v44, %v999_v48  ;;  %v687_v45 = vmul.f32 %v3325_v43, %v3609_v20  ;;  %v1309_v19 = vsel %vm1297_vm1, %v1305_v44, %v1308_v9  ;;  %v1381_v62 = vadd.f32 %v1303_v46, %v3549_v15 }
  0x46   : > { %v689_v47 = vmul.f32 %v3325_v43, %v596_v32  ;;  %v3658_v42 = vmul.f32 %v3325_v43, %v3618_v13  ;;  %2272 = vmatpush2.bf16.msra.mxu0 %v2951_v57  ;;  %2879 = vmatpush2.bf16.msra.mxu1 %v2951_v57  ;;  %v1385_v48 = vadd.f32 %v1309_v19, %v3563_v6  ;;  %v4716_v9 = vunpack.c.l.bf16 %v3362_v60 }
  0x47   : > { %v1423_v34 = vadd.f32 %v3577_v29, %v1379_v37  ;;  %v1427_v17 = vadd.f32 %v3577_v29, %v1383_v38  ;;  %2273 = vmatprep.subr.bf16.mxu0 %v2952_v3  ;;  %2864 = vmatprep.subr.bf16.mxu1 %v2952_v3  ;;  %v1425_v53 = vadd.f32 %v3577_v29, %v1381_v62 }
  0x48   : > { %4714 = vst [vmem:[#allocation37_spill] sm:$0xff] %v3658_v42  ;;  %v3670_v44 = vmul.f32 %v3325_v43, %v3621_v56  ;;  %v715_v57 = vadd.f32 %v683_v59, %v638_v30  ;;  %v3674_v46 = vrot.slane %v4716_v9, 1  ;;  %v1429_v6 = vadd.f32 %v3577_v29, %v1385_v48 }
  0x49   : > { %v1487_v19 = vmul.f32 %v1423_v34, %v1423_v34  ;;  %v717_v37 = vadd.f32 %v685_v4, %v640_v33  ;;  %v3678_v15 = vmul.f32 0.5, %v1423_v34  ;;  %v3680_v3 = vmul.f32 0.5, %v1427_v17 }
  0x4a   : > { %4715 = vst [vmem:[#allocation38_spill] sm:$0xff] %v3670_v44  ;;  %4717 = vst [vmem:[#allocation39_spill] sm:$0xff] %v3674_v46  ;;  %v1489_v62 = vmul.f32 %v1425_v53, %v1425_v53  ;;  %v1491_v42 = vmul.f32 %v1427_v17, %v1427_v17  ;;  %2274 = vmatpush2.bf16.msra.mxu0 %v2954_v12  ;;  %2880 = vmatpush2.bf16.msra.mxu1 %v2954_v12  ;;  %v3682_v44 = vmul.f32 0.5, %v1425_v53 }
  0x4b   : > { %v1493_v30 = vmul.f32 %v1429_v6, %v1429_v6  ;;  %v1519_v60 = vmul.f32 %v1487_v19, %v1423_v34  ;;  %v719_v59 = vadd.f32 %v687_v45, %v642_v14  ;;  %v760_v33 = vmul.f32 %v3343_v51, %v3609_v20 }
  0x4c   : > { %v1521_v9 = vmul.f32 %v1489_v62, %v1425_v53  ;;  %v1523_v46 = vmul.f32 %v1491_v42, %v1427_v17  ;;  %v762_v4 = vmul.f32 %v3343_v51, %v596_v32  ;;  %v3687_v48 = vmul.f32 0.5, %v1429_v6 }
  0x4d   : > { %v1525_v38 = vmul.f32 %v1493_v30, %v1429_v6  ;;  %v1551_v40 = vmul.f32 0.044715, %v1519_v60  ;;  %v764_v0 = vmul.f32 %v3343_v51, %v3618_v13  ;;  %v721_v43 = vadd.f32 %v689_v47, %v644_v11 }
  0x4e   : > { %v1553_v12 = vmul.f32 0.044715, %v1521_v9  ;;  %v1555_v58 = vmul.f32 0.044715, %v1523_v46  ;;  %v766_v14 = vmul.f32 %v3343_v51, %v3621_v56  ;;  %v792_v19 = vadd.f32 %v760_v33, %v715_v57  ;;  %v3702_v56 = vld [vmem:[#allocation2 + $0xd8] sm:$0xfe] }
  0x4f   : > { %v1557_v45 = vmul.f32 0.044715, %v1525_v38  ;;  %v1583_v42 = vadd.f32 %v1551_v40, %v1423_v34  ;;  %v794_v62 = vadd.f32 %v762_v4, %v717_v37  ;;  %v4718_v32 = vunpack.c.h.bf16 %v3277_v22  ;;  %v3704_v40 = vld [vmem:[#allocation2 + $0xe8] sm:$0x1] }
  0x50   : > { %v1585_v20 = vadd.f32 %v1553_v12, %v1425_v53  ;;  %v1587_v23 = vadd.f32 %v1555_v58, %v1427_v17  ;;  %v851_v60 = vmul.f32 %v3377_v8, %v3389_v16  ;;  %v796_v46 = vadd.f32 %v764_v0, %v719_v59  ;;  %v3710_v17 = vld [vmem:[#allocation2 + $0x108] sm:$0xfe]  ;;  %v1053_v59 = vld [vmem:[#allocation2 + $0x148] sm:$0x1] }
  0x51   : > { %v849_v30 = vmul.f32 %v3377_v8, %v4718_v32  ;;  %v1589_v13 = vadd.f32 %v1557_v45, %v1429_v6  ;;  %v1615_v9 = vmul.f32 0.7978846, %v1583_v42  ;;  %v3700_v47 = vmul.f32 %v3377_v8, %v3479_v39  ;;  %4720 = vst [vmem:[#allocation41_spill] sm:$0xff] %v3710_v17  ;;  %v3714_v6 = vld [vmem:[#allocation2 + $0x118] sm:$0x1] }
  0x52   : > { %v1617_v11 = vmul.f32 0.7978846, %v1585_v20  ;;  %v1619_v58 = vmul.f32 0.7978846, %v1587_v23  ;;  %v878_v22 = vmul.f32 %v3442_v61, %v3389_v16  ;;  %v880_v34 = vmul.f32 %v3442_v61, %v3479_v39  ;;  %4721 = vst [vmem:[#allocation42_spill] sm:$0xff] %v3714_v6 }
  0x53   : > { %4719 = vst [vmem:[#allocation40_spill] sm:$0xff] %v3700_v47  ;;  %v1621_v53 = vmul.f32 0.7978846, %v1589_v13  ;;  %2955 = vtanh.f32 %v1615_v9  ;;  %v798_v0 = vadd.f32 %v766_v14, %v721_v43  ;;  %v923_v57 = vmul.f32 %v3445_v63, %v3479_v39  ;;  %v1051_v45 = vld [vmem:[#allocation2 + $0x138] sm:$0xfe] }
  0x54   : > { %2957 = vtanh.f32 %v1617_v11  ;;  %v894_v37 = vadd.f32 %v878_v22, %v849_v30  ;;  %v896_v38 = vadd.f32 %v880_v34, %v851_v60  ;;  %v925_v23 = vmul.f32 %v3445_v63, %v3300_v35  ;;  %v1055_v42 = vld [vmem:[#allocation2 + $0x168] sm:$0xfe]  ;;  %v1057_v20 = vld [vmem:[#allocation2 + $0x178] sm:$0x1] }
  0x55   : > { %2959 = vtanh.f32 %v1619_v58  ;;  %v1096_v33 = vmul.f32 %v3454_v7, %v3702_v56  ;;  %v1098_v4 = vmul.f32 %v3454_v7, %v3704_v40  ;;  %v1100_v43 = vmul.f32 %v3454_v7, %v3710_v17 }
  0x56   : > { %2961 = vtanh.f32 %v1621_v53  ;;  %v939_v12 = vadd.f32 %v923_v57, %v894_v37  ;;  %v941_v14 = vadd.f32 %v925_v23, %v896_v38  ;;  %v1102_v32 = vmul.f32 %v3454_v7, %v3714_v6 }
  0x57   : > { %v3727_v30 = vmul.f32 %v3454_v7, %v1051_v45  ;;  %v3730_v60 = vmul.f32 %v3454_v7, %v1053_v59  ;;  %v3733_v13 = vmul.f32 %v3454_v7, %v1055_v42  ;;  %v3736_v9 = vmul.f32 %v3454_v7, %v1057_v20 }
  0x58   : > { %v3740_v11 = vmul.f32 %v3377_v8, %v3300_v35  ;;  %v971_v58 = vrot.slane %v939_v12, 1  ;;  %v1141_v22 = vmul.f32 %v3467_v18, %v3710_v17  ;;  %v1143_v34 = vmul.f32 %v3467_v18, %v3714_v6 }
  0x59   : > { %4722 = vst [vmem:[#allocation43_spill] sm:$0xff] %v3727_v30  ;;  %4723 = vst [vmem:[#allocation44_spill] sm:$0xff] %v3730_v60  ;;  %v3748_v53 = vmul.f32 %v3442_v61, %v3300_v35  ;;  %v973_v57 = vrot.slane %v941_v14, 1  ;;  %v1145_v37 = vmul.f32 %v3467_v18, %v1051_v45  ;;  %v1147_v7 = vmul.f32 %v3467_v18, %v1053_v59 }
  0x5a   : > { %4724 = vst [vmem:[#allocation45_spill] sm:$0xff] %v3733_v13  ;;  %4725 = vst [vmem:[#allocation46_spill] sm:$0xff] %v3736_v9  ;;  %v1011_v38 = vadd.f32 %v971_v58, %v792_v19  ;;  %v1013_v23 = vadd.f32 %v971_v58, %v794_v62  ;;  %v3753_v8 = vmul.f32 %v3467_v18, %v1055_v42  ;;  %v569_v9 = vld [vmem:[#allocation2] sm:$0x80]  ;;  %v571_v13 = vld [vmem:[#allocation2 + $0x10] sm:$0x7f] }
  0x5b   : > { %4726 = vst [vmem:[#allocation47_spill] sm:$0xff] %v3740_v11  ;;  %4727 = vst [vmem:[#allocation48_spill] sm:$0xff] %v3748_v53  ;;  %v3756_v12 = vmul.f32 %v3467_v18, %v1057_v20  ;;  %v1173_v60 = vadd.f32 %v1141_v22, %v1096_v33  ;;  %v1175_v30 = vadd.f32 %v1143_v34, %v1098_v4  ;;  %v573_v62 = vld [vmem:[#allocation2 + $0x30] sm:$0x80]  ;;  %v575_v58 = vld [vmem:[#allocation2 + $0x40] sm:$0x7f] }
  0x5c   : > { %4728 = vst [vmem:[#allocation49_spill] sm:$0xff] %v3753_v8  ;;  %v1177_v11 = vadd.f32 %v1145_v37, %v1100_v43  ;;  %v1179_v35 = vadd.f32 %v1147_v7, %v1102_v32  ;;  %v1218_v14 = vmul.f32 %v3571_v1, %v1051_v45  ;;  %v1220_v53 = vmul.f32 %v3571_v1, %v1053_v59  ;;  %v3764_v22 = vld [vmem:[#allocation2 + $0x60] sm:$0x80]  ;;  %v3766_v45 = vld [vmem:[#allocation2 + $0x70] sm:$0x7f] }
  0x5d   : > { %4729 = vst [vmem:[#allocation50_spill] sm:$0xff] %v3756_v12  ;;  %v1222_v47 = vmul.f32 %v3571_v1, %v1055_v42  ;;  %v1224_v19 = vmul.f32 %v3571_v1, %v1057_v20  ;;  %v1015_v8 = vadd.f32 %v973_v57, %v796_v46  ;;  %v1017_v6 = vadd.f32 %v973_v57, %v798_v0 }
  0x5e   : > { %v621_v12 = vmul.f32 %v3319_v41, %v569_v9  ;;  %v623_v17 = vmul.f32 %v3319_v41, %v571_v13  ;;  %v1250_v33 = vadd.f32 %v1218_v14, %v1173_v60  ;;  %v1252_v4 = vadd.f32 %v1220_v53, %v1175_v30 }
  0x5f   : > { %v1254_v43 = vadd.f32 %v1222_v47, %v1177_v11  ;;  %v1256_v32 = vadd.f32 %v1224_v19, %v1179_v35  ;;  %v625_v59 = vmul.f32 %v3319_v41, %v573_v62  ;;  %v3770_v42 = vmul.f32 %v3319_v41, %v575_v58 }
  0x60   : > { %v666_v46 = vmul.f32 %v3337_v49, %v573_v62  ;;  %v668_v0 = vmul.f32 %v3337_v49, %v575_v58  ;;  %v2956_v20 = vpop.eup %2955  ;;  %v1323_v9 = vrot.slane %v1250_v33, 2  ;;  %v1326_v13 = vrot.slane %v1252_v4, 2 }
  0x61   : > { %v1329_v60 = vrot.slane %v1254_v43, 2  ;;  %v1332_v30 = vrot.slane %v1256_v32, 2  ;;  %v2958_v47 = vpop.eup %2957  ;;  %v1679_v11 = vadd.f32 1.0, %v2956_v20  ;;  %v670_v34 = vmul.f32 %v3337_v49, %v3764_v22 }
  0x62   : > { %v672_v53 = vmul.f32 %v3337_v49, %v3766_v45  ;;  %v3778_v57 = vadd.f32 %v666_v46, %v621_v12  ;;  %v2960_v37 = vpop.eup %2959  ;;  %v1681_v7 = vadd.f32 1.0, %v2958_v47  ;;  %v1327_v35 = vsel %vm1297_vm1, %v1323_v9, %v1326_v13 }
  0x63   : > { %v1333_v14 = vsel %vm1297_vm1, %v1329_v60, %v1332_v30  ;;  %v1395_v19 = vadd.f32 %v1323_v9, %v1011_v38  ;;  %v2962_v62 = vpop.eup %2961  ;;  %v1683_v58 = vadd.f32 1.0, %v2960_v37  ;;  %v1711_v33 = vmul.f32 %v1679_v11, %v3678_v15 }
  0x64   : > { %v1397_v4 = vadd.f32 %v1327_v35, %v1013_v23  ;;  %v1399_v43 = vadd.f32 %v1329_v60, %v1015_v8  ;;  %v1685_v32 = vadd.f32 1.0, %v2962_v62  ;;  %v1713_v20 = vmul.f32 %v1681_v7, %v3682_v44 }
  0x65   : > { %v1401_v1 = vadd.f32 %v1333_v14, %v1017_v6  ;;  %v1439_v12 = vadd.f32 %v3577_v29, %v1395_v19  ;;  %v1715_v46 = vmul.f32 %v1683_v58, %v3680_v3  ;;  %v1755_v13 = vmul.f32 %v3587_v52, %v1711_v33 }
  0x66   : > { %v1441_v30 = vadd.f32 %v3577_v29, %v1397_v4  ;;  %v3789_v38 = vadd.f32 %v3577_v29, %v1399_v43  ;;  %v1717_v15 = vmul.f32 %v1685_v32, %v3687_v48  ;;  %v1757_v23 = vmul.f32 %v3587_v52, %v1713_v20 }
  0x67   : > { %v3794_v8 = vadd.f32 %v3577_v29, %v1401_v1  ;;  %v700_v44 = vadd.f32 %v668_v0, %v623_v17  ;;  %v1759_v6 = vmul.f32 %v3587_v52, %v1715_v46  ;;  %v1799_v9 = vadd.f32 %v3593_v31, %v1755_v13 }
  0x68   : > { %v3798_v3 = vmul.f32 0.5, %v1439_v12  ;;  %v702_v60 = vadd.f32 %v670_v34, %v625_v59  ;;  %v1761_v47 = vmul.f32 %v3587_v52, %v1717_v15  ;;  %v1801_v11 = vadd.f32 %v3593_v31, %v1757_v23 }
  0x69   : > { %v3802_v37 = vmul.f32 0.5, %v1441_v30  ;;  %v1503_v48 = vmul.f32 %v1439_v12, %v1439_v12  ;;  %v1803_v7 = vadd.f32 %v3593_v31, %v1759_v6  ;;  %v4730_v1 = vrot.slane %v3282_v25, 1  ;;  %v3820_v25 = vld [vmem:[#allocation2 + $0x90] sm:$0x80] }
  0x6a   : > { %v1505_v17 = vmul.f32 %v1441_v30, %v1441_v30  ;;  %v1507_v0 = vmul.f32 %v3789_v38, %v3789_v38  ;;  %v1805_v14 = vadd.f32 %v3593_v31, %v1761_v47  ;;  %v1509_v19 = vmul.f32 %v3794_v8, %v3794_v8 }
  0x6b   : > { %v1879_v35 = vadd.f32 %v4730_v1, %v1799_v9  ;;  %v4731_v59 = vmov %v4730_v1  ;;  %v1535_v62 = vmul.f32 %v1503_v48, %v1439_v12  ;;  %v4732_v58 = vrot.slane %v3286_v27, 1 }
  0x6c   : > { %v1881_v34 = vadd.f32 %v4731_v59, %v1801_v11  ;;  %v1537_v43 = vmul.f32 %v1505_v17, %v1441_v30  ;;  %v1539_v32 = vmul.f32 %v1507_v0, %v3789_v38  ;;  %v1541_v15 = vmul.f32 %v1509_v19, %v3794_v8  ;;  %v3824_v17 = vld [vmem:[#allocation2 + $0xa0] sm:$0x7f] }
  0x6d   : > { %v1883_v33 = vadd.f32 %v4732_v58, %v1803_v7  ;;  %v1946_v4 = vrot.slane %v1879_v35, 7  ;;  %v4733_v20 = vmov %v4732_v58  ;;  %v1567_v23 = vmul.f32 0.044715, %v1535_v62 }
  0x6e   : > { %v1885_v46 = vadd.f32 %v4733_v20, %v1805_v14  ;;  %v1947_v13 = vrot.slane %v1881_v34, 7  ;;  %v1569_v9 = vmul.f32 0.044715, %v1537_v43  ;;  %v1571_v47 = vmul.f32 0.044715, %v1539_v32  ;;  %v3838_v20 = vld [vmem:[#allocation2 + $0x8] sm:$0xff] }
  0x6f   : > { %v1952_v6 = vrot.slane %v1883_v33, 7  ;;  %v704_v11 = vadd.f32 %v672_v53, %v3770_v42  ;;  %v1573_v1 = vmul.f32 0.044715, %v1541_v15  ;;  %v1599_v35 = vadd.f32 %v1567_v23, %v1439_v12  ;;  %v1030_v15 = vld [vmem:[#allocation2 + $0x40] sm:$0xfe] }
  0x70   : > { %v1948_v48 = vsel %vm1942_vm2, %v1946_v4, %v1947_v13  ;;  %v1953_v7 = vrot.slane %v1885_v46, 7  ;;  %v1601_v27 = vadd.f32 %v1569_v9, %v1441_v30  ;;  %v1603_v0 = vadd.f32 %v1571_v47, %v3789_v38  ;;  %v1028_v13 = vld [vmem:[#allocation2 + $0x20] sm:$0x1] }
  0x71   : > { %v743_v14 = vmul.f32 %v3340_v50, %v3764_v22  ;;  %v745_v59 = vmul.f32 %v3340_v50, %v3766_v45  ;;  %v1605_v42 = vadd.f32 %v1573_v1, %v3794_v8  ;;  %v1631_v53 = vmul.f32 0.7978846, %v1599_v35  ;;  %v1026_v45 = vld [vmem:[#allocation2 + $0x10] sm:$0xfe] }
  0x72   : > { %v1954_v34 = vsel %vm1942_vm2, %v1952_v6, %v1953_v7  ;;  %v747_v19 = vmul.f32 %v3340_v50, %v3820_v25  ;;  %v1633_v62 = vmul.f32 0.7978846, %v1601_v27  ;;  %v1635_v58 = vmul.f32 0.7978846, %v1603_v0  ;;  %v1032_v6 = vld [vmem:[#allocation2 + $0x50] sm:$0x1] }
  0x73   : > { %v2008_v12 = vpack.c.bf16 %v1954_v34, %v1948_v48  ;;  %v749_v30 = vmul.f32 %v3340_v50, %v3824_v17  ;;  %v1637_v33 = vmul.f32 0.7978846, %v1605_v42  ;;  %2963 = vtanh.f32 %v1631_v53  ;;  %v1036_v48 = vld [vmem:[#allocation2 + $0x80] sm:$0x1] }
  0x74   : > { %v775_v22 = vadd.f32 %v743_v14, %v3778_v57  ;;  %v777_v4 = vadd.f32 %v745_v59, %v700_v44  ;;  %2965 = vtanh.f32 %v1633_v62  ;;  %v779_v43 = vadd.f32 %v747_v19, %v702_v60  ;;  %v1034_v60 = vld [vmem:[#allocation2 + $0x70] sm:$0xfe]  ;;  %v1038_v14 = vld [vmem:[#allocation2 + $0xa0] sm:$0xfe] }
  0x75   : > { %2275 = vmatprep.mubr.bf16.mxu0 %v2008_v12  ;;  %v781_v32 = vadd.f32 %v749_v30, %v704_v11  ;;  %v840_v46 = vmul.f32 %v3838_v20, %v3351_v55  ;;  %2967 = vtanh.f32 %v1635_v58  ;;  %v842_v23 = vmul.f32 %v3351_v55, %v3280_v24  ;;  %v1040_v12 = vld [vmem:[#allocation2 + $0xb0] sm:$0x1] }
  0x76   : > { %v869_v57 = vmul.f32 %v3397_v28, %v3280_v24  ;;  %v871_v44 = vmul.f32 %v3397_v28, %v3284_v26  ;;  %2969 = vtanh.f32 %v1637_v33  ;;  %v914_v9 = vmul.f32 %v3448_v2, %v3284_v26 }
  0x77   : > { %v4734_v47 = vunpack.c.l.bf16 %v3274_v21  ;;  %v1079_v7 = vmul.f32 %v3451_v5, %v1026_v45  ;;  %v1081_v27 = vmul.f32 %v3451_v5, %v1028_v13  ;;  %v1083_v0 = vmul.f32 %v3451_v5, %v1030_v15 }
  0x78   : > { %v885_v1 = vadd.f32 %v869_v57, %v840_v46  ;;  %v887_v35 = vadd.f32 %v871_v44, %v842_v23  ;;  %v1085_v59 = vmul.f32 %v3451_v5, %v1032_v6  ;;  %v1124_v34 = vmul.f32 %v3457_v10, %v1030_v15  ;;  %v3864_v44 = vld [vmem:[#allocation2 + $0xc0] sm:$0x80] }
  0x79   : > { %v916_v11 = vmul.f32 %v3448_v2, %v4734_v47  ;;  %v1126_v42 = vmul.f32 %v3457_v10, %v1032_v6  ;;  %v1128_v21 = vmul.f32 %v3457_v10, %v1034_v60  ;;  %v1130_v62 = vmul.f32 %v3457_v10, %v1036_v48 }
  0x7a   : > { %v930_v53 = vadd.f32 %v914_v9, %v885_v1  ;;  %v1201_v58 = vmul.f32 %v3568_v36, %v1034_v60  ;;  %v1156_v30 = vadd.f32 %v1124_v34, %v1079_v7  ;;  %v1203_v46 = vmul.f32 %v3568_v36, %v1036_v48  ;;  %v3868_v1 = vld [vmem:[#allocation2 + $0xd0] sm:$0x7f]  ;;  %v3870_v60 = vld [vmem:[#allocation2 + $0xf0] sm:$0x80] }
  0x7b   : > { %v932_v19 = vadd.f32 %v916_v11, %v887_v35  ;;  %v1158_v33 = vadd.f32 %v1126_v42, %v1081_v27  ;;  %v1160_v45 = vadd.f32 %v1128_v21, %v1083_v0  ;;  %v1162_v57 = vadd.f32 %v1130_v62, %v1085_v59  ;;  %4735 = vst [vmem:[#allocation51_spill] sm:$0xff] %v3868_v1  ;;  %v3873_v42 = vld [vmem:[#allocation2 + $0x100] sm:$0x7f] }
  0x7c   : > { %v962_v13 = vrot.slane %v930_v53, 1  ;;  %v1205_v15 = vmul.f32 %v3568_v36, %v1038_v14  ;;  %v1475_v6 = vmul.f32 0.5, %v3789_v38  ;;  %v1207_v9 = vmul.f32 %v3568_v36, %v1040_v12  ;;  %4736 = vst [vmem:[#allocation52_spill] sm:$0xff] %v3870_v60  ;;  %4737 = vst [vmem:[#allocation53_spill] sm:$0xff] %v3873_v42 }
  0x7d   : > { %v964_v23 = vrot.slane %v932_v19, 1  ;;  %v1233_v47 = vadd.f32 %v1201_v58, %v1156_v30  ;;  %v1235_v11 = vadd.f32 %v1203_v46, %v1158_v33  ;;  %v1477_v7 = vmul.f32 0.5, %v3794_v8 }
  0x7e   : > { %v994_v48 = vadd.f32 %v962_v13, %v775_v22  ;;  %v996_v35 = vadd.f32 %v962_v13, %v777_v4  ;;  %v1237_v0 = vadd.f32 %v1205_v15, %v1160_v45  ;;  %v1239_v59 = vadd.f32 %v1207_v9, %v1162_v57  ;;  %v3896_v15 = vld [vmem:[#allocation2 + $0x120] sm:$0x80] }
  0x7f   : > { %v998_v27 = vadd.f32 %v964_v23, %v779_v43  ;;  %v1298_v14 = vrot.slane %v1233_v47, 2  ;;  %v1300_v34 = vrot.slane %v1235_v11, 2  ;;  %v1000_v38 = vadd.f32 %v964_v23, %v781_v32 }
  0x80   : > { %v3877_v21 = vmul.f32 %v3319_v41, %v3864_v44  ;;  %v3881_v53 = vmul.f32 %v3319_v41, %v3868_v1  ;;  %v3885_v8 = vmul.f32 %v3319_v41, %v3870_v60  ;;  %v2964_v22 = vpop.eup %2963  ;;  %v1304_v43 = vrot.slane %v1237_v0, 2 }
  0x81   : > { %v1301_v4 = vsel %vm1297_vm1, %v1298_v14, %v1300_v34  ;;  %v1306_v19 = vrot.slane %v1239_v59, 2  ;;  %v1378_v12 = vadd.f32 %v1298_v14, %v994_v48  ;;  %v2966_v62 = vpop.eup %2965  ;;  %v1695_v32 = vadd.f32 1.0, %v2964_v22 }
  0x82   : > { %v1380_v58 = vadd.f32 %v1301_v4, %v996_v35  ;;  %v3890_v30 = vmul.f32 %v3319_v41, %v3873_v42  ;;  %v682_v33 = vmul.f32 %v3337_v49, %v3870_v60  ;;  %v2968_v45 = vpop.eup %2967  ;;  %v1697_v46 = vadd.f32 1.0, %v2966_v62 }
  0x83   : > { %v1307_v13 = vsel %vm1297_vm1, %v1304_v43, %v1306_v19  ;;  %v1382_v23 = vadd.f32 %v1304_v43, %v998_v27  ;;  %v1422_v57 = vadd.f32 %v3574_v54, %v1378_v12  ;;  %v2970_v9 = vpop.eup %2969  ;;  %v1699_v47 = vadd.f32 1.0, %v2968_v45 }
  0x84   : > { %v1727_v11 = vmul.f32 %v1695_v32, %v3798_v3  ;;  %v1384_v48 = vadd.f32 %v1307_v13, %v1000_v38  ;;  %v1424_v35 = vadd.f32 %v3574_v54, %v1380_v58  ;;  %v1701_v0 = vadd.f32 1.0, %v2970_v9 }
  0x85   : > { %v1729_v59 = vmul.f32 %v1697_v46, %v3802_v37  ;;  %v3902_v14 = vadd.f32 %v3574_v54, %v1382_v23  ;;  %v684_v27 = vmul.f32 %v3337_v49, %v3873_v42  ;;  %v1731_v34 = vmul.f32 %v1699_v47, %v1475_v6 }
  0x86   : > { %v1771_v22 = vmul.f32 %v3587_v52, %v1727_v11  ;;  %v3908_v4 = vadd.f32 %v3574_v54, %v1384_v48  ;;  %v686_v3 = vmul.f32 %v3337_v49, %v3896_v15  ;;  %v1733_v38 = vmul.f32 %v1701_v0, %v1477_v7 }
  0x87   : > { %v1773_v43 = vmul.f32 %v3587_v52, %v1729_v59  ;;  %v3913_v19 = vmul.f32 0.5, %v1422_v57  ;;  %v1486_v37 = vmul.f32 %v1422_v57, %v1422_v57  ;;  %v1775_v12 = vmul.f32 %v3587_v52, %v1731_v34 }
  0x88   : > { %v1815_v62 = vadd.f32 %v3593_v31, %v1771_v22  ;;  %v3917_v32 = vmul.f32 0.5, %v1424_v35  ;;  %v1488_v6 = vmul.f32 %v1424_v35, %v1424_v35  ;;  %v1777_v58 = vmul.f32 %v3587_v52, %v1733_v38  ;;  %v595_v38 = vld [vmem:[#allocation2 + $0x130] sm:$0x7f] }
  0x89   : > { %v1817_v45 = vadd.f32 %v3593_v31, %v1773_v43  ;;  %v1490_v46 = vmul.f32 %v3902_v14, %v3902_v14  ;;  %v1492_v7 = vmul.f32 %v3908_v4, %v3908_v4  ;;  %v1819_v13 = vadd.f32 %v3593_v31, %v1775_v12 }
  0x8a   : > { %v4738_v23 = vrot.slane %v3389_v16, 1  ;;  %v1518_v47 = vmul.f32 %v1486_v37, %v1422_v57  ;;  %v1520_v11 = vmul.f32 %v1488_v6, %v1424_v35  ;;  %v1821_v48 = vadd.f32 %v3593_v31, %v1777_v58 }
  0x8b   : > { %v1522_v34 = vmul.f32 %v1490_v46, %v3902_v14  ;;  %v1524_v22 = vmul.f32 %v1492_v7, %v3908_v4  ;;  %v4740_v43 = vrot.slane %v3479_v39, 1  ;;  %v688_v46 = vmul.f32 %v3337_v49, %v595_v38 }
  0x8c   : > { %v1895_v9 = vadd.f32 %v4738_v23, %v1815_v62  ;;  %v4739_v0 = vmov %v4738_v23  ;;  %v1550_v12 = vmul.f32 0.044715, %v1518_v47  ;;  %v1552_v1 = vmul.f32 0.044715, %v1520_v11  ;;  %v3943_v11 = vld [vmem:[#allocation2 + $0x160] sm:$0x7f] }
  0x8d   : > { %v1897_v59 = vadd.f32 %v4739_v0, %v1817_v45  ;;  %v1899_v42 = vadd.f32 %v4740_v43, %v1819_v13  ;;  %v4741_v62 = vmov %v4740_v43  ;;  %v1554_v23 = vmul.f32 0.044715, %v1522_v34  ;;  %4743 = vst [vmem:[#allocation55_spill] sm:$0xff] %v3943_v11 }
  0x8e   : > { %v1970_v60 = vrot.slane %v1895_v9, 7  ;;  %v1901_v37 = vadd.f32 %v4741_v62, %v1821_v48  ;;  %v1556_v58 = vmul.f32 0.044715, %v1524_v22  ;;  %v1582_v16 = vadd.f32 %v1550_v12, %v1422_v57  ;;  %v3941_v9 = vld [vmem:[#allocation2 + $0x150] sm:$0x80] }
  0x8f   : > { %v1971_v6 = vrot.slane %v1897_v59, 7  ;;  %v1976_v31 = vrot.slane %v1899_v42, 7  ;;  %v1584_v45 = vadd.f32 %v1552_v1, %v1424_v35  ;;  %v1586_v52 = vadd.f32 %v1554_v23, %v3902_v14  ;;  %4742 = vst [vmem:[#allocation54_spill] sm:$0xff] %v3941_v9  ;;  %v3949_v59 = vld [vmem:[#allocation2 + $0xd0] sm:$0xff] }
  0x90   : > { %v1977_v0 = vrot.slane %v1901_v37, 7  ;;  %v1588_v13 = vadd.f32 %v1556_v58, %v3908_v4  ;;  %v1614_v47 = vmul.f32 0.7978846, %v1582_v16  ;;  %v714_v48 = vadd.f32 %v682_v33, %v3877_v21  ;;  %v3971_v12 = vld [vmem:[#allocation2 + $0x110] sm:$0x1]  ;;  %v4748_v58 = vld [vmem:[#allocation17_spill] sm:$0xff] }
  0x91   : > { %v1972_v7 = vsel %vm1942_vm2, %v1970_v60, %v1971_v6  ;;  %v1616_v39 = vmul.f32 0.7978846, %v1584_v45  ;;  %v716_v42 = vadd.f32 %v684_v27, %v3881_v53  ;;  %v1618_v57 = vmul.f32 0.7978846, %v1586_v52  ;;  %v3963_v27 = vld [vmem:[#allocation2 + $0x100] sm:$0xff]  ;;  %4747 = vst [vmem:[#allocation59_spill] sm:$0xff] %v3971_v12 }
  0x92   : > { %v1978_v1 = vsel %vm1942_vm2, %v1976_v31, %v1977_v0  ;;  %v1620_v35 = vmul.f32 0.7978846, %v1588_v13  ;;  %v718_v60 = vadd.f32 %v686_v3, %v3885_v8  ;;  %2971 = vtanh.f32 %v1614_v47  ;;  %v821_v31 = vld [vmem:[#allocation2 + $0x160] sm:$0xff]  ;;  %v3959_v8 = vld [vmem:[#allocation2 + $0xd0] sm:$0xfe] }
  0x93   : > { %v2012_v34 = vpack.c.bf16 %v1978_v1, %v1972_v7  ;;  %v720_v22 = vadd.f32 %v688_v46, %v3890_v30  ;;  %v759_v43 = vmul.f32 %v3340_v50, %v3896_v15  ;;  %2973 = vtanh.f32 %v1616_v39  ;;  %4744 = vst [vmem:[#allocation56_spill] sm:$0xff] %v3959_v8  ;;  %v3967_v3 = vld [vmem:[#allocation2 + $0xe0] sm:$0x1]  ;;  %v1050_v7 = vld [vmem:[#allocation2 + $0x130] sm:$0xfe] }
  0x94   : > { %v761_v21 = vmul.f32 %v3340_v50, %v595_v38  ;;  %v763_v53 = vmul.f32 %v3340_v50, %v3941_v9  ;;  %v765_v52 = vmul.f32 %v3340_v50, %v3943_v11  ;;  %2975 = vtanh.f32 %v1618_v57  ;;  %4745 = vst [vmem:[#allocation57_spill] sm:$0xff] %v3967_v3  ;;  %v3969_v38 = vld [vmem:[#allocation2 + $0x100] sm:$0xfe]  ;;  %v1052_v0 = vld [vmem:[#allocation2 + $0x140] sm:$0x1] }
  0x95   : > { %2295 = vmatprep.mubr.bf16.mxu1 %v2012_v34  ;;  %v791_v33 = vadd.f32 %v759_v43, %v714_v48  ;;  %v848_v30 = vmul.f32 %v3351_v55, %v3949_v59  ;;  %v850_v15 = vmul.f32 %v3963_v27, %v3351_v55  ;;  %4746 = vst [vmem:[#allocation58_spill] sm:$0xff] %v3969_v38  ;;  %2977 = vtanh.f32 %v1620_v35  ;;  %v3988_v57 = vld [vmem:[#allocation2 + $0x160] sm:$0xfe]  ;;  %v3990_v35 = vld [vmem:[#allocation2 + $0x170] sm:$0x1] }
  0x96   : > { %v793_v62 = vadd.f32 %v761_v21, %v716_v42  ;;  %v795_v37 = vadd.f32 %v763_v53, %v718_v60  ;;  %v797_v6 = vadd.f32 %v765_v52, %v720_v22  ;;  %v877_v23 = vmul.f32 %v3963_v27, %v3397_v28  ;;  %4749 = vst [vmem:[#allocation17_spill] sm:$0xff] %v3990_v35 }
  0x97   : > { %v879_v16 = vmul.f32 %v3397_v28, %v4748_v58  ;;  %v922_v45 = vmul.f32 %v3448_v2, %v4748_v58  ;;  %v924_v46 = vmul.f32 %v3448_v2, %v821_v31  ;;  %v1095_v13 = vmul.f32 %v3451_v5, %v3959_v8 }
  0x98   : > { %v1097_v47 = vmul.f32 %v3451_v5, %v3967_v3  ;;  %v1099_v39 = vmul.f32 %v3451_v5, %v3969_v38  ;;  %v1101_v48 = vmul.f32 %v3451_v5, %v3971_v12  ;;  %v893_v42 = vadd.f32 %v877_v23, %v848_v30 }
  0x99   : > { %v895_v1 = vadd.f32 %v879_v16, %v850_v15  ;;  %v1140_v60 = vmul.f32 %v3457_v10, %v3969_v38  ;;  %v1142_v34 = vmul.f32 %v3457_v10, %v3971_v12  ;;  %v1144_v22 = vmul.f32 %v3457_v10, %v1050_v7 }
  0x9a   : > { %v1146_v43 = vmul.f32 %v3457_v10, %v1052_v0  ;;  %v1217_v21 = vmul.f32 %v3568_v36, %v1050_v7  ;;  %v1219_v53 = vmul.f32 %v3568_v36, %v1052_v0  ;;  %v938_v52 = vadd.f32 %v922_v45, %v893_v42 }
  0x9b   : > { %v940_v31 = vadd.f32 %v924_v46, %v895_v1  ;;  %v1172_v30 = vadd.f32 %v1140_v60, %v1095_v13  ;;  %v1174_v15 = vadd.f32 %v1142_v34, %v1097_v47  ;;  %v1176_v23 = vadd.f32 %v1144_v22, %v1099_v39 }
  0x9c   : > { %v1178_v16 = vadd.f32 %v1146_v43, %v1101_v48  ;;  %v1221_v11 = vmul.f32 %v3568_v36, %v3988_v57  ;;  %v1223_v9 = vmul.f32 %v3568_v36, %v3990_v35  ;;  %v970_v12 = vrot.slane %v938_v52, 1 }
  0x9d   : > { %v972_v38 = vrot.slane %v940_v31, 1  ;;  %v1249_v3 = vadd.f32 %v1217_v21, %v1172_v30  ;;  %v1251_v8 = vadd.f32 %v1219_v53, %v1174_v15  ;;  %v1458_v7 = vmul.f32 0.5, %v3902_v14  ;;  %v4750_v31 = vld [vmem:[#allocation26_spill] sm:$0xff]  ;;  %v4751_v21 = vld [vmem:[#allocation8_spill] sm:$0xff]  ;;  %v4752_v30 = vld [vmem:[#allocation9_spill] sm:$0xff] }
  0x9e   : > { %v1460_v0 = vmul.f32 0.5, %v3908_v4  ;;  %v1253_v45 = vadd.f32 %v1221_v11, %v1176_v23  ;;  %v1255_v46 = vadd.f32 %v1223_v9, %v1178_v16  ;;  %v1010_v13 = vadd.f32 %v970_v12, %v791_v33  ;;  %v4753_v14 = vld [vmem:[#allocation11_spill] sm:$0xff]  ;;  %v4754_v4 = vld [vmem:[#allocation12_spill] sm:$0xff]  ;;  %v4755_v9 = vld [vmem:[#allocation14_spill] sm:$0xff] }
  0x9f   : > { %v1012_v47 = vadd.f32 %v970_v12, %v793_v62  ;;  %v1014_v39 = vadd.f32 %v972_v38, %v795_v37  ;;  %v1016_v48 = vadd.f32 %v972_v38, %v797_v6  ;;  %v2972_v42 = vpop.eup %2971  ;;  %v1322_v1 = vrot.slane %v1249_v3, 2 }
  0xa0   : > { %v1324_v60 = vrot.slane %v1251_v8, 2  ;;  %v1328_v34 = vrot.slane %v1253_v45, 2  ;;  %v1330_v22 = vrot.slane %v1255_v46, 2  ;;  %v2974_v43 = vpop.eup %2973  ;;  %v1678_v52 = vadd.f32 1.0, %v2972_v42 }
  0xa1   : > { %v679_v53 = vmul.f32 %v4751_v21, %v4750_v31  ;;  %v4010_v15 = vadd.f32 %v4753_v14, %v4752_v30  ;;  %v4014_v11 = vadd.f32 %v4755_v9, %v4754_v4  ;;  %v2976_v33 = vpop.eup %2975  ;;  %v1680_v38 = vadd.f32 1.0, %v2974_v43  ;;  %v4756_v14 = vld [vmem:[#allocation28_spill] sm:$0xff] }
  0xa2   : > { %v1325_v3 = vsel %vm1297_vm1, %v1322_v1, %v1324_v60  ;;  %v1331_v8 = vsel %vm1297_vm1, %v1328_v34, %v1330_v22  ;;  %v1394_v12 = vadd.f32 %v1322_v1, %v1010_v13  ;;  %v2978_v62 = vpop.eup %2977  ;;  %v1682_v37 = vadd.f32 1.0, %v2976_v33 }
  0xa3   : > { %v1710_v6 = vmul.f32 %v1678_v52, %v3913_v19  ;;  %v1396_v23 = vadd.f32 %v1325_v3, %v1012_v47  ;;  %v1398_v16 = vadd.f32 %v1328_v34, %v1014_v39  ;;  %v1684_v45 = vadd.f32 1.0, %v2978_v62  ;;  %v4757_v47 = vld [vmem:[#allocation27_spill] sm:$0xff]  ;;  %v4759_v52 = vld [vmem:[#allocation10_spill] sm:$0xff] }
  0xa4   : > { %v1712_v46 = vmul.f32 %v1680_v38, %v3917_v32  ;;  %v1400_v42 = vadd.f32 %v1331_v8, %v1016_v48  ;;  %v1438_v31 = vadd.f32 %v3574_v54, %v1394_v12  ;;  %v1714_v30 = vmul.f32 %v1682_v37, %v1458_v7  ;;  %v4758_v48 = vld [vmem:[#allocation30_spill] sm:$0xff] }
  0xa5   : > { %v1754_v43 = vmul.f32 %v4756_v14, %v1710_v6  ;;  %v1440_v60 = vadd.f32 %v3574_v54, %v1396_v23  ;;  %v4024_v22 = vadd.f32 %v3574_v54, %v1398_v16  ;;  %v1716_v13 = vmul.f32 %v1684_v45, %v1460_v0 }
  0xa6   : > { %v1756_v1 = vmul.f32 %v4756_v14, %v1712_v46  ;;  %v4028_v19 = vadd.f32 %v3574_v54, %v1400_v42  ;;  %v681_v32 = vmul.f32 %v4751_v21, %v4757_v47  ;;  %v1758_v39 = vmul.f32 %v4756_v14, %v1714_v30 }
  0xa7   : > { %v1798_v7 = vadd.f32 %v4758_v48, %v1754_v43  ;;  %v4034_v34 = vmul.f32 0.5, %v1438_v31  ;;  %v711_v4 = vadd.f32 %v679_v53, %v4759_v52  ;;  %v1760_v9 = vmul.f32 %v4756_v14, %v1716_v13 }
  0xa8   : > { %v1800_v0 = vadd.f32 %v4758_v48, %v1756_v1  ;;  %v4039_v33 = vmul.f32 0.5, %v1440_v60  ;;  %v1502_v38 = vmul.f32 %v1438_v31, %v1438_v31  ;;  %v1802_v3 = vadd.f32 %v4758_v48, %v1758_v39 }
  0xa9   : > { %v4760_v8 = vrot.slane %v3280_v24, 1  ;;  %v1504_v62 = vmul.f32 %v1440_v60, %v1440_v60  ;;  %v1506_v37 = vmul.f32 %v4024_v22, %v4024_v22  ;;  %v1804_v6 = vadd.f32 %v4758_v48, %v1760_v9 }
  0xaa   : > { %v1508_v16 = vmul.f32 %v4028_v19, %v4028_v19  ;;  %v1534_v45 = vmul.f32 %v1502_v38, %v1438_v31  ;;  %v4762_v46 = vrot.slane %v3284_v26, 1 }
  0xab   : > { %v1878_v12 = vadd.f32 %v4760_v8, %v1798_v7  ;;  %v4761_v53 = vmov %v4760_v8  ;;  %v1536_v43 = vmul.f32 %v1504_v62, %v1440_v60  ;;  %v1538_v13 = vmul.f32 %v1506_v37, %v4024_v22  ;;  %v4764_v8 = vld [vmem:[#allocation13_spill] sm:$0xff] }
  0xac   : > { %v1880_v23 = vadd.f32 %v4761_v53, %v1800_v0  ;;  %v1882_v42 = vadd.f32 %v4762_v46, %v1802_v3  ;;  %v4763_v1 = vmov %v4762_v46  ;;  %v1540_v7 = vmul.f32 %v1508_v16, %v4028_v19  ;;  %v3053_v46 = vld [vmem:[#allocation2 + $0xc8] sm:$0x80] }
  0xad   : > { %v1943_v30 = vrot.slane %v1878_v12, 7  ;;  %v1884_v47 = vadd.f32 %v4763_v1, %v1804_v6  ;;  %v1566_v52 = vmul.f32 0.044715, %v1534_v45  ;;  %v1568_v9 = vmul.f32 0.044715, %v1536_v43 }
  0xae   : > { %v1944_v39 = vrot.slane %v1880_v23, 7  ;;  %v1949_v24 = vrot.slane %v1882_v42, 7  ;;  %v1570_v0 = vmul.f32 0.044715, %v1538_v13  ;;  %v713_v53 = vadd.f32 %v681_v32, %v4764_v8  ;;  %v3054_v6 = vld [vmem:[#allocation2 + $0xd8] sm:$0x7f] }
  0xaf   : > { %v1950_v35 = vrot.slane %v1884_v47, 7  ;;  %v1572_v3 = vmul.f32 0.044715, %v1540_v7  ;;  %v1598_v12 = vadd.f32 %v1566_v52, %v1438_v31  ;;  %v1600_v62 = vadd.f32 %v1568_v9, %v1440_v60  ;;  %v3055_v32 = vld [vmem:[#allocation2 + $0xf8] sm:$0x80]  ;;  %v4765_v60 = vld [vmem:[#allocation32_spill] sm:$0xff] }
  0xb0   : > { %v1945_v38 = vsel %vm1942_vm2, %v1943_v30, %v1944_v39  ;;  %v1602_v37 = vadd.f32 %v1570_v0, %v4024_v22  ;;  %v752_v26 = vmul.f32 %v3053_v46, %v3343_v51  ;;  %v754_v23 = vmul.f32 %v3054_v6, %v3343_v51  ;;  %v4766_v0 = vld [vmem:[#allocation15_spill] sm:$0xff]  ;;  %v4767_v8 = vld [vmem:[#allocation22_spill] sm:$0xff] }
  0xb1   : > { %v1951_v16 = vsel %vm1942_vm2, %v1949_v24, %v1950_v35  ;;  %v1604_v45 = vadd.f32 %v1572_v3, %v4028_v19  ;;  %v1630_v42 = vmul.f32 0.7978846, %v1598_v12  ;;  %v756_v30 = vmul.f32 %v3055_v32, %v3343_v51  ;;  %v4069_v24 = vld [vmem:[#allocation2 + $0xd8] sm:$0xff]  ;;  %v3057_v12 = vld [vmem:[#allocation2 + $0x108] sm:$0xff]  ;;  %v4769_v46 = vld [vmem:[#allocation18_spill] sm:$0xff] }
  0xb2   : > { %v2007_v43 = vpack.c.bf16 %v1951_v16, %v1945_v38  ;;  %v1632_v13 = vmul.f32 0.7978846, %v1600_v62  ;;  %v1634_v31 = vmul.f32 0.7978846, %v1602_v37  ;;  %v758_v1 = vmul.f32 %v3343_v51, %v4765_v60  ;;  %v4772_v16 = vld [vmem:[#allocation24_spill] sm:$0xff] }
  0xb3   : > { %v1636_v47 = vmul.f32 0.7978846, %v1604_v45  ;;  %2979 = vtanh.f32 %v1630_v42  ;;  %v784_v39 = vadd.f32 %v752_v26, %v4010_v15  ;;  %v786_v7 = vadd.f32 %v754_v23, %v4014_v11  ;;  %v4768_v11 = vld [vmem:[#allocation16_spill] sm:$0xff]  ;;  %v4770_v26 = vld [vmem:[#allocation23_spill] sm:$0xff]  ;;  %v4773_v42 = vld [vmem:[#allocation25_spill] sm:$0xff] }
  0xb4   : > { %2276 = vmatmul.mubr.bf16.vlgmr.msra.gmra.mxu0 %v2007_v43  ;;  %2981 = vtanh.f32 %v1632_v13  ;;  %v788_v35 = vadd.f32 %v756_v30, %v711_v4  ;;  %v790_v52 = vadd.f32 %v758_v1, %v713_v53  ;;  %v876_v9 = vmul.f32 %v4069_v24, %v3442_v61  ;;  %v4771_v23 = vld [vmem:[#allocation19_spill] sm:$0xff]  ;;  %v4774_v43 = vld [vmem:[#allocation20_spill] sm:$0xff] }
  0xb5   : > { %2983 = vtanh.f32 %v1634_v31  ;;  %v890_v38 = vadd.f32 %v4767_v8, %v4766_v0  ;;  %v919_v3 = vmul.f32 %v4069_v24, %v3445_v63  ;;  %v921_v15 = vmul.f32 %v3057_v12, %v3445_v63  ;;  %v4775_v31 = vld [vmem:[#allocation21_spill] sm:$0xff]  ;;  %v4777_v8 = vld [vmem:[#allocation42_spill] sm:$0xff] }
  0xb6   : > { %2985 = vtanh.f32 %v1636_v47  ;;  %v892_v62 = vadd.f32 %v876_v9, %v4768_v11  ;;  %v1137_v4 = vmul.f32 %v3467_v18, %v3702_v56  ;;  %v1139_v53 = vmul.f32 %v3467_v18, %v3704_v40  ;;  %v4776_v9 = vld [vmem:[#allocation41_spill] sm:$0xff] }
  0xb7   : > { %v935_v37 = vadd.f32 %v919_v3, %v890_v38  ;;  %v1165_v6 = vadd.f32 %v4770_v26, %v4769_v46  ;;  %v1167_v45 = vadd.f32 %v4772_v16, %v4771_v23  ;;  %v1210_v32 = vmul.f32 %v4773_v42, %v3702_v56  ;;  %v602_v12 = vld [vmem:[#allocation2 + $0x188] sm:$0x80] }
  0xb8   : > { %v937_v30 = vadd.f32 %v921_v15, %v892_v62  ;;  %v1169_v13 = vadd.f32 %v1137_v4, %v4774_v43  ;;  %v1171_v60 = vadd.f32 %v1139_v53, %v4775_v31  ;;  %v1212_v1 = vmul.f32 %v4773_v42, %v3704_v40  ;;  %v604_v4 = vld [vmem:[#allocation2 + $0x198] sm:$0x7f] }
  0xb9   : > { %v967_v47 = vrot.slane %v935_v37, 1  ;;  %v1214_v0 = vmul.f32 %v4773_v42, %v4776_v9  ;;  %v1216_v38 = vmul.f32 %v4773_v42, %v4777_v8  ;;  %v1242_v3 = vadd.f32 %v1210_v32, %v1165_v6 }
  0xba   : > { %v1474_v11 = vmul.f32 0.5, %v4024_v22  ;;  %v1476_v56 = vmul.f32 0.5, %v4028_v19  ;;  %v969_v15 = vrot.slane %v937_v30, 1  ;;  %v1244_v62 = vadd.f32 %v1212_v1, %v1167_v45  ;;  %v4778_v30 = vld [vmem:[#allocation33_spill] sm:$0xff] }
  0xbb   : > { %v1003_v53 = vadd.f32 %v967_v47, %v784_v39  ;;  %v1005_v46 = vadd.f32 %v967_v47, %v786_v7  ;;  %v1246_v26 = vadd.f32 %v1214_v0, %v1169_v13  ;;  %v1248_v40 = vadd.f32 %v1216_v38, %v1171_v60  ;;  %v4779_v45 = vld [vmem:[#allocation37_spill] sm:$0xff]  ;;  %v4780_v39 = vld [vmem:[#allocation34_spill] sm:$0xff] }
  0xbc   : > { %v1007_v37 = vadd.f32 %v969_v15, %v788_v35  ;;  %v1009_v23 = vadd.f32 %v969_v15, %v790_v52  ;;  %v1311_v16 = vrot.slane %v1242_v3, 2  ;;  %v1314_v43 = vrot.slane %v1244_v62, 2  ;;  %v4781_v7 = vld [vmem:[#allocation38_spill] sm:$0xff]  ;;  %v4111_v47 = vld [vmem:[#allocation2 + $0xa8] sm:$0xff]  ;;  %v4782_v15 = vld [vmem:[#allocation35_spill] sm:$0xff] }
  0xbd   : > { %v1317_v31 = vrot.slane %v1246_v26, 2  ;;  %v1320_v9 = vrot.slane %v1248_v40, 2  ;;  %v695_v6 = vmul.f32 %v4751_v21, %v602_v12  ;;  %v697_v32 = vmul.f32 %v4751_v21, %v604_v4  ;;  %v606_v3 = vld [vmem:[#allocation2 + $0x1b8] sm:$0x80] }
  0xbe   : > { %v1315_v22 = vsel %vm1297_vm1, %v1311_v16, %v1314_v43  ;;  %v1387_v19 = vadd.f32 %v1311_v16, %v1003_v53  ;;  %v4104_v1 = vadd.f32 %v4779_v45, %v4778_v30  ;;  %v4108_v13 = vadd.f32 %v4781_v7, %v4780_v39 }
  0xbf   : > { %v1321_v35 = vsel %vm1297_vm1, %v1317_v31, %v1320_v9  ;;  %v1389_v52 = vadd.f32 %v1315_v22, %v1005_v46  ;;  %v1391_v60 = vadd.f32 %v1317_v31, %v1007_v37  ;;  %v4117_v62 = vadd.f32 %v695_v6, %v4782_v15  ;;  %v4783_v37 = vld [vmem:[#allocation36_spill] sm:$0xff] }
  0xc0   : > { %v2980_v21 = vpop.eup %2979  ;;  %v1393_v8 = vadd.f32 %v1321_v35, %v1009_v23  ;;  %v1431_v38 = vadd.f32 %v3577_v29, %v1387_v19  ;;  %v4124_v16 = vadd.f32 %v697_v32, %v4783_v37  ;;  %v768_v22 = vmul.f32 %v3343_v51, %v602_v12 }
  0xc1   : > { %v2982_v53 = vpop.eup %2981  ;;  %v1694_v26 = vadd.f32 1.0, %v2980_v21  ;;  %v1433_v40 = vadd.f32 %v3577_v29, %v1389_v52  ;;  %v4121_v46 = vadd.f32 %v3577_v29, %v1391_v60  ;;  %v770_v39 = vmul.f32 %v3343_v51, %v604_v4 }
  0xc2   : > { %v2984_v43 = vpop.eup %2983  ;;  %v1696_v31 = vadd.f32 1.0, %v2982_v53  ;;  %v4127_v23 = vadd.f32 %v3577_v29, %v1393_v8  ;;  %v1495_v9 = vmul.f32 %v1431_v38, %v1431_v38  ;;  %v4131_v45 = vmul.f32 0.5, %v1431_v38 }
  0xc3   : > { %v2986_v6 = vpop.eup %2985  ;;  %v1698_v19 = vadd.f32 1.0, %v2984_v43  ;;  %v1726_v30 = vmul.f32 %v1694_v26, %v4034_v34  ;;  %v4135_v35 = vmul.f32 0.5, %v1433_v40  ;;  %v1497_v52 = vmul.f32 %v1433_v40, %v1433_v40 }
  0xc4   : > { %v1700_v7 = vadd.f32 1.0, %v2986_v6  ;;  %v1728_v32 = vmul.f32 %v1696_v31, %v4039_v33  ;;  %v1499_v12 = vmul.f32 %v4121_v46, %v4121_v46  ;;  %v1501_v8 = vmul.f32 %v4127_v23, %v4127_v23 }
  0xc5   : > { %v1730_v60 = vmul.f32 %v1698_v19, %v1474_v11  ;;  %v1770_v21 = vmul.f32 %v4756_v14, %v1726_v30  ;;  %v1527_v53 = vmul.f32 %v1495_v9, %v1431_v38  ;;  %v1529_v4 = vmul.f32 %v1497_v52, %v1433_v40  ;;  %v4784_v30 = vld [vmem:[#allocation39_spill] sm:$0xff] }
  0xc6   : > { %v1732_v34 = vmul.f32 %v1700_v7, %v1476_v56  ;;  %v1772_v15 = vmul.f32 %v4756_v14, %v1728_v32  ;;  %v1531_v37 = vmul.f32 %v1499_v12, %v4121_v46  ;;  %v1533_v11 = vmul.f32 %v1501_v8, %v4127_v23 }
  0xc7   : > { %v1774_v26 = vmul.f32 %v4756_v14, %v1730_v60  ;;  %v1814_v33 = vadd.f32 %v4758_v48, %v1770_v21  ;;  %v1559_v6 = vmul.f32 0.044715, %v1527_v53  ;;  %v1561_v19 = vmul.f32 0.044715, %v1529_v4  ;;  %v608_v4 = vld [vmem:[#allocation2 + $0x1c8] sm:$0x7f] }
  0xc8   : > { %v1776_v43 = vmul.f32 %v4756_v14, %v1732_v34  ;;  %v1816_v31 = vadd.f32 %v4758_v48, %v1772_v15  ;;  %v1563_v9 = vmul.f32 0.044715, %v1531_v37  ;;  %v1565_v32 = vmul.f32 0.044715, %v1533_v11 }
  0xc9   : > { %v1818_v56 = vadd.f32 %v4758_v48, %v1774_v26  ;;  %v1894_v7 = vadd.f32 %v4784_v30, %v1814_v33  ;;  %v1591_v21 = vadd.f32 %v1559_v6, %v1431_v38  ;;  %v1593_v12 = vadd.f32 %v1561_v19, %v1433_v40 }
  0xca   : > { %v1820_v52 = vadd.f32 %v4758_v48, %v1776_v43  ;;  %v1896_v60 = vadd.f32 %v4784_v30, %v1816_v31  ;;  %v4785_v8 = vrot.slane %v4748_v58, 1  ;;  %v1595_v15 = vadd.f32 %v1563_v9, %v4121_v46  ;;  %v1059_v9 = vld [vmem:[#allocation2 + $0x198] sm:$0xfe] }
  0xcb   : > { %v1967_v0 = vrot.slane %v1894_v7, 7  ;;  %v1597_v53 = vadd.f32 %v1565_v32, %v4127_v23  ;;  %v1623_v11 = vmul.f32 0.7978846, %v1591_v21  ;;  %v1625_v43 = vmul.f32 0.7978846, %v1593_v12  ;;  %v4787_v21 = vld [vmem:[#allocation40_spill] sm:$0xff] }
  0xcc   : > { %v1898_v34 = vadd.f32 %v4785_v8, %v1818_v56  ;;  %v4786_v26 = vmov %v4785_v8  ;;  %v1968_v37 = vrot.slane %v1896_v60, 7  ;;  %v1627_v31 = vmul.f32 0.7978846, %v1595_v15  ;;  %v1061_v32 = vld [vmem:[#allocation2 + $0x1a8] sm:$0x1]  ;;  %v4167_v60 = vld [vmem:[#allocation2 + $0x198] sm:$0xff] }
  0xcd   : > { %v1900_v33 = vadd.f32 %v4786_v26, %v1820_v52  ;;  %v1629_v38 = vmul.f32 0.7978846, %v1597_v53  ;;  %v772_v40 = vmul.f32 %v3343_v51, %v606_v3  ;;  %2987 = vtanh.f32 %v1623_v11  ;;  %v1063_v12 = vld [vmem:[#allocation2 + $0x1c8] sm:$0xfe]  ;;  %v4790_v15 = vld [vmem:[#allocation43_spill] sm:$0xff]  ;;  %v4792_v26 = vld [vmem:[#allocation44_spill] sm:$0xff] }
  0xce   : > { %v1973_v48 = vrot.slane %v1898_v34, 7  ;;  %v1969_v6 = vsel %vm1942_vm2, %v1967_v0, %v1968_v37  ;;  %v774_v56 = vmul.f32 %v3343_v51, %v608_v4  ;;  %2989 = vtanh.f32 %v1625_v43  ;;  %v4791_v53 = vld [vmem:[#allocation49_spill] sm:$0xff] }
  0xcf   : > { %v1974_v19 = vrot.slane %v1900_v33, 7  ;;  %v800_v30 = vadd.f32 %v768_v22, %v4104_v1  ;;  %v802_v58 = vadd.f32 %v770_v39, %v4108_v13  ;;  %v804_v7 = vadd.f32 %v772_v40, %v4117_v62  ;;  %v4788_v1 = vld [vmem:[#allocation48_spill] sm:$0xff]  ;;  %v4789_v62 = vld [vmem:[#allocation47_spill] sm:$0xff]  ;;  %v4793_v33 = vld [vmem:[#allocation50_spill] sm:$0xff] }
  0xd0   : > { %2991 = vtanh.f32 %v1627_v31  ;;  %v806_v3 = vadd.f32 %v774_v56, %v4124_v16  ;;  %v884_v0 = vmul.f32 %v4167_v60, %v3442_v61  ;;  %v898_v22 = vadd.f32 %v4788_v1, %v4787_v21  ;;  %v1065_v16 = vld [vmem:[#allocation2 + $0x1d8] sm:$0x1]  ;;  %v4794_v31 = vld [vmem:[#allocation45_spill] sm:$0xff] }
  0xd1   : > { %v1975_v52 = vsel %vm1942_vm2, %v1973_v48, %v1974_v19  ;;  %2993 = vtanh.f32 %v1629_v38  ;;  %v927_v13 = vmul.f32 %v4167_v60, %v3445_v63  ;;  %v929_v48 = vmul.f32 %v3838_v20, %v3445_v63  ;;  %v4795_v63 = vld [vmem:[#allocation46_spill] sm:$0xff] }
  0xd2   : > { %v2011_v51 = vpack.c.bf16 %v1975_v52, %v1969_v6  ;;  %v900_v39 = vadd.f32 %v884_v0, %v4789_v62  ;;  %v1153_v8 = vmul.f32 %v3467_v18, %v1059_v9  ;;  %v1155_v34 = vmul.f32 %v3467_v18, %v1061_v32 }
  0xd3   : > { %v943_v61 = vadd.f32 %v927_v13, %v898_v22  ;;  %v1181_v4 = vadd.f32 %v4791_v53, %v4790_v15  ;;  %v1183_v37 = vadd.f32 %v4793_v33, %v4792_v26  ;;  %v1226_v11 = vmul.f32 %v4773_v42, %v1059_v9 }
  0xd4   : > { %2296 = vmatmul.mubr.bf16.vlgmr.msra.gmra.mxu1 %v2011_v51  ;;  %v945_v43 = vadd.f32 %v929_v48, %v900_v39  ;;  %v1185_v38 = vadd.f32 %v1153_v8, %v4794_v31  ;;  %v1187_v20 = vadd.f32 %v1155_v34, %v4795_v63  ;;  %v1228_v40 = vmul.f32 %v4773_v42, %v1061_v32 }
  0xd5   : > { %v975_v6 = vrot.slane %v943_v61, 1  ;;  %v1230_v18 = vmul.f32 %v4773_v42, %v1063_v12  ;;  %v1232_v19 = vmul.f32 %v4773_v42, %v1065_v16  ;;  %v1258_v56 = vadd.f32 %v1226_v11, %v1181_v4  ;;  %v4192_v12 = vld [vmem:[#allocation2 + $0x168] sm:$0xff]  ;;  %v3061_v61 = vld [vmem:[#allocation2 + $0x60] sm:$0x80] }
  0xd6   : > { %v1467_v52 = vmul.f32 0.5, %v4121_v46  ;;  %v1469_v0 = vmul.f32 0.5, %v4127_v23  ;;  %v977_v51 = vrot.slane %v945_v43, 1  ;;  %v1260_v21 = vadd.f32 %v1228_v40, %v1183_v37 }
  0xd7   : > { %v1019_v9 = vadd.f32 %v975_v6, %v800_v30  ;;  %v1021_v1 = vadd.f32 %v975_v6, %v802_v58  ;;  %v1262_v22 = vadd.f32 %v1230_v18, %v1185_v38  ;;  %v1264_v13 = vadd.f32 %v1232_v19, %v1187_v20  ;;  %v3062_v58 = vld [vmem:[#allocation2 + $0x70] sm:$0x7f] }
  0xd8   : > { %v1023_v62 = vadd.f32 %v977_v51, %v804_v7  ;;  %v1025_v39 = vadd.f32 %v977_v51, %v806_v3  ;;  %v1335_v48 = vrot.slane %v1258_v56, 2  ;;  %v1338_v32 = vrot.slane %v1260_v21, 2 }
  0xd9   : > { %v1341_v8 = vrot.slane %v1262_v22, 2  ;;  %v1344_v34 = vrot.slane %v1264_v13, 2  ;;  %v1859_v42 = vrot.slane %v4192_v12, 1  ;;  %v1861_v46 = vrot.slane %v4167_v60, 1 }
  0xda   : > { %v1339_v23 = vsel %vm1297_vm1, %v1335_v48, %v1338_v32  ;;  %v1403_v16 = vadd.f32 %v1335_v48, %v1019_v9  ;;  %v4198_v30 = vmul.f32 %v3061_v61, %v3319_v41  ;;  %v4201_v7 = vmul.f32 %v3062_v58, %v3319_v41  ;;  %v2988_v3 = vpop.eup %2987 }
  0xdb   : > { %v1345_v15 = vsel %vm1297_vm1, %v1341_v8, %v1344_v34  ;;  %v1405_v53 = vadd.f32 %v1339_v23, %v1021_v1  ;;  %v1407_v4 = vadd.f32 %v1341_v8, %v1023_v62  ;;  %v4206_v26 = vmul.f32 %v3319_v41, %v3820_v25  ;;  %v2990_v33 = vpop.eup %2989  ;;  %v4797_v34 = vld [vmem:[#allocation31_spill] sm:$0xff] }
  0xdc   : > { %v1687_v37 = vadd.f32 1.0, %v2988_v3  ;;  %v1409_v11 = vadd.f32 %v1345_v15, %v1025_v39  ;;  %v1447_v43 = vadd.f32 %v3577_v29, %v1403_v16  ;;  %v635_v31 = vmul.f32 %v3319_v41, %v3824_v17 }
  0xdd   : > { %v2992_v38 = vpop.eup %2991  ;;  %v1689_v63 = vadd.f32 1.0, %v2990_v33  ;;  %v1449_v20 = vadd.f32 %v3577_v29, %v1405_v53  ;;  %v4213_v40 = vadd.f32 %v3577_v29, %v1407_v4  ;;  %v674_v6 = vmul.f32 %v3337_v49, %v3820_v25  ;;  %v4796_v25 = vld [vmem:[#allocation29_spill] sm:$0xff] }
  0xde   : > { %v2994_v18 = vpop.eup %2993  ;;  %v1691_v19 = vadd.f32 1.0, %v2992_v38  ;;  %v1719_v56 = vmul.f32 %v1687_v37, %v4131_v45  ;;  %v4219_v51 = vadd.f32 %v3577_v29, %v1409_v11  ;;  %v676_v21 = vmul.f32 %v3337_v49, %v3824_v17 }
  0xdf   : > { %v1693_v9 = vadd.f32 1.0, %v2994_v18  ;;  %v1721_v1 = vmul.f32 %v1689_v63, %v4135_v35  ;;  %v4224_v22 = vmul.f32 0.5, %v1447_v43  ;;  %v678_v13 = vmul.f32 %v3337_v49, %v3864_v44 }
  0xe0   : > { %v1723_v62 = vmul.f32 %v1691_v19, %v1467_v52  ;;  %v1763_v39 = vmul.f32 %v4796_v25, %v1719_v56  ;;  %v4229_v48 = vmul.f32 0.5, %v1449_v20  ;;  %v1511_v45 = vmul.f32 %v1447_v43, %v1447_v43 }
  0xe1   : > { %v1725_v32 = vmul.f32 %v1693_v9, %v1469_v0  ;;  %v1765_v29 = vmul.f32 %v4796_v25, %v1721_v1  ;;  %v1513_v8 = vmul.f32 %v1449_v20, %v1449_v20  ;;  %v1515_v17 = vmul.f32 %v4213_v40, %v4213_v40 }
  0xe2   : > { %v1767_v35 = vmul.f32 %v4796_v25, %v1723_v62  ;;  %v1807_v23 = vadd.f32 %v4797_v34, %v1763_v39  ;;  %v1517_v16 = vmul.f32 %v4219_v51, %v4219_v51  ;;  %v1543_v52 = vmul.f32 %v1511_v45, %v1447_v43 }
  0xe3   : > { %v1769_v61 = vmul.f32 %v4796_v25, %v1725_v32  ;;  %v1809_v58 = vadd.f32 %v4797_v34, %v1765_v29  ;;  %v1545_v3 = vmul.f32 %v1513_v8, %v1449_v20  ;;  %v1547_v0 = vmul.f32 %v1515_v17, %v4213_v40 }
  0xe4   : > { %v1811_v15 = vadd.f32 %v4797_v34, %v1767_v35  ;;  %v4798_v53 = vrot.slane %v4111_v47, 1  ;;  %v1549_v33 = vmul.f32 %v1517_v16, %v4219_v51  ;;  %v1575_v37 = vmul.f32 0.044715, %v1543_v52  ;;  %v4802_v16 = vld [vmem:[#allocation51_spill] sm:$0xff] }
  0xe5   : > { %v1813_v11 = vadd.f32 %v4797_v34, %v1769_v61  ;;  %v1577_v18 = vmul.f32 0.044715, %v1545_v3  ;;  %v1579_v19 = vmul.f32 0.044715, %v1547_v0  ;;  %v4800_v56 = vrot.slane %v4069_v24, 1 }
  0xe6   : > { %v1887_v4 = vadd.f32 %v4798_v53, %v1807_v23  ;;  %v4799_v38 = vmov %v4798_v53  ;;  %v1581_v62 = vmul.f32 0.044715, %v1549_v33  ;;  %v1607_v39 = vadd.f32 %v1575_v37, %v1447_v43 }
  0xe7   : > { %v1889_v63 = vadd.f32 %v4799_v38, %v1809_v58  ;;  %v1891_v9 = vadd.f32 %v4800_v56, %v1811_v15  ;;  %v4801_v45 = vmov %v4800_v56  ;;  %v1609_v8 = vadd.f32 %v1577_v18, %v1449_v20  ;;  %v4803_v38 = vld [vmem:[#allocation52_spill] sm:$0xff] }
  0xe8   : > { %v1958_v1 = vrot.slane %v1887_v4, 7  ;;  %v1893_v32 = vadd.f32 %v4801_v45, %v1813_v11  ;;  %v1611_v17 = vadd.f32 %v1579_v19, %v4213_v40  ;;  %v1613_v23 = vadd.f32 %v1581_v62, %v4219_v51  ;;  %v3065_v45 = vld [vmem:[#allocation2 + $0x70] sm:$0xfe] }
  0xe9   : > { %v1959_v29 = vrot.slane %v1889_v63, 7  ;;  %v1964_v35 = vrot.slane %v1891_v9, 7  ;;  %v1639_v47 = vmul.f32 0.7978846, %v1607_v39  ;;  %v680_v52 = vmul.f32 %v3337_v49, %v4802_v16 }
  0xea   : > { %v1965_v58 = vrot.slane %v1893_v32, 7  ;;  %v1641_v3 = vmul.f32 0.7978846, %v1609_v8  ;;  %v1643_v0 = vmul.f32 0.7978846, %v1611_v17  ;;  %v706_v24 = vadd.f32 %v674_v6, %v4198_v30  ;;  %v4804_v6 = vld [vmem:[#allocation53_spill] sm:$0xff] }
  0xeb   : > { %v1960_v61 = vsel %vm1942_vm2, %v1958_v1, %v1959_v29  ;;  %v1645_v43 = vmul.f32 0.7978846, %v1613_v23  ;;  %2995 = vtanh.f32 %v1639_v47  ;;  %v708_v20 = vadd.f32 %v676_v21, %v4201_v7  ;;  %v3063_v21 = vld [vmem:[#allocation2 + $0x70] sm:$0xff]  ;;  %v3066_v29 = vld [vmem:[#allocation2 + $0x80] sm:$0x1] }
  0xec   : > { %v1966_v15 = vsel %vm1942_vm2, %v1964_v35, %v1965_v58  ;;  %2997 = vtanh.f32 %v1641_v3  ;;  %v710_v53 = vadd.f32 %v678_v13, %v4206_v26  ;;  %v712_v4 = vadd.f32 %v680_v52, %v635_v31  ;;  %v4270_v13 = vld [vmem:[#allocation2 + $0xa0] sm:$0xff]  ;;  %v3068_v47 = vld [vmem:[#allocation2 + $0xb0] sm:$0x1]  ;;  %v4806_v3 = vld [vmem:[#allocation57_spill] sm:$0xff] }
  0xed   : > { %v2010_v33 = vpack.c.bf16 %v1966_v15, %v1960_v61  ;;  %2999 = vtanh.f32 %v1643_v0  ;;  %v751_v37 = vmul.f32 %v3340_v50, %v3864_v44  ;;  %v753_v11 = vmul.f32 %v3340_v50, %v4802_v16  ;;  %v3067_v35 = vld [vmem:[#allocation2 + $0xa0] sm:$0xfe] }
  0xee   : > { %3001 = vtanh.f32 %v1645_v43  ;;  %v755_v30 = vmul.f32 %v3340_v50, %v4803_v38  ;;  %v757_v7 = vmul.f32 %v3340_v50, %v4804_v6  ;;  %v844_v63 = vmul.f32 %v3063_v21, %v3351_v55  ;;  %v4805_v58 = vld [vmem:[#allocation56_spill] sm:$0xff]  ;;  %v4807_v38 = vld [vmem:[#allocation58_spill] sm:$0xff]  ;;  %v4808_v6 = vld [vmem:[#allocation59_spill] sm:$0xff] }
  0xef   : > { %2285 = vmatprep.mubr.bf16.mxu0 %v2010_v33  ;;  %v783_v26 = vadd.f32 %v751_v37, %v706_v24  ;;  %v785_v31 = vadd.f32 %v753_v11, %v708_v20  ;;  %v846_v44 = vmul.f32 %v4270_v13, %v3351_v55  ;;  %v873_v18 = vmul.f32 %v4270_v13, %v3397_v28 }
  0xf0   : > { %v787_v19 = vadd.f32 %v755_v30, %v710_v53  ;;  %v789_v56 = vadd.f32 %v757_v7, %v712_v4  ;;  %v875_v9 = vmul.f32 %v3397_v28, %v3949_v59  ;;  %v918_v1 = vmul.f32 %v3448_v2, %v3949_v59 }
  0xf1   : > { %v889_v62 = vadd.f32 %v873_v18, %v844_v63  ;;  %v920_v39 = vmul.f32 %v3963_v27, %v3448_v2  ;;  %v1087_v32 = vmul.f32 %v3065_v45, %v3451_v5  ;;  %v1089_v8 = vmul.f32 %v3066_v29, %v3451_v5 }
  0xf2   : > { %v891_v17 = vadd.f32 %v875_v9, %v846_v44  ;;  %v1091_v23 = vmul.f32 %v3067_v35, %v3451_v5  ;;  %v1093_v16 = vmul.f32 %v3068_v47, %v3451_v5  ;;  %v1132_v52 = vmul.f32 %v3067_v35, %v3457_v10 }
  0xf3   : > { %v934_v59 = vadd.f32 %v918_v1, %v889_v62  ;;  %v1134_v61 = vmul.f32 %v3068_v47, %v3457_v10  ;;  %v1136_v27 = vmul.f32 %v3457_v10, %v4805_v58  ;;  %v1138_v0 = vmul.f32 %v3457_v10, %v4806_v3 }
  0xf4   : > { %v936_v43 = vadd.f32 %v920_v39, %v891_v17  ;;  %v1164_v24 = vadd.f32 %v1132_v52, %v1087_v32  ;;  %v1209_v20 = vmul.f32 %v3568_v36, %v4805_v58  ;;  %v1211_v15 = vmul.f32 %v3568_v36, %v4806_v3 }
  0xf5   : > { %v966_v53 = vrot.slane %v934_v59, 1  ;;  %v1166_v4 = vadd.f32 %v1134_v61, %v1089_v8  ;;  %v1168_v33 = vadd.f32 %v1136_v27, %v1091_v23  ;;  %v1170_v37 = vadd.f32 %v1138_v0, %v1093_v16 }
  0xf6   : > { %v968_v11 = vrot.slane %v936_v43, 1  ;;  %v1213_v30 = vmul.f32 %v3568_v36, %v4807_v38  ;;  %v1215_v7 = vmul.f32 %v3568_v36, %v4808_v6  ;;  %v1241_v21 = vadd.f32 %v1209_v20, %v1164_v24 }
  0xf7   : > { %v1483_v63 = vmul.f32 0.5, %v4213_v40  ;;  %v1485_v44 = vmul.f32 0.5, %v4219_v51  ;;  %v1002_v18 = vadd.f32 %v966_v53, %v783_v26  ;;  %v1243_v9 = vadd.f32 %v1211_v15, %v1166_v4  ;;  %v3069_v40 = vld [vmem:[%s3257_s21 + $0x38] sm:$0xff] }
  0xf8   : > { %v2996_v1 = vpop.eup %2995  ;;  %v1004_v62 = vadd.f32 %v966_v53, %v785_v31  ;;  %v1006_v39 = vadd.f32 %v968_v11, %v787_v19  ;;  %v1245_v45 = vadd.f32 %v1213_v30, %v1168_v33  ;;  %v1247_v32 = vadd.f32 %v1215_v7, %v1170_v37 }
  0xf9   : > { %v2998_v29 = vpop.eup %2997  ;;  %v1703_v8 = vadd.f32 1.0, %v2996_v1  ;;  %v1008_v17 = vadd.f32 %v968_v11, %v789_v56  ;;  %v1310_v35 = vrot.slane %v1241_v21, 2  ;;  %v1312_v23 = vrot.slane %v1243_v9, 2 }
  0xfa   : > { %v3000_v47 = vpop.eup %2999  ;;  %v1705_v16 = vadd.f32 1.0, %v2998_v29  ;;  %v1316_v52 = vrot.slane %v1245_v45, 2  ;;  %v1318_v59 = vrot.slane %v1247_v32, 2  ;;  %v4303_v61 = vunpack.c.l.bf16 %v3069_v40  ;;  %v3071_v40 = vld [vmem:[#allocation2 + $0x130] sm:$0x7f] }
  0xfb   : > { %v3002_v51 = vpop.eup %3001  ;;  %v1707_v26 = vadd.f32 1.0, %v3000_v47  ;;  %v1735_v58 = vmul.f32 %v1703_v8, %v4224_v22  ;;  %v1313_v31 = vsel %vm1297_vm1, %v1310_v35, %v1312_v23  ;;  %v1386_v19 = vadd.f32 %v1310_v35, %v1002_v18 }
  0xfc   : > { %v1709_v27 = vadd.f32 1.0, %v3002_v51  ;;  %v1737_v3 = vmul.f32 %v1705_v16, %v4229_v48  ;;  %v1319_v56 = vsel %vm1297_vm1, %v1316_v52, %v1318_v59  ;;  %v1388_v0 = vadd.f32 %v1313_v31, %v1004_v62  ;;  %567 = vst [vmem:[#allocation2 + $0x190] sm:$0xff] %v4303_v61  ;;  %v601_v59 = vld [vmem:[#allocation2 + $0x180] sm:$0x80] }
  0xfd   : > { %v1739_v43 = vmul.f32 %v1707_v26, %v1483_v63  ;;  %v1779_v24 = vmul.f32 %v4796_v25, %v1735_v58  ;;  %v1390_v20 = vadd.f32 %v1316_v52, %v1006_v39  ;;  %v1392_v15 = vadd.f32 %v1319_v56, %v1008_v17  ;;  %v3070_v17 = vld [vmem:[#allocation2 + $0x120] sm:$0x80]  ;;  %v4809_v26 = vld [vmem:[#allocation54_spill] sm:$0xff]  ;;  %v4810_v56 = vld [vmem:[#allocation55_spill] sm:$0xff] }
  0xfe   : > { %v1741_v53 = vmul.f32 %v1709_v27, %v1485_v44  ;;  %v1781_v4 = vmul.f32 %v4796_v25, %v1737_v3  ;;  %v4313_v22 = vadd.f32 %v3574_v54, %v1386_v19  ;;  %v4316_v33 = vadd.f32 %v3574_v54, %v1388_v0 }
  0xff   : > { %v1783_v48 = vmul.f32 %v4796_v25, %v1739_v43  ;;  %v1823_v37 = vadd.f32 %v4797_v34, %v1779_v24  ;;  %v4321_v11 = vadd.f32 %v3574_v54, %v1390_v20  ;;  %v4324_v38 = vadd.f32 %v3574_v54, %v1392_v15  ;;  %v3072_v15 = vld [vmem:[#allocation2 + $0x150] sm:$0x80] }
 0x100   : > { %v1785_v30 = vmul.f32 %v4796_v25, %v1741_v53  ;;  %v1825_v6 = vadd.f32 %v4797_v34, %v1781_v4  ;;  %v1494_v18 = vmul.f32 %v4313_v22, %v4313_v22  ;;  %v1496_v9 = vmul.f32 %v4316_v33, %v4316_v33 }
 0x101   : > { %v1827_v7 = vadd.f32 %v4797_v34, %v1783_v48  ;;  %v1903_v21 = vadd.f32 %v1859_v42, %v1823_v37  ;;  %v1498_v62 = vmul.f32 %v4321_v11, %v4321_v11  ;;  %v1500_v39 = vmul.f32 %v4324_v38, %v4324_v38  ;;  %v605_v37 = vld [vmem:[#allocation2 + $0x1b0] sm:$0x80] }
 0x102   : > { %v1829_v63 = vadd.f32 %v4797_v34, %v1785_v30  ;;  %v1905_v44 = vadd.f32 %v1859_v42, %v1825_v6  ;;  %v1526_v34 = vmul.f32 %v1494_v18, %v4313_v22  ;;  %v1528_v45 = vmul.f32 %v1496_v9, %v4316_v33  ;;  %v3073_v30 = vld [vmem:[#allocation2 + $0x160] sm:$0x7f] }
 0x103   : > { %v1907_v25 = vadd.f32 %v1861_v46, %v1827_v7  ;;  %v1982_v1 = vrot.slane %v1903_v21, 7  ;;  %v1530_v29 = vmul.f32 %v1498_v62, %v4321_v11  ;;  %v1532_v8 = vmul.f32 %v1500_v39, %v4324_v38  ;;  %v603_v3 = vld [vmem:[#allocation2 + $0x190] sm:$0x7f] }
 0x104   : > { %v1909_v12 = vadd.f32 %v1861_v46, %v1829_v63  ;;  %v1983_v42 = vrot.slane %v1905_v44, 7  ;;  %v645_v35 = vmul.f32 %v3070_v17, %v3319_v41  ;;  %v1558_v16 = vmul.f32 0.044715, %v1526_v34 }
 0x105   : > { %v1988_v32 = vrot.slane %v1907_v25, 7  ;;  %v1560_v52 = vmul.f32 0.044715, %v1528_v45  ;;  %v1562_v60 = vmul.f32 0.044715, %v1530_v29  ;;  %v647_v51 = vmul.f32 %v3071_v40, %v3319_v41  ;;  %v3074_v45 = vld [vmem:[#allocation2 + $0x130] sm:$0xff] }
 0x106   : > { %v1984_v23 = vsel %vm1942_vm2, %v1982_v1, %v1983_v42  ;;  %v1989_v47 = vrot.slane %v1909_v12, 7  ;;  %v1564_v46 = vmul.f32 0.044715, %v1532_v8  ;;  %v649_v58 = vmul.f32 %v3319_v41, %v4809_v26  ;;  %v3075_v8 = vld [vmem:[#allocation2 + $0x160] sm:$0xff] }
 0x107   : > { %v1590_v19 = vadd.f32 %v1558_v16, %v4313_v22  ;;  %v1592_v27 = vadd.f32 %v1560_v52, %v4316_v33  ;;  %v651_v0 = vmul.f32 %v3319_v41, %v4810_v56  ;;  %v1594_v24 = vadd.f32 %v1562_v60, %v4321_v11  ;;  %v607_v41 = vld [vmem:[#allocation2 + $0x1c0] sm:$0x7f]  ;;  %v3076_v60 = vld [vmem:[#allocation2 + $0x8] sm:$0xff]  ;;  %v1064_v56 = vld [vmem:[#allocation2 + $0x1d0] sm:$0x1] }
 0x108   : > { %v1990_v31 = vsel %vm1942_vm2, %v1988_v32, %v1989_v47  ;;  %v1596_v20 = vadd.f32 %v1564_v46, %v4324_v38  ;;  %v690_v53 = vmul.f32 %v3072_v15, %v3337_v49  ;;  %v692_v6 = vmul.f32 %v3073_v30, %v3337_v49  ;;  %v1060_v52 = vld [vmem:[#allocation2 + $0x1a0] sm:$0x1] }
 0x109   : > { %v2014_v43 = vpack.c.bf16 %v1990_v31, %v1984_v23  ;;  %v1622_v4 = vmul.f32 0.7978846, %v1590_v19  ;;  %v1624_v48 = vmul.f32 0.7978846, %v1592_v27  ;;  %v694_v7 = vmul.f32 %v3337_v49, %v601_v59  ;;  %v4811_v19 = vld [vmem:[#allocation17_spill] sm:$0xff] }
 0x10a   : > { %v1626_v21 = vmul.f32 0.7978846, %v1594_v24  ;;  %v1628_v63 = vmul.f32 0.7978846, %v1596_v20  ;;  %v696_v44 = vmul.f32 %v3337_v49, %v603_v3  ;;  %v722_v18 = vadd.f32 %v690_v53, %v645_v35 }
 0x10b   : > { %2305 = vmatprep.mubr.bf16.mxu1 %v2014_v43  ;;  %3003 = vtanh.f32 %v1622_v4  ;;  %v724_v9 = vadd.f32 %v692_v6, %v647_v51  ;;  %v726_v25 = vadd.f32 %v694_v7, %v649_v58  ;;  %v767_v1 = vmul.f32 %v3340_v50, %v601_v59  ;;  %v3077_v59 = vld [vmem:[#allocation2 + $0x130] sm:$0xfe]  ;;  %v3078_v51 = vld [vmem:[#allocation2 + $0x140] sm:$0x1] }
 0x10c   : > { %3005 = vtanh.f32 %v1624_v48  ;;  %v728_v62 = vadd.f32 %v696_v44, %v651_v0  ;;  %v769_v39 = vmul.f32 %v3340_v50, %v603_v3  ;;  %v771_v12 = vmul.f32 %v3340_v50, %v605_v37 }
 0x10d   : > { %3007 = vtanh.f32 %v1626_v21  ;;  %v773_v42 = vmul.f32 %v3340_v50, %v607_v41  ;;  %v799_v34 = vadd.f32 %v767_v1, %v722_v18  ;;  %v852_v32 = vmul.f32 %v3074_v45, %v3351_v55  ;;  %v1058_v50 = vld [vmem:[#allocation2 + $0x190] sm:$0xfe] }
 0x10e   : > { %3009 = vtanh.f32 %v1628_v63  ;;  %v801_v49 = vadd.f32 %v769_v39, %v724_v9  ;;  %v803_v29 = vadd.f32 %v771_v12, %v726_v25  ;;  %v854_v17 = vmul.f32 %v3075_v8, %v3351_v55 }
 0x10f   : > { %v805_v35 = vadd.f32 %v773_v42, %v728_v62  ;;  %v881_v23 = vmul.f32 %v3075_v8, %v3397_v28  ;;  %v883_v47 = vmul.f32 %v3397_v28, %v4303_v61  ;;  %v926_v16 = vmul.f32 %v3448_v2, %v4303_v61  ;;  %v1062_v28 = vld [vmem:[#allocation2 + $0x1c0] sm:$0xfe] }
 0x110   : > { %v928_v46 = vmul.f32 %v3076_v60, %v3448_v2  ;;  %v1103_v40 = vmul.f32 %v3077_v59, %v3451_v5  ;;  %v1105_v55 = vmul.f32 %v3078_v51, %v3451_v5  ;;  %v1107_v26 = vmul.f32 %v3451_v5, %v3988_v57  ;;  %v3079_v2 = vld [vmem:[#allocation2 + $0x170] sm:$0x1] }
 0x111   : > { %v897_v58 = vadd.f32 %v881_v23, %v852_v32  ;;  %v899_v31 = vadd.f32 %v883_v47, %v854_v17  ;;  %v1109_v27 = vmul.f32 %v3451_v5, %v4811_v19  ;;  %v1148_v3 = vmul.f32 %v3457_v10, %v3988_v57  ;;  %v4812_v19 = vld [vmem:[#allocation30_spill] sm:$0xff] }
 0x112   : > { %v1150_v0 = vmul.f32 %v3079_v2, %v3457_v10  ;;  %v1152_v43 = vmul.f32 %v3457_v10, %v1058_v50  ;;  %v1154_v24 = vmul.f32 %v3457_v10, %v1060_v52  ;;  %v1225_v20 = vmul.f32 %v3568_v36, %v1058_v50 }
 0x113   : > { %v942_v15 = vadd.f32 %v926_v16, %v897_v58  ;;  %v944_v53 = vadd.f32 %v928_v46, %v899_v31  ;;  %v1180_v4 = vadd.f32 %v1148_v3, %v1103_v40  ;;  %v1227_v48 = vmul.f32 %v3568_v36, %v1060_v52  ;;  %v3080_v3 = vld [vmem:[#allocation2 + $0xd0] sm:$0xff] }
 0x114   : > { %v1182_v37 = vadd.f32 %v1150_v0, %v1105_v55  ;;  %v1184_v5 = vadd.f32 %v1152_v43, %v1107_v26  ;;  %v1186_v30 = vadd.f32 %v1154_v24, %v1109_v27  ;;  %v1229_v57 = vmul.f32 %v3568_v36, %v1062_v28 }
 0x115   : > { %v974_v6 = vrot.slane %v942_v15, 1  ;;  %v976_v7 = vrot.slane %v944_v53, 1  ;;  %v1231_v21 = vmul.f32 %v3568_v36, %v1064_v56  ;;  %v1257_v63 = vadd.f32 %v1225_v20, %v1180_v4 }
 0x116   : > { %v1462_v41 = vmul.f32 0.5, %v4313_v22  ;;  %v1850_v10 = vrot.slane %v4270_v13, 1  ;;  %v1259_v44 = vadd.f32 %v1227_v48, %v1182_v37  ;;  %v1261_v18 = vadd.f32 %v1229_v57, %v1184_v5 }
 0x117   : > { %v1464_v9 = vmul.f32 0.5, %v4316_v33  ;;  %v1018_v25 = vadd.f32 %v974_v6, %v799_v34  ;;  %v1020_v1 = vadd.f32 %v974_v6, %v801_v49  ;;  %v1022_v62 = vadd.f32 %v976_v7, %v803_v29 }
 0x118   : > { %v3004_v39 = vpop.eup %3003  ;;  %v1263_v12 = vadd.f32 %v1231_v21, %v1186_v30  ;;  %v1334_v42 = vrot.slane %v1257_v63, 2  ;;  %v1336_v45 = vrot.slane %v1259_v44, 2  ;;  %v1340_v32 = vrot.slane %v1261_v18, 2 }
 0x119   : > { %v3006_v8 = vpop.eup %3005  ;;  %v1466_v36 = vmul.f32 0.5, %v4321_v11  ;;  %v1468_v17 = vmul.f32 0.5, %v4324_v38  ;;  %v1686_v22 = vadd.f32 1.0, %v3004_v39  ;;  %v1024_v23 = vadd.f32 %v976_v7, %v805_v35 }
 0x11a   : > { %v3008_v13 = vpop.eup %3007  ;;  %v1688_v47 = vadd.f32 1.0, %v3006_v8  ;;  %v1337_v16 = vsel %vm1297_vm1, %v1334_v42, %v1336_v45  ;;  %v1342_v33 = vrot.slane %v1263_v12, 2  ;;  %v1402_v34 = vadd.f32 %v1334_v42, %v1018_v25 }
 0x11b   : > { %v3010_v49 = vpop.eup %3009  ;;  %v1690_v29 = vadd.f32 1.0, %v3008_v13  ;;  %v1718_v50 = vmul.f32 %v1686_v22, %v1462_v41  ;;  %v1404_v52 = vadd.f32 %v1337_v16, %v1020_v1  ;;  %v1406_v60 = vadd.f32 %v1340_v32, %v1022_v62 }
 0x11c   : > { %v1692_v46 = vadd.f32 1.0, %v3010_v49  ;;  %v1720_v59 = vmul.f32 %v1688_v47, %v1464_v9  ;;  %v1343_v40 = vsel %vm1297_vm1, %v1340_v32, %v1342_v33  ;;  %v1446_v11 = vadd.f32 %v3574_v54, %v1402_v34 }
 0x11d   : > { %v1722_v38 = vmul.f32 %v1690_v29, %v1466_v36  ;;  %v1762_v35 = vmul.f32 %v4756_v14, %v1718_v50  ;;  %v1408_v51 = vadd.f32 %v1343_v40, %v1024_v23  ;;  %v1448_v55 = vadd.f32 %v3574_v54, %v1404_v52 }
 0x11e   : > { %v1724_v26 = vmul.f32 %v1692_v46, %v1468_v17  ;;  %v1764_v58 = vmul.f32 %v4756_v14, %v1720_v59  ;;  %v1450_v31 = vadd.f32 %v3574_v54, %v1406_v60  ;;  %v1852_v56 = vrot.slane %v3080_v3, 1 }
 0x11f   : > { %v1766_v28 = vmul.f32 %v4756_v14, %v1722_v38  ;;  %v1806_v27 = vadd.f32 %v4812_v19, %v1762_v35  ;;  %v1452_v2 = vadd.f32 %v3574_v54, %v1408_v51  ;;  %v1510_v24 = vmul.f32 %v1446_v11, %v1446_v11 }
 0x120   : > { %v1768_v0 = vmul.f32 %v4756_v14, %v1724_v26  ;;  %v1808_v43 = vadd.f32 %v4812_v19, %v1764_v58  ;;  %v1512_v53 = vmul.f32 %v1448_v55, %v1448_v55  ;;  %v1514_v37 = vmul.f32 %v1450_v31, %v1450_v31  ;;  %v3081_v26 = vld [vmem:[#allocation2 + $0x160] sm:$0xff] }
 0x121   : > { %v1810_v20 = vadd.f32 %v4812_v19, %v1766_v28  ;;  %v1886_v15 = vadd.f32 %v1850_v10, %v1806_v27  ;;  %v1516_v5 = vmul.f32 %v1452_v2, %v1452_v2  ;;  %v1542_v6 = vmul.f32 %v1510_v24, %v1446_v11 }
 0x122   : > { %v1812_v4 = vadd.f32 %v4812_v19, %v1768_v0  ;;  %v1888_v48 = vadd.f32 %v1850_v10, %v1808_v43  ;;  %v1544_v7 = vmul.f32 %v1512_v53, %v1448_v55  ;;  %v1546_v63 = vmul.f32 %v1514_v37, %v1450_v31 }
 0x123   : > { %v1890_v30 = vadd.f32 %v1852_v56, %v1810_v20  ;;  %v1955_v57 = vrot.slane %v1886_v15, 7  ;;  %v1548_v41 = vmul.f32 %v1516_v5, %v1452_v2  ;;  %v1574_v18 = vmul.f32 0.044715, %v1542_v6  ;;  %v4813_v6 = vld [vmem:[#allocation6_spill] sm:$0xff] }
 0x124   : > { %v1892_v21 = vadd.f32 %v1852_v56, %v1812_v4  ;;  %v1956_v54 = vrot.slane %v1888_v48, 7  ;;  %v1576_v9 = vmul.f32 0.044715, %v1544_v7  ;;  %v1578_v62 = vmul.f32 0.044715, %v1546_v63 }
 0x125   : > { %v1961_v44 = vrot.slane %v1890_v30, 7  ;;  %v1580_v39 = vmul.f32 0.044715, %v1548_v41  ;;  %v1606_v12 = vadd.f32 %v1574_v18, %v1446_v11  ;;  %v1478_v13 = vmul.f32 0.5, %v1446_v11 }
 0x126   : > { %v1957_v25 = vsel %vm1942_vm2, %v1955_v57, %v1956_v54  ;;  %v1962_v1 = vrot.slane %v1892_v21, 7  ;;  %v1608_v10 = vadd.f32 %v1576_v9, %v1448_v55  ;;  %v1610_v45 = vadd.f32 %v1578_v62, %v1450_v31  ;;  %v4814_v54 = vld [vmem:[#allocation7_spill] sm:$0xff] }
 0x127   : > { %v1612_v32 = vadd.f32 %v1580_v39, %v1452_v2  ;;  %v1638_v36 = vmul.f32 0.7978846, %v1606_v12  ;;  %v1480_v16 = vmul.f32 0.5, %v1448_v55  ;;  %v1482_v34 = vmul.f32 0.5, %v1450_v31 }
 0x128   : > { %v1963_v42 = vsel %vm1942_vm2, %v1961_v44, %v1962_v1  ;;  %v1640_v17 = vmul.f32 0.7978846, %v1608_v10  ;;  %v1642_v22 = vmul.f32 0.7978846, %v1610_v45  ;;  %v1484_v50 = vmul.f32 0.5, %v1452_v2 }
 0x129   : > { %v2009_v8 = vpack.c.bf16 %v1963_v42, %v1957_v25  ;;  %v1644_v23 = vmul.f32 0.7978846, %v1612_v32  ;;  %3011 = vtanh.f32 %v1638_v36  ;;  %v1858_v58 = vrot.slane %v3081_v26, 1 }
 0x12a   : > { %3013 = vtanh.f32 %v1640_v17  ;;  %v1860_v27 = vrot.slane %v4303_v61, 1 }
 0x12b   : > { %2286 = vmatmul.mubr.bf16.gmra.mxu0 %v2009_v8  ;;  %3015 = vtanh.f32 %v1642_v22 }
 0x12c   : > { %3017 = vtanh.f32 %v1644_v23 }
 0x136   : > { %v3012_v47 = vpop.eup %3011 }
 0x137   : > { %v3014_v33 = vpop.eup %3013  ;;  %v1702_v49 = vadd.f32 1.0, %v3012_v47 }
 0x138   : > { %v3016_v29 = vpop.eup %3015  ;;  %v1704_v52 = vadd.f32 1.0, %v3014_v33 }
 0x139   : > { %v3018_v60 = vpop.eup %3017  ;;  %v1706_v46 = vadd.f32 1.0, %v3016_v29  ;;  %v1734_v59 = vmul.f32 %v1702_v49, %v1478_v13 }
 0x13a   : > { %v1708_v40 = vadd.f32 1.0, %v3018_v60  ;;  %v1736_v38 = vmul.f32 %v1704_v52, %v1480_v16 }
 0x13b   : > { %v1738_v35 = vmul.f32 %v1706_v46, %v1482_v34  ;;  %v1778_v51 = vmul.f32 %v4756_v14, %v1734_v59 }
 0x13c   : > { %v1740_v28 = vmul.f32 %v1708_v40, %v1484_v50  ;;  %v1780_v11 = vmul.f32 %v4756_v14, %v1736_v38 }
 0x13d   : > { %v1782_v55 = vmul.f32 %v4756_v14, %v1738_v35  ;;  %v1822_v31 = vadd.f32 %v4812_v19, %v1778_v51 }
 0x13e   : > { %v1784_v3 = vmul.f32 %v4756_v14, %v1740_v28  ;;  %v1824_v56 = vadd.f32 %v4812_v19, %v1780_v11  ;;  %v2367_v14 = vld [vmem:[%s4634_s6] sm:$0x3] }
 0x13f   : > { %v1826_v2 = vadd.f32 %v4812_v19, %v1782_v55  ;;  %v1902_v0 = vadd.f32 %v1858_v58, %v1822_v31  ;;  %v4435_v63 = vrot.slane %v2367_v14, %v4814_v54 }
 0x140   : > { %v1828_v43 = vadd.f32 %v4812_v19, %v1784_v3  ;;  %v1904_v24 = vadd.f32 %v1858_v58, %v1824_v56  ;;  %v4429_v19 = vrot.slane %v2367_v14, %v4813_v6 }
 0x141   : > { %v1906_v20 = vadd.f32 %v1860_v27, %v1826_v2  ;;  %v1979_v15 = vrot.slane %v1902_v0, 7 }
 0x142   : > { %v1908_v53 = vadd.f32 %v1860_v27, %v1828_v43  ;;  %v1980_v4 = vrot.slane %v1904_v24, 7 }
 0x143   : > { %v1985_v48 = vrot.slane %v1906_v20, 7 }
 0x144   : > { %v1981_v37 = vsel %vm1942_vm2, %v1979_v15, %v1980_v4  ;;  %v1986_v5 = vrot.slane %v1908_v53, 7 }
 0x146   : > { %v1987_v61 = vsel %vm1942_vm2, %v1985_v48, %v1986_v5 }
 0x147   : > { %v2013_v30 = vpack.c.bf16 %v1987_v61, %v1981_v37 }
 0x149   : > { %2306 = vmatmul.mubr.bf16.gmra.mxu1 %v2013_v30 }
 0x174   : > { %v2277_v57 = vpop.f32.mrf.mxu0 }
 0x175   : > { %v4432_v21 = vadd.f32 %v4429_v19, %v2277_v57 }
 0x176   : > { %v2279_v7 = vpop.f32.mrf.mxu0 }
 0x177   : > { %v2411_v44 = vmul.f32 %v4432_v21, %v4432_v21  ;;  %v4440_v18 = vadd.f32 %v4435_v63, %v2279_v7 }
 0x178   : > { %v2281_v41 = vpop.f32.mrf.mxu0 }
 0x179   : > { %v4443_v9 = vadd.f32 %v4429_v19, %v2281_v41  ;;  %v2427_v25 = vmul.f32 %v2411_v44, %v4432_v21  ;;  %v2412_v1 = vmul.f32 %v4440_v18, %v4440_v18 }
 0x17a   : > { %v2283_v39 = vpop.f32.mrf.mxu0 }
 0x17b   : > { %v2413_v62 = vmul.f32 %v4443_v9, %v4443_v9  ;;  %v2443_v12 = vmul.f32 0.044715, %v2427_v25  ;;  %v2428_v42 = vmul.f32 %v2412_v1, %v4440_v18  ;;  %v4452_v45 = vadd.f32 %v4435_v63, %v2283_v39 }
 0x17d   : > { %v2429_v32 = vmul.f32 %v2413_v62, %v4443_v9  ;;  %v2459_v36 = vadd.f32 %v2443_v12, %v4432_v21  ;;  %v2444_v23 = vmul.f32 0.044715, %v2428_v42  ;;  %v2414_v13 = vmul.f32 %v4452_v45, %v4452_v45 }
 0x17f   : > { %v2445_v33 = vmul.f32 0.044715, %v2429_v32  ;;  %v2475_v50 = vmul.f32 0.7978846, %v2459_v36  ;;  %v2460_v40 = vadd.f32 %v2444_v23, %v4440_v18  ;;  %v2430_v38 = vmul.f32 %v2414_v13, %v4452_v45 }
 0x181   : > { %v2461_v26 = vadd.f32 %v2445_v33, %v4443_v9  ;;  %3019 = vtanh.f32 %v2475_v50  ;;  %v2476_v2 = vmul.f32 0.7978846, %v2460_v40  ;;  %v2446_v0 = vmul.f32 0.044715, %v2430_v38 }
 0x183   : > { %v2477_v20 = vmul.f32 0.7978846, %v2461_v26  ;;  %3021 = vtanh.f32 %v2476_v2  ;;  %v2462_v30 = vadd.f32 %v2446_v0, %v4452_v45 }
 0x185   : > { %3023 = vtanh.f32 %v2477_v20  ;;  %v2478_v39 = vmul.f32 0.7978846, %v2462_v30 }
 0x18e   : > { %v3020_v23 = vpop.eup %3019 }
 0x194   : > { %v2297_v10 = vpop.f32.mrf.mxu1 }
 0x195   : > { %v4462_v16 = vadd.f32 %v4429_v19, %v2297_v10 }
 0x196   : > { %v2299_v17 = vpop.f32.mrf.mxu1 }
 0x197   : > { %v2419_v51 = vmul.f32 %v4462_v16, %v4462_v16  ;;  %v4483_v28 = vadd.f32 %v4435_v63, %v2299_v17 }
 0x198   : > { %v2301_v52 = vpop.f32.mrf.mxu1 }
 0x199   : > { %v4490_v31 = vadd.f32 %v4429_v19, %v2301_v52  ;;  %v2435_v24 = vmul.f32 %v2419_v51, %v4462_v16  ;;  %v2420_v53 = vmul.f32 %v4483_v28, %v4483_v28  ;;  %v2539_v52 = vld [vmem:[%s4635_s7] sm:$0x3] }
 0x19a   : > { %v2303_v27 = vpop.f32.mrf.mxu1  ;;  %v4523_v26 = vrot.slane %v2539_v52, %v4813_v6 }
 0x19b   : > { %v4499_v4 = vadd.f32 %v4435_v63, %v2303_v27  ;;  %v2421_v5 = vmul.f32 %v4490_v31, %v4490_v31  ;;  %v2451_v7 = vmul.f32 0.044715, %v2435_v24  ;;  %v2436_v41 = vmul.f32 %v2420_v53, %v4483_v28 }
 0x19c   : > { %v4537_v53 = vrot.slane %v2539_v52, %v4814_v54 }
 0x19d   : > { %v2422_v44 = vmul.f32 %v4499_v4, %v4499_v4  ;;  %v2437_v1 = vmul.f32 %v2421_v5, %v4490_v31  ;;  %v2467_v42 = vadd.f32 %v2451_v7, %v4462_v16  ;;  %v2452_v32 = vmul.f32 0.044715, %v2436_v41 }
 0x19f   : > { %v2453_v17 = vmul.f32 0.044715, %v2437_v1  ;;  %v2468_v33 = vadd.f32 %v2452_v32, %v4483_v28 }
 0x1a1   : > { %v2469_v50 = vadd.f32 %v2453_v17, %v4490_v31  ;;  %v2484_v38 = vmul.f32 0.7978846, %v2468_v33 }
 0x1eb   : > { %v2287_v8 = vpop.f32.mrf.mxu0 }
 0x1ec   : > { %v4457_v22 = vadd.f32 %v4429_v19, %v2287_v8  ;;  %v2438_v8 = vmul.f32 %v2422_v44, %v4499_v4 }
 0x1ed   : > { %v2289_v47 = vpop.f32.mrf.mxu0 }
 0x1ee   : > { %v2415_v34 = vmul.f32 %v4457_v22, %v4457_v22  ;;  %v4467_v49 = vadd.f32 %v4435_v63, %v2289_v47  ;;  %v2483_v47 = vmul.f32 0.7978846, %v2467_v42 }
 0x1ef   : > { %v2291_v29 = vpop.f32.mrf.mxu0 }
 0x1f0   : > { %v2431_v60 = vmul.f32 %v2415_v34, %v4457_v22  ;;  %v2416_v46 = vmul.f32 %v4467_v49, %v4467_v49  ;;  %v4473_v59 = vadd.f32 %v4429_v19, %v2291_v29  ;;  %v2454_v34 = vmul.f32 0.044715, %v2438_v8 }
 0x1f1   : > { %v2293_v35 = vpop.f32.mrf.mxu0  ;;  %v2507_v29 = vadd.f32 1.0, %v3020_v23 }
 0x1f2   : > { %v2417_v58 = vmul.f32 %v4473_v59, %v4473_v59  ;;  %v2432_v11 = vmul.f32 %v2416_v46, %v4467_v49  ;;  %v4487_v55 = vadd.f32 %v4435_v63, %v2293_v35  ;;  %v2447_v3 = vmul.f32 0.044715, %v2431_v60  ;;  %v3022_v60 = vpop.eup %3021 }
 0x1f3   : > { %v2395_v46 = vmul.f32 0.5, %v4432_v21  ;;  %v3024_v40 = vpop.eup %3023  ;;  %v2470_v35 = vadd.f32 %v2454_v34, %v4499_v4  ;;  %v2508_v27 = vadd.f32 1.0, %v3022_v60 }
 0x1f4   : > { %v2433_v56 = vmul.f32 %v2417_v58, %v4473_v59  ;;  %v2418_v43 = vmul.f32 %v4487_v55, %v4487_v55  ;;  %v2448_v48 = vmul.f32 0.044715, %v2432_v11  ;;  %v2463_v61 = vadd.f32 %v2447_v3, %v4457_v22  ;;  %v2567_v11 = vld [vmem:[%s4636_s8] sm:$0x3] }
 0x1f5   : > { %v2523_v51 = vmul.f32 %v2507_v29, %v2395_v46  ;;  %v2485_v58 = vmul.f32 0.7978846, %v2469_v50  ;;  %v2396_v3 = vmul.f32 0.5, %v4440_v18  ;;  %v2486_v21 = vmul.f32 0.7978846, %v2470_v35 }
 0x1f6   : > { %v2449_v15 = vmul.f32 0.044715, %v2433_v56  ;;  %v2434_v37 = vmul.f32 %v2418_v43, %v4487_v55  ;;  %v2464_v25 = vadd.f32 %v2448_v48, %v4467_v49  ;;  %v2479_v62 = vmul.f32 0.7978846, %v2463_v61 }
 0x1f7   : > { %v2509_v56 = vadd.f32 1.0, %v3024_v40  ;;  %v2551_v0 = vmul.f32 %v4523_v26, %v2523_v51  ;;  %v4531_v43 = vrot.slane %v2567_v11, %v4813_v6  ;;  %v2397_v18 = vmul.f32 0.5, %v4443_v9 }
 0x1f8   : > { %v2450_v14 = vmul.f32 0.044715, %v2434_v37  ;;  %v2465_v57 = vadd.f32 %v2449_v15, %v4473_v59  ;;  %v2480_v36 = vmul.f32 0.7978846, %v2464_v25  ;;  %3025 = vtanh.f32 %v2479_v62 }
 0x1f9   : > { %3027 = vtanh.f32 %v2478_v39  ;;  %v2524_v15 = vmul.f32 %v2508_v27, %v2396_v3  ;;  %v4541_v5 = vrot.slane %v2567_v11, %v4814_v54  ;;  %v2525_v30 = vmul.f32 %v2509_v56, %v2397_v18 }
 0x1fa   : > { %v2466_v12 = vadd.f32 %v2450_v14, %v4487_v55  ;;  %v2481_v10 = vmul.f32 0.7978846, %v2465_v57  ;;  %v2398_v14 = vmul.f32 0.5, %v4452_v45  ;;  %v2579_v9 = vadd.f32 %v4531_v43, %v2551_v0 }
 0x1fb   : > { %v2552_v1 = vmul.f32 %v4537_v53, %v2524_v15  ;;  %v2399_v39 = vmul.f32 0.5, %v4457_v22  ;;  %v2401_v22 = vmul.f32 0.5, %v4473_v59  ;;  %v2402_v11 = vmul.f32 0.5, %v4487_v55 }
 0x1fc   : > { %v2482_v13 = vmul.f32 0.7978846, %v2466_v12  ;;  %3029 = vtanh.f32 %v2481_v10 }
 0x1fd   : > { %3031 = vtanh.f32 %v2480_v36 }
 0x1fe   : > { %3033 = vtanh.f32 %v2482_v13 }
 0x1ff   : > { %3035 = vtanh.f32 %v2483_v47 }
 0x200   : > { %3037 = vtanh.f32 %v2484_v38 }
 0x201   : > { %3039 = vtanh.f32 %v2485_v58 }
 0x202   : > { %3041 = vtanh.f32 %v2486_v21 }
 0x205   : > { %v3026_v20 = vpop.eup %3025 }
 0x206   : > { %v3028_v37 = vpop.eup %3027  ;;  %v2511_v44 = vadd.f32 1.0, %v3026_v20 }
 0x207   : > { %v2510_v62 = vadd.f32 1.0, %v3028_v37 }
 0x208   : > { %v2527_v47 = vmul.f32 %v2511_v44, %v2399_v39  ;;  %v2404_v44 = vmul.f32 0.5, %v4483_v28 }
 0x209   : > { %v2307_v2 = vpop.f32.mrf.mxu1  ;;  %v3030_v61 = vpop.eup %3029  ;;  %v2526_v50 = vmul.f32 %v2510_v62, %v2398_v14 }
 0x20a   : > { %v4534_v24 = vadd.f32 %v4429_v19, %v2307_v2  ;;  %v3032_v41 = vpop.eup %3031  ;;  %v2513_v32 = vadd.f32 1.0, %v3030_v61  ;;  %v2555_v3 = vmul.f32 %v4523_v26, %v2527_v47  ;;  %v2403_v2 = vmul.f32 0.5, %v4462_v16 }
 0x20b   : > { %v2309_v48 = vpop.f32.mrf.mxu1  ;;  %v3034_v10 = vpop.eup %3033  ;;  %v2512_v17 = vadd.f32 1.0, %v3032_v41  ;;  %v2554_v0 = vmul.f32 %v4537_v53, %v2526_v50 }
 0x20c   : > { %v2423_v6 = vmul.f32 %v4534_v24, %v4534_v24  ;;  %v4547_v57 = vadd.f32 %v4435_v63, %v2309_v48  ;;  %v3036_v13 = vpop.eup %3035  ;;  %v2514_v60 = vadd.f32 1.0, %v3034_v10  ;;  %v2529_v40 = vmul.f32 %v2513_v32, %v2401_v22 }
 0x20d   : > { %v2311_v7 = vpop.f32.mrf.mxu1  ;;  %v2515_v59 = vadd.f32 1.0, %v3036_v13  ;;  %v3038_v27 = vpop.eup %3037  ;;  %v2583_v16 = vadd.f32 %v4531_v43, %v2555_v3  ;;  %v2580_v10 = vadd.f32 %v4541_v5, %v2552_v1  ;;  %v2406_v22 = vmul.f32 0.5, %v4499_v4 }
 0x20e   : > { %v2439_v25 = vmul.f32 %v2423_v6, %v4534_v24  ;;  %v4552_v54 = vadd.f32 %v4429_v19, %v2311_v7  ;;  %v2424_v45 = vmul.f32 %v4547_v57, %v4547_v57  ;;  %v2553_v19 = vmul.f32 %v4523_v26, %v2525_v30  ;;  %v3040_v21 = vpop.eup %3039 }
 0x20f   : > { %v2313_v12 = vpop.f32.mrf.mxu1  ;;  %v2530_v15 = vmul.f32 %v2514_v60, %v2402_v11  ;;  %v2557_v48 = vmul.f32 %v4523_v26, %v2529_v40  ;;  %v2531_v6 = vmul.f32 %v2515_v59, %v2403_v2  ;;  %v2516_v61 = vadd.f32 1.0, %v3038_v27  ;;  %v3042_v14 = vpop.eup %3041 }
 0x210   : > { %v2455_v42 = vmul.f32 0.044715, %v2439_v25  ;;  %v2425_v8 = vmul.f32 %v4552_v54, %v4552_v54  ;;  %v4561_v36 = vadd.f32 %v4435_v63, %v2313_v12  ;;  %v2440_v23 = vmul.f32 %v2424_v45, %v4547_v57 }
 0x211   : > { %v2400_v63 = vmul.f32 0.5, %v4467_v49  ;;  %v2581_v18 = vadd.f32 %v4531_v43, %v2553_v19  ;;  %v2517_v7 = vadd.f32 1.0, %v3040_v21  ;;  %v2582_v25 = vadd.f32 %v4541_v5, %v2554_v0 }
 0x212   : > { %v2471_v33 = vadd.f32 %v2455_v42, %v4534_v24  ;;  %v2441_v34 = vmul.f32 %v2425_v8, %v4552_v54  ;;  %v2426_v29 = vmul.f32 %v4561_v36, %v4561_v36  ;;  %v2456_v52 = vmul.f32 0.044715, %v2440_v23 }
 0x213   : > { %v2528_v51 = vmul.f32 %v2512_v17, %v2400_v63  ;;  %v2558_v62 = vmul.f32 %v4537_v53, %v2530_v15  ;;  %v2595_v39 = vadd.f32 %v2581_v18, %v2579_v9  ;;  %v2405_v45 = vmul.f32 0.5, %v4490_v31 }
 0x214   : > { %v2487_v46 = vmul.f32 0.7978846, %v2471_v33  ;;  %v2457_v38 = vmul.f32 0.044715, %v2441_v34  ;;  %v2442_v35 = vmul.f32 %v2426_v29, %v4561_v36  ;;  %v2472_v58 = vadd.f32 %v2456_v52, %v4547_v57 }
 0x215   : > { %v2556_v30 = vmul.f32 %v4537_v53, %v2528_v51  ;;  %v2585_v12 = vadd.f32 %v4531_v43, %v2557_v48  ;;  %v2532_v42 = vmul.f32 %v2516_v61, %v2404_v44  ;;  %v2518_v32 = vadd.f32 1.0, %v3042_v14 }
 0x216   : > { %3043 = vtanh.f32 %v2487_v46  ;;  %v2473_v56 = vadd.f32 %v2457_v38, %v4552_v54  ;;  %v2458_v49 = vmul.f32 0.044715, %v2442_v35  ;;  %v2488_v20 = vmul.f32 0.7978846, %v2472_v58 }
 0x217   : > { %v2584_v8 = vadd.f32 %v4541_v5, %v2556_v30  ;;  %v2559_v19 = vmul.f32 %v4523_v26, %v2531_v6  ;;  %v2533_v17 = vmul.f32 %v2517_v7, %v2405_v45  ;;  %v2596_v28 = vadd.f32 %v2595_v39, %v2583_v16 }
 0x218   : > { %v2489_v37 = vmul.f32 0.7978846, %v2473_v56  ;;  %v2474_v55 = vadd.f32 %v2458_v49, %v4561_v36  ;;  %3045 = vtanh.f32 %v2488_v20  ;;  %v2608_v23 = vadd.f32 %v2582_v25, %v2580_v10 }
 0x219   : > { %v2586_v9 = vadd.f32 %v4541_v5, %v2558_v62  ;;  %v2597_v13 = vadd.f32 %v2596_v28, %v2585_v12  ;;  %v2560_v31 = vmul.f32 %v4537_v53, %v2532_v42  ;;  %v2534_v47 = vmul.f32 %v2518_v32, %v2406_v22 }
 0x21a   : > { %3047 = vtanh.f32 %v2489_v37  ;;  %v2490_v41 = vmul.f32 0.7978846, %v2474_v55  ;;  %v2609_v33 = vadd.f32 %v2608_v23, %v2584_v8  ;;  %v2587_v1 = vadd.f32 %v4531_v43, %v2559_v19 }
 0x21b   : > { %v2561_v34 = vmul.f32 %v4523_v26, %v2533_v17  ;;  %v2407_v63 = vmul.f32 0.5, %v4534_v24  ;;  %v2588_v46 = vadd.f32 %v4541_v5, %v2560_v31  ;;  %v2562_v4 = vmul.f32 %v4537_v53, %v2534_v47 }
 0x21c   : > { %3049 = vtanh.f32 %v2490_v41  ;;  %v2610_v50 = vadd.f32 %v2609_v33, %v2586_v9  ;;  %v2598_v60 = vadd.f32 %v2597_v13, %v2587_v1  ;;  %v2408_v51 = vmul.f32 0.5, %v4547_v57 }
 0x21d   : > { %v2589_v38 = vadd.f32 %v4531_v43, %v2561_v34  ;;  %v2409_v3 = vmul.f32 0.5, %v4552_v54  ;;  %v2590_v21 = vadd.f32 %v4541_v5, %v2562_v4  ;;  %v2410_v15 = vmul.f32 0.5, %v4561_v36 }
 0x21e   : > { %v2611_v11 = vadd.f32 %v2610_v50, %v2588_v46  ;;  %v3107_v12 = vmov 1966171168  }
 0x21f   : > { %v2599_v56 = vadd.f32 %v2598_v60, %v2589_v38  ;;  %v2628_v10 = vunpack.c.l.s4 %v3107_v12 }
 0x220   : > { %v2612_v48 = vadd.f32 %v2611_v11, %v2590_v21 }
 0x223   : > { %v3044_v29 = vpop.eup %3043 }
 0x224   : > { %v2519_v52 = vadd.f32 1.0, %v3044_v29 }
 0x225   : > { %v3046_v40 = vpop.eup %3045 }
 0x226   : > { %v2535_v35 = vmul.f32 %v2519_v52, %v2407_v63  ;;  %v2520_v58 = vadd.f32 1.0, %v3046_v40 }
 0x227   : > { %v3048_v59 = vpop.eup %3047 }
 0x228   : > { %v2563_v27 = vmul.f32 %v4523_v26, %v2535_v35  ;;  %v2521_v24 = vadd.f32 1.0, %v3048_v59  ;;  %v2536_v2 = vmul.f32 %v2520_v58, %v2408_v51 }
 0x229   : > { %v3050_v49 = vpop.eup %3049 }
 0x22a   : > { %v2591_v0 = vadd.f32 %v4531_v43, %v2563_v27  ;;  %v2537_v20 = vmul.f32 %v2521_v24, %v2409_v3  ;;  %v2522_v18 = vadd.f32 1.0, %v3050_v49  ;;  %v2564_v57 = vmul.f32 %v4537_v53, %v2536_v2 }
 0x22c   : > { %v2565_v37 = vmul.f32 %v4523_v26, %v2537_v20  ;;  %v2600_v55 = vadd.f32 %v2599_v56, %v2591_v0  ;;  %v2538_v6 = vmul.f32 %v2522_v18, %v2410_v15  ;;  %v2592_v54 = vadd.f32 %v4541_v5, %v2564_v57 }
 0x22e   : > { %v2593_v61 = vadd.f32 %v4531_v43, %v2565_v37  ;;  %v2566_v30 = vmul.f32 %v4537_v53, %v2538_v6  ;;  %v2613_v14 = vadd.f32 %v2612_v48, %v2592_v54  ;;  %v2629_v53 = vunpack.c.0.s8 %v2628_v10 }
 0x230   : > { %v2601_v7 = vadd.f32 %v2600_v55, %v2593_v61  ;;  %v2594_v16 = vadd.f32 %v4541_v5, %v2566_v30  ;;  %v4815_v5 = vld [vmem:[#allocation5_spill] sm:$0xff] }
 0x231   : > { %v2632_v23 = vsub.s32 %v2629_v53, %v4815_v5 }
 0x232   : > { %v2602_v41 = vrot.slane %v2601_v7, 4  ;;  %v2614_v36 = vadd.f32 %v2613_v14, %v2594_v16 }
 0x234   : > { %v2603_v44 = vadd.f32 %v2602_v41, %v2601_v7  ;;  %v2615_v25 = vrot.slane %v2614_v36, 4 }
 0x236   : > { %v2604_v62 = vrot.slane %v2603_v44, 2  ;;  %v2616_v39 = vadd.f32 %v2615_v25, %v2614_v36 }
 0x238   : > { %v2605_v26 = vadd.f32 %v2604_v62, %v2603_v44  ;;  %v2617_v45 = vrot.slane %v2616_v39, 2 }
 0x23a   : > { %v2606_v42 = vrot.slane %v2605_v26, 1  ;;  %v2618_v32 = vadd.f32 %v2617_v45, %v2616_v39 }
 0x23c   : > { %v2607_v43 = vadd.f32 %v2606_v42, %v2605_v26  ;;  %v2619_v8 = vrot.slane %v2618_v32, 1 }
 0x23e   : > { %v2620_v19 = vadd.f32 %v2619_v8, %v2618_v32  ;;  %v2622_v17 = vmul.f32 0.015625, %v2607_v43 }
 0x240   : > { %v2623_v28 = vmul.f32 0.015625, %v2620_v19 }
 0x242   : > { %v2626_v22 = vcombine.low %v2622_v17, %v2623_v28 }
 0x244   : > { %v2633_v9 = vrot.slane %v2626_v22, %v2632_v23 }
 0x246   : > { %v2640_v13 = vrot.slane %v2633_v9, %v2632_v23 }
 0x248   : > { %2642 = vst.msk [vmem:[%s462_s15] sm:$0x3] %vm3190_vm0, %v2640_v13 }
 0x249 PF: > { %s19_s11 = sadd.s32 1, %s3104_s11   ;;  %s4817_s30 = smov %s3100_s10 }
 0x24a   : > { %p16_p5 = scmp.ge.s32.totalorder %s19_s11, 4   ;;  %s4818_s10 = smov %s4820_s12 }
 0x24c   :  { %18 = sbr.rel (!%p16_p5) target bundleno = 2 (0x2), region = 135 }

// kernel: convmixer_forward.5
= control target key start
LH: loop header
LB: loop body
LE: loop exit
PB: predicated region body
PF: predicated region fallthrough
CT: control target
= control target key end

     0   :  { %s3202_s30 = smov 0   ;;  %s3204_s10 = smov 0   ;;  %s4566_s0 = inlined_call_operand.vmem [shape: bf16[2,8,8,256], index: 0, kind: input, shape index: {}]   ;;  %s4567_s1 = inlined_call_operand.vmem [shape: f32[9,256], index: 1, kind: input, shape index: {}]   ;;  %s4568_s2 = inlined_call_operand.vmem [shape: f32[1,256], index: 2, kind: input, shape index: {}]   ;;  %s4569_s3 = inlined_call_operand.vmem [shape: f32[1,256], index: 3, kind: input, shape index: {}]   ;;  %s4570_s4 = inlined_call_operand.vmem [shape: f32[1,256], index: 4, kind: input, shape index: {}]   ;;  %s4571_s5 = inlined_call_operand.vmem [shape: bf16[256,256], index: 5, kind: input, shape index: {}]   ;;  %s4572_s6 = inlined_call_operand.vmem [shape: f32[1,256], index: 6, kind: input, shape index: {}]   ;;  %s4573_s7 = inlined_call_operand.vmem [shape: f32[1,256], index: 7, kind: input, shape index: {}]   ;;  %s4574_s8 = inlined_call_operand.vmem [shape: f32[1,256], index: 8, kind: input, shape index: {}]   ;;  %s4575_s9 = inlined_call_operand.vmem [shape: bf16[2,8,8,256], index: 9, kind: output, shape index: {}]  }
   0x1   :  { %s3206_s11 = smov 0  }
   0x2 LB: > { %s31_s12 = sadd.s32 1, %s3145_s10  ;;  %p2830_p0 = scmp.ge.s32.totalorder %s3149_s11, 1  ;;  %s3149_s11 = sphi %s3206_s11, %s19_s11   ;;  %s3145_s10 = sphi %s3204_s10, %s4750_s10   ;;  %s3141_s30 = sphi %s3202_s30, %s4749_s30  }
   0x3   : > { %p33_p1 = scmp.ge.s32.totalorder %s31_s12, 2  ;;  %p359_p2 = scmp.lt.s32.totalorder %s3149_s11, 3 }
   0x5   : > { %s4752_s12 = smov (%p33_p1, %s31_s12), 0  ;;  %p360_p3 = pnand %p2830_p0, %p359_p2 }
   0x7   : > { %363 = sbr.rel (%p360_p3) target bundleno = 565 (0x235), region = 56 }
   0xc   : > { %v2952_v0 = vld [vmem:[%s4571_s5 + $0x74] ss:$8 sps:$4 sm:$0xff]   ;;  %v479_v1 = vlaneseq  ;;  %v2954_v2 = vld [vmem:[%s4571_s5 + $0x70] ss:$8 sps:$4 sm:$0xff]   ;;  %v3151_v3 = vmov 0.0   ;;  %p423_p4 = scmp.lt.s32.totalorder %s3141_s30, 1 }
   0xd   : > { %466 = vst [vmem:[#allocation2 + $0x8] sm:$0xff] %v3151_v3  ;;  %468 = vst [vmem:[#allocation2 + $0x18] sm:$0xff] %v3151_v3  ;;  %2245 = vmatprep.subr.bf16.mxu0 %v2952_v0  ;;  %2895 = vmatprep.subr.bf16.mxu1 %v2952_v0  ;;  %v2955_v4 = vld [vmem:[%s4571_s5 + $0x64] ss:$8 sps:$4 sm:$0xff]   ;;  %v2957_v5 = vld [vmem:[%s4571_s5 + $0x60] ss:$8 sps:$4 sm:$0xff]  }
   0xe   : > { %470 = vst [vmem:[#allocation2 + $0x28] sm:$0x1] %v3151_v3  ;;  %465 = vst [vmem:[#allocation2] sm:$0xff] %v3151_v3  ;;  %2246 = vmatpush1.bf16.msra.mxu0 %v2954_v2  ;;  %2911 = vmatpush1.bf16.msra.mxu1 %v2954_v2  ;;  %vm3234_vm0 = vcmp.lt.s32.totalorder %v479_v1, 256  ;;  %v2958_v7 = vld [vmem:[%s4571_s5 + $0x54] ss:$8 sps:$4 sm:$0xff]  }
   0xf   : > { %467 = vst [vmem:[#allocation2 + $0x10] sm:$0xff] %v3151_v3  ;;  %469 = vst [vmem:[#allocation2 + $0x20] sm:$0x1] %v3151_v3  ;;  %2247 = vmatprep.subr.bf16.mxu0 %v2955_v4  ;;  %2896 = vmatprep.subr.bf16.mxu1 %v2955_v4  ;;  %v2960_v8 = vld [vmem:[%s4571_s5 + $0x50] ss:$8 sps:$4 sm:$0xff]   ;;  %s4754_s30 = smov (!%p423_p4, %s3141_s30), 1 }
  0x10   : > { %472 = vst [vmem:[#allocation2 + $0x1b0] sm:$0xff] %v3151_v3  ;;  %473 = vst [vmem:[#allocation2 + $0x1b8] sm:$0xff] %v3151_v3  ;;  %v2961_v9 = vld [vmem:[%s4571_s5 + $0x44] ss:$8 sps:$4 sm:$0xff]   ;;  %v2963_v10 = vld [vmem:[%s4571_s5 + $0x40] ss:$8 sps:$4 sm:$0xff]  }
  0x11   : > { %474 = vst [vmem:[#allocation2 + $0x1c0] sm:$0xff] %v3151_v3  ;;  %475 = vst [vmem:[#allocation2 + $0x1c8] sm:$0xff] %v3151_v3  ;;  %v2964_v11 = vld [vmem:[%s4571_s5 + $0x34] ss:$8 sps:$4 sm:$0xff]   ;;  %v2966_v12 = vld [vmem:[%s4571_s5 + $0x30] ss:$8 sps:$4 sm:$0xff]  }
  0x12   : > { %476 = vst [vmem:[#allocation2 + $0x1d0] sm:$0x1] %v3151_v3  ;;  %477 = vst [vmem:[#allocation2 + $0x1d8] sm:$0x1] %v3151_v3  ;;  %2248 = vmatpush1.bf16.msra.mxu0 %v2957_v5  ;;  %2912 = vmatpush1.bf16.msra.mxu1 %v2957_v5  ;;  %s2885_s16 = sshll.u32 %s4754_s30, 6  ;;  %v614_v14 = vshrl.u32 %v479_v1, 7 }
  0x13   : > { %484 = vst.msk [vmem:[#allocation2 + $0x37] ss:$8 sm:$0x3] %vm3234_vm0, %v3151_v3  ;;  %487 = vst.msk [vmem:[#allocation2 + $0x67] ss:$8 sm:$0x3] %vm3234_vm0, %v3151_v3  ;;  %2249 = vmatprep.subr.bf16.mxu0 %v2958_v7  ;;  %2897 = vmatprep.subr.bf16.mxu1 %v2958_v7  ;;  %s3301_s21 = scalar_lea.vmem %s4566_s0, %s2885_s16  ;;  %s4509_s19 = scalar_lea.vmem %s4575_s9, %s2885_s16 }
  0x14   : > { %490 = vst.msk [vmem:[#allocation2 + $0x97] ss:$8 sm:$0x3] %vm3234_vm0, %v3151_v3  ;;  %508 = vst.msk [vmem:[#allocation2 + $0x50] ss:$8 sm:$0x3] %vm3234_vm0, %v3151_v3 }
  0x15   : > { %511 = vst.msk [vmem:[#allocation2 + $0x80] ss:$8 sm:$0x3] %vm3234_vm0, %v3151_v3  ;;  %514 = vst.msk [vmem:[#allocation2 + $0xb0] ss:$8 sm:$0x3] %vm3234_vm0, %v3151_v3 }
  0x16   : > { %493 = vst.msk [vmem:[#allocation2 + $0xc7] ss:$8 sm:$0x3] %vm3234_vm0, %v3151_v3  ;;  %496 = vst.msk [vmem:[#allocation2 + $0xf7] ss:$8 sm:$0x3] %vm3234_vm0, %v3151_v3  ;;  %2250 = vmatpush1.bf16.msra.mxu0 %v2960_v8  ;;  %2913 = vmatpush1.bf16.msra.mxu1 %v2960_v8 }
  0x17   : > { %499 = vst.msk [vmem:[#allocation2 + $0x127] ss:$8 sm:$0x3] %vm3234_vm0, %v3151_v3  ;;  %502 = vst.msk [vmem:[#allocation2 + $0x157] ss:$8 sm:$0x3] %vm3234_vm0, %v3151_v3  ;;  %2251 = vmatprep.subr.bf16.mxu0 %v2961_v9  ;;  %2898 = vmatprep.subr.bf16.mxu1 %v2961_v9 }
  0x18   : > { %505 = vst.msk [vmem:[#allocation2 + $0x187] ss:$8 sm:$0x3] %vm3234_vm0, %v3151_v3  ;;  %517 = vst.msk [vmem:[#allocation2 + $0xe0] ss:$8 sm:$0x3] %vm3234_vm0, %v3151_v3 }
  0x19   : > { %520 = vst.msk [vmem:[#allocation2 + $0x110] ss:$8 sm:$0x3] %vm3234_vm0, %v3151_v3  ;;  %523 = vst.msk [vmem:[#allocation2 + $0x140] ss:$8 sm:$0x3] %vm3234_vm0, %v3151_v3 }
  0x1a   : > { %526 = vst.msk [vmem:[#allocation2 + $0x170] ss:$8 sm:$0x3] %vm3234_vm0, %v3151_v3  ;;  %529 = vst.msk [vmem:[#allocation2 + $0x1a0] ss:$8 sm:$0x3] %vm3234_vm0, %v3151_v3  ;;  %2252 = vmatpush1.bf16.msra.mxu0 %v2963_v10  ;;  %2914 = vmatpush1.bf16.msra.mxu1 %v2963_v10 }
  0x1b   : > { %2253 = vmatprep.subr.bf16.mxu0 %v2964_v11  ;;  %2899 = vmatprep.subr.bf16.mxu1 %v2964_v11  ;;  %v2967_v13 = vld [vmem:[%s4571_s5 + $0x24] ss:$8 sps:$4 sm:$0xff]   ;;  %v2969_v15 = vld [vmem:[%s4571_s5 + $0x20] ss:$8 sps:$4 sm:$0xff]   ;;  %v2970_v16 = vld [vmem:[%s4571_s5 + $0x14] ss:$8 sps:$4 sm:$0xff]  }
  0x1c   : > { %v531_v17 = vld [vmem:[%s3301_s21] sm:$0xff]  ;;  %v532_v18 = vld [vmem:[%s3301_s21 + $0x8] sm:$0xff]  ;;  %v3311_v19 = vsub.s32 0, %v614_v14  ;;  %v3313_v20 = vsub.s32 1, %v614_v14  ;;  %v3316_v21 = vld [vmem:[%s3301_s21 + $0x10] sm:$0xff]  ;;  %vm1299_vm1 = vcmask 1045504  }
  0x1d   : > { %v3319_v22 = vld [vmem:[%s3301_s21 + $0x18] sm:$0xff]  ;;  %v537_v23 = vld [vmem:[%s3301_s21 + $0x30] sm:$0xff]  ;;  %v3322_v24 = vunpack.c.l.bf16 %v531_v17  ;;  %v3324_v25 = vunpack.c.h.bf16 %v531_v17  ;;  %v3326_v26 = vunpack.c.l.bf16 %v532_v18  ;;  %v3328_v27 = vunpack.c.h.bf16 %v532_v18  ;;  %v2973_v29 = vld [vmem:[%s4571_s5 + $0x4] ss:$8 sps:$4 sm:$0xff]  }
  0x1e   : > { %2254 = vmatpush1.bf16.msra.mxu0 %v2966_v12  ;;  %2915 = vmatpush1.bf16.msra.mxu1 %v2966_v12  ;;  %4617 = vst [vmem:[#allocation4_spill] sm:$0xff] %v3311_v19  ;;  %4618 = vst [vmem:[#allocation5_spill] sm:$0xff] %v3313_v20  ;;  %v2972_v28 = vld [vmem:[%s4571_s5 + $0x10] ss:$8 sps:$4 sm:$0xff]   ;;  %v4576_v30 = vunpack.c.l.bf16 %v3316_v21  ;;  %v3338_v31 = vunpack.c.h.bf16 %v3316_v21  ;;  %v545_v32 = vunpack.c.l.bf16 %v3319_v22  ;;  %v4577_v33 = vunpack.c.h.bf16 %v3319_v22  ;;  %v572_v36 = vld [vmem:[#allocation2 + $0x8] sm:$0x80] }
  0x1f   : > { %2255 = vmatprep.subr.bf16.mxu0 %v2967_v13  ;;  %2900 = vmatprep.subr.bf16.mxu1 %v2967_v13  ;;  %v551_v34 = vunpack.c.l.bf16 %v537_v23  ;;  %v3342_v35 = vunpack.c.h.bf16 %v537_v23  ;;  %555 = vst [vmem:[#allocation2 + $0x40] sm:$0xff] %v3322_v24  ;;  %556 = vst [vmem:[#allocation2 + $0x48] sm:$0xff] %v3324_v25  ;;  %v576_v37 = vld [vmem:[#allocation2 + $0x38] sm:$0x80]  ;;  %v580_v38 = vld [vmem:[#allocation2 + $0x68] sm:$0x80] }
  0x20   : > { %557 = vst [vmem:[#allocation2 + $0x70] sm:$0xff] %v3326_v26  ;;  %558 = vst [vmem:[#allocation2 + $0x78] sm:$0xff] %v3328_v27  ;;  %v611_v39 = vld [vmem:[%s4567_s1] ss:$8 sm:$0x3]  ;;  %vm1944_vm2 = vcmask 1040384  }
  0x21   : > { %559 = vst [vmem:[#allocation2 + $0xa0] sm:$0xff] %v4576_v30  ;;  %560 = vst [vmem:[#allocation2 + $0xa8] sm:$0xff] %v3338_v31  ;;  %v2835_v40 = vld [vmem:[%s4567_s1 + $0x3] ss:$8 sm:$0x3]  ;;  %v3361_v41 = vrot.slane %v611_v39, %v3311_v19  ;;  %v3364_v42 = vrot.slane %v611_v39, %v3313_v20 }
  0x22   : > { %2256 = vmatpush1.bf16.msra.mxu0 %v2969_v15  ;;  %2916 = vmatpush1.bf16.msra.mxu1 %v2969_v15  ;;  %561 = vst [vmem:[#allocation2 + $0xd0] sm:$0xff] %v545_v32  ;;  %562 = vst [vmem:[#allocation2 + $0xd8] sm:$0xff] %v4577_v33  ;;  %v3367_v43 = vrot.slane %v2835_v40, %v3313_v20  ;;  %v2836_v44 = vld [vmem:[%s4567_s1 + $0x6] ss:$8 sm:$0x3]  ;;  %v3379_v49 = vrot.slane %v2835_v40, %v3311_v19 }
  0x23   : > { %2257 = vmatprep.subr.bf16.mxu0 %v2970_v16  ;;  %2901 = vmatprep.subr.bf16.mxu1 %v2970_v16  ;;  %567 = vst [vmem:[#allocation2 + $0x160] sm:$0xff] %v551_v34  ;;  %568 = vst [vmem:[#allocation2 + $0x168] sm:$0xff] %v3342_v35  ;;  %v2837_v45 = vld [vmem:[%s4567_s1 + $0x1] ss:$8 sm:$0x3]  ;;  %v3382_v50 = vrot.slane %v2836_v44, %v3311_v19  ;;  %v3385_v51 = vrot.slane %v2836_v44, %v3313_v20 }
  0x24   : > { %4619 = vst [vmem:[#allocation6_spill] sm:$0xff] %v3367_v43  ;;  %v2975_v46 = vld [vmem:[%s4571_s5] ss:$8 sps:$4 sm:$0xff]   ;;  %v574_v47 = vld [vmem:[#allocation2 + $0x18] sm:$0x7f]  ;;  %v624_v53 = vmul.f32 %v3364_v42, %v572_v36  ;;  %v628_v54 = vmul.f32 %v3364_v42, %v576_v37  ;;  %v3393_v55 = vrot.slane %v2837_v45, %v3311_v19  ;;  %v3396_v56 = vmul.f32 %v3364_v42, %v580_v38 }
  0x25   : > { %v584_v48 = vld [vmem:[#allocation2 + $0x98] sm:$0x80]  ;;  %v669_v58 = vmul.f32 %v3367_v43, %v576_v37  ;;  %v673_v59 = vmul.f32 %v3367_v43, %v580_v38  ;;  %v3404_v60 = vld [vmem:[%s3301_s21 + $0x20] sm:$0xff]  ;;  %v626_v61 = vmul.f32 %v3364_v42, %v574_v47  ;;  %v746_v63 = vmul.f32 %v3385_v51, %v580_v38  ;;  %v2978_v2 = vld [vmem:[%s4571_s5 + $0xf0] ss:$8 sps:$4 sm:$0xff]  }
  0x26   : > { %2258 = vmatpush1.bf16.msra.mxu0 %v2972_v28  ;;  %2917 = vmatpush1.bf16.msra.mxu1 %v2972_v28  ;;  %v2976_v52 = vld [vmem:[%s4571_s5 + $0xf4] ss:$8 sps:$4 sm:$0xff]   ;;  %4620 = vst [vmem:[#allocation7_spill] sm:$0xff] %v3396_v56  ;;  %v3399_v57 = vmul.f32 %v3364_v42, %v584_v48  ;;  %v3408_v62 = vmul.f32 %v3367_v43, %v584_v48  ;;  %v2838_v1 = vld [vmem:[%s4567_s1 + $0x4] ss:$8 sm:$0x3]  ;;  %v4578_v8 = vunpack.c.l.bf16 %v3404_v60  ;;  %v3431_v14 = vunpack.c.h.bf16 %v3404_v60 }
  0x27   : > { %2259 = vmatprep.subr.bf16.mxu0 %v2973_v29  ;;  %2902 = vmatprep.subr.bf16.mxu1 %v2973_v29  ;;  %v750_v0 = vmul.f32 %v3385_v51, %v584_v48  ;;  %v578_v3 = vld [vmem:[#allocation2 + $0x48] sm:$0x7f]  ;;  %v582_v4 = vld [vmem:[#allocation2 + $0x78] sm:$0x7f]  ;;  %v701_v5 = vadd.f32 %v669_v58, %v624_v53  ;;  %v705_v6 = vadd.f32 %v673_v59, %v628_v54 }
  0x28   : > { %4621 = vst [vmem:[#allocation8_spill] sm:$0xff] %v3399_v57  ;;  %4622 = vst [vmem:[#allocation9_spill] sm:$0xff] %v3408_v62  ;;  %v3419_v7 = vrot.slane %v2837_v45, %v3313_v20  ;;  %v2979_v9 = vld [vmem:[%s4571_s5 + $0xe4] ss:$8 sps:$4 sm:$0xff]   ;;  %v630_v11 = vmul.f32 %v3364_v42, %v578_v3  ;;  %v3427_v12 = vmul.f32 %v3364_v42, %v582_v4  ;;  %v2981_v23 = vld [vmem:[%s4571_s5 + $0xe0] ss:$8 sps:$4 sm:$0xff]  }
  0x29   : > { %v586_v10 = vld [vmem:[#allocation2 + $0xa8] sm:$0x7f]  ;;  %v671_v13 = vmul.f32 %v3367_v43, %v578_v3  ;;  %v675_v16 = vmul.f32 %v3367_v43, %v582_v4  ;;  %v748_v17 = vmul.f32 %v3385_v51, %v582_v4  ;;  %v3439_v18 = vrot.slane %v2838_v1, %v3311_v19  ;;  %563 = vst [vmem:[#allocation2 + $0x100] sm:$0xff] %v4578_v8  ;;  %v2839_v36 = vld [vmem:[%s4567_s1 + $0x7] ss:$8 sm:$0x3] }
  0x2a   : > { %2260 = vmatpush1.bf16.msra.mxu0 %v2975_v46  ;;  %2918 = vmatpush1.bf16.msra.mxu1 %v2975_v46  ;;  %4623 = vst [vmem:[#allocation10_spill] sm:$0xff] %v3427_v12  ;;  %v3434_v15 = vmul.f32 %v3364_v42, %v586_v10  ;;  %v3447_v28 = vmul.f32 %v3367_v43, %v586_v10  ;;  %564 = vst [vmem:[#allocation2 + $0x108] sm:$0xff] %v3431_v14  ;;  %v843_v39 = vmul.f32 0.0, %v3419_v7  ;;  %v2840_v40 = vld [vmem:[%s4567_s1 + $0x2] ss:$8 sm:$0x3] }
  0x2b   : > { %2261 = vmatprep.subr.bf16.mxu0 %v2976_v52  ;;  %2903 = vmatprep.subr.bf16.mxu1 %v2976_v52  ;;  %v703_v29 = vadd.f32 %v671_v13, %v626_v61  ;;  %v752_v32 = vmul.f32 %v3385_v51, %v586_v10  ;;  %v3450_v34 = vadd.f32 %v746_v63, %v701_v5  ;;  %v2841_v44 = vld [vmem:[%s4567_s1 + $0x5] ss:$8 sm:$0x3]  ;;  %v2982_v45 = vld [vmem:[%s4571_s5 + $0xd4] ss:$8 sps:$4 sm:$0xff]  }
  0x2c   : > { %4624 = vst [vmem:[#allocation11_spill] sm:$0xff] %v3434_v15  ;;  %4625 = vst [vmem:[#allocation12_spill] sm:$0xff] %v3447_v28  ;;  %v707_v37 = vadd.f32 %v675_v16, %v630_v11  ;;  %v3456_v38 = vadd.f32 %v750_v0, %v705_v6  ;;  %v845_v47 = vmul.f32 %v3419_v7, %v3324_v25  ;;  %v536_v52 = vld [vmem:[%s3301_s21 + $0x28] sm:$0xff]  ;;  %v1029_v61 = vld [vmem:[#allocation2 + $0x18] sm:$0xfe] }
  0x2d   : > { %v3468_v46 = vadd.f32 %v748_v17, %v703_v29  ;;  %v3474_v48 = vmul.f32 %v3419_v7, %v3328_v27  ;;  %v3481_v54 = vmul.f32 %v3419_v7, %v3338_v31  ;;  %v3484_v58 = vrot.slane %v2838_v1, %v3313_v20  ;;  %v1031_v0 = vld [vmem:[#allocation2 + $0x28] sm:$0x1]  ;;  %v2984_v1 = vld [vmem:[%s4571_s5 + $0xd0] ss:$8 sps:$4 sm:$0xff]   ;;  %v2985_v16 = vld [vmem:[%s4571_s5 + $0xc4] ss:$8 sps:$4 sm:$0xff]  }
  0x2e   : > { %2262 = vmatpush2.bf16.msra.mxu0 %v2978_v2  ;;  %2919 = vmatpush2.bf16.msra.mxu1 %v2978_v2  ;;  %v3477_v53 = vadd.f32 %v752_v32, %v707_v37  ;;  %v3487_v59 = vrot.slane %v2839_v36, %v3313_v20  ;;  %v3490_v63 = vrot.slane %v2839_v36, %v3311_v19  ;;  %v1033_v2 = vld [vmem:[#allocation2 + $0x48] sm:$0xfe]  ;;  %v1035_v10 = vld [vmem:[#allocation2 + $0x58] sm:$0x1]  ;;  %v3511_v13 = vunpack.c.l.bf16 %v536_v52  ;;  %v3660_v12 = vld [vmem:[#allocation2 + $0x158] sm:$0x80] }
  0x2f   : > { %2263 = vmatprep.subr.bf16.mxu0 %v2979_v9  ;;  %2904 = vmatprep.subr.bf16.mxu1 %v2979_v9  ;;  %4626 = vst [vmem:[#allocation13_spill] sm:$0xff] %v3474_v48  ;;  %4627 = vst [vmem:[#allocation14_spill] sm:$0xff] %v3481_v54  ;;  %v3493_v3 = vrot.slane %v2840_v40, %v3311_v19  ;;  %v3496_v4 = vrot.slane %v2840_v40, %v3313_v20  ;;  %v3521_v32 = vunpack.c.h.bf16 %v536_v52  ;;  %v3523_v40 = vld [vmem:[#allocation2 + $0x78] sm:$0xfe]  ;;  %v3532_v8 = vld [vmem:[#allocation2 + $0xb8] sm:$0x1] }
  0x30   : > { %v3499_v5 = vrot.slane %v2841_v44, %v3311_v19  ;;  %v872_v6 = vmul.f32 %v3484_v58, %v3324_v25  ;;  %v874_v9 = vmul.f32 %v3484_v58, %v3328_v27  ;;  %v3509_v11 = vrot.slane %v2841_v44, %v3313_v20  ;;  %4628 = vst [vmem:[#allocation15_spill] sm:$0xff] %v3511_v13  ;;  %v3525_v44 = vld [vmem:[#allocation2 + $0x88] sm:$0x1] }
  0x31   : > { %v917_v17 = vmul.f32 %v3487_v59, %v3328_v27  ;;  %v1082_v29 = vmul.f32 %v3496_v4, %v1029_v61  ;;  %v1084_v30 = vmul.f32 %v3496_v4, %v1031_v0  ;;  %v1086_v33 = vmul.f32 %v3496_v4, %v1033_v2  ;;  %565 = vst [vmem:[#allocation2 + $0x130] sm:$0xff] %v3511_v13  ;;  %v2987_v0 = vld [vmem:[%s4571_s5 + $0xc0] ss:$8 sps:$4 sm:$0xff]  }
  0x32   : > { %2264 = vmatpush2.bf16.msra.mxu0 %v2981_v23  ;;  %2920 = vmatpush2.bf16.msra.mxu1 %v2981_v23  ;;  %v919_v23 = vmul.f32 %v3487_v59, %v3338_v31  ;;  %v888_v36 = vadd.f32 %v872_v6, %v843_v39  ;;  %v890_v37 = vadd.f32 %v874_v9, %v845_v47  ;;  %v3663_v56 = vld [vmem:[#allocation2 + $0x168] sm:$0x7f] }
  0x33   : > { %2265 = vmatprep.subr.bf16.mxu0 %v2982_v45  ;;  %2905 = vmatprep.subr.bf16.mxu1 %v2982_v45  ;;  %v3527_v45 = vld [vmem:[#allocation2 + $0xa8] sm:$0xfe]  ;;  %v1088_v61 = vmul.f32 %v3496_v4, %v1035_v10  ;;  %v3537_v39 = vmul.f32 %v3496_v4, %v3523_v40  ;;  %v3541_v47 = vmul.f32 %v3496_v4, %v3525_v44 }
  0x34   : > { %v3545_v52 = vmul.f32 %v3496_v4, %v3527_v45  ;;  %566 = vst [vmem:[#allocation2 + $0x138] sm:$0xff] %v3521_v32  ;;  %v933_v6 = vadd.f32 %v917_v17, %v888_v36  ;;  %v935_v9 = vadd.f32 %v919_v23, %v890_v37  ;;  %v1129_v54 = vmul.f32 %v3509_v11, %v1035_v10  ;;  %v2990_v36 = vld [vmem:[%s4571_s5 + $0xb0] ss:$8 sps:$4 sm:$0xff]  }
  0x35   : > { %4629 = vst [vmem:[#allocation16_spill] sm:$0xff] %v3537_v39  ;;  %4630 = vst [vmem:[#allocation17_spill] sm:$0xff] %v3541_v47  ;;  %v3553_v39 = vmul.f32 %v3496_v4, %v3532_v8  ;;  %v1131_v17 = vmul.f32 %v3509_v11, %v3523_v40  ;;  %v3575_v10 = vmul.f32 %v3509_v11, %v3527_v45 }
  0x36   : > { %4631 = vst [vmem:[#allocation18_spill] sm:$0xff] %v3545_v52  ;;  %2266 = vmatpush2.bf16.msra.mxu0 %v2984_v1  ;;  %2921 = vmatpush2.bf16.msra.mxu1 %v2984_v1  ;;  %v2988_v52 = vld [vmem:[%s4571_s5 + $0xb4] ss:$8 sps:$4 sm:$0xff]   ;;  %v1127_v1 = vmul.f32 %v3509_v11, %v1033_v2  ;;  %v965_v37 = vrot.slane %v933_v6, 1  ;;  %v967_v47 = vrot.slane %v935_v9, 1  ;;  %v1133_v2 = vmul.f32 %v3509_v11, %v3525_v44 }
  0x37   : > { %4632 = vst [vmem:[#allocation19_spill] sm:$0xff] %v3553_v39  ;;  %2267 = vmatprep.subr.bf16.mxu0 %v2985_v16  ;;  %2906 = vmatprep.subr.bf16.mxu1 %v2985_v16  ;;  %v3569_v16 = vmul.f32 %v3484_v58, %v3338_v31  ;;  %4634 = vst [vmem:[#allocation21_spill] sm:$0xff] %v3575_v10  ;;  %v3579_v23 = vmul.f32 %v3509_v11, %v3532_v8  ;;  %v2842_v31 = vld [vmem:[%s4567_s1 + $0x10] ss:$8 sm:$0x3] }
  0x38   : > { %v1159_v39 = vadd.f32 %v1127_v1, %v1082_v29  ;;  %v1161_v48 = vadd.f32 %v1129_v54, %v1084_v30  ;;  %v1412_v6 = vld [vmem:[%s4568_s2] sm:$0x3]  ;;  %v3588_v9 = vadd.f32 %v965_v37, %v3450_v34  ;;  %v3591_v10 = vadd.f32 %v965_v37, %v3468_v46  ;;  %v2991_v34 = vld [vmem:[%s4571_s5 + $0xa4] ss:$8 sps:$4 sm:$0xff]   ;;  %v538_v37 = vld [vmem:[%s3301_s21 + $0x38] sm:$0xff] }
  0x39   : > { %4633 = vst [vmem:[#allocation20_spill] sm:$0xff] %v3569_v16  ;;  %4635 = vst [vmem:[#allocation22_spill] sm:$0xff] %v3579_v23  ;;  %v1163_v29 = vadd.f32 %v1131_v17, %v1086_v33  ;;  %v1744_v30 = vld [vmem:[%s4569_s3] sm:$0x3]  ;;  %v1001_v46 = vadd.f32 %v967_v47, %v3456_v38  ;;  %v3605_v33 = vadd.f32 %v967_v47, %v3477_v53  ;;  %v3621_v38 = vld [vmem:[#allocation2 + $0xc8] sm:$0x80]  ;;  %v554_v57 = vunpack.c.h.bf16 %v538_v37 }
  0x3a   : > { %2268 = vmatpush2.bf16.msra.mxu0 %v2987_v0  ;;  %2922 = vmatpush2.bf16.msra.mxu1 %v2987_v0  ;;  %v1788_v54 = vld [vmem:[%s4570_s4] sm:$0x3]  ;;  %v1165_v0 = vadd.f32 %v1133_v2, %v1088_v61  ;;  %v3610_v23 = vrot.slane %v2842_v31, %v3311_v19  ;;  %v3613_v1 = vrot.slane %v2842_v31, %v3313_v20  ;;  %v3623_v53 = vld [vmem:[#allocation2 + $0xd8] sm:$0x7f]  ;;  %v592_v17 = vld [vmem:[#allocation2 + $0xf8] sm:$0x80] }
  0x3b   : > { %2269 = vmatprep.subr.bf16.mxu0 %v2988_v52  ;;  %2907 = vmatprep.subr.bf16.mxu1 %v2988_v52  ;;  %v3616_v52 = vrot.slane %v1412_v6, %v3311_v19  ;;  %v3619_v16 = vrot.slane %v1412_v6, %v3313_v20  ;;  %4637 = vst [vmem:[#allocation24_spill] sm:$0xff] %v3621_v38  ;;  %4638 = vst [vmem:[#allocation25_spill] sm:$0xff] %v3623_v53  ;;  %v2993_v6 = vld [vmem:[%s4571_s5 + $0xa0] ss:$8 sps:$4 sm:$0xff]   ;;  %v598_v28 = vld [vmem:[#allocation2 + $0x138] sm:$0x7f] }
  0x3c   : > { %4636 = vst [vmem:[#allocation23_spill] sm:$0xff] %v3613_v1  ;;  %v3626_v61 = vrot.slane %v1744_v30, %v3311_v19  ;;  %v3629_v47 = vrot.slane %v1744_v30, %v3313_v20  ;;  %v3632_v2 = vrot.slane %v1788_v54, %v3311_v19  ;;  %v3635_v31 = vrot.slane %v1788_v54, %v3313_v20  ;;  %v3651_v20 = vld [vmem:[#allocation2 + $0x128] sm:$0x80] }
  0x3d   : > { %v1204_v15 = vmul.f32 %v3613_v1, %v3523_v40  ;;  %v1206_v30 = vmul.f32 %v3613_v1, %v3525_v44  ;;  %v1208_v19 = vmul.f32 %v3613_v1, %v3527_v45  ;;  %v1210_v54 = vmul.f32 %v3613_v1, %v3532_v8  ;;  %570 = vst [vmem:[#allocation2 + $0x198] sm:$0xff] %v554_v57  ;;  %v2996_v57 = vld [vmem:[%s4571_s5 + $0x90] ss:$8 sps:$4 sm:$0xff]  }
  0x3e   : > { %4639 = vst [vmem:[#allocation26_spill] sm:$0xff] %v3626_v61  ;;  %4640 = vst [vmem:[#allocation27_spill] sm:$0xff] %v3629_v47  ;;  %2270 = vmatpush2.bf16.msra.mxu0 %v2990_v36  ;;  %2923 = vmatpush2.bf16.msra.mxu1 %v2990_v36  ;;  %v2994_v36 = vld [vmem:[%s4571_s5 + $0x94] ss:$8 sps:$4 sm:$0xff]   ;;  %v640_v40 = vmul.f32 %v3364_v42, %v3621_v38  ;;  %v642_v44 = vmul.f32 %v3364_v42, %v3623_v53  ;;  %v3658_v61 = vld [vmem:[#allocation2 + $0x108] sm:$0x7f] }
  0x3f   : > { %4641 = vst [vmem:[#allocation28_spill] sm:$0xff] %v3632_v2  ;;  %4642 = vst [vmem:[#allocation29_spill] sm:$0xff] %v3635_v31  ;;  %2271 = vmatprep.subr.bf16.mxu0 %v2991_v34  ;;  %2908 = vmatprep.subr.bf16.mxu1 %v2991_v34  ;;  %v1236_v37 = vadd.f32 %v1204_v15, %v1159_v39  ;;  %v1238_v2 = vadd.f32 %v1206_v30, %v1161_v48 }
  0x40   : > { %v1240_v34 = vadd.f32 %v1208_v19, %v1163_v29  ;;  %4643 = vst [vmem:[#allocation30_spill] sm:$0xff] %v3658_v61  ;;  %v644_v8 = vmul.f32 %v3364_v42, %v592_v17  ;;  %v1242_v62 = vadd.f32 %v1210_v54, %v1165_v0  ;;  %v3667_v38 = vmul.f32 %v3364_v42, %v3651_v20  ;;  %v2997_v0 = vld [vmem:[%s4571_s5 + $0x84] ss:$8 sps:$4 sm:$0xff]  }
  0x41   : > { %v3670_v45 = vmul.f32 %v3364_v42, %v598_v28  ;;  %v3674_v19 = vmul.f32 %v3364_v42, %v3660_v12  ;;  %v1301_v15 = vrot.slane %v1236_v37, 2  ;;  %v1304_v48 = vrot.slane %v1238_v2, 2 }
  0x42   : > { %4644 = vst [vmem:[#allocation31_spill] sm:$0xff] %v3667_v38  ;;  %2272 = vmatpush2.bf16.msra.mxu0 %v2993_v6  ;;  %2924 = vmatpush2.bf16.msra.mxu1 %v2993_v6  ;;  %v1307_v39 = vrot.slane %v1240_v34, 2  ;;  %v3681_v29 = vmul.f32 %v3364_v42, %v3663_v56  ;;  %v1310_v30 = vrot.slane %v1242_v62, 2  ;;  %v646_v6 = vmul.f32 %v3364_v42, %v3658_v61 }
  0x43   : > { %4645 = vst [vmem:[#allocation32_spill] sm:$0xff] %v3670_v45  ;;  %4646 = vst [vmem:[#allocation33_spill] sm:$0xff] %v3674_v19  ;;  %2273 = vmatprep.subr.bf16.mxu0 %v2994_v36  ;;  %2909 = vmatprep.subr.bf16.mxu1 %v2994_v36  ;;  %v685_v54 = vmul.f32 %v3367_v43, %v592_v17  ;;  %v687_v2 = vmul.f32 %v3367_v43, %v3658_v61 }
  0x44   : > { %4647 = vst [vmem:[#allocation34_spill] sm:$0xff] %v3681_v29  ;;  %v1305_v37 = vsel %vm1299_vm1, %v1301_v15, %v1304_v48  ;;  %v1381_v34 = vadd.f32 %v1301_v15, %v3588_v9  ;;  %v1385_v29 = vadd.f32 %v1307_v39, %v1001_v46  ;;  %v689_v36 = vmul.f32 %v3367_v43, %v3651_v20  ;;  %v2999_v9 = vld [vmem:[%s4571_s5 + $0x80] ss:$8 sps:$4 sm:$0xff]  }
  0x45   : > { %v1311_v19 = vsel %vm1299_vm1, %v1307_v39, %v1310_v30  ;;  %v1383_v62 = vadd.f32 %v1305_v37, %v3591_v10  ;;  %v691_v45 = vmul.f32 %v3367_v43, %v598_v28  ;;  %v3700_v42 = vmul.f32 %v3367_v43, %v3660_v12 }
  0x46   : > { %2274 = vmatpush2.bf16.msra.mxu0 %v2996_v57  ;;  %2925 = vmatpush2.bf16.msra.mxu1 %v2996_v57  ;;  %v1387_v46 = vadd.f32 %v1311_v19, %v3605_v33  ;;  %v1425_v17 = vadd.f32 %v3619_v16, %v1381_v34  ;;  %v1429_v15 = vadd.f32 %v3619_v16, %v1385_v29  ;;  %v4650_v30 = vunpack.c.l.bf16 %v3404_v60 }
  0x47   : > { %4648 = vst [vmem:[#allocation35_spill] sm:$0xff] %v3700_v42  ;;  %2275 = vmatprep.subr.bf16.mxu0 %v2997_v0  ;;  %2910 = vmatprep.subr.bf16.mxu1 %v2997_v0  ;;  %v1427_v48 = vadd.f32 %v3619_v16, %v1383_v62  ;;  %v3712_v39 = vmul.f32 %v3367_v43, %v3663_v56 }
  0x48   : > { %v717_v57 = vadd.f32 %v685_v54, %v640_v40  ;;  %v3716_v37 = vrot.slane %v4650_v30, 1  ;;  %v1431_v33 = vadd.f32 %v3619_v16, %v1387_v46  ;;  %v1489_v19 = vmul.f32 %v1425_v17, %v1425_v17 }
  0x49   : > { %4649 = vst [vmem:[#allocation36_spill] sm:$0xff] %v3712_v39  ;;  %v719_v34 = vadd.f32 %v687_v2, %v642_v44  ;;  %v3720_v10 = vmul.f32 0.5, %v1425_v17  ;;  %v3722_v0 = vmul.f32 0.5, %v1429_v15  ;;  %v1491_v62 = vmul.f32 %v1427_v48, %v1427_v48 }
  0x4a   : > { %4651 = vst [vmem:[#allocation37_spill] sm:$0xff] %v3716_v37  ;;  %v1493_v42 = vmul.f32 %v1429_v15, %v1429_v15  ;;  %2276 = vmatpush2.bf16.msra.mxu0 %v2999_v9  ;;  %2926 = vmatpush2.bf16.msra.mxu1 %v2999_v9  ;;  %v3724_v39 = vmul.f32 0.5, %v1427_v48  ;;  %v1495_v40 = vmul.f32 %v1431_v33, %v1431_v33  ;;  %v3729_v46 = vmul.f32 0.5, %v1431_v33 }
  0x4b   : > { %v1521_v60 = vmul.f32 %v1489_v19, %v1425_v17  ;;  %v721_v54 = vadd.f32 %v689_v36, %v644_v8  ;;  %v1523_v30 = vmul.f32 %v1491_v62, %v1427_v48  ;;  %v762_v44 = vmul.f32 %v3385_v51, %v3651_v20 }
  0x4c   : > { %v1525_v37 = vmul.f32 %v1493_v42, %v1429_v15  ;;  %v764_v2 = vmul.f32 %v3385_v51, %v598_v28  ;;  %v1527_v29 = vmul.f32 %v1495_v40, %v1431_v33  ;;  %v766_v61 = vmul.f32 %v3385_v51, %v3660_v12 }
  0x4d   : > { %v1553_v38 = vmul.f32 0.044715, %v1521_v60  ;;  %v1555_v9 = vmul.f32 0.044715, %v1523_v30  ;;  %v723_v43 = vadd.f32 %v691_v45, %v646_v6  ;;  %v768_v8 = vmul.f32 %v3385_v51, %v3663_v56  ;;  %v3744_v56 = vld [vmem:[#allocation2 + $0xd8] sm:$0xfe] }
  0x4e   : > { %v1557_v53 = vmul.f32 0.044715, %v1525_v37  ;;  %v1559_v36 = vmul.f32 0.044715, %v1527_v29  ;;  %v794_v19 = vadd.f32 %v762_v44, %v717_v57  ;;  %v796_v62 = vadd.f32 %v764_v2, %v719_v34 }
  0x4f   : > { %v1585_v42 = vadd.f32 %v1553_v38, %v1425_v17  ;;  %v1587_v20 = vadd.f32 %v1555_v9, %v1427_v48  ;;  %v4652_v28 = vunpack.c.h.bf16 %v3319_v22  ;;  %v853_v60 = vmul.f32 %v3419_v7, %v3431_v14  ;;  %v3746_v38 = vld [vmem:[#allocation2 + $0xe8] sm:$0x1] }
  0x50   : > { %v1589_v13 = vadd.f32 %v1557_v53, %v1429_v15  ;;  %v1591_v12 = vadd.f32 %v1559_v36, %v1431_v33  ;;  %v798_v37 = vadd.f32 %v766_v61, %v721_v54  ;;  %v3742_v45 = vmul.f32 %v3419_v7, %v3521_v32  ;;  %v3752_v15 = vld [vmem:[#allocation2 + $0x108] sm:$0xfe]  ;;  %v3756_v33 = vld [vmem:[#allocation2 + $0x118] sm:$0x1]  ;;  %v1055_v54 = vld [vmem:[#allocation2 + $0x148] sm:$0x1] }
  0x51   : > { %v851_v40 = vmul.f32 %v3419_v7, %v4652_v28  ;;  %v1617_v30 = vmul.f32 0.7978846, %v1585_v42  ;;  %v1619_v6 = vmul.f32 0.7978846, %v1587_v20  ;;  %v880_v22 = vmul.f32 %v3484_v58, %v3431_v14  ;;  %4654 = vst [vmem:[#allocation39_spill] sm:$0xff] %v3752_v15  ;;  %4655 = vst [vmem:[#allocation40_spill] sm:$0xff] %v3756_v33 }
  0x52   : > { %4653 = vst [vmem:[#allocation38_spill] sm:$0xff] %v3742_v45  ;;  %v1621_v53 = vmul.f32 0.7978846, %v1589_v13  ;;  %v882_v17 = vmul.f32 %v3484_v58, %v3521_v32  ;;  %v1623_v48 = vmul.f32 0.7978846, %v1591_v12  ;;  %v800_v61 = vadd.f32 %v768_v8, %v723_v43 }
  0x53   : > { %3000 = vtanh.f32 %v1617_v30  ;;  %v925_v57 = vmul.f32 %v3487_v59, %v3521_v32  ;;  %v896_v34 = vadd.f32 %v880_v22, %v851_v40  ;;  %v927_v13 = vmul.f32 %v3487_v59, %v3342_v35  ;;  %v1053_v36 = vld [vmem:[#allocation2 + $0x138] sm:$0xfe]  ;;  %v1057_v42 = vld [vmem:[#allocation2 + $0x168] sm:$0xfe]  ;;  %v1059_v20 = vld [vmem:[#allocation2 + $0x178] sm:$0x1] }
  0x54   : > { %3002 = vtanh.f32 %v1619_v6  ;;  %v898_v29 = vadd.f32 %v882_v17, %v853_v60  ;;  %v1098_v44 = vmul.f32 %v3496_v4, %v3744_v56  ;;  %v1100_v2 = vmul.f32 %v3496_v4, %v3746_v38 }
  0x55   : > { %3004 = vtanh.f32 %v1621_v53  ;;  %v1102_v43 = vmul.f32 %v3496_v4, %v3752_v15  ;;  %v941_v9 = vadd.f32 %v925_v57, %v896_v34  ;;  %v1104_v28 = vmul.f32 %v3496_v4, %v3756_v33 }
  0x56   : > { %3006 = vtanh.f32 %v1623_v48  ;;  %v943_v8 = vadd.f32 %v927_v13, %v898_v29  ;;  %v3769_v40 = vmul.f32 %v3496_v4, %v1053_v36  ;;  %v3772_v60 = vmul.f32 %v3496_v4, %v1055_v54 }
  0x57   : > { %v3775_v12 = vmul.f32 %v3496_v4, %v1057_v42  ;;  %v3778_v30 = vmul.f32 %v3496_v4, %v1059_v20  ;;  %v3782_v6 = vmul.f32 %v3419_v7, %v3342_v35  ;;  %v973_v53 = vrot.slane %v941_v9, 1 }
  0x58   : > { %4656 = vst [vmem:[#allocation41_spill] sm:$0xff] %v3769_v40  ;;  %4657 = vst [vmem:[#allocation42_spill] sm:$0xff] %v3772_v60  ;;  %v1143_v22 = vmul.f32 %v3509_v11, %v3752_v15  ;;  %v1145_v17 = vmul.f32 %v3509_v11, %v3756_v33  ;;  %v3790_v48 = vmul.f32 %v3484_v58, %v3342_v35  ;;  %v975_v57 = vrot.slane %v943_v8, 1 }
  0x59   : > { %4658 = vst [vmem:[#allocation43_spill] sm:$0xff] %v3775_v12  ;;  %4659 = vst [vmem:[#allocation44_spill] sm:$0xff] %v3778_v30  ;;  %v1147_v34 = vmul.f32 %v3509_v11, %v1053_v36  ;;  %v1149_v4 = vmul.f32 %v3509_v11, %v1055_v54  ;;  %v1013_v29 = vadd.f32 %v973_v53, %v794_v19  ;;  %v571_v30 = vld [vmem:[#allocation2] sm:$0x80]  ;;  %v573_v12 = vld [vmem:[#allocation2 + $0x10] sm:$0x7f] }
  0x5a   : > { %4660 = vst [vmem:[#allocation45_spill] sm:$0xff] %v3782_v6  ;;  %4661 = vst [vmem:[#allocation46_spill] sm:$0xff] %v3790_v48  ;;  %v1015_v13 = vadd.f32 %v973_v53, %v796_v62  ;;  %v3795_v7 = vmul.f32 %v3509_v11, %v1057_v42  ;;  %v3798_v9 = vmul.f32 %v3509_v11, %v1059_v20  ;;  %v575_v62 = vld [vmem:[#allocation2 + $0x30] sm:$0x80]  ;;  %v577_v53 = vld [vmem:[#allocation2 + $0x40] sm:$0x7f] }
  0x5b   : > { %v1175_v60 = vadd.f32 %v1143_v22, %v1098_v44  ;;  %v1177_v40 = vadd.f32 %v1145_v17, %v1100_v2  ;;  %v1179_v6 = vadd.f32 %v1147_v34, %v1102_v43  ;;  %v1181_v35 = vadd.f32 %v1149_v4, %v1104_v28  ;;  %v3806_v22 = vld [vmem:[#allocation2 + $0x60] sm:$0x80] }
  0x5c   : > { %4662 = vst [vmem:[#allocation47_spill] sm:$0xff] %v3795_v7  ;;  %4663 = vst [vmem:[#allocation48_spill] sm:$0xff] %v3798_v9  ;;  %v1220_v8 = vmul.f32 %v3613_v1, %v1053_v36  ;;  %v1222_v48 = vmul.f32 %v3613_v1, %v1055_v54  ;;  %v1224_v45 = vmul.f32 %v3613_v1, %v1057_v42  ;;  %v3808_v36 = vld [vmem:[#allocation2 + $0x70] sm:$0x7f] }
  0x5d   : > { %v1226_v19 = vmul.f32 %v3613_v1, %v1059_v20  ;;  %v1017_v7 = vadd.f32 %v975_v57, %v798_v37  ;;  %v1019_v33 = vadd.f32 %v975_v57, %v800_v61  ;;  %v623_v9 = vmul.f32 %v3361_v41, %v571_v30 }
  0x5e   : > { %v625_v15 = vmul.f32 %v3361_v41, %v573_v12  ;;  %v1252_v44 = vadd.f32 %v1220_v8, %v1175_v60  ;;  %v1254_v2 = vadd.f32 %v1222_v48, %v1177_v40  ;;  %v1256_v43 = vadd.f32 %v1224_v45, %v1179_v6 }
  0x5f   : > { %v1258_v28 = vadd.f32 %v1226_v19, %v1181_v35  ;;  %v627_v54 = vmul.f32 %v3361_v41, %v575_v62  ;;  %v3812_v42 = vmul.f32 %v3361_v41, %v577_v53  ;;  %v668_v37 = vmul.f32 %v3379_v49, %v575_v62 }
  0x60   : > { %v670_v61 = vmul.f32 %v3379_v49, %v577_v53  ;;  %v3001_v20 = vpop.eup %3000  ;;  %v1325_v30 = vrot.slane %v1252_v44, 2  ;;  %v1328_v12 = vrot.slane %v1254_v2, 2  ;;  %v1331_v60 = vrot.slane %v1256_v43, 2 }
  0x61   : > { %v1334_v40 = vrot.slane %v1258_v28, 2  ;;  %v3003_v45 = vpop.eup %3002  ;;  %v1681_v6 = vadd.f32 1.0, %v3001_v20  ;;  %v672_v17 = vmul.f32 %v3379_v49, %v3806_v22  ;;  %v674_v48 = vmul.f32 %v3379_v49, %v3808_v36 }
  0x62   : > { %v3820_v57 = vadd.f32 %v668_v37, %v623_v9  ;;  %v3005_v34 = vpop.eup %3004  ;;  %v1683_v4 = vadd.f32 1.0, %v3003_v45  ;;  %v1329_v35 = vsel %vm1299_vm1, %v1325_v30, %v1328_v12  ;;  %v1397_v19 = vadd.f32 %v1325_v30, %v1013_v29 }
  0x63   : > { %v1335_v8 = vsel %vm1299_vm1, %v1331_v60, %v1334_v40  ;;  %v3007_v62 = vpop.eup %3006  ;;  %v1685_v53 = vadd.f32 1.0, %v3005_v34  ;;  %v1713_v44 = vmul.f32 %v1681_v6, %v3720_v10  ;;  %v1399_v2 = vadd.f32 %v1329_v35, %v1015_v13 }
  0x64   : > { %v1401_v43 = vadd.f32 %v1331_v60, %v1017_v7  ;;  %v1687_v28 = vadd.f32 1.0, %v3007_v62  ;;  %v1715_v20 = vmul.f32 %v1683_v4, %v3724_v39  ;;  %v1403_v1 = vadd.f32 %v1335_v8, %v1019_v33 }
  0x65   : > { %v1441_v9 = vadd.f32 %v3619_v16, %v1397_v19  ;;  %v1717_v37 = vmul.f32 %v1685_v53, %v3722_v0  ;;  %v1757_v12 = vmul.f32 %v3629_v47, %v1713_v44  ;;  %v1443_v40 = vadd.f32 %v3619_v16, %v1399_v2 }
  0x66   : > { %v3831_v29 = vadd.f32 %v3619_v16, %v1401_v43  ;;  %v1719_v10 = vmul.f32 %v1687_v28, %v3729_v46  ;;  %v1759_v13 = vmul.f32 %v3629_v47, %v1715_v20  ;;  %v3836_v7 = vadd.f32 %v3619_v16, %v1403_v1 }
  0x67   : > { %v702_v39 = vadd.f32 %v670_v61, %v625_v15  ;;  %v1761_v33 = vmul.f32 %v3629_v47, %v1717_v37  ;;  %v1801_v30 = vadd.f32 %v3635_v31, %v1757_v12  ;;  %v3840_v0 = vmul.f32 0.5, %v1441_v9 }
  0x68   : > { %v704_v60 = vadd.f32 %v672_v17, %v627_v54  ;;  %v1763_v45 = vmul.f32 %v3629_v47, %v1719_v10  ;;  %v1803_v6 = vadd.f32 %v3635_v31, %v1759_v13  ;;  %v3844_v34 = vmul.f32 0.5, %v1443_v40 }
  0x69   : > { %v1505_v46 = vmul.f32 %v1441_v9, %v1441_v9  ;;  %v1805_v4 = vadd.f32 %v3635_v31, %v1761_v33  ;;  %v4664_v1 = vrot.slane %v3324_v25, 1  ;;  %v1507_v15 = vmul.f32 %v1443_v40, %v1443_v40  ;;  %v3862_v25 = vld [vmem:[#allocation2 + $0x90] sm:$0x80] }
  0x6a   : > { %v1509_v61 = vmul.f32 %v3831_v29, %v3831_v29  ;;  %v1807_v8 = vadd.f32 %v3635_v31, %v1763_v45  ;;  %v1511_v19 = vmul.f32 %v3836_v7, %v3836_v7  ;;  %v4666_v53 = vrot.slane %v3328_v27, 1 }
  0x6b   : > { %v1881_v35 = vadd.f32 %v4664_v1, %v1801_v30  ;;  %v4665_v54 = vmov %v4664_v1  ;;  %v1537_v62 = vmul.f32 %v1505_v46, %v1441_v9  ;;  %v1539_v43 = vmul.f32 %v1507_v15, %v1443_v40  ;;  %v3866_v15 = vld [vmem:[#allocation2 + $0xa0] sm:$0x7f] }
  0x6c   : > { %v1883_v17 = vadd.f32 %v4665_v54, %v1803_v6  ;;  %v1885_v44 = vadd.f32 %v4666_v53, %v1805_v4  ;;  %v1541_v28 = vmul.f32 %v1509_v61, %v3831_v29  ;;  %v4667_v20 = vmov %v4666_v53 }
  0x6d   : > { %v1948_v2 = vrot.slane %v1881_v35, 7  ;;  %v1887_v37 = vadd.f32 %v4667_v20, %v1807_v8  ;;  %v1543_v10 = vmul.f32 %v1511_v19, %v3836_v7  ;;  %v1569_v13 = vmul.f32 0.044715, %v1537_v62  ;;  %v3880_v20 = vld [vmem:[#allocation2 + $0x8] sm:$0xff] }
  0x6e   : > { %v1949_v12 = vrot.slane %v1883_v17, 7  ;;  %v1954_v33 = vrot.slane %v1885_v44, 7  ;;  %v1571_v30 = vmul.f32 0.044715, %v1539_v43  ;;  %v1573_v45 = vmul.f32 0.044715, %v1541_v28 }
  0x6f   : > { %v706_v6 = vadd.f32 %v674_v48, %v3812_v42  ;;  %v1955_v4 = vrot.slane %v1887_v37, 7  ;;  %v1575_v1 = vmul.f32 0.044715, %v1543_v10  ;;  %v1601_v35 = vadd.f32 %v1569_v13, %v1441_v9  ;;  %v1032_v10 = vld [vmem:[#allocation2 + $0x40] sm:$0xfe] }
  0x70   : > { %v1950_v46 = vsel %vm1944_vm2, %v1948_v2, %v1949_v12  ;;  %v1603_v27 = vadd.f32 %v1571_v30, %v1443_v40  ;;  %v1605_v61 = vadd.f32 %v1573_v45, %v3831_v29  ;;  %v745_v8 = vmul.f32 %v3382_v50, %v3806_v22  ;;  %v1030_v12 = vld [vmem:[#allocation2 + $0x20] sm:$0x1] }
  0x71   : > { %v747_v54 = vmul.f32 %v3382_v50, %v3808_v36  ;;  %v1956_v17 = vsel %vm1944_vm2, %v1954_v33, %v1955_v4  ;;  %v1607_v42 = vadd.f32 %v1575_v1, %v3836_v7  ;;  %v1633_v48 = vmul.f32 0.7978846, %v1601_v35  ;;  %v1028_v36 = vld [vmem:[#allocation2 + $0x10] sm:$0xfe]  ;;  %v1034_v33 = vld [vmem:[#allocation2 + $0x50] sm:$0x1] }
  0x72   : > { %v749_v19 = vmul.f32 %v3382_v50, %v3862_v25  ;;  %v2010_v9 = vpack.c.bf16 %v1956_v17, %v1950_v46  ;;  %v1635_v62 = vmul.f32 0.7978846, %v1603_v27  ;;  %v1637_v53 = vmul.f32 0.7978846, %v1605_v61  ;;  %v1038_v46 = vld [vmem:[#allocation2 + $0x80] sm:$0x1] }
  0x73   : > { %v751_v40 = vmul.f32 %v3382_v50, %v3866_v15  ;;  %v1639_v44 = vmul.f32 0.7978846, %v1607_v42  ;;  %3008 = vtanh.f32 %v1633_v48  ;;  %v777_v22 = vadd.f32 %v745_v8, %v3820_v57  ;;  %v1040_v8 = vld [vmem:[#allocation2 + $0xa0] sm:$0xfe] }
  0x74   : > { %v779_v2 = vadd.f32 %v747_v54, %v702_v39  ;;  %2277 = vmatprep.mubr.bf16.mxu0 %v2010_v9  ;;  %3010 = vtanh.f32 %v1635_v62  ;;  %v781_v43 = vadd.f32 %v749_v19, %v704_v60  ;;  %v842_v37 = vmul.f32 %v3880_v20, %v3393_v55  ;;  %v1036_v60 = vld [vmem:[#allocation2 + $0x70] sm:$0xfe]  ;;  %v1042_v9 = vld [vmem:[#allocation2 + $0xb0] sm:$0x1] }
  0x75   : > { %v783_v28 = vadd.f32 %v751_v40, %v706_v6  ;;  %3012 = vtanh.f32 %v1637_v53  ;;  %v844_v13 = vmul.f32 %v3393_v55, %v3322_v24  ;;  %v871_v57 = vmul.f32 %v3439_v18, %v3322_v24 }
  0x76   : > { %v873_v39 = vmul.f32 %v3439_v18, %v3326_v26  ;;  %3014 = vtanh.f32 %v1639_v44  ;;  %v916_v30 = vmul.f32 %v3490_v63, %v3326_v26  ;;  %v4668_v45 = vunpack.c.l.bf16 %v3316_v21 }
  0x77   : > { %v1081_v4 = vmul.f32 %v3493_v3, %v1028_v36  ;;  %v887_v1 = vadd.f32 %v871_v57, %v842_v37  ;;  %v1083_v27 = vmul.f32 %v3493_v3, %v1030_v12  ;;  %v1085_v61 = vmul.f32 %v3493_v3, %v1032_v10 }
  0x78   : > { %v918_v6 = vmul.f32 %v3490_v63, %v4668_v45  ;;  %v889_v35 = vadd.f32 %v873_v39, %v844_v13  ;;  %v1087_v54 = vmul.f32 %v3493_v3, %v1034_v33  ;;  %v1126_v17 = vmul.f32 %v3499_v5, %v1032_v10  ;;  %v3906_v39 = vld [vmem:[#allocation2 + $0xc0] sm:$0x80] }
  0x79   : > { %v1128_v42 = vmul.f32 %v3499_v5, %v1034_v33  ;;  %v1130_v21 = vmul.f32 %v3499_v5, %v1036_v60  ;;  %v932_v48 = vadd.f32 %v916_v30, %v887_v1  ;;  %v1132_v62 = vmul.f32 %v3499_v5, %v1038_v46  ;;  %v3910_v1 = vld [vmem:[#allocation2 + $0xd0] sm:$0x7f] }
  0x7a   : > { %v934_v19 = vadd.f32 %v918_v6, %v889_v35  ;;  %v1203_v53 = vmul.f32 %v3610_v23, %v1036_v60  ;;  %v1158_v40 = vadd.f32 %v1126_v17, %v1081_v4  ;;  %v1205_v37 = vmul.f32 %v3610_v23, %v1038_v46  ;;  %4669 = vst [vmem:[#allocation49_spill] sm:$0xff] %v3910_v1  ;;  %v3912_v60 = vld [vmem:[#allocation2 + $0xf0] sm:$0x80] }
  0x7b   : > { %v1160_v44 = vadd.f32 %v1128_v42, %v1083_v27  ;;  %v1162_v36 = vadd.f32 %v1130_v21, %v1085_v61  ;;  %v964_v12 = vrot.slane %v932_v48, 1  ;;  %v1164_v57 = vadd.f32 %v1132_v62, %v1087_v54  ;;  %4670 = vst [vmem:[#allocation50_spill] sm:$0xff] %v3912_v60  ;;  %v3915_v42 = vld [vmem:[#allocation2 + $0x100] sm:$0x7f] }
  0x7c   : > { %v966_v13 = vrot.slane %v934_v19, 1  ;;  %v1207_v10 = vmul.f32 %v3610_v23, %v1040_v8  ;;  %v1477_v33 = vmul.f32 0.5, %v3831_v29  ;;  %v1209_v30 = vmul.f32 %v3610_v23, %v1042_v9  ;;  %4671 = vst [vmem:[#allocation51_spill] sm:$0xff] %v3915_v42 }
  0x7d   : > { %v1235_v45 = vadd.f32 %v1203_v53, %v1158_v40  ;;  %v1237_v6 = vadd.f32 %v1205_v37, %v1160_v44  ;;  %v1479_v4 = vmul.f32 0.5, %v3836_v7  ;;  %v996_v46 = vadd.f32 %v964_v12, %v777_v22 }
  0x7e   : > { %v998_v35 = vadd.f32 %v964_v12, %v779_v2  ;;  %v1000_v27 = vadd.f32 %v966_v13, %v781_v43  ;;  %v1239_v61 = vadd.f32 %v1207_v10, %v1162_v36  ;;  %v1241_v54 = vadd.f32 %v1209_v30, %v1164_v57  ;;  %v3938_v10 = vld [vmem:[#allocation2 + $0x120] sm:$0x80] }
  0x7f   : > { %v1300_v8 = vrot.slane %v1235_v45, 2  ;;  %v1302_v17 = vrot.slane %v1237_v6, 2  ;;  %v1002_v29 = vadd.f32 %v966_v13, %v783_v28  ;;  %v3919_v21 = vmul.f32 %v3361_v41, %v3906_v39 }
  0x80   : > { %v3923_v48 = vmul.f32 %v3361_v41, %v3910_v1  ;;  %v3927_v7 = vmul.f32 %v3361_v41, %v3912_v60  ;;  %v3009_v22 = vpop.eup %3008  ;;  %v1306_v43 = vrot.slane %v1239_v61, 2  ;;  %v1308_v19 = vrot.slane %v1241_v54, 2 }
  0x81   : > { %v1303_v2 = vsel %vm1299_vm1, %v1300_v8, %v1302_v17  ;;  %v1380_v9 = vadd.f32 %v1300_v8, %v996_v46  ;;  %v3011_v62 = vpop.eup %3010  ;;  %v1697_v28 = vadd.f32 1.0, %v3009_v22  ;;  %v3932_v40 = vmul.f32 %v3361_v41, %v3915_v42 }
  0x82   : > { %v1382_v53 = vadd.f32 %v1303_v2, %v998_v35  ;;  %v684_v44 = vmul.f32 %v3379_v49, %v3912_v60  ;;  %v3013_v36 = vpop.eup %3012  ;;  %v1699_v37 = vadd.f32 1.0, %v3011_v62  ;;  %v1309_v12 = vsel %vm1299_vm1, %v1306_v43, %v1308_v19 }
  0x83   : > { %v1384_v13 = vadd.f32 %v1306_v43, %v1000_v27  ;;  %v1424_v57 = vadd.f32 %v3616_v52, %v1380_v9  ;;  %v3015_v30 = vpop.eup %3014  ;;  %v1701_v45 = vadd.f32 1.0, %v3013_v36  ;;  %v1729_v6 = vmul.f32 %v1697_v28, %v3840_v0 }
  0x84   : > { %v1386_v46 = vadd.f32 %v1309_v12, %v1002_v29  ;;  %v1426_v35 = vadd.f32 %v3616_v52, %v1382_v53  ;;  %v1703_v61 = vadd.f32 1.0, %v3015_v30  ;;  %v1731_v54 = vmul.f32 %v1699_v37, %v3844_v34 }
  0x85   : > { %v3944_v8 = vadd.f32 %v3616_v52, %v1384_v13  ;;  %v686_v27 = vmul.f32 %v3379_v49, %v3915_v42  ;;  %v1733_v17 = vmul.f32 %v1701_v45, %v1477_v33  ;;  %v1773_v22 = vmul.f32 %v3629_v47, %v1729_v6 }
  0x86   : > { %v3950_v2 = vadd.f32 %v3616_v52, %v1386_v46  ;;  %v688_v0 = vmul.f32 %v3379_v49, %v3938_v10  ;;  %v1735_v29 = vmul.f32 %v1703_v61, %v1479_v4  ;;  %v1775_v43 = vmul.f32 %v3629_v47, %v1731_v54 }
  0x87   : > { %v3955_v19 = vmul.f32 0.5, %v1424_v57  ;;  %v1488_v34 = vmul.f32 %v1424_v57, %v1424_v57  ;;  %v1777_v9 = vmul.f32 %v3629_v47, %v1733_v17  ;;  %v1817_v62 = vadd.f32 %v3635_v31, %v1773_v22 }
  0x88   : > { %v3959_v28 = vmul.f32 0.5, %v1426_v35  ;;  %v1490_v33 = vmul.f32 %v1426_v35, %v1426_v35  ;;  %v1779_v53 = vmul.f32 %v3629_v47, %v1735_v29  ;;  %v1819_v36 = vadd.f32 %v3635_v31, %v1775_v43  ;;  %v597_v29 = vld [vmem:[#allocation2 + $0x130] sm:$0x7f] }
  0x89   : > { %v1492_v37 = vmul.f32 %v3944_v8, %v3944_v8  ;;  %v1494_v4 = vmul.f32 %v3950_v2, %v3950_v2  ;;  %v1821_v12 = vadd.f32 %v3635_v31, %v1777_v9  ;;  %v4672_v13 = vrot.slane %v3431_v14, 1 }
  0x8a   : > { %v1520_v45 = vmul.f32 %v1488_v34, %v1424_v57  ;;  %v1522_v6 = vmul.f32 %v1490_v33, %v1426_v35  ;;  %v1823_v46 = vadd.f32 %v3635_v31, %v1779_v53  ;;  %v4674_v43 = vrot.slane %v3521_v32, 1 }
  0x8b   : > { %v1897_v30 = vadd.f32 %v4672_v13, %v1817_v62  ;;  %v4673_v61 = vmov %v4672_v13  ;;  %v1524_v17 = vmul.f32 %v1492_v37, %v3944_v8  ;;  %v1526_v22 = vmul.f32 %v1494_v4, %v3950_v2 }
  0x8c   : > { %v1899_v54 = vadd.f32 %v4673_v61, %v1819_v36  ;;  %v1901_v42 = vadd.f32 %v4674_v43, %v1821_v12  ;;  %v1552_v9 = vmul.f32 0.044715, %v1520_v45  ;;  %v1554_v1 = vmul.f32 0.044715, %v1522_v6  ;;  %v3985_v6 = vld [vmem:[#allocation2 + $0x160] sm:$0x7f] }
  0x8d   : > { %v1972_v60 = vrot.slane %v1897_v30, 7  ;;  %v4675_v62 = vmov %v4674_v43  ;;  %v1556_v13 = vmul.f32 0.044715, %v1524_v17  ;;  %v1558_v53 = vmul.f32 0.044715, %v1526_v22  ;;  %4677 = vst [vmem:[#allocation53_spill] sm:$0xff] %v3985_v6 }
  0x8e   : > { %v1903_v34 = vadd.f32 %v4675_v62, %v1823_v46  ;;  %v1973_v33 = vrot.slane %v1899_v54, 7  ;;  %v1978_v31 = vrot.slane %v1901_v42, 7  ;;  %v1584_v14 = vadd.f32 %v1552_v9, %v1424_v57  ;;  %v3983_v30 = vld [vmem:[#allocation2 + $0x150] sm:$0x80]  ;;  %v4013_v9 = vld [vmem:[#allocation2 + $0x110] sm:$0x1] }
  0x8f   : > { %v1586_v36 = vadd.f32 %v1554_v1, %v1426_v35  ;;  %v690_v37 = vmul.f32 %v3379_v49, %v597_v29  ;;  %v1588_v47 = vadd.f32 %v1556_v13, %v3944_v8  ;;  %v1590_v12 = vadd.f32 %v1558_v53, %v3950_v2  ;;  %4676 = vst [vmem:[#allocation52_spill] sm:$0xff] %v3983_v30  ;;  %v3991_v54 = vld [vmem:[#allocation2 + $0xd0] sm:$0xff]  ;;  %v4682_v53 = vld [vmem:[#allocation15_spill] sm:$0xff] }
  0x90   : > { %v1974_v4 = vsel %vm1944_vm2, %v1972_v60, %v1973_v33  ;;  %v1979_v61 = vrot.slane %v1903_v34, 7  ;;  %v1616_v45 = vmul.f32 0.7978846, %v1584_v14  ;;  %v716_v46 = vadd.f32 %v684_v44, %v3919_v21  ;;  %4681 = vst [vmem:[#allocation57_spill] sm:$0xff] %v4013_v9 }
  0x91   : > { %v1618_v32 = vmul.f32 0.7978846, %v1586_v36  ;;  %v718_v42 = vadd.f32 %v686_v27, %v3923_v48  ;;  %v1620_v57 = vmul.f32 0.7978846, %v1588_v47  ;;  %v1622_v35 = vmul.f32 0.7978846, %v1590_v12 }
  0x92   : > { %v1980_v1 = vsel %vm1944_vm2, %v1978_v31, %v1979_v61  ;;  %v720_v60 = vadd.f32 %v688_v0, %v3927_v7  ;;  %3016 = vtanh.f32 %v1616_v45  ;;  %v722_v22 = vadd.f32 %v690_v37, %v3932_v40  ;;  %v823_v31 = vld [vmem:[#allocation2 + $0x160] sm:$0xff]  ;;  %v4001_v7 = vld [vmem:[#allocation2 + $0xd0] sm:$0xfe] }
  0x93   : > { %v2014_v17 = vpack.c.bf16 %v1980_v1, %v1974_v4  ;;  %v761_v43 = vmul.f32 %v3382_v50, %v3938_v10  ;;  %3018 = vtanh.f32 %v1618_v32  ;;  %v763_v21 = vmul.f32 %v3382_v50, %v597_v29  ;;  %4678 = vst [vmem:[#allocation54_spill] sm:$0xff] %v4001_v7  ;;  %v4005_v27 = vld [vmem:[#allocation2 + $0x100] sm:$0xff]  ;;  %v1052_v4 = vld [vmem:[#allocation2 + $0x130] sm:$0xfe] }
  0x94   : > { %v765_v48 = vmul.f32 %v3382_v50, %v3983_v30  ;;  %v767_v47 = vmul.f32 %v3382_v50, %v3985_v6  ;;  %3020 = vtanh.f32 %v1620_v57  ;;  %v850_v40 = vmul.f32 %v3393_v55, %v3991_v54  ;;  %v4009_v0 = vld [vmem:[#allocation2 + $0xe0] sm:$0x1]  ;;  %v4011_v29 = vld [vmem:[#allocation2 + $0x100] sm:$0xfe] }
  0x95   : > { %2297 = vmatprep.mubr.bf16.mxu1 %v2014_v17  ;;  %v793_v44 = vadd.f32 %v761_v43, %v716_v46  ;;  %v852_v10 = vmul.f32 %v4005_v27, %v3393_v55  ;;  %4679 = vst [vmem:[#allocation55_spill] sm:$0xff] %v4009_v0  ;;  %4680 = vst [vmem:[#allocation56_spill] sm:$0xff] %v4011_v29  ;;  %3022 = vtanh.f32 %v1622_v35  ;;  %v1054_v61 = vld [vmem:[#allocation2 + $0x140] sm:$0x1]  ;;  %v4030_v57 = vld [vmem:[#allocation2 + $0x160] sm:$0xfe] }
  0x96   : > { %v795_v62 = vadd.f32 %v763_v21, %v718_v42  ;;  %v797_v34 = vadd.f32 %v765_v48, %v720_v60  ;;  %v799_v33 = vadd.f32 %v767_v47, %v722_v22  ;;  %v879_v13 = vmul.f32 %v4005_v27, %v3439_v18  ;;  %v4032_v35 = vld [vmem:[#allocation2 + $0x170] sm:$0x1] }
  0x97   : > { %v881_v14 = vmul.f32 %v3439_v18, %v4682_v53  ;;  %v924_v36 = vmul.f32 %v3490_v63, %v4682_v53  ;;  %v926_v37 = vmul.f32 %v3490_v63, %v823_v31  ;;  %v1097_v12 = vmul.f32 %v3493_v3, %v4001_v7  ;;  %4683 = vst [vmem:[#allocation15_spill] sm:$0xff] %v4032_v35 }
  0x98   : > { %v1099_v45 = vmul.f32 %v3493_v3, %v4009_v0  ;;  %v1101_v32 = vmul.f32 %v3493_v3, %v4011_v29  ;;  %v1103_v46 = vmul.f32 %v3493_v3, %v4013_v9  ;;  %v895_v42 = vadd.f32 %v879_v13, %v850_v40 }
  0x99   : > { %v897_v1 = vadd.f32 %v881_v14, %v852_v10  ;;  %v1142_v60 = vmul.f32 %v3499_v5, %v4011_v29  ;;  %v1144_v17 = vmul.f32 %v3499_v5, %v4013_v9  ;;  %v1146_v22 = vmul.f32 %v3499_v5, %v1052_v4 }
  0x9a   : > { %v1148_v43 = vmul.f32 %v3499_v5, %v1054_v61  ;;  %v1219_v21 = vmul.f32 %v3610_v23, %v1052_v4  ;;  %v1221_v48 = vmul.f32 %v3610_v23, %v1054_v61  ;;  %v940_v47 = vadd.f32 %v924_v36, %v895_v42 }
  0x9b   : > { %v942_v31 = vadd.f32 %v926_v37, %v897_v1  ;;  %v1174_v40 = vadd.f32 %v1142_v60, %v1097_v12  ;;  %v1176_v10 = vadd.f32 %v1144_v17, %v1099_v45  ;;  %v1178_v13 = vadd.f32 %v1146_v22, %v1101_v32 }
  0x9c   : > { %v1180_v14 = vadd.f32 %v1148_v43, %v1103_v46  ;;  %v1223_v6 = vmul.f32 %v3610_v23, %v4030_v57  ;;  %v1225_v30 = vmul.f32 %v3610_v23, %v4032_v35  ;;  %v972_v9 = vrot.slane %v940_v47, 1 }
  0x9d   : > { %v974_v29 = vrot.slane %v942_v31, 1  ;;  %v1251_v0 = vadd.f32 %v1219_v21, %v1174_v40  ;;  %v1253_v7 = vadd.f32 %v1221_v48, %v1176_v10  ;;  %v1460_v4 = vmul.f32 0.5, %v3944_v8  ;;  %v4684_v31 = vld [vmem:[#allocation24_spill] sm:$0xff]  ;;  %v4685_v21 = vld [vmem:[#allocation6_spill] sm:$0xff]  ;;  %v4686_v40 = vld [vmem:[#allocation7_spill] sm:$0xff] }
  0x9e   : > { %v1462_v61 = vmul.f32 0.5, %v3950_v2  ;;  %v1255_v36 = vadd.f32 %v1223_v6, %v1178_v13  ;;  %v1257_v37 = vadd.f32 %v1225_v30, %v1180_v14  ;;  %v1012_v12 = vadd.f32 %v972_v9, %v793_v44  ;;  %v4687_v8 = vld [vmem:[#allocation9_spill] sm:$0xff]  ;;  %v4688_v2 = vld [vmem:[#allocation10_spill] sm:$0xff]  ;;  %v4689_v30 = vld [vmem:[#allocation12_spill] sm:$0xff] }
  0x9f   : > { %v1014_v45 = vadd.f32 %v972_v9, %v795_v62  ;;  %v1016_v32 = vadd.f32 %v974_v29, %v797_v34  ;;  %v1018_v46 = vadd.f32 %v974_v29, %v799_v33  ;;  %v3017_v42 = vpop.eup %3016  ;;  %v1324_v1 = vrot.slane %v1251_v0, 2 }
  0xa0   : > { %v1326_v60 = vrot.slane %v1253_v7, 2  ;;  %v1330_v17 = vrot.slane %v1255_v36, 2  ;;  %v1332_v22 = vrot.slane %v1257_v37, 2  ;;  %v3019_v43 = vpop.eup %3018  ;;  %v1680_v47 = vadd.f32 1.0, %v3017_v42 }
  0xa1   : > { %v681_v48 = vmul.f32 %v4685_v21, %v4684_v31  ;;  %v4052_v10 = vadd.f32 %v4687_v8, %v4686_v40  ;;  %v4056_v6 = vadd.f32 %v4689_v30, %v4688_v2  ;;  %v3021_v44 = vpop.eup %3020  ;;  %v1682_v29 = vadd.f32 1.0, %v3019_v43  ;;  %v4690_v8 = vld [vmem:[#allocation26_spill] sm:$0xff] }
  0xa2   : > { %v1327_v0 = vsel %vm1299_vm1, %v1324_v1, %v1326_v60  ;;  %v1333_v7 = vsel %vm1299_vm1, %v1330_v17, %v1332_v22  ;;  %v1396_v9 = vadd.f32 %v1324_v1, %v1012_v12  ;;  %v3023_v62 = vpop.eup %3022  ;;  %v1684_v34 = vadd.f32 1.0, %v3021_v44 }
  0xa3   : > { %v1712_v33 = vmul.f32 %v1680_v47, %v3955_v19  ;;  %v1398_v13 = vadd.f32 %v1327_v0, %v1014_v45  ;;  %v1400_v14 = vadd.f32 %v1330_v17, %v1016_v32  ;;  %v1686_v36 = vadd.f32 1.0, %v3023_v62  ;;  %v4691_v45 = vld [vmem:[#allocation25_spill] sm:$0xff]  ;;  %v4693_v47 = vld [vmem:[#allocation8_spill] sm:$0xff] }
  0xa4   : > { %v1714_v37 = vmul.f32 %v1682_v29, %v3959_v28  ;;  %v1402_v42 = vadd.f32 %v1333_v7, %v1018_v46  ;;  %v1440_v31 = vadd.f32 %v3616_v52, %v1396_v9  ;;  %v1716_v40 = vmul.f32 %v1684_v34, %v1460_v4  ;;  %v4692_v46 = vld [vmem:[#allocation28_spill] sm:$0xff] }
  0xa5   : > { %v1756_v43 = vmul.f32 %v4690_v8, %v1712_v33  ;;  %v1442_v60 = vadd.f32 %v3616_v52, %v1398_v13  ;;  %v4066_v22 = vadd.f32 %v3616_v52, %v1400_v14  ;;  %v1718_v12 = vmul.f32 %v1686_v36, %v1462_v61 }
  0xa6   : > { %v1758_v1 = vmul.f32 %v4690_v8, %v1714_v37  ;;  %v4070_v19 = vadd.f32 %v3616_v52, %v1402_v42  ;;  %v683_v28 = vmul.f32 %v4685_v21, %v4691_v45  ;;  %v1760_v32 = vmul.f32 %v4690_v8, %v1716_v40 }
  0xa7   : > { %v1800_v4 = vadd.f32 %v4692_v46, %v1756_v43  ;;  %v4076_v17 = vmul.f32 0.5, %v1440_v31  ;;  %v713_v2 = vadd.f32 %v681_v48, %v4693_v47  ;;  %v1762_v30 = vmul.f32 %v4690_v8, %v1718_v12 }
  0xa8   : > { %v1802_v61 = vadd.f32 %v4692_v46, %v1758_v1  ;;  %v4081_v44 = vmul.f32 0.5, %v1442_v60  ;;  %v1504_v29 = vmul.f32 %v1440_v31, %v1440_v31  ;;  %v1804_v0 = vadd.f32 %v4692_v46, %v1760_v32 }
  0xa9   : > { %v4694_v7 = vrot.slane %v3322_v24, 1  ;;  %v1506_v62 = vmul.f32 %v1442_v60, %v1442_v60  ;;  %v1508_v34 = vmul.f32 %v4066_v22, %v4066_v22  ;;  %v1806_v33 = vadd.f32 %v4692_v46, %v1762_v30 }
  0xaa   : > { %v1510_v14 = vmul.f32 %v4070_v19, %v4070_v19  ;;  %v1536_v36 = vmul.f32 %v1504_v29, %v1440_v31  ;;  %v4696_v37 = vrot.slane %v3326_v26, 1 }
  0xab   : > { %v1880_v9 = vadd.f32 %v4694_v7, %v1800_v4  ;;  %v4695_v48 = vmov %v4694_v7  ;;  %v1538_v43 = vmul.f32 %v1506_v62, %v1442_v60  ;;  %v1540_v12 = vmul.f32 %v1508_v34, %v4066_v22  ;;  %v4698_v7 = vld [vmem:[#allocation11_spill] sm:$0xff] }
  0xac   : > { %v1882_v13 = vadd.f32 %v4695_v48, %v1802_v61  ;;  %v1884_v42 = vadd.f32 %v4696_v37, %v1804_v0  ;;  %v4697_v1 = vmov %v4696_v37  ;;  %v1542_v4 = vmul.f32 %v1510_v14, %v4070_v19  ;;  %v3098_v37 = vld [vmem:[#allocation2 + $0xc8] sm:$0x80] }
  0xad   : > { %v1945_v40 = vrot.slane %v1880_v9, 7  ;;  %v1886_v45 = vadd.f32 %v4697_v1, %v1806_v33  ;;  %v1568_v47 = vmul.f32 0.044715, %v1536_v36  ;;  %v1570_v30 = vmul.f32 0.044715, %v1538_v43 }
  0xae   : > { %v1946_v32 = vrot.slane %v1882_v13, 7  ;;  %v1951_v24 = vrot.slane %v1884_v42, 7  ;;  %v1572_v61 = vmul.f32 0.044715, %v1540_v12  ;;  %v715_v48 = vadd.f32 %v683_v28, %v4698_v7  ;;  %v3099_v33 = vld [vmem:[#allocation2 + $0xd8] sm:$0x7f] }
  0xaf   : > { %v1952_v35 = vrot.slane %v1886_v45, 7  ;;  %v1574_v0 = vmul.f32 0.044715, %v1542_v4  ;;  %v1600_v9 = vadd.f32 %v1568_v47, %v1440_v31  ;;  %v1602_v62 = vadd.f32 %v1570_v30, %v1442_v60  ;;  %v3100_v28 = vld [vmem:[#allocation2 + $0xf8] sm:$0x80]  ;;  %v4699_v60 = vld [vmem:[#allocation30_spill] sm:$0xff] }
  0xb0   : > { %v1947_v29 = vsel %vm1944_vm2, %v1945_v40, %v1946_v32  ;;  %v1604_v34 = vadd.f32 %v1572_v61, %v4066_v22  ;;  %v754_v26 = vmul.f32 %v3098_v37, %v3385_v51  ;;  %v756_v13 = vmul.f32 %v3099_v33, %v3385_v51  ;;  %v4700_v61 = vld [vmem:[#allocation13_spill] sm:$0xff]  ;;  %v4701_v7 = vld [vmem:[#allocation20_spill] sm:$0xff] }
  0xb1   : > { %v1953_v14 = vsel %vm1944_vm2, %v1951_v24, %v1952_v35  ;;  %v1606_v36 = vadd.f32 %v1574_v0, %v4070_v19  ;;  %v1632_v42 = vmul.f32 0.7978846, %v1600_v9  ;;  %v758_v40 = vmul.f32 %v3100_v28, %v3385_v51  ;;  %v4111_v24 = vld [vmem:[#allocation2 + $0xd8] sm:$0xff]  ;;  %v3102_v9 = vld [vmem:[#allocation2 + $0x108] sm:$0xff]  ;;  %v4703_v37 = vld [vmem:[#allocation16_spill] sm:$0xff] }
  0xb2   : > { %v2009_v43 = vpack.c.bf16 %v1953_v14, %v1947_v29  ;;  %v1634_v12 = vmul.f32 0.7978846, %v1602_v62  ;;  %v1636_v31 = vmul.f32 0.7978846, %v1604_v34  ;;  %v760_v1 = vmul.f32 %v3385_v51, %v4699_v60  ;;  %v4706_v14 = vld [vmem:[#allocation22_spill] sm:$0xff] }
  0xb3   : > { %v1638_v45 = vmul.f32 0.7978846, %v1606_v36  ;;  %3024 = vtanh.f32 %v1632_v42  ;;  %v786_v32 = vadd.f32 %v754_v26, %v4052_v10  ;;  %v788_v4 = vadd.f32 %v756_v13, %v4056_v6  ;;  %v4702_v6 = vld [vmem:[#allocation14_spill] sm:$0xff]  ;;  %v4704_v26 = vld [vmem:[#allocation21_spill] sm:$0xff]  ;;  %v4707_v42 = vld [vmem:[#allocation23_spill] sm:$0xff] }
  0xb4   : > { %2278 = vmatmul.mubr.bf16.vlgmr.msra.gmra.mxu0 %v2009_v43  ;;  %3026 = vtanh.f32 %v1634_v12  ;;  %v790_v35 = vadd.f32 %v758_v40, %v713_v2  ;;  %v792_v47 = vadd.f32 %v760_v1, %v715_v48  ;;  %v878_v30 = vmul.f32 %v4111_v24, %v3484_v58  ;;  %v4705_v13 = vld [vmem:[#allocation17_spill] sm:$0xff]  ;;  %v4708_v43 = vld [vmem:[#allocation18_spill] sm:$0xff] }
  0xb5   : > { %3028 = vtanh.f32 %v1636_v31  ;;  %v892_v29 = vadd.f32 %v4701_v7, %v4700_v61  ;;  %v921_v0 = vmul.f32 %v4111_v24, %v3487_v59  ;;  %v923_v10 = vmul.f32 %v3102_v9, %v3487_v59  ;;  %v4709_v31 = vld [vmem:[#allocation19_spill] sm:$0xff]  ;;  %v4711_v7 = vld [vmem:[#allocation40_spill] sm:$0xff]  ;;  %v604_v9 = vld [vmem:[#allocation2 + $0x188] sm:$0x80] }
  0xb6   : > { %3030 = vtanh.f32 %v1638_v45  ;;  %v894_v62 = vadd.f32 %v878_v30, %v4702_v6  ;;  %v1139_v2 = vmul.f32 %v3509_v11, %v3744_v56  ;;  %v1141_v48 = vmul.f32 %v3509_v11, %v3746_v38  ;;  %v4710_v30 = vld [vmem:[#allocation39_spill] sm:$0xff] }
  0xb7   : > { %v937_v34 = vadd.f32 %v921_v0, %v892_v29  ;;  %v1167_v33 = vadd.f32 %v4704_v26, %v4703_v37  ;;  %v1169_v36 = vadd.f32 %v4706_v14, %v4705_v13  ;;  %v1212_v28 = vmul.f32 %v4707_v42, %v3744_v56 }
  0xb8   : > { %v939_v40 = vadd.f32 %v923_v10, %v894_v62  ;;  %v1171_v12 = vadd.f32 %v1139_v2, %v4708_v43  ;;  %v1173_v60 = vadd.f32 %v1141_v48, %v4709_v31  ;;  %v1214_v1 = vmul.f32 %v4707_v42, %v3746_v38  ;;  %v606_v2 = vld [vmem:[#allocation2 + $0x198] sm:$0x7f] }
  0xb9   : > { %v969_v45 = vrot.slane %v937_v34, 1  ;;  %v1216_v61 = vmul.f32 %v4707_v42, %v4710_v30  ;;  %v1218_v29 = vmul.f32 %v4707_v42, %v4711_v7  ;;  %v1244_v0 = vadd.f32 %v1212_v28, %v1167_v33 }
  0xba   : > { %v1476_v6 = vmul.f32 0.5, %v4066_v22  ;;  %v1478_v56 = vmul.f32 0.5, %v4070_v19  ;;  %v971_v10 = vrot.slane %v939_v40, 1  ;;  %v1246_v62 = vadd.f32 %v1214_v1, %v1169_v36  ;;  %v4712_v40 = vld [vmem:[#allocation31_spill] sm:$0xff] }
  0xbb   : > { %v1005_v48 = vadd.f32 %v969_v45, %v786_v32  ;;  %v1007_v37 = vadd.f32 %v969_v45, %v788_v4  ;;  %v1248_v26 = vadd.f32 %v1216_v61, %v1171_v12  ;;  %v1250_v38 = vadd.f32 %v1218_v29, %v1173_v60  ;;  %v4713_v36 = vld [vmem:[#allocation35_spill] sm:$0xff]  ;;  %v4714_v32 = vld [vmem:[#allocation32_spill] sm:$0xff]  ;;  %v4153_v45 = vld [vmem:[#allocation2 + $0xa8] sm:$0xff] }
  0xbc   : > { %v1009_v34 = vadd.f32 %v971_v10, %v790_v35  ;;  %v1011_v13 = vadd.f32 %v971_v10, %v792_v47  ;;  %v1313_v14 = vrot.slane %v1244_v0, 2  ;;  %v1316_v43 = vrot.slane %v1246_v62, 2  ;;  %v4715_v4 = vld [vmem:[#allocation36_spill] sm:$0xff]  ;;  %v4716_v10 = vld [vmem:[#allocation33_spill] sm:$0xff]  ;;  %v608_v0 = vld [vmem:[#allocation2 + $0x1b8] sm:$0x80] }
  0xbd   : > { %v1319_v31 = vrot.slane %v1248_v26, 2  ;;  %v1322_v30 = vrot.slane %v1250_v38, 2  ;;  %v697_v33 = vmul.f32 %v4685_v21, %v604_v9  ;;  %v699_v28 = vmul.f32 %v4685_v21, %v606_v2 }
  0xbe   : > { %v1317_v22 = vsel %vm1299_vm1, %v1313_v14, %v1316_v43  ;;  %v1389_v19 = vadd.f32 %v1313_v14, %v1005_v48  ;;  %v4146_v1 = vadd.f32 %v4713_v36, %v4712_v40  ;;  %v4150_v12 = vadd.f32 %v4715_v4, %v4714_v32 }
  0xbf   : > { %v1323_v35 = vsel %vm1299_vm1, %v1319_v31, %v1322_v30  ;;  %v1391_v47 = vadd.f32 %v1317_v22, %v1007_v37  ;;  %v1393_v60 = vadd.f32 %v1319_v31, %v1009_v34  ;;  %v4159_v62 = vadd.f32 %v697_v33, %v4716_v10  ;;  %v4717_v34 = vld [vmem:[#allocation34_spill] sm:$0xff] }
  0xc0   : > { %v3025_v21 = vpop.eup %3024  ;;  %v1395_v7 = vadd.f32 %v1323_v35, %v1011_v13  ;;  %v1433_v29 = vadd.f32 %v3619_v16, %v1389_v19  ;;  %v4166_v14 = vadd.f32 %v699_v28, %v4717_v34  ;;  %v770_v22 = vmul.f32 %v3385_v51, %v604_v9 }
  0xc1   : > { %v3027_v48 = vpop.eup %3026  ;;  %v1696_v26 = vadd.f32 1.0, %v3025_v21  ;;  %v1435_v38 = vadd.f32 %v3619_v16, %v1391_v47  ;;  %v4163_v37 = vadd.f32 %v3619_v16, %v1393_v60  ;;  %v772_v32 = vmul.f32 %v3385_v51, %v606_v2 }
  0xc2   : > { %v3029_v43 = vpop.eup %3028  ;;  %v1698_v31 = vadd.f32 1.0, %v3027_v48  ;;  %v4169_v13 = vadd.f32 %v3619_v16, %v1395_v7  ;;  %v1497_v30 = vmul.f32 %v1433_v29, %v1433_v29  ;;  %v4173_v36 = vmul.f32 0.5, %v1433_v29 }
  0xc3   : > { %v3031_v33 = vpop.eup %3030  ;;  %v1700_v19 = vadd.f32 1.0, %v3029_v43  ;;  %v1728_v40 = vmul.f32 %v1696_v26, %v4076_v17  ;;  %v4177_v35 = vmul.f32 0.5, %v1435_v38  ;;  %v1499_v47 = vmul.f32 %v1435_v38, %v1435_v38 }
  0xc4   : > { %v1702_v4 = vadd.f32 1.0, %v3031_v33  ;;  %v1730_v28 = vmul.f32 %v1698_v31, %v4081_v44  ;;  %v1501_v9 = vmul.f32 %v4163_v37, %v4163_v37  ;;  %v1503_v7 = vmul.f32 %v4169_v13, %v4169_v13 }
  0xc5   : > { %v1732_v60 = vmul.f32 %v1700_v19, %v1476_v6  ;;  %v1772_v21 = vmul.f32 %v4690_v8, %v1728_v40  ;;  %v1529_v48 = vmul.f32 %v1497_v30, %v1433_v29  ;;  %v1531_v2 = vmul.f32 %v1499_v47, %v1435_v38  ;;  %v4718_v40 = vld [vmem:[#allocation37_spill] sm:$0xff] }
  0xc6   : > { %v1734_v17 = vmul.f32 %v1702_v4, %v1478_v56  ;;  %v1774_v10 = vmul.f32 %v4690_v8, %v1730_v28  ;;  %v1533_v34 = vmul.f32 %v1501_v9, %v4163_v37  ;;  %v1535_v6 = vmul.f32 %v1503_v7, %v4169_v13 }
  0xc7   : > { %v1776_v26 = vmul.f32 %v4690_v8, %v1732_v60  ;;  %v1816_v44 = vadd.f32 %v4692_v46, %v1772_v21  ;;  %v1561_v33 = vmul.f32 0.044715, %v1529_v48  ;;  %v1563_v19 = vmul.f32 0.044715, %v1531_v2  ;;  %v610_v2 = vld [vmem:[#allocation2 + $0x1c8] sm:$0x7f] }
  0xc8   : > { %v1778_v43 = vmul.f32 %v4690_v8, %v1734_v17  ;;  %v1818_v31 = vadd.f32 %v4692_v46, %v1774_v10  ;;  %v1565_v30 = vmul.f32 0.044715, %v1533_v34  ;;  %v1567_v28 = vmul.f32 0.044715, %v1535_v6 }
  0xc9   : > { %v1820_v56 = vadd.f32 %v4692_v46, %v1776_v26  ;;  %v1896_v4 = vadd.f32 %v4718_v40, %v1816_v44  ;;  %v1593_v21 = vadd.f32 %v1561_v33, %v1433_v29  ;;  %v1595_v9 = vadd.f32 %v1563_v19, %v1435_v38 }
  0xca   : > { %v1822_v47 = vadd.f32 %v4692_v46, %v1778_v43  ;;  %v1898_v60 = vadd.f32 %v4718_v40, %v1818_v31  ;;  %v4719_v7 = vrot.slane %v4682_v53, 1  ;;  %v1597_v10 = vadd.f32 %v1565_v30, %v4163_v37  ;;  %v1061_v30 = vld [vmem:[#allocation2 + $0x198] sm:$0xfe] }
  0xcb   : > { %v1969_v61 = vrot.slane %v1896_v4, 7  ;;  %v1599_v48 = vadd.f32 %v1567_v28, %v4169_v13  ;;  %v1625_v6 = vmul.f32 0.7978846, %v1593_v21  ;;  %v1627_v43 = vmul.f32 0.7978846, %v1595_v9  ;;  %v4721_v21 = vld [vmem:[#allocation38_spill] sm:$0xff] }
  0xcc   : > { %v1900_v17 = vadd.f32 %v4719_v7, %v1820_v56  ;;  %v4720_v26 = vmov %v4719_v7  ;;  %v1970_v34 = vrot.slane %v1898_v60, 7  ;;  %v1629_v31 = vmul.f32 0.7978846, %v1597_v10  ;;  %v1063_v28 = vld [vmem:[#allocation2 + $0x1a8] sm:$0x1]  ;;  %v4209_v60 = vld [vmem:[#allocation2 + $0x198] sm:$0xff] }
  0xcd   : > { %v1902_v44 = vadd.f32 %v4720_v26, %v1822_v47  ;;  %v1631_v29 = vmul.f32 0.7978846, %v1599_v48  ;;  %v774_v38 = vmul.f32 %v3385_v51, %v608_v0  ;;  %3032 = vtanh.f32 %v1625_v6  ;;  %v1065_v9 = vld [vmem:[#allocation2 + $0x1c8] sm:$0xfe]  ;;  %v4725_v48 = vld [vmem:[#allocation47_spill] sm:$0xff]  ;;  %v4726_v26 = vld [vmem:[#allocation42_spill] sm:$0xff] }
  0xce   : > { %v1975_v46 = vrot.slane %v1900_v17, 7  ;;  %v1971_v33 = vsel %vm1944_vm2, %v1969_v61, %v1970_v34  ;;  %v776_v56 = vmul.f32 %v3385_v51, %v610_v2  ;;  %3034 = vtanh.f32 %v1627_v43  ;;  %v4724_v10 = vld [vmem:[#allocation41_spill] sm:$0xff] }
  0xcf   : > { %v1976_v19 = vrot.slane %v1902_v44, 7  ;;  %v802_v40 = vadd.f32 %v770_v22, %v4146_v1  ;;  %v804_v53 = vadd.f32 %v772_v32, %v4150_v12  ;;  %v806_v4 = vadd.f32 %v774_v38, %v4159_v62  ;;  %v4722_v1 = vld [vmem:[#allocation46_spill] sm:$0xff]  ;;  %v4723_v62 = vld [vmem:[#allocation45_spill] sm:$0xff]  ;;  %v4727_v44 = vld [vmem:[#allocation48_spill] sm:$0xff] }
  0xd0   : > { %3036 = vtanh.f32 %v1629_v31  ;;  %v808_v0 = vadd.f32 %v776_v56, %v4166_v14  ;;  %v886_v61 = vmul.f32 %v4209_v60, %v3484_v58  ;;  %v900_v22 = vadd.f32 %v4722_v1, %v4721_v21  ;;  %v1067_v14 = vld [vmem:[#allocation2 + $0x1d8] sm:$0x1] }
  0xd1   : > { %v1977_v47 = vsel %vm1944_vm2, %v1975_v46, %v1976_v19  ;;  %3038 = vtanh.f32 %v1631_v29  ;;  %v929_v12 = vmul.f32 %v4209_v60, %v3487_v59  ;;  %v931_v46 = vmul.f32 %v3880_v20, %v3487_v59  ;;  %v4728_v31 = vld [vmem:[#allocation43_spill] sm:$0xff]  ;;  %v4729_v59 = vld [vmem:[#allocation44_spill] sm:$0xff] }
  0xd2   : > { %v2013_v51 = vpack.c.bf16 %v1977_v47, %v1971_v33  ;;  %v902_v32 = vadd.f32 %v886_v61, %v4723_v62  ;;  %v1155_v7 = vmul.f32 %v3509_v11, %v1061_v30  ;;  %v1157_v17 = vmul.f32 %v3509_v11, %v1063_v28 }
  0xd3   : > { %v945_v58 = vadd.f32 %v929_v12, %v900_v22  ;;  %v1183_v2 = vadd.f32 %v4725_v48, %v4724_v10  ;;  %v1185_v34 = vadd.f32 %v4727_v44, %v4726_v26  ;;  %v1228_v6 = vmul.f32 %v4707_v42, %v1061_v30 }
  0xd4   : > { %2298 = vmatmul.mubr.bf16.vlgmr.msra.gmra.mxu1 %v2013_v51  ;;  %v947_v43 = vadd.f32 %v931_v46, %v902_v32  ;;  %v1187_v29 = vadd.f32 %v1155_v7, %v4728_v31  ;;  %v1189_v20 = vadd.f32 %v1157_v17, %v4729_v59  ;;  %v1230_v38 = vmul.f32 %v4707_v42, %v1063_v28 }
  0xd5   : > { %v977_v33 = vrot.slane %v945_v58, 1  ;;  %v1232_v11 = vmul.f32 %v4707_v42, %v1065_v9  ;;  %v1234_v19 = vmul.f32 %v4707_v42, %v1067_v14  ;;  %v1260_v56 = vadd.f32 %v1228_v6, %v1183_v2  ;;  %v4234_v9 = vld [vmem:[#allocation2 + $0x168] sm:$0xff]  ;;  %v3106_v58 = vld [vmem:[#allocation2 + $0x60] sm:$0x80] }
  0xd6   : > { %v1469_v47 = vmul.f32 0.5, %v4163_v37  ;;  %v1471_v61 = vmul.f32 0.5, %v4169_v13  ;;  %v979_v51 = vrot.slane %v947_v43, 1  ;;  %v1262_v21 = vadd.f32 %v1230_v38, %v1185_v34 }
  0xd7   : > { %v1021_v30 = vadd.f32 %v977_v33, %v802_v40  ;;  %v1023_v1 = vadd.f32 %v977_v33, %v804_v53  ;;  %v1264_v22 = vadd.f32 %v1232_v11, %v1187_v29  ;;  %v1266_v12 = vadd.f32 %v1234_v19, %v1189_v20  ;;  %v3107_v53 = vld [vmem:[#allocation2 + $0x70] sm:$0x7f] }
  0xd8   : > { %v1025_v62 = vadd.f32 %v979_v51, %v806_v4  ;;  %v1027_v32 = vadd.f32 %v979_v51, %v808_v0  ;;  %v1337_v46 = vrot.slane %v1260_v56, 2  ;;  %v1340_v28 = vrot.slane %v1262_v21, 2 }
  0xd9   : > { %v1343_v7 = vrot.slane %v1264_v22, 2  ;;  %v1346_v17 = vrot.slane %v1266_v12, 2  ;;  %v1861_v42 = vrot.slane %v4234_v9, 1  ;;  %v1863_v37 = vrot.slane %v4209_v60, 1 }
  0xda   : > { %v1341_v13 = vsel %vm1299_vm1, %v1337_v46, %v1340_v28  ;;  %v1405_v14 = vadd.f32 %v1337_v46, %v1021_v30  ;;  %v4240_v40 = vmul.f32 %v3106_v58, %v3361_v41  ;;  %v4243_v4 = vmul.f32 %v3107_v53, %v3361_v41  ;;  %v3033_v0 = vpop.eup %3032 }
  0xdb   : > { %v1347_v10 = vsel %vm1299_vm1, %v1343_v7, %v1346_v17  ;;  %v1407_v48 = vadd.f32 %v1341_v13, %v1023_v1  ;;  %v1409_v2 = vadd.f32 %v1343_v7, %v1025_v62  ;;  %v4248_v26 = vmul.f32 %v3361_v41, %v3862_v25  ;;  %v3035_v44 = vpop.eup %3034  ;;  %v4731_v17 = vld [vmem:[#allocation29_spill] sm:$0xff] }
  0xdc   : > { %v1689_v34 = vadd.f32 1.0, %v3033_v0  ;;  %v1411_v6 = vadd.f32 %v1347_v10, %v1027_v32  ;;  %v1449_v43 = vadd.f32 %v3619_v16, %v1405_v14  ;;  %v637_v31 = vmul.f32 %v3361_v41, %v3866_v15 }
  0xdd   : > { %v3037_v29 = vpop.eup %3036  ;;  %v1691_v59 = vadd.f32 1.0, %v3035_v44  ;;  %v1451_v20 = vadd.f32 %v3619_v16, %v1407_v48  ;;  %v4255_v38 = vadd.f32 %v3619_v16, %v1409_v2  ;;  %v676_v33 = vmul.f32 %v3379_v49, %v3862_v25  ;;  %v4730_v25 = vld [vmem:[#allocation27_spill] sm:$0xff] }
  0xde   : > { %v3039_v11 = vpop.eup %3038  ;;  %v1693_v19 = vadd.f32 1.0, %v3037_v29  ;;  %v1721_v56 = vmul.f32 %v1689_v34, %v4173_v36  ;;  %v4261_v51 = vadd.f32 %v3619_v16, %v1411_v6  ;;  %v678_v21 = vmul.f32 %v3379_v49, %v3866_v15 }
  0xdf   : > { %v1695_v30 = vadd.f32 1.0, %v3039_v11  ;;  %v1723_v1 = vmul.f32 %v1691_v59, %v4177_v35  ;;  %v4266_v22 = vmul.f32 0.5, %v1449_v43  ;;  %v680_v12 = vmul.f32 %v3379_v49, %v3906_v39 }
  0xe0   : > { %v1725_v62 = vmul.f32 %v1693_v19, %v1469_v47  ;;  %v1765_v32 = vmul.f32 %v4730_v25, %v1721_v56  ;;  %v4271_v46 = vmul.f32 0.5, %v1451_v20  ;;  %v1513_v36 = vmul.f32 %v1449_v43, %v1449_v43 }
  0xe1   : > { %v1727_v28 = vmul.f32 %v1695_v30, %v1471_v61  ;;  %v1767_v16 = vmul.f32 %v4730_v25, %v1723_v1  ;;  %v1515_v7 = vmul.f32 %v1451_v20, %v1451_v20  ;;  %v1517_v15 = vmul.f32 %v4255_v38, %v4255_v38 }
  0xe2   : > { %v1769_v35 = vmul.f32 %v4730_v25, %v1725_v62  ;;  %v1809_v13 = vadd.f32 %v4731_v17, %v1765_v32  ;;  %v1519_v14 = vmul.f32 %v4261_v51, %v4261_v51  ;;  %v1545_v47 = vmul.f32 %v1513_v36, %v1449_v43 }
  0xe3   : > { %v1771_v58 = vmul.f32 %v4730_v25, %v1727_v28  ;;  %v1811_v53 = vadd.f32 %v4731_v17, %v1767_v16  ;;  %v1547_v0 = vmul.f32 %v1515_v7, %v1451_v20  ;;  %v1549_v61 = vmul.f32 %v1517_v15, %v4255_v38 }
  0xe4   : > { %v1813_v10 = vadd.f32 %v4731_v17, %v1769_v35  ;;  %v4732_v48 = vrot.slane %v4153_v45, 1  ;;  %v1551_v44 = vmul.f32 %v1519_v14, %v4261_v51  ;;  %v1577_v34 = vmul.f32 0.044715, %v1545_v47  ;;  %v4736_v14 = vld [vmem:[#allocation49_spill] sm:$0xff] }
  0xe5   : > { %v1815_v6 = vadd.f32 %v4731_v17, %v1771_v58  ;;  %v1579_v11 = vmul.f32 0.044715, %v1547_v0  ;;  %v1581_v19 = vmul.f32 0.044715, %v1549_v61  ;;  %v4734_v56 = vrot.slane %v4111_v24, 1 }
  0xe6   : > { %v1889_v2 = vadd.f32 %v4732_v48, %v1809_v13  ;;  %v4733_v29 = vmov %v4732_v48  ;;  %v1583_v62 = vmul.f32 0.044715, %v1551_v44  ;;  %v1609_v32 = vadd.f32 %v1577_v34, %v1449_v43 }
  0xe7   : > { %v1891_v59 = vadd.f32 %v4733_v29, %v1811_v53  ;;  %v1893_v30 = vadd.f32 %v4734_v56, %v1813_v10  ;;  %v4735_v36 = vmov %v4734_v56  ;;  %v1611_v7 = vadd.f32 %v1579_v11, %v1451_v20  ;;  %v4737_v29 = vld [vmem:[#allocation50_spill] sm:$0xff] }
  0xe8   : > { %v1960_v1 = vrot.slane %v1889_v2, 7  ;;  %v1895_v28 = vadd.f32 %v4735_v36, %v1815_v6  ;;  %v1613_v15 = vadd.f32 %v1581_v19, %v4255_v38  ;;  %v1615_v13 = vadd.f32 %v1583_v62, %v4261_v51  ;;  %v3110_v36 = vld [vmem:[#allocation2 + $0x70] sm:$0xfe] }
  0xe9   : > { %v1961_v16 = vrot.slane %v1891_v59, 7  ;;  %v1966_v35 = vrot.slane %v1893_v30, 7  ;;  %v1641_v45 = vmul.f32 0.7978846, %v1609_v32  ;;  %v682_v47 = vmul.f32 %v3379_v49, %v4736_v14 }
  0xea   : > { %v1967_v53 = vrot.slane %v1895_v28, 7  ;;  %v1643_v0 = vmul.f32 0.7978846, %v1611_v7  ;;  %v1645_v61 = vmul.f32 0.7978846, %v1613_v15  ;;  %v708_v24 = vadd.f32 %v676_v33, %v4240_v40  ;;  %v4738_v33 = vld [vmem:[#allocation51_spill] sm:$0xff] }
  0xeb   : > { %v1962_v58 = vsel %vm1944_vm2, %v1960_v1, %v1961_v16  ;;  %v1647_v43 = vmul.f32 0.7978846, %v1615_v13  ;;  %3040 = vtanh.f32 %v1641_v45  ;;  %v710_v20 = vadd.f32 %v678_v21, %v4243_v4  ;;  %v3108_v21 = vld [vmem:[#allocation2 + $0x70] sm:$0xff]  ;;  %v3111_v16 = vld [vmem:[#allocation2 + $0x80] sm:$0x1] }
  0xec   : > { %v1968_v10 = vsel %vm1944_vm2, %v1966_v35, %v1967_v53  ;;  %3042 = vtanh.f32 %v1643_v0  ;;  %v712_v48 = vadd.f32 %v680_v12, %v4248_v26  ;;  %v714_v2 = vadd.f32 %v682_v47, %v637_v31  ;;  %v4312_v12 = vld [vmem:[#allocation2 + $0xa0] sm:$0xff]  ;;  %v3113_v45 = vld [vmem:[#allocation2 + $0xb0] sm:$0x1]  ;;  %v4740_v0 = vld [vmem:[#allocation55_spill] sm:$0xff] }
  0xed   : > { %v2012_v44 = vpack.c.bf16 %v1968_v10, %v1962_v58  ;;  %3044 = vtanh.f32 %v1645_v61  ;;  %v753_v34 = vmul.f32 %v3382_v50, %v3906_v39  ;;  %v755_v6 = vmul.f32 %v3382_v50, %v4736_v14  ;;  %v3112_v35 = vld [vmem:[#allocation2 + $0xa0] sm:$0xfe]  ;;  %v4739_v53 = vld [vmem:[#allocation54_spill] sm:$0xff] }
  0xee   : > { %3046 = vtanh.f32 %v1647_v43  ;;  %v757_v40 = vmul.f32 %v3382_v50, %v4737_v29  ;;  %v759_v4 = vmul.f32 %v3382_v50, %v4738_v33  ;;  %v846_v59 = vmul.f32 %v3108_v21, %v3393_v55  ;;  %v4741_v29 = vld [vmem:[#allocation56_spill] sm:$0xff]  ;;  %v4742_v33 = vld [vmem:[#allocation57_spill] sm:$0xff] }
  0xef   : > { %2287 = vmatprep.mubr.bf16.mxu0 %v2012_v44  ;;  %v785_v26 = vadd.f32 %v753_v34, %v708_v24  ;;  %v787_v31 = vadd.f32 %v755_v6, %v710_v20  ;;  %v848_v39 = vmul.f32 %v4312_v12, %v3393_v55  ;;  %v875_v11 = vmul.f32 %v4312_v12, %v3439_v18 }
  0xf0   : > { %v789_v19 = vadd.f32 %v757_v40, %v712_v48  ;;  %v791_v56 = vadd.f32 %v759_v4, %v714_v2  ;;  %v877_v30 = vmul.f32 %v3439_v18, %v3991_v54  ;;  %v920_v1 = vmul.f32 %v3490_v63, %v3991_v54 }
  0xf1   : > { %v891_v62 = vadd.f32 %v875_v11, %v846_v59  ;;  %v922_v32 = vmul.f32 %v4005_v27, %v3490_v63  ;;  %v1089_v28 = vmul.f32 %v3110_v36, %v3493_v3  ;;  %v1091_v7 = vmul.f32 %v3111_v16, %v3493_v3 }
  0xf2   : > { %v893_v15 = vadd.f32 %v877_v30, %v848_v39  ;;  %v1093_v13 = vmul.f32 %v3112_v35, %v3493_v3  ;;  %v1095_v14 = vmul.f32 %v3113_v45, %v3493_v3  ;;  %v1134_v47 = vmul.f32 %v3112_v35, %v3499_v5 }
  0xf3   : > { %v936_v54 = vadd.f32 %v920_v1, %v891_v62  ;;  %v1136_v58 = vmul.f32 %v3113_v45, %v3499_v5  ;;  %v1138_v27 = vmul.f32 %v3499_v5, %v4739_v53  ;;  %v1140_v61 = vmul.f32 %v3499_v5, %v4740_v0 }
  0xf4   : > { %v938_v43 = vadd.f32 %v922_v32, %v893_v15  ;;  %v1166_v24 = vadd.f32 %v1134_v47, %v1089_v28  ;;  %v1211_v20 = vmul.f32 %v3610_v23, %v4739_v53  ;;  %v1213_v10 = vmul.f32 %v3610_v23, %v4740_v0 }
  0xf5   : > { %v968_v48 = vrot.slane %v936_v54, 1  ;;  %v1168_v2 = vadd.f32 %v1136_v58, %v1091_v7  ;;  %v1170_v44 = vadd.f32 %v1138_v27, %v1093_v13  ;;  %v1172_v34 = vadd.f32 %v1140_v61, %v1095_v14 }
  0xf6   : > { %v970_v6 = vrot.slane %v938_v43, 1  ;;  %v1215_v40 = vmul.f32 %v3610_v23, %v4741_v29  ;;  %v1217_v4 = vmul.f32 %v3610_v23, %v4742_v33  ;;  %v1243_v21 = vadd.f32 %v1211_v20, %v1166_v24 }
  0xf7   : > { %v1485_v59 = vmul.f32 0.5, %v4255_v38  ;;  %v1487_v39 = vmul.f32 0.5, %v4261_v51  ;;  %v1004_v11 = vadd.f32 %v968_v48, %v785_v26  ;;  %v1245_v30 = vadd.f32 %v1213_v10, %v1168_v2  ;;  %v3114_v38 = vld [vmem:[%s3301_s21 + $0x38] sm:$0xff] }
  0xf8   : > { %v3041_v1 = vpop.eup %3040  ;;  %v1006_v62 = vadd.f32 %v968_v48, %v787_v31  ;;  %v1008_v32 = vadd.f32 %v970_v6, %v789_v19  ;;  %v1247_v36 = vadd.f32 %v1215_v40, %v1170_v44  ;;  %v1249_v28 = vadd.f32 %v1217_v4, %v1172_v34 }
  0xf9   : > { %v3043_v16 = vpop.eup %3042  ;;  %v1705_v7 = vadd.f32 1.0, %v3041_v1  ;;  %v1010_v15 = vadd.f32 %v970_v6, %v791_v56  ;;  %v1312_v35 = vrot.slane %v1243_v21, 2  ;;  %v1314_v13 = vrot.slane %v1245_v30, 2 }
  0xfa   : > { %v3045_v45 = vpop.eup %3044  ;;  %v1707_v14 = vadd.f32 1.0, %v3043_v16  ;;  %v1318_v47 = vrot.slane %v1247_v36, 2  ;;  %v1320_v54 = vrot.slane %v1249_v28, 2  ;;  %v4345_v58 = vunpack.c.l.bf16 %v3114_v38  ;;  %v3116_v38 = vld [vmem:[#allocation2 + $0x130] sm:$0x7f] }
  0xfb   : > { %v3047_v51 = vpop.eup %3046  ;;  %v1709_v26 = vadd.f32 1.0, %v3045_v45  ;;  %v1737_v53 = vmul.f32 %v1705_v7, %v4266_v22  ;;  %v1315_v31 = vsel %vm1299_vm1, %v1312_v35, %v1314_v13  ;;  %v1388_v19 = vadd.f32 %v1312_v35, %v1004_v11 }
  0xfc   : > { %v1711_v27 = vadd.f32 1.0, %v3047_v51  ;;  %v1739_v0 = vmul.f32 %v1707_v14, %v4271_v46  ;;  %v1321_v56 = vsel %vm1299_vm1, %v1318_v47, %v1320_v54  ;;  %v1390_v61 = vadd.f32 %v1315_v31, %v1006_v62  ;;  %569 = vst [vmem:[#allocation2 + $0x190] sm:$0xff] %v4345_v58  ;;  %v603_v54 = vld [vmem:[#allocation2 + $0x180] sm:$0x80] }
  0xfd   : > { %v1741_v43 = vmul.f32 %v1709_v26, %v1485_v59  ;;  %v1781_v24 = vmul.f32 %v4730_v25, %v1737_v53  ;;  %v1392_v20 = vadd.f32 %v1318_v47, %v1008_v32  ;;  %v1394_v10 = vadd.f32 %v1321_v56, %v1010_v15  ;;  %v3115_v15 = vld [vmem:[#allocation2 + $0x120] sm:$0x80]  ;;  %v4744_v56 = vld [vmem:[#allocation53_spill] sm:$0xff] }
  0xfe   : > { %v1743_v48 = vmul.f32 %v1711_v27, %v1487_v39  ;;  %v1783_v2 = vmul.f32 %v4730_v25, %v1739_v0  ;;  %v4355_v22 = vadd.f32 %v3616_v52, %v1388_v19  ;;  %v4358_v44 = vadd.f32 %v3616_v52, %v1390_v61  ;;  %v4743_v26 = vld [vmem:[#allocation52_spill] sm:$0xff] }
  0xff   : > { %v1785_v46 = vmul.f32 %v4730_v25, %v1741_v43  ;;  %v1825_v34 = vadd.f32 %v4731_v17, %v1781_v24  ;;  %v4363_v6 = vadd.f32 %v3616_v52, %v1392_v20  ;;  %v4366_v29 = vadd.f32 %v3616_v52, %v1394_v10  ;;  %v3117_v10 = vld [vmem:[#allocation2 + $0x150] sm:$0x80] }
 0x100   : > { %v1787_v40 = vmul.f32 %v4730_v25, %v1743_v48  ;;  %v1827_v33 = vadd.f32 %v4731_v17, %v1783_v2  ;;  %v1496_v11 = vmul.f32 %v4355_v22, %v4355_v22  ;;  %v1498_v30 = vmul.f32 %v4358_v44, %v4358_v44 }
 0x101   : > { %v1829_v4 = vadd.f32 %v4731_v17, %v1785_v46  ;;  %v1905_v21 = vadd.f32 %v1861_v42, %v1825_v34  ;;  %v1500_v62 = vmul.f32 %v4363_v6, %v4363_v6  ;;  %v1502_v32 = vmul.f32 %v4366_v29, %v4366_v29  ;;  %v607_v34 = vld [vmem:[#allocation2 + $0x1b0] sm:$0x80] }
 0x102   : > { %v1831_v59 = vadd.f32 %v4731_v17, %v1787_v40  ;;  %v1907_v39 = vadd.f32 %v1861_v42, %v1827_v33  ;;  %v1528_v17 = vmul.f32 %v1496_v11, %v4355_v22  ;;  %v1530_v36 = vmul.f32 %v1498_v30, %v4358_v44  ;;  %v3118_v40 = vld [vmem:[#allocation2 + $0x160] sm:$0x7f] }
 0x103   : > { %v1909_v25 = vadd.f32 %v1863_v37, %v1829_v4  ;;  %v1984_v1 = vrot.slane %v1905_v21, 7  ;;  %v1532_v16 = vmul.f32 %v1500_v62, %v4363_v6  ;;  %v1534_v7 = vmul.f32 %v1502_v32, %v4366_v29  ;;  %v605_v0 = vld [vmem:[#allocation2 + $0x190] sm:$0x7f] }
 0x104   : > { %v1911_v9 = vadd.f32 %v1863_v37, %v1831_v59  ;;  %v1985_v42 = vrot.slane %v1907_v39, 7  ;;  %v647_v35 = vmul.f32 %v3115_v15, %v3361_v41  ;;  %v1560_v14 = vmul.f32 0.044715, %v1528_v17 }
 0x105   : > { %v1990_v28 = vrot.slane %v1909_v25, 7  ;;  %v1562_v47 = vmul.f32 0.044715, %v1530_v36  ;;  %v1564_v60 = vmul.f32 0.044715, %v1532_v16  ;;  %v649_v51 = vmul.f32 %v3116_v38, %v3361_v41  ;;  %v3119_v36 = vld [vmem:[#allocation2 + $0x130] sm:$0xff] }
 0x106   : > { %v1986_v13 = vsel %vm1944_vm2, %v1984_v1, %v1985_v42  ;;  %v1991_v45 = vrot.slane %v1911_v9, 7  ;;  %v1566_v37 = vmul.f32 0.044715, %v1534_v7  ;;  %v651_v53 = vmul.f32 %v3361_v41, %v4743_v26  ;;  %v3120_v7 = vld [vmem:[#allocation2 + $0x160] sm:$0xff] }
 0x107   : > { %v1592_v19 = vadd.f32 %v1560_v14, %v4355_v22  ;;  %v1594_v27 = vadd.f32 %v1562_v47, %v4358_v44  ;;  %v653_v61 = vmul.f32 %v3361_v41, %v4744_v56  ;;  %v1596_v24 = vadd.f32 %v1564_v60, %v4363_v6  ;;  %v609_v41 = vld [vmem:[#allocation2 + $0x1c0] sm:$0x7f]  ;;  %v3121_v60 = vld [vmem:[#allocation2 + $0x8] sm:$0xff]  ;;  %v1066_v56 = vld [vmem:[#allocation2 + $0x1d0] sm:$0x1] }
 0x108   : > { %v1992_v31 = vsel %vm1944_vm2, %v1990_v28, %v1991_v45  ;;  %v1598_v20 = vadd.f32 %v1566_v37, %v4366_v29  ;;  %v692_v48 = vmul.f32 %v3117_v10, %v3379_v49  ;;  %v694_v33 = vmul.f32 %v3118_v40, %v3379_v49  ;;  %v1062_v47 = vld [vmem:[#allocation2 + $0x1a0] sm:$0x1] }
 0x109   : > { %v2016_v43 = vpack.c.bf16 %v1992_v31, %v1986_v13  ;;  %v1624_v2 = vmul.f32 0.7978846, %v1592_v19  ;;  %v1626_v46 = vmul.f32 0.7978846, %v1594_v27  ;;  %v696_v4 = vmul.f32 %v3379_v49, %v603_v54  ;;  %v4745_v19 = vld [vmem:[#allocation15_spill] sm:$0xff] }
 0x10a   : > { %v1628_v21 = vmul.f32 0.7978846, %v1596_v24  ;;  %v1630_v59 = vmul.f32 0.7978846, %v1598_v20  ;;  %v698_v39 = vmul.f32 %v3379_v49, %v605_v0  ;;  %v724_v11 = vadd.f32 %v692_v48, %v647_v35 }
 0x10b   : > { %2307 = vmatprep.mubr.bf16.mxu1 %v2016_v43  ;;  %3048 = vtanh.f32 %v1624_v2  ;;  %v726_v30 = vadd.f32 %v694_v33, %v649_v51  ;;  %v728_v25 = vadd.f32 %v696_v4, %v651_v53  ;;  %v769_v1 = vmul.f32 %v3382_v50, %v603_v54  ;;  %v3122_v54 = vld [vmem:[#allocation2 + $0x130] sm:$0xfe]  ;;  %v3123_v51 = vld [vmem:[#allocation2 + $0x140] sm:$0x1] }
 0x10c   : > { %3050 = vtanh.f32 %v1626_v46  ;;  %v730_v62 = vadd.f32 %v698_v39, %v653_v61  ;;  %v771_v32 = vmul.f32 %v3382_v50, %v605_v0  ;;  %v773_v9 = vmul.f32 %v3382_v50, %v607_v34 }
 0x10d   : > { %3052 = vtanh.f32 %v1628_v21  ;;  %v775_v42 = vmul.f32 %v3382_v50, %v609_v41  ;;  %v801_v17 = vadd.f32 %v769_v1, %v724_v11  ;;  %v854_v28 = vmul.f32 %v3119_v36, %v3393_v55  ;;  %v1060_v50 = vld [vmem:[#allocation2 + $0x190] sm:$0xfe] }
 0x10e   : > { %3054 = vtanh.f32 %v1630_v59  ;;  %v803_v49 = vadd.f32 %v771_v32, %v726_v30  ;;  %v805_v16 = vadd.f32 %v773_v9, %v728_v25  ;;  %v856_v15 = vmul.f32 %v3120_v7, %v3393_v55 }
 0x10f   : > { %v807_v35 = vadd.f32 %v775_v42, %v730_v62  ;;  %v883_v13 = vmul.f32 %v3120_v7, %v3439_v18  ;;  %v885_v45 = vmul.f32 %v3439_v18, %v4345_v58  ;;  %v928_v14 = vmul.f32 %v3490_v63, %v4345_v58  ;;  %v1064_v18 = vld [vmem:[#allocation2 + $0x1c0] sm:$0xfe] }
 0x110   : > { %v930_v37 = vmul.f32 %v3121_v60, %v3490_v63  ;;  %v1105_v38 = vmul.f32 %v3122_v54, %v3493_v3  ;;  %v1107_v55 = vmul.f32 %v3123_v51, %v3493_v3  ;;  %v1109_v26 = vmul.f32 %v3493_v3, %v4030_v57  ;;  %v3124_v63 = vld [vmem:[#allocation2 + $0x170] sm:$0x1] }
 0x111   : > { %v899_v53 = vadd.f32 %v883_v13, %v854_v28  ;;  %v901_v31 = vadd.f32 %v885_v45, %v856_v15  ;;  %v1111_v27 = vmul.f32 %v3493_v3, %v4745_v19  ;;  %v1150_v0 = vmul.f32 %v3499_v5, %v4030_v57  ;;  %v4746_v19 = vld [vmem:[#allocation28_spill] sm:$0xff] }
 0x112   : > { %v1152_v61 = vmul.f32 %v3124_v63, %v3499_v5  ;;  %v1154_v43 = vmul.f32 %v3499_v5, %v1060_v50  ;;  %v1156_v24 = vmul.f32 %v3499_v5, %v1062_v47  ;;  %v1227_v20 = vmul.f32 %v3610_v23, %v1060_v50 }
 0x113   : > { %v944_v10 = vadd.f32 %v928_v14, %v899_v53  ;;  %v946_v48 = vadd.f32 %v930_v37, %v901_v31  ;;  %v1182_v2 = vadd.f32 %v1150_v0, %v1105_v38  ;;  %v1229_v46 = vmul.f32 %v3610_v23, %v1062_v47  ;;  %v3125_v0 = vld [vmem:[#allocation2 + $0xd0] sm:$0xff] }
 0x114   : > { %v1184_v34 = vadd.f32 %v1152_v61, %v1107_v55  ;;  %v1186_v3 = vadd.f32 %v1154_v43, %v1109_v26  ;;  %v1188_v40 = vadd.f32 %v1156_v24, %v1111_v27  ;;  %v1231_v57 = vmul.f32 %v3610_v23, %v1064_v18 }
 0x115   : > { %v976_v33 = vrot.slane %v944_v10, 1  ;;  %v978_v4 = vrot.slane %v946_v48, 1  ;;  %v1233_v21 = vmul.f32 %v3610_v23, %v1066_v56  ;;  %v1259_v59 = vadd.f32 %v1227_v20, %v1182_v2 }
 0x116   : > { %v1464_v41 = vmul.f32 0.5, %v4355_v22  ;;  %v1852_v5 = vrot.slane %v4312_v12, 1  ;;  %v1261_v39 = vadd.f32 %v1229_v46, %v1184_v34  ;;  %v1263_v11 = vadd.f32 %v1231_v57, %v1186_v3 }
 0x117   : > { %v1466_v30 = vmul.f32 0.5, %v4358_v44  ;;  %v1020_v25 = vadd.f32 %v976_v33, %v801_v17  ;;  %v1022_v1 = vadd.f32 %v976_v33, %v803_v49  ;;  %v1024_v62 = vadd.f32 %v978_v4, %v805_v16 }
 0x118   : > { %v3049_v32 = vpop.eup %3048  ;;  %v1265_v9 = vadd.f32 %v1233_v21, %v1188_v40  ;;  %v1336_v42 = vrot.slane %v1259_v59, 2  ;;  %v1338_v36 = vrot.slane %v1261_v39, 2  ;;  %v1342_v28 = vrot.slane %v1263_v11, 2 }
 0x119   : > { %v3051_v7 = vpop.eup %3050  ;;  %v1468_v23 = vmul.f32 0.5, %v4363_v6  ;;  %v1470_v15 = vmul.f32 0.5, %v4366_v29  ;;  %v1688_v22 = vadd.f32 1.0, %v3049_v32  ;;  %v1026_v13 = vadd.f32 %v978_v4, %v807_v35 }
 0x11a   : > { %v3053_v12 = vpop.eup %3052  ;;  %v1690_v45 = vadd.f32 1.0, %v3051_v7  ;;  %v1339_v14 = vsel %vm1299_vm1, %v1336_v42, %v1338_v36  ;;  %v1344_v44 = vrot.slane %v1265_v9, 2  ;;  %v1404_v17 = vadd.f32 %v1336_v42, %v1020_v25 }
 0x11b   : > { %v3055_v49 = vpop.eup %3054  ;;  %v1692_v16 = vadd.f32 1.0, %v3053_v12  ;;  %v1720_v50 = vmul.f32 %v1688_v22, %v1464_v41  ;;  %v1406_v47 = vadd.f32 %v1339_v14, %v1022_v1  ;;  %v1408_v60 = vadd.f32 %v1342_v28, %v1024_v62 }
 0x11c   : > { %v1694_v37 = vadd.f32 1.0, %v3055_v49  ;;  %v1722_v54 = vmul.f32 %v1690_v45, %v1466_v30  ;;  %v1345_v38 = vsel %vm1299_vm1, %v1342_v28, %v1344_v44  ;;  %v1448_v6 = vadd.f32 %v3616_v52, %v1404_v17 }
 0x11d   : > { %v1724_v29 = vmul.f32 %v1692_v16, %v1468_v23  ;;  %v1764_v35 = vmul.f32 %v4690_v8, %v1720_v50  ;;  %v1410_v51 = vadd.f32 %v1345_v38, %v1026_v13  ;;  %v1450_v55 = vadd.f32 %v3616_v52, %v1406_v47 }
 0x11e   : > { %v1726_v26 = vmul.f32 %v1694_v37, %v1470_v15  ;;  %v1766_v53 = vmul.f32 %v4690_v8, %v1722_v54  ;;  %v1452_v31 = vadd.f32 %v3616_v52, %v1408_v60  ;;  %v1854_v56 = vrot.slane %v3125_v0, 1 }
 0x11f   : > { %v1768_v18 = vmul.f32 %v4690_v8, %v1724_v29  ;;  %v1808_v27 = vadd.f32 %v4746_v19, %v1764_v35  ;;  %v1454_v63 = vadd.f32 %v3616_v52, %v1410_v51  ;;  %v1512_v24 = vmul.f32 %v1448_v6, %v1448_v6 }
 0x120   : > { %v1770_v61 = vmul.f32 %v4690_v8, %v1726_v26  ;;  %v1810_v43 = vadd.f32 %v4746_v19, %v1766_v53  ;;  %v1514_v48 = vmul.f32 %v1450_v55, %v1450_v55  ;;  %v1516_v34 = vmul.f32 %v1452_v31, %v1452_v31  ;;  %v3126_v26 = vld [vmem:[#allocation2 + $0x160] sm:$0xff] }
 0x121   : > { %v1812_v20 = vadd.f32 %v4746_v19, %v1768_v18  ;;  %v1888_v10 = vadd.f32 %v1852_v5, %v1808_v27  ;;  %v1518_v3 = vmul.f32 %v1454_v63, %v1454_v63  ;;  %v1544_v33 = vmul.f32 %v1512_v24, %v1448_v6 }
 0x122   : > { %v1814_v2 = vadd.f32 %v4746_v19, %v1770_v61  ;;  %v1890_v46 = vadd.f32 %v1852_v5, %v1810_v43  ;;  %v1546_v4 = vmul.f32 %v1514_v48, %v1450_v55  ;;  %v1548_v59 = vmul.f32 %v1516_v34, %v1452_v31 }
 0x123   : > { %v1892_v40 = vadd.f32 %v1854_v56, %v1812_v20  ;;  %v1957_v57 = vrot.slane %v1888_v10, 7  ;;  %v1550_v41 = vmul.f32 %v1518_v3, %v1454_v63  ;;  %v1576_v11 = vmul.f32 0.044715, %v1544_v33 }
 0x124   : > { %v1894_v21 = vadd.f32 %v1854_v56, %v1814_v2  ;;  %v1958_v52 = vrot.slane %v1890_v46, 7  ;;  %v1578_v30 = vmul.f32 0.044715, %v1546_v4  ;;  %v1580_v62 = vmul.f32 0.044715, %v1548_v59 }
 0x125   : > { %v1963_v39 = vrot.slane %v1892_v40, 7  ;;  %v1582_v32 = vmul.f32 0.044715, %v1550_v41  ;;  %v1608_v9 = vadd.f32 %v1576_v11, %v1448_v6  ;;  %v1480_v12 = vmul.f32 0.5, %v1448_v6 }
 0x126   : > { %v1959_v25 = vsel %vm1944_vm2, %v1957_v57, %v1958_v52  ;;  %v1964_v1 = vrot.slane %v1894_v21, 7  ;;  %v1610_v5 = vadd.f32 %v1578_v30, %v1450_v55  ;;  %v1612_v36 = vadd.f32 %v1580_v62, %v1452_v31  ;;  %v4747_v57 = vld [vmem:[#allocation4_spill] sm:$0xff] }
 0x127   : > { %v1614_v28 = vadd.f32 %v1582_v32, %v1454_v63  ;;  %v1640_v23 = vmul.f32 0.7978846, %v1608_v9  ;;  %v1482_v14 = vmul.f32 0.5, %v1450_v55  ;;  %v1484_v17 = vmul.f32 0.5, %v1452_v31 }
 0x128   : > { %v1965_v42 = vsel %vm1944_vm2, %v1963_v39, %v1964_v1  ;;  %v1642_v15 = vmul.f32 0.7978846, %v1610_v5  ;;  %v1644_v22 = vmul.f32 0.7978846, %v1612_v36  ;;  %v1486_v50 = vmul.f32 0.5, %v1454_v63 }
 0x129   : > { %v2011_v7 = vpack.c.bf16 %v1965_v42, %v1959_v25  ;;  %v1646_v13 = vmul.f32 0.7978846, %v1614_v28  ;;  %3056 = vtanh.f32 %v1640_v23  ;;  %v1860_v53 = vrot.slane %v3126_v26, 1 }
 0x12a   : > { %3058 = vtanh.f32 %v1642_v15  ;;  %v1862_v27 = vrot.slane %v4345_v58, 1 }
 0x12b   : > { %2288 = vmatmul.mubr.bf16.gmra.mxu0 %v2011_v7  ;;  %3060 = vtanh.f32 %v1644_v22 }
 0x12c   : > { %3062 = vtanh.f32 %v1646_v13 }
 0x136   : > { %v3057_v45 = vpop.eup %3056 }
 0x137   : > { %v3059_v44 = vpop.eup %3058  ;;  %v1704_v49 = vadd.f32 1.0, %v3057_v45 }
 0x138   : > { %v3061_v16 = vpop.eup %3060  ;;  %v1706_v47 = vadd.f32 1.0, %v3059_v44 }
 0x139   : > { %v3063_v60 = vpop.eup %3062  ;;  %v1708_v37 = vadd.f32 1.0, %v3061_v16  ;;  %v1736_v54 = vmul.f32 %v1704_v49, %v1480_v12 }
 0x13a   : > { %v1710_v38 = vadd.f32 1.0, %v3063_v60  ;;  %v1738_v29 = vmul.f32 %v1706_v47, %v1482_v14 }
 0x13b   : > { %v1740_v35 = vmul.f32 %v1708_v37, %v1484_v17  ;;  %v1780_v51 = vmul.f32 %v4690_v8, %v1736_v54 }
 0x13c   : > { %v1742_v18 = vmul.f32 %v1710_v38, %v1486_v50  ;;  %v1782_v6 = vmul.f32 %v4690_v8, %v1738_v29  ;;  %v2541_v50 = vld [vmem:[%s4573_s7] sm:$0x3] }
 0x13d   : > { %v1784_v55 = vmul.f32 %v4690_v8, %v1740_v35  ;;  %v1824_v31 = vadd.f32 %v4746_v19, %v1780_v51  ;;  %v4484_v54 = vrot.slane %v2541_v50, %v4747_v57  ;;  %v2569_v38 = vld [vmem:[%s4574_s8] sm:$0x3] }
 0x13e   : > { %v1786_v0 = vmul.f32 %v4690_v8, %v1742_v18  ;;  %v1826_v56 = vadd.f32 %v4746_v19, %v1782_v6  ;;  %v2369_v8 = vld [vmem:[%s4572_s6] sm:$0x3]  ;;  %v4493_v6 = vrot.slane %v2569_v38, %v4747_v57 }
 0x13f   : > { %v1828_v63 = vadd.f32 %v4746_v19, %v1784_v55  ;;  %v1904_v61 = vadd.f32 %v1860_v53, %v1824_v31  ;;  %v4471_v33 = vrot.slane %v2369_v8, %v4747_v57 }
 0x140   : > { %v1830_v43 = vadd.f32 %v4746_v19, %v1786_v0  ;;  %v1906_v24 = vadd.f32 %v1860_v53, %v1826_v56  ;;  %v4748_v19 = vld [vmem:[#allocation5_spill] sm:$0xff] }
 0x141   : > { %v1908_v20 = vadd.f32 %v1862_v27, %v1828_v63  ;;  %v1981_v10 = vrot.slane %v1904_v61, 7  ;;  %v4474_v4 = vrot.slane %v2369_v8, %v4748_v19  ;;  %v4490_v53 = vrot.slane %v2541_v50, %v4748_v19 }
 0x142   : > { %v1910_v48 = vadd.f32 %v1862_v27, %v1830_v43  ;;  %v1982_v2 = vrot.slane %v1906_v24, 7  ;;  %v4496_v55 = vrot.slane %v2569_v38, %v4748_v19 }
 0x143   : > { %v1987_v46 = vrot.slane %v1908_v20, 7 }
 0x144   : > { %v1983_v34 = vsel %vm1944_vm2, %v1981_v10, %v1982_v2  ;;  %v1988_v3 = vrot.slane %v1910_v48, 7 }
 0x146   : > { %v1989_v58 = vsel %vm1944_vm2, %v1987_v46, %v1988_v3 }
 0x147   : > { %v2015_v40 = vpack.c.bf16 %v1989_v58, %v1983_v34 }
 0x149   : > { %2308 = vmatmul.mubr.bf16.gmra.mxu1 %v2015_v40 }
 0x174   : > { %v2279_v21 = vpop.f32.mrf.mxu0 }
 0x175   : > { %v2381_v52 = vadd.f32 %v4471_v33, %v2279_v21 }
 0x176   : > { %v2281_v59 = vpop.f32.mrf.mxu0 }
 0x177   : > { %v2413_v41 = vmul.f32 %v2381_v52, %v2381_v52  ;;  %v2382_v39 = vadd.f32 %v4474_v4, %v2281_v59  ;;  %v2397_v60 = vmul.f32 0.5, %v2381_v52 }
 0x178   : > { %v2283_v11 = vpop.f32.mrf.mxu0 }
 0x179   : > { %v2429_v30 = vmul.f32 %v2413_v41, %v2381_v52  ;;  %v2414_v25 = vmul.f32 %v2382_v39, %v2382_v39  ;;  %v2383_v1 = vadd.f32 %v4471_v33, %v2283_v11  ;;  %v2398_v51 = vmul.f32 0.5, %v2382_v39 }
 0x17a   : > { %v2285_v62 = vpop.f32.mrf.mxu0 }
 0x17b   : > { %v2445_v32 = vmul.f32 0.044715, %v2429_v30  ;;  %v2430_v9 = vmul.f32 %v2414_v25, %v2382_v39  ;;  %v2415_v5 = vmul.f32 %v2383_v1, %v2383_v1  ;;  %v2384_v42 = vadd.f32 %v4474_v4, %v2285_v62 }
 0x17c   : > { %v2399_v56 = vmul.f32 0.5, %v2383_v1 }
 0x17d   : > { %v2461_v36 = vadd.f32 %v2445_v32, %v2381_v52  ;;  %v2446_v28 = vmul.f32 0.044715, %v2430_v9  ;;  %v2431_v7 = vmul.f32 %v2415_v5, %v2383_v1  ;;  %v2416_v23 = vmul.f32 %v2384_v42, %v2384_v42 }
 0x17e   : > { %v2400_v40 = vmul.f32 0.5, %v2384_v42 }
 0x17f   : > { %v2477_v15 = vmul.f32 0.7978846, %v2461_v36  ;;  %v2462_v22 = vadd.f32 %v2446_v28, %v2382_v39  ;;  %v2447_v13 = vmul.f32 0.044715, %v2431_v7  ;;  %v2432_v12 = vmul.f32 %v2416_v23, %v2384_v42 }
 0x181   : > { %3064 = vtanh.f32 %v2477_v15  ;;  %v2478_v45 = vmul.f32 0.7978846, %v2462_v22  ;;  %v2463_v14 = vadd.f32 %v2447_v13, %v2383_v1  ;;  %v2448_v44 = vmul.f32 0.044715, %v2432_v12 }
 0x183   : > { %3066 = vtanh.f32 %v2478_v45  ;;  %v2479_v17 = vmul.f32 0.7978846, %v2463_v14  ;;  %v2464_v49 = vadd.f32 %v2448_v44, %v2384_v42 }
 0x185   : > { %3068 = vtanh.f32 %v2479_v17  ;;  %v2480_v16 = vmul.f32 0.7978846, %v2464_v49 }
 0x187   : > { %3070 = vtanh.f32 %v2480_v16 }
 0x18e   : > { %v3065_v47 = vpop.eup %3064 }
 0x18f   : > { %v2509_v37 = vadd.f32 1.0, %v3065_v47 }
 0x190   : > { %v3067_v29 = vpop.eup %3066 }
 0x191   : > { %v2525_v35 = vmul.f32 %v2509_v37, %v2397_v60  ;;  %v2510_v26 = vadd.f32 1.0, %v3067_v29 }
 0x192   : > { %v3069_v18 = vpop.eup %3068 }
 0x193   : > { %v2553_v31 = vmul.f32 %v4484_v54, %v2525_v35  ;;  %v2526_v0 = vmul.f32 %v2510_v26, %v2398_v51  ;;  %v2511_v63 = vadd.f32 1.0, %v3069_v18 }
 0x194   : > { %v2299_v27 = vpop.f32.mrf.mxu1  ;;  %v3071_v43 = vpop.eup %3070 }
 0x195   : > { %v2389_v61 = vadd.f32 %v4471_v33, %v2299_v27  ;;  %v2554_v24 = vmul.f32 %v4490_v53, %v2526_v0  ;;  %v2527_v10 = vmul.f32 %v2511_v63, %v2399_v56  ;;  %v2512_v46 = vadd.f32 1.0, %v3071_v43 }
 0x196   : > { %v2301_v20 = vpop.f32.mrf.mxu1  ;;  %v2581_v34 = vadd.f32 %v4493_v6, %v2553_v31 }
 0x197   : > { %v2421_v48 = vmul.f32 %v2389_v61, %v2389_v61  ;;  %v2390_v2 = vadd.f32 %v4474_v4, %v2301_v20  ;;  %v2582_v3 = vadd.f32 %v4496_v55, %v2554_v24  ;;  %v2555_v52 = vmul.f32 %v4484_v54, %v2527_v10 }
 0x198   : > { %v2303_v58 = vpop.f32.mrf.mxu1  ;;  %v2528_v59 = vmul.f32 %v2512_v46, %v2400_v40  ;;  %v2405_v16 = vmul.f32 0.5, %v2389_v61 }
 0x199   : > { %v2437_v8 = vmul.f32 %v2421_v48, %v2389_v61  ;;  %v2422_v57 = vmul.f32 %v2390_v2, %v2390_v2  ;;  %v2391_v19 = vadd.f32 %v4471_v33, %v2303_v58  ;;  %v2887_v21 = vpack.c.bf16 %v2582_v3, %v2581_v34 }
 0x19a   : > { %v2305_v41 = vpop.f32.mrf.mxu1  ;;  %v2556_v25 = vmul.f32 %v4490_v53, %v2528_v59  ;;  %v2583_v5 = vadd.f32 %v4493_v6, %v2555_v52  ;;  %v2406_v37 = vmul.f32 0.5, %v2390_v2 }
 0x19b   : > { %v2453_v39 = vmul.f32 0.044715, %v2437_v8  ;;  %v2438_v11 = vmul.f32 %v2422_v57, %v2390_v2  ;;  %v2423_v30 = vmul.f32 %v2391_v19, %v2391_v19  ;;  %2661 = vst [vmem:[%s4509_s19] sm:$0xff] %v2887_v21  ;;  %v2392_v1 = vadd.f32 %v4474_v4, %v2305_v41 }
 0x19c   : > { %v2584_v42 = vadd.f32 %v4496_v55, %v2556_v25  ;;  %v2407_v26 = vmul.f32 0.5, %v2391_v19 }
 0x19d   : > { %v2469_v62 = vadd.f32 %v2453_v39, %v2389_v61  ;;  %v2454_v32 = vmul.f32 0.044715, %v2438_v11  ;;  %v2439_v9 = vmul.f32 %v2423_v30, %v2391_v19  ;;  %v2424_v36 = vmul.f32 %v2392_v1, %v2392_v1 }
 0x19e   : > { %v2888_v15 = vpack.c.bf16 %v2584_v42, %v2583_v5  ;;  %v2408_v56 = vmul.f32 0.5, %v2392_v1 }
 0x19f   : > { %v2485_v28 = vmul.f32 0.7978846, %v2469_v62  ;;  %v2470_v7 = vadd.f32 %v2454_v32, %v2390_v2  ;;  %v2455_v23 = vmul.f32 0.044715, %v2439_v9  ;;  %v2440_v22 = vmul.f32 %v2424_v36, %v2392_v1 }
 0x1a0   : > { %2662 = vst [vmem:[%s4509_s19 + $0x8] sm:$0xff] %v2888_v15 }
 0x1a1   : > { %3072 = vtanh.f32 %v2485_v28  ;;  %v2486_v13 = vmul.f32 0.7978846, %v2470_v7  ;;  %v2471_v12 = vadd.f32 %v2455_v23, %v2391_v19  ;;  %v2456_v45 = vmul.f32 0.044715, %v2440_v22 }
 0x1a3   : > { %3074 = vtanh.f32 %v2486_v13  ;;  %v2487_v14 = vmul.f32 0.7978846, %v2471_v12  ;;  %v2472_v44 = vadd.f32 %v2456_v45, %v2392_v1 }
 0x1a5   : > { %3076 = vtanh.f32 %v2487_v14  ;;  %v2488_v17 = vmul.f32 0.7978846, %v2472_v44 }
 0x1a7   : > { %3078 = vtanh.f32 %v2488_v17 }
 0x1ae   : > { %v3073_v49 = vpop.eup %3072 }
 0x1af   : > { %v2517_v50 = vadd.f32 1.0, %v3073_v49 }
 0x1b0   : > { %v3075_v47 = vpop.eup %3074 }
 0x1b1   : > { %v2533_v60 = vmul.f32 %v2517_v50, %v2405_v16  ;;  %v2518_v38 = vadd.f32 1.0, %v3075_v47 }
 0x1b2   : > { %v3077_v29 = vpop.eup %3076 }
 0x1b3   : > { %v2561_v35 = vmul.f32 %v4484_v54, %v2533_v60  ;;  %v2534_v51 = vmul.f32 %v2518_v38, %v2406_v37  ;;  %v2519_v18 = vadd.f32 1.0, %v3077_v29 }
 0x1b4   : > { %v3079_v31 = vpop.eup %3078 }
 0x1b5   : > { %v2562_v27 = vmul.f32 %v4490_v53, %v2534_v51  ;;  %v2535_v0 = vmul.f32 %v2519_v18, %v2407_v26  ;;  %v2520_v63 = vadd.f32 1.0, %v3079_v31  ;;  %v2589_v61 = vadd.f32 %v4493_v6, %v2561_v35 }
 0x1b7   : > { %v2590_v43 = vadd.f32 %v4496_v55, %v2562_v27  ;;  %v2563_v24 = vmul.f32 %v4484_v54, %v2535_v0  ;;  %v2536_v20 = vmul.f32 %v2520_v63, %v2408_v56 }
 0x1b9   : > { %v2891_v10 = vpack.c.bf16 %v2590_v43, %v2589_v61  ;;  %v2564_v48 = vmul.f32 %v4490_v53, %v2536_v20  ;;  %v2591_v2 = vadd.f32 %v4493_v6, %v2563_v24 }
 0x1bb   : > { %2665 = vst [vmem:[%s4509_s19 + $0x20] sm:$0xff] %v2891_v10  ;;  %v2592_v46 = vadd.f32 %v4496_v55, %v2564_v48 }
 0x1bd   : > { %v2892_v34 = vpack.c.bf16 %v2592_v46, %v2591_v2 }
 0x1bf   : > { %2666 = vst [vmem:[%s4509_s19 + $0x28] sm:$0xff] %v2892_v34 }
 0x1eb   : > { %v2289_v3 = vpop.f32.mrf.mxu0 }
 0x1ec   : > { %v2385_v58 = vadd.f32 %v4471_v33, %v2289_v3 }
 0x1ed   : > { %v2291_v40 = vpop.f32.mrf.mxu0 }
 0x1ee   : > { %v2417_v8 = vmul.f32 %v2385_v58, %v2385_v58  ;;  %v2386_v57 = vadd.f32 %v4474_v4, %v2291_v40  ;;  %v2401_v14 = vmul.f32 0.5, %v2385_v58 }
 0x1ef   : > { %v2293_v19 = vpop.f32.mrf.mxu0 }
 0x1f0   : > { %v2433_v21 = vmul.f32 %v2417_v8, %v2385_v58  ;;  %v2418_v52 = vmul.f32 %v2386_v57, %v2386_v57  ;;  %v2387_v59 = vadd.f32 %v4471_v33, %v2293_v19  ;;  %v2402_v16 = vmul.f32 0.5, %v2386_v57 }
 0x1f1   : > { %v2295_v41 = vpop.f32.mrf.mxu0 }
 0x1f2   : > { %v2449_v39 = vmul.f32 0.044715, %v2433_v21  ;;  %v2434_v11 = vmul.f32 %v2418_v52, %v2386_v57  ;;  %v2419_v30 = vmul.f32 %v2387_v59, %v2387_v59  ;;  %v2388_v25 = vadd.f32 %v4474_v4, %v2295_v41 }
 0x1f3   : > { %v2403_v38 = vmul.f32 0.5, %v2387_v59 }
 0x1f4   : > { %v2465_v1 = vadd.f32 %v2449_v39, %v2385_v58  ;;  %v2450_v62 = vmul.f32 0.044715, %v2434_v11  ;;  %v2435_v32 = vmul.f32 %v2419_v30, %v2387_v59  ;;  %v2420_v9 = vmul.f32 %v2388_v25, %v2388_v25 }
 0x1f5   : > { %v2404_v0 = vmul.f32 0.5, %v2388_v25 }
 0x1f6   : > { %v2481_v5 = vmul.f32 0.7978846, %v2465_v1  ;;  %v2466_v42 = vadd.f32 %v2450_v62, %v2386_v57  ;;  %v2451_v36 = vmul.f32 0.044715, %v2435_v32  ;;  %v2436_v28 = vmul.f32 %v2420_v9, %v2388_v25 }
 0x1f8   : > { %3080 = vtanh.f32 %v2481_v5  ;;  %v2482_v7 = vmul.f32 0.7978846, %v2466_v42  ;;  %v2467_v23 = vadd.f32 %v2451_v36, %v2387_v59  ;;  %v2452_v15 = vmul.f32 0.044715, %v2436_v28 }
 0x1fa   : > { %3082 = vtanh.f32 %v2482_v7  ;;  %v2483_v22 = vmul.f32 0.7978846, %v2467_v23  ;;  %v2468_v13 = vadd.f32 %v2452_v15, %v2388_v25 }
 0x1fc   : > { %3084 = vtanh.f32 %v2483_v22  ;;  %v2484_v12 = vmul.f32 0.7978846, %v2468_v13 }
 0x1fe   : > { %3086 = vtanh.f32 %v2484_v12 }
 0x205   : > { %v3081_v45 = vpop.eup %3080 }
 0x206   : > { %v2513_v44 = vadd.f32 1.0, %v3081_v45 }
 0x207   : > { %v3083_v17 = vpop.eup %3082 }
 0x208   : > { %v2529_v49 = vmul.f32 %v2513_v44, %v2401_v14  ;;  %v2514_v50 = vadd.f32 1.0, %v3083_v17 }
 0x209   : > { %v3085_v47 = vpop.eup %3084  ;;  %v2309_v35 = vpop.f32.mrf.mxu1 }
 0x20a   : > { %v2557_v60 = vmul.f32 %v4484_v54, %v2529_v49  ;;  %v2530_v37 = vmul.f32 %v2514_v50, %v2402_v16  ;;  %v2515_v29 = vadd.f32 1.0, %v3085_v47  ;;  %v2393_v26 = vadd.f32 %v4471_v33, %v2309_v35 }
 0x20b   : > { %v3087_v51 = vpop.eup %3086  ;;  %v2311_v27 = vpop.f32.mrf.mxu1 }
 0x20c   : > { %v2558_v18 = vmul.f32 %v4490_v53, %v2530_v37  ;;  %v2531_v31 = vmul.f32 %v2515_v29, %v2403_v38  ;;  %v2516_v56 = vadd.f32 1.0, %v3087_v51  ;;  %v2585_v63 = vadd.f32 %v4493_v6, %v2557_v60 }
 0x20d   : > { %v2425_v61 = vmul.f32 %v2393_v26, %v2393_v26  ;;  %v2394_v24 = vadd.f32 %v4474_v4, %v2311_v27  ;;  %v2313_v10 = vpop.f32.mrf.mxu1  ;;  %v2409_v23 = vmul.f32 0.5, %v2393_v26 }
 0x20e   : > { %v2586_v43 = vadd.f32 %v4496_v55, %v2558_v18  ;;  %v2559_v20 = vmul.f32 %v4484_v54, %v2531_v31  ;;  %v2532_v48 = vmul.f32 %v2516_v56, %v2404_v0  ;;  %v2395_v3 = vadd.f32 %v4471_v33, %v2313_v10 }
 0x20f   : > { %v2441_v2 = vmul.f32 %v2425_v61, %v2393_v26  ;;  %v2426_v34 = vmul.f32 %v2394_v24, %v2394_v24  ;;  %v2315_v40 = vpop.f32.mrf.mxu1  ;;  %v2410_v12 = vmul.f32 0.5, %v2394_v24 }
 0x210   : > { %v2889_v46 = vpack.c.bf16 %v2586_v43, %v2585_v63  ;;  %v2560_v58 = vmul.f32 %v4490_v53, %v2532_v48  ;;  %v2396_v19 = vadd.f32 %v4474_v4, %v2315_v40  ;;  %v2587_v21 = vadd.f32 %v4493_v6, %v2559_v20 }
 0x211   : > { %v2457_v8 = vmul.f32 0.044715, %v2441_v2  ;;  %v2442_v57 = vmul.f32 %v2426_v34, %v2394_v24  ;;  %v2427_v52 = vmul.f32 %v2395_v3, %v2395_v3  ;;  %v2411_v16 = vmul.f32 0.5, %v2395_v3 }
 0x212   : > { %2663 = vst [vmem:[%s4509_s19 + $0x10] sm:$0xff] %v2889_v46  ;;  %v2588_v59 = vadd.f32 %v4496_v55, %v2560_v58  ;;  %v2428_v11 = vmul.f32 %v2396_v19, %v2396_v19  ;;  %v2412_v60 = vmul.f32 0.5, %v2396_v19 }
 0x213   : > { %v2473_v41 = vadd.f32 %v2457_v8, %v2393_v26  ;;  %v2458_v39 = vmul.f32 0.044715, %v2442_v57  ;;  %v2443_v30 = vmul.f32 %v2427_v52, %v2395_v3 }
 0x214   : > { %v2890_v25 = vpack.c.bf16 %v2588_v59, %v2587_v21  ;;  %v2444_v62 = vmul.f32 %v2428_v11, %v2396_v19 }
 0x215   : > { %v2489_v33 = vmul.f32 0.7978846, %v2473_v41  ;;  %v2474_v1 = vadd.f32 %v2458_v39, %v2394_v24  ;;  %v2459_v32 = vmul.f32 0.044715, %v2443_v30 }
 0x216   : > { %2664 = vst [vmem:[%s4509_s19 + $0x18] sm:$0xff] %v2890_v25  ;;  %v2460_v5 = vmul.f32 0.044715, %v2444_v62 }
 0x217   : > { %3088 = vtanh.f32 %v2489_v33  ;;  %v2490_v9 = vmul.f32 0.7978846, %v2474_v1  ;;  %v2475_v42 = vadd.f32 %v2459_v32, %v2395_v3 }
 0x218   : > { %v2476_v4 = vadd.f32 %v2460_v5, %v2396_v19 }
 0x219   : > { %3090 = vtanh.f32 %v2490_v9  ;;  %v2491_v36 = vmul.f32 0.7978846, %v2475_v42 }
 0x21a   : > { %v2492_v28 = vmul.f32 0.7978846, %v2476_v4 }
 0x21b   : > { %3092 = vtanh.f32 %v2491_v36 }
 0x21c   : > { %3094 = vtanh.f32 %v2492_v28 }
 0x224   : > { %v3089_v7 = vpop.eup %3088 }
 0x225   : > { %v2521_v15 = vadd.f32 1.0, %v3089_v7 }
 0x226   : > { %v3091_v22 = vpop.eup %3090 }
 0x227   : > { %v2537_v13 = vmul.f32 %v2521_v15, %v2409_v23  ;;  %v2522_v45 = vadd.f32 1.0, %v3091_v22 }
 0x228   : > { %v3093_v14 = vpop.eup %3092 }
 0x229   : > { %v2565_v44 = vmul.f32 %v4484_v54, %v2537_v13  ;;  %v2538_v17 = vmul.f32 %v2522_v45, %v2410_v12  ;;  %v3095_v49 = vpop.eup %3094  ;;  %v2523_v50 = vadd.f32 1.0, %v3093_v14 }
 0x22a   : > { %v2524_v37 = vadd.f32 1.0, %v3095_v49 }
 0x22b   : > { %v2566_v47 = vmul.f32 %v4490_v53, %v2538_v17  ;;  %v2539_v38 = vmul.f32 %v2523_v50, %v2411_v16  ;;  %v2593_v29 = vadd.f32 %v4493_v6, %v2565_v44 }
 0x22c   : > { %v2540_v51 = vmul.f32 %v2524_v37, %v2412_v60 }
 0x22d   : > { %v2594_v35 = vadd.f32 %v4496_v55, %v2566_v47  ;;  %v2567_v26 = vmul.f32 %v4484_v54, %v2539_v38 }
 0x22e   : > { %v2568_v31 = vmul.f32 %v4490_v53, %v2540_v51 }
 0x22f   : > { %v2893_v18 = vpack.c.bf16 %v2594_v35, %v2593_v29  ;;  %v2595_v27 = vadd.f32 %v4493_v6, %v2567_v26 }
 0x230   : > { %v2596_v0 = vadd.f32 %v4496_v55, %v2568_v31 }
 0x231   : > { %2667 = vst [vmem:[%s4509_s19 + $0x30] sm:$0xff] %v2893_v18 }
 0x232   : > { %v2894_v56 = vpack.c.bf16 %v2596_v0, %v2595_v27 }
 0x234   : > { %2668 = vst [vmem:[%s4509_s19 + $0x38] sm:$0xff] %v2894_v56 }
 0x235 PF: > { %s19_s11 = sadd.s32 1, %s3149_s11   ;;  %s4749_s30 = smov %s3145_s10 }
 0x236   : > { %p16_p5 = scmp.ge.s32.totalorder %s19_s11, 4   ;;  %s4750_s10 = smov %s4752_s12 }
 0x238   :  { %18 = sbr.rel (!%p16_p5) target bundleno = 2 (0x2), region = 135 }

</bundles_post_ra>
